<compile_context>
chip_gen: v7x
topology: tpu7x:2x2x1
jax: 0.10.0
libtpu: 0.0.40
codegen_flags: <defaults>
</compile_context>

<pallas_src>
import jax
import jax.numpy as jnp
from jax import lax
from jax.experimental import pallas as pl
from jax.experimental.pallas import tpu as pltpu

BN_EPS = 1e-5
KH = KW = 4
STRIDE = 2
PAD = 1


# ---------------------------------------------------------------------------
# Fused kernel factory
# ---------------------------------------------------------------------------
def _make_kernel(n, h_in, w_in):
    """Parity-buffer layout for the inputs of layers 2/3:
         P[s, t, q, p*n + b, c] = padded_act[2*q + s, 2*p + t, b, c]
    (padded_act carries the conv's 1-pixel zero ring).  The 16 taps of a
    4x4/stride-2 conv at output row h are then contiguous, tile-aligned slices
         tap(ki, kj) = P[ki%2, kj%2, h + ki//2, (kj//2)*n : (kj//2 + wo)*n, :]
    """
    ho1, wo1 = h_in // 2, w_in // 2
    ho2, wo2 = h_in // 4, w_in // 4
    ho3, wo3 = h_in // 8, w_in // 8

    def kernel(lhs1_ref, w1_ref, g1_ref, b1_ref,
               w2_ref, g2_ref, b2_ref,
               w3_ref, g3_ref, b3_ref,
               o_ref, p2_ref, p3_ref):

        def bn_scale_shift(sum_vec, ssq_vec, m, g_ref, b_ref):
            # Folded BN epilogue: y = x * scale + shift.
            inv_m = 1.0 / m
            mean = sum_vec * inv_m
            var = jnp.maximum(ssq_vec * inv_m - mean * mean, 0.0)
            scale = g_ref[...] * lax.rsqrt(var + BN_EPS)
            shift = b_ref[...] - mean * scale
            return scale, shift

        def zero_halo(dst, hi, wi):
            # Zero only the padding ring of each parity plane; the interior is
            # fully overwritten by the scatter.
            hq, wq = hi // 2 + 1, wi // 2 + 1
            c = dst.shape[-1]
            zrow = jnp.zeros((wq * n, c), dst.dtype)
            zcol = jnp.zeros((hq, n, c), dst.dtype)
            for s in range(2):
                q_h = 0 if s == 0 else hq - 1
                dst[s, 0, q_h, :, :] = zrow
                dst[s, 1, q_h, :, :] = zrow
            for t in range(2):
                p_h = 0 if t == 0 else wq - 1
                dst[0, t, :, p_h * n:(p_h + 1) * n, :] = zcol
                dst[1, t, :, p_h * n:(p_h + 1) * n, :] = zcol

        def scatter_row(dst, h, y, wo):
            # Write one pre-BN output row (rows ordered (ow, batch)) into the
            # consumer's parity-buffer interior.  The even/odd ow split is a
            # vreg-granular select (n == 8 == the f32 sublane tile).
            c = y.shape[-1]
            half = wo // 2
            yr = y.reshape(half, 2, n, c)
            y_even = yr[:, 0].reshape(half * n, c)   # ow = 0, 2, ...
            y_odd = yr[:, 1].reshape(half * n, c)    # ow = 1, 3, ...
            s, q = (h + 1) % 2, (h + 1) // 2
            dst[s, 1, q, 0:half * n, :] = y_even
            dst[s, 0, q, n:(half + 1) * n, :] = y_odd

        def normalize_parity(dst, hi, wi, scale, shift):
            # In-place x*scale + shift on the interior (non-halo) region of
            # every parity plane; the zero halo is left untouched.
            nq, npp = hi // 2, wi // 2
            for s in range(2):
                q0 = 1 - s
                for t in range(2):
                    p0 = 1 - t
                    blk = dst[s, t, q0:q0 + nq, p0 * n:(p0 + npp) * n, :]
                    dst[s, t, q0:q0 + nq, p0 * n:(p0 + npp) * n, :] = (
                        blk * scale + shift)

        def conv_row_merged(p_ref, w_ref, h, wo):
            # One output row of a 4x4/stride-2 conv from a parity buffer.
            # Tap pairs (kj, kj+2) are merged along K -> 8 dots of K = 2*ci;
            # the f32 accumulator (wo*n, co) stays register-resident.
            rows = wo * n
            co = w_ref.shape[-1]
            acc = jnp.zeros((rows, co), jnp.float32)
            for ki in range(KH):
                s, hq = ki % 2, h + ki // 2
                for t in range(2):
                    a0 = p_ref[s, t, hq, 0:rows, :].astype(jnp.bfloat16)
                    a1 = p_ref[s, t, hq, n:rows + n, :].astype(jnp.bfloat16)
                    a = jnp.concatenate([a0, a1], axis=-1)        # (rows, 2*ci)
                    acc = acc + jnp.dot(a, w_ref[ki, t],
                                        preferred_element_type=jnp.float32)
            return acc

        zero_halo(p2_ref, ho1, wo1)
        zero_halo(p3_ref, ho2, wo2)

        # ---- layer 1: im2col matmul (K padded to 384) -> ReLU -> BN --------
        co1 = w1_ref.shape[-1]
        r1 = wo1 * n
        sum1 = jnp.zeros((1, co1), jnp.float32)
        ssq1 = jnp.zeros((1, co1), jnp.float32)
        for h in range(ho1):
            acc = jnp.dot(lhs1_ref[h * r1:(h + 1) * r1, :], w1_ref[...],
                          preferred_element_type=jnp.float32)
            acc = jnp.maximum(acc, 0.0)
            sum1 = sum1 + jnp.sum(acc, axis=0, keepdims=True)
            ssq1 = ssq1 + jnp.sum(acc * acc, axis=0, keepdims=True)
            scatter_row(p2_ref, h, acc, wo1)
        scale1, shift1 = bn_scale_shift(sum1, ssq1, ho1 * wo1 * n, g1_ref, b1_ref)
        normalize_parity(p2_ref, ho1, wo1, scale1, shift1)

        # ---- layer 2: conv -> ReLU -> BN -----------------------------------
        co2 = w2_ref.shape[-1]
        sum2 = jnp.zeros((1, co2), jnp.float32)
        ssq2 = jnp.zeros((1, co2), jnp.float32)
        for h in range(ho2):
            acc = conv_row_merged(p2_ref, w2_ref, h, wo2)
            acc = jnp.maximum(acc, 0.0)
            sum2 = sum2 + jnp.sum(acc, axis=0, keepdims=True)
            ssq2 = ssq2 + jnp.sum(acc * acc, axis=0, keepdims=True)
            scatter_row(p3_ref, h, acc, wo2)
        scale2, shift2 = bn_scale_shift(sum2, ssq2, ho2 * wo2 * n, g2_ref, b2_ref)
        normalize_parity(p3_ref, ho2, wo2, scale2, shift2)

        # ---- layer 3: conv -> BN (no ReLU) ---------------------------------
        co3 = w3_ref.shape[-1]
        r3 = wo3 * n
        sum3 = jnp.zeros((1, co3), jnp.float32)
        ssq3 = jnp.zeros((1, co3), jnp.float32)
        for h in range(ho3):
            acc = conv_row_merged(p3_ref, w3_ref, h, wo3)
            sum3 = sum3 + jnp.sum(acc, axis=0, keepdims=True)
            ssq3 = ssq3 + jnp.sum(acc * acc, axis=0, keepdims=True)
            o_ref[h * r3:(h + 1) * r3, :] = acc
        scale3, shift3 = bn_scale_shift(sum3, ssq3, ho3 * wo3 * n, g3_ref, b3_ref)
        o_ref[...] = o_ref[...] * scale3 + shift3

    return kernel


# ---------------------------------------------------------------------------
# JAX glue (cheap one-time layout prep on small arrays)
# ---------------------------------------------------------------------------
def _im2col_l1(x, k1p):
    # (N, 22, H, W) -> (Ho1*Wo1*N, k1p) bf16, rows ordered (oh, ow, n),
    # K ordered (ki, kj, ci), zero-padded to k1p columns.
    N, C, H, W = x.shape
    ho, wo = H // 2, W // 2
    xn = jnp.transpose(x, (0, 2, 3, 1))                           # (N,H,W,C)
    xp = jnp.pad(xn, ((0, 0), (PAD, PAD), (PAD, PAD), (0, 0)))
    taps = [xp[:, ki:ki + H:2, kj:kj + W:2, :]
            for ki in range(KH) for kj in range(KW)]              # (N,ho,wo,C)
    lhs = jnp.concatenate(taps, axis=-1)                          # (N,ho,wo,16C)
    lhs = jnp.transpose(lhs, (1, 2, 0, 3)).reshape(ho * wo * N, KH * KW * C)
    lhs = jnp.pad(lhs, ((0, 0), (0, k1p - KH * KW * C)))
    return lhs.astype(jnp.bfloat16)


def _prep_w1(w, k1p):
    # torch (CO_padded, CI, 4, 4) -> (k1p, CO_padded) bf16, rows (ki, kj, ci).
    co, ci, kh, kw = w.shape
    wt = jnp.transpose(w, (2, 3, 1, 0)).reshape(kh * kw * ci, co)
    wt = jnp.pad(wt, ((0, k1p - kh * kw * ci), (0, 0)))
    return wt.astype(jnp.bfloat16)


def _prep_w_pair(w):
    # torch (CO, CI, 4, 4) -> tap-pair stacked (4, 2, 2*CI, CO) so each MXU dot
    # has K = 2*CI = 256 (full systolic depth on v6e/v7x).
    wt = jnp.transpose(w, (2, 3, 1, 0))                           # (kh,kw,ci,co)
    pairs = jnp.stack(
        [jnp.concatenate([wt[:, t], wt[:, t + 2]], axis=1) for t in range(2)],
        axis=1)                                                   # (kh,2,2ci,co)
    return pairs.astype(jnp.bfloat16)


def drawer_image_encoder_forward(x, params):
    n, c_in, h_in, w_in = x.shape
    assert c_in == 22 and n % 8 == 0 and h_in % 8 == 0 and w_in % 8 == 0

    # Pad layer-1 output channels (64) to 128 so intermediates are lane-dense.
    # Padded channels are exactly zero and w2's matching input rows are zero,
    # so the result is unchanged.
    co1 = params["w1"].shape[0]
    co1p = ((co1 + 127) // 128) * 128
    pad1 = co1p - co1
    w1 = jnp.pad(params["w1"], ((0, pad1), (0, 0), (0, 0), (0, 0)))
    g1 = jnp.pad(params["g1"], (0, pad1)).reshape(1, -1).astype(jnp.float32)
    b1 = jnp.pad(params["b1"], (0, pad1)).reshape(1, -1).astype(jnp.float32)
    w2 = jnp.pad(params["w2"], ((0, 0), (0, pad1), (0, 0), (0, 0)))
    g2 = params["g2"].reshape(1, -1).astype(jnp.float32)
    b2 = params["b2"].reshape(1, -1).astype(jnp.float32)
    w3 = params["w3"]
    g3 = params["g3"].reshape(1, -1).astype(jnp.float32)
    b3 = params["b3"].reshape(1, -1).astype(jnp.float32)
    co2 = w2.shape[0]
    feat = w3.shape[0]

    k1p = ((KH * KW * c_in + 127) // 128) * 128
    lhs1 = _im2col_l1(x, k1p)
    w1t = _prep_w1(w1, k1p)
    w2t = _prep_w_pair(w2)
    w3t = _prep_w_pair(w3)

    ho1, wo1 = h_in // 2, w_in // 2
    ho2, wo2 = h_in // 4, w_in // 4
    ho3, wo3 = h_in // 8, w_in // 8
    m1, m2, m3 = ho1 * wo1 * n, ho2 * wo2 * n, ho3 * wo3 * n

    flops = 2 * (m1 * k1p * co1p + m2 * KH * KW * co1p * co2
                 + m3 * KH * KW * co2 * feat)
    in_bytes = ((lhs1.size + w1t.size + w2t.size + w3t.size) * 2
                + (g1.size + b1.size + g2.size + b2.size + g3.size + b3.size) * 4)
    out_bytes = m3 * feat * 4
    p2_bytes = 2 * 2 * (ho2 + 1) * ((wo2 + 1) * n) * co1p * 4
    p3_bytes = 2 * 2 * (ho3 + 1) * ((wo3 + 1) * n) * co2 * 4
    vmem_need = in_bytes + out_bytes + p2_bytes + p3_bytes
    vmem_limit = int(min(max(2 * vmem_need + (4 << 20), 16 << 20), 48 << 20))

    out2d = pl.pallas_call(
        _make_kernel(n, h_in, w_in),
        out_shape=jax.ShapeDtypeStruct((m3, feat), jnp.float32),
        in_specs=[pl.BlockSpec(memory_space=pltpu.MemorySpace.VMEM)] * 10,
        out_specs=pl.BlockSpec(memory_space=pltpu.MemorySpace.VMEM),
        scratch_shapes=[
            pltpu.VMEM((2, 2, ho2 + 1, (wo2 + 1) * n, co1p), jnp.float32),
            pltpu.VMEM((2, 2, ho3 + 1, (wo3 + 1) * n, co2), jnp.float32),
        ],
        compiler_params=pltpu.CompilerParams(vmem_limit_bytes=vmem_limit),
        cost_estimate=pl.CostEstimate(flops=int(flops), transcendentals=0,
                                      bytes_accessed=int(in_bytes + out_bytes)),
    )(lhs1, w1t, g1, b1, w2t, g2, b2, w3t, g3, b3)

    # Kernel rows are ordered (oh, ow, n); module returns
    # x.permute(0, 2, 3, 1).view(N, H'*W', C)  (rows (n, h, w), channels last).
    out = out2d.reshape(ho3, wo3, n, feat)
    return jnp.transpose(out, (2, 0, 1, 3)).reshape(n, ho3 * wo3, feat)


# ---------------------------------------------------------------------------
# Deterministic parameter init (shapes per module __init__)
# ---------------------------------------------------------------------------
def init_params(key, image_feat_dim=128):
    ks = jax.random.split(key, 9)

    def conv_w(k, co, ci, kh, kw):
        fan_in = ci * kh * kw
        return (jax.random.normal(k, (co, ci, kh, kw), jnp.float32)
                * (2.0 / fan_in) ** 0.5)

    return {
        "w1": conv_w(ks[0], 64, 22, 4, 4),
        "g1": 1.0 + 0.1 * jax.random.normal(ks[1], (64,), jnp.float32),
        "b1": 0.1 * jax.random.normal(ks[2], (64,), jnp.float32),
        "w2": conv_w(ks[3], 128, 64, 4, 4),
        "g2": 1.0 + 0.1 * jax.random.normal(ks[4], (128,), jnp.float32),
        "b2": 0.1 * jax.random.normal(ks[5], (128,), jnp.float32),
        "w3": conv_w(ks[6], image_feat_dim, 128, 4, 4),
        "g3": 1.0 + 0.1 * jax.random.normal(ks[7], (image_feat_dim,), jnp.float32),
        "b3": 0.1 * jax.random.normal(ks[8], (image_feat_dim,), jnp.float32),
    }


# ---------------------------------------------------------------------------
# Pure-JAX reference (lax.conv).  conv_dtype=bf16 matches the kernel's MXU
# precision (bf16 multiplicands, f32 accumulation); conv_dtype=f32 is the full
# f32 module semantics used for a loose sanity check.
# ---------------------------------------------------------------------------
def _ref_forward(x, params, conv_dtype=jnp.bfloat16):
    def conv(h, w):
        return lax.conv_general_dilated(
            h.astype(conv_dtype), w.astype(conv_dtype),
            window_strides=(STRIDE, STRIDE), padding=((PAD, PAD), (PAD, PAD)),
            dimension_numbers=("NCHW", "OIHW", "NCHW"),
            preferred_element_type=jnp.float32,
            precision=lax.Precision.HIGHEST)

    def bn(h, g, b):
        mean = h.mean(axis=(0, 2, 3), keepdims=True)
        var = ((h - mean) ** 2).mean(axis=(0, 2, 3), keepdims=True)
        return ((h - mean) * lax.rsqrt(var + BN_EPS)
                * g.reshape(1, -1, 1, 1) + b.reshape(1, -1, 1, 1))

    h = bn(jnp.maximum(conv(x, params["w1"]), 0.0), params["g1"], params["b1"])
    h = bn(jnp.maximum(conv(h, params["w2"]), 0.0), params["g2"], params["b2"])
    h = bn(conv(h, params["w3"]), params["g3"], params["b3"])
    n, c, hh, ww = h.shape
    return jnp.transpose(h, (0, 2, 3, 1)).reshape(n, hh * ww, c)


if __name__ == "__main__":
    key = jax.random.PRNGKey(0)
    k_x, k_p = jax.random.split(key)

    N, C_IN, H, W = 8, 22, 16, 16      # Conv2d(22, ...) => 22 input channels
    IMAGE_FEAT_DIM = 128               # cfg.image_feat_dim

    x = jax.random.normal(k_x, (N, C_IN, H, W), jnp.float32)
    params = init_params(k_p, IMAGE_FEAT_DIM)

    fwd = jax.jit(drawer_image_encoder_forward)
    out = jax.block_until_ready(fwd(x, params))
    assert out.shape == (N, (H // 8) * (W // 8), IMAGE_FEAT_DIM), out.shape

    # Tight check vs. a reference using the same bf16-input / f32-accumulate
    # convolutions as the kernel's MXU path.
    ref = jax.block_until_ready(_ref_forward(x, params, jnp.bfloat16))
    err = float(jnp.max(jnp.abs(out - ref)))
    assert jnp.allclose(out, ref, atol=2e-3, rtol=2e-3), err

    # Loose sanity check vs. the full-f32 module semantics.
    ref32 = jax.block_until_ready(_ref_forward(x, params, jnp.float32))
    assert float(jnp.max(jnp.abs(out - ref32))) < 0.15

    print("KERNEL_OK")
</pallas_src>

<mosaic_0001>
module attributes {stable_mosaic.version = 11 : i64} {
  func.func @kernel(%arg0: memref<512x384xbf16, #tpu.memory_space<vmem>>, %arg1: memref<384x128xbf16, #tpu.memory_space<vmem>>, %arg2: memref<1x128xf32, #tpu.memory_space<vmem>>, %arg3: memref<1x128xf32, #tpu.memory_space<vmem>>, %arg4: memref<4x2x256x128xbf16, #tpu.memory_space<vmem>>, %arg5: memref<1x128xf32, #tpu.memory_space<vmem>>, %arg6: memref<1x128xf32, #tpu.memory_space<vmem>>, %arg7: memref<4x2x256x128xbf16, #tpu.memory_space<vmem>>, %arg8: memref<1x128xf32, #tpu.memory_space<vmem>>, %arg9: memref<1x128xf32, #tpu.memory_space<vmem>>, %arg10: memref<32x128xf32, #tpu.memory_space<vmem>>, %arg11: memref<2x2x5x40x128xf32, #tpu.memory_space<vmem>>, %arg12: memref<2x2x3x24x128xf32, #tpu.memory_space<vmem>>) attributes {dimension_semantics = [], scalar_prefetch = 0 : i64, scratch_operands = 2 : i64, tpu.core_type = #tpu.core_type<tc>} {
    %cst = arith.constant 0.000000e+00 : f32
    %0 = vector.broadcast %cst : f32 to vector<40x128xf32>
    %cst_0 = arith.constant 0.000000e+00 : f32
    %1 = vector.broadcast %cst_0 : f32 to vector<5x8x128xf32>
    %c0 = arith.constant 0 : index
    %c0_1 = arith.constant 0 : index
    %c0_2 = arith.constant 0 : index
    %c0_3 = arith.constant 0 : index
    %c0_4 = arith.constant 0 : index
    %2 = vector.load %arg11[%c0, %c0_1, %c0_2, %c0_3, %c0_4] : memref<2x2x5x40x128xf32, #tpu.memory_space<vmem>>, vector<1x1x1x40x128xf32>
    %3 = vector.shape_cast %2 : vector<1x1x1x40x128xf32> to vector<40x128xf32>
    %4 = vector.shape_cast %0 : vector<40x128xf32> to vector<1x1x1x40x128xf32>
    tpu.vector_store %arg11[%c0, %c0_1, %c0_2, %c0_3, %c0_4], %4 {strides = array<i32>} : memref<2x2x5x40x128xf32, #tpu.memory_space<vmem>>, vector<1x1x1x40x128xf32>,
    %c0_5 = arith.constant 0 : index
    %c1 = arith.constant 1 : index
    %c0_6 = arith.constant 0 : index
    %c0_7 = arith.constant 0 : index
    %c0_8 = arith.constant 0 : index
    %5 = vector.load %arg11[%c0_5, %c1, %c0_6, %c0_7, %c0_8] : memref<2x2x5x40x128xf32, #tpu.memory_space<vmem>>, vector<1x1x1x40x128xf32>
    %6 = vector.shape_cast %5 : vector<1x1x1x40x128xf32> to vector<40x128xf32>
    %7 = vector.shape_cast %0 : vector<40x128xf32> to vector<1x1x1x40x128xf32>
    tpu.vector_store %arg11[%c0_5, %c1, %c0_6, %c0_7, %c0_8], %7 {strides = array<i32>} : memref<2x2x5x40x128xf32, #tpu.memory_space<vmem>>, vector<1x1x1x40x128xf32>,
    %c1_9 = arith.constant 1 : index
    %c0_10 = arith.constant 0 : index
    %c4 = arith.constant 4 : index
    %c0_11 = arith.constant 0 : index
    %c0_12 = arith.constant 0 : index
    %8 = vector.load %arg11[%c1_9, %c0_10, %c4, %c0_11, %c0_12] : memref<2x2x5x40x128xf32, #tpu.memory_space<vmem>>, vector<1x1x1x40x128xf32>
    %9 = vector.shape_cast %8 : vector<1x1x1x40x128xf32> to vector<40x128xf32>
    %10 = vector.shape_cast %0 : vector<40x128xf32> to vector<1x1x1x40x128xf32>
    tpu.vector_store %arg11[%c1_9, %c0_10, %c4, %c0_11, %c0_12], %10 {strides = array<i32>} : memref<2x2x5x40x128xf32, #tpu.memory_space<vmem>>, vector<1x1x1x40x128xf32>,
    %c1_13 = arith.constant 1 : index
    %c1_14 = arith.constant 1 : index
    %c4_15 = arith.constant 4 : index
    %c0_16 = arith.constant 0 : index
    %c0_17 = arith.constant 0 : index
    %11 = vector.load %arg11[%c1_13, %c1_14, %c4_15, %c0_16, %c0_17] : memref<2x2x5x40x128xf32, #tpu.memory_space<vmem>>, vector<1x1x1x40x128xf32>
    %12 = vector.shape_cast %11 : vector<1x1x1x40x128xf32> to vector<40x128xf32>
    %13 = vector.shape_cast %0 : vector<40x128xf32> to vector<1x1x1x40x128xf32>
    tpu.vector_store %arg11[%c1_13, %c1_14, %c4_15, %c0_16, %c0_17], %13 {strides = array<i32>} : memref<2x2x5x40x128xf32, #tpu.memory_space<vmem>>, vector<1x1x1x40x128xf32>,
    %c0_18 = arith.constant 0 : index
    %c0_19 = arith.constant 0 : index
    %c0_20 = arith.constant 0 : index
    %c0_21 = arith.constant 0 : index
    %c0_22 = arith.constant 0 : index
    %14 = vector.load %arg11[%c0_18, %c0_19, %c0_20, %c0_21, %c0_22] : memref<2x2x5x40x128xf32, #tpu.memory_space<vmem>>, vector<1x1x5x8x128xf32>
    %15 = vector.shape_cast %14 : vector<1x1x5x8x128xf32> to vector<5x8x128xf32>
    %16 = vector.shape_cast %1 : vector<5x8x128xf32> to vector<1x1x5x8x128xf32>
    tpu.vector_store %arg11[%c0_18, %c0_19, %c0_20, %c0_21, %c0_22], %16 {strides = array<i32>} : memref<2x2x5x40x128xf32, #tpu.memory_space<vmem>>, vector<1x1x5x8x128xf32>,
    %c1_23 = arith.constant 1 : index
    %c0_24 = arith.constant 0 : index
    %c0_25 = arith.constant 0 : index
    %c0_26 = arith.constant 0 : index
    %c0_27 = arith.constant 0 : index
    %17 = vector.load %arg11[%c1_23, %c0_24, %c0_25, %c0_26, %c0_27] : memref<2x2x5x40x128xf32, #tpu.memory_space<vmem>>, vector<1x1x5x8x128xf32>
    %18 = vector.shape_cast %17 : vector<1x1x5x8x128xf32> to vector<5x8x128xf32>
    %19 = vector.shape_cast %1 : vector<5x8x128xf32> to vector<1x1x5x8x128xf32>
    tpu.vector_store %arg11[%c1_23, %c0_24, %c0_25, %c0_26, %c0_27], %19 {strides = array<i32>} : memref<2x2x5x40x128xf32, #tpu.memory_space<vmem>>, vector<1x1x5x8x128xf32>,
    %c0_28 = arith.constant 0 : index
    %c1_29 = arith.constant 1 : index
    %c0_30 = arith.constant 0 : index
    %c32 = arith.constant 32 : index
    %c0_31 = arith.constant 0 : index
    %20 = vector.load %arg11[%c0_28, %c1_29, %c0_30, %c32, %c0_31] : memref<2x2x5x40x128xf32, #tpu.memory_space<vmem>>, vector<1x1x5x8x128xf32>
    %21 = vector.shape_cast %20 : vector<1x1x5x8x128xf32> to vector<5x8x128xf32>
    %22 = vector.shape_cast %1 : vector<5x8x128xf32> to vector<1x1x5x8x128xf32>
    tpu.vector_store %arg11[%c0_28, %c1_29, %c0_30, %c32, %c0_31], %22 {strides = array<i32>} : memref<2x2x5x40x128xf32, #tpu.memory_space<vmem>>, vector<1x1x5x8x128xf32>,
    %c1_32 = arith.constant 1 : index
    %c1_33 = arith.constant 1 : index
    %c0_34 = arith.constant 0 : index
    %c32_35 = arith.constant 32 : index
    %c0_36 = arith.constant 0 : index
    %23 = vector.load %arg11[%c1_32, %c1_33, %c0_34, %c32_35, %c0_36] : memref<2x2x5x40x128xf32, #tpu.memory_space<vmem>>, vector<1x1x5x8x128xf32>
    %24 = vector.shape_cast %23 : vector<1x1x5x8x128xf32> to vector<5x8x128xf32>
    %25 = vector.shape_cast %1 : vector<5x8x128xf32> to vector<1x1x5x8x128xf32>
    tpu.vector_store %arg11[%c1_32, %c1_33, %c0_34, %c32_35, %c0_36], %25 {strides = array<i32>} : memref<2x2x5x40x128xf32, #tpu.memory_space<vmem>>, vector<1x1x5x8x128xf32>,
    %cst_37 = arith.constant 0.000000e+00 : f32
    %26 = vector.broadcast %cst_37 : f32 to vector<24x128xf32>
    %cst_38 = arith.constant 0.000000e+00 : f32
    %27 = vector.broadcast %cst_38 : f32 to vector<3x8x128xf32>
    %c0_39 = arith.constant 0 : index
    %c0_40 = arith.constant 0 : index
    %c0_41 = arith.constant 0 : index
    %c0_42 = arith.constant 0 : index
    %c0_43 = arith.constant 0 : index
    %28 = vector.load %arg12[%c0_39, %c0_40, %c0_41, %c0_42, %c0_43] : memref<2x2x3x24x128xf32, #tpu.memory_space<vmem>>, vector<1x1x1x24x128xf32>
    %29 = vector.shape_cast %28 : vector<1x1x1x24x128xf32> to vector<24x128xf32>
    %30 = vector.shape_cast %26 : vector<24x128xf32> to vector<1x1x1x24x128xf32>
    tpu.vector_store %arg12[%c0_39, %c0_40, %c0_41, %c0_42, %c0_43], %30 {strides = array<i32>} : memref<2x2x3x24x128xf32, #tpu.memory_space<vmem>>, vector<1x1x1x24x128xf32>,
    %c0_44 = arith.constant 0 : index
    %c1_45 = arith.constant 1 : index
    %c0_46 = arith.constant 0 : index
    %c0_47 = arith.constant 0 : index
    %c0_48 = arith.constant 0 : index
    %31 = vector.load %arg12[%c0_44, %c1_45, %c0_46, %c0_47, %c0_48] : memref<2x2x3x24x128xf32, #tpu.memory_space<vmem>>, vector<1x1x1x24x128xf32>
    %32 = vector.shape_cast %31 : vector<1x1x1x24x128xf32> to vector<24x128xf32>
    %33 = vector.shape_cast %26 : vector<24x128xf32> to vector<1x1x1x24x128xf32>
    tpu.vector_store %arg12[%c0_44, %c1_45, %c0_46, %c0_47, %c0_48], %33 {strides = array<i32>} : memref<2x2x3x24x128xf32, #tpu.memory_space<vmem>>, vector<1x1x1x24x128xf32>,
    %c1_49 = arith.constant 1 : index
    %c0_50 = arith.constant 0 : index
    %c2 = arith.constant 2 : index
    %c0_51 = arith.constant 0 : index
    %c0_52 = arith.constant 0 : index
    %34 = vector.load %arg12[%c1_49, %c0_50, %c2, %c0_51, %c0_52] : memref<2x2x3x24x128xf32, #tpu.memory_space<vmem>>, vector<1x1x1x24x128xf32>
    %35 = vector.shape_cast %34 : vector<1x1x1x24x128xf32> to vector<24x128xf32>
    %36 = vector.shape_cast %26 : vector<24x128xf32> to vector<1x1x1x24x128xf32>
    tpu.vector_store %arg12[%c1_49, %c0_50, %c2, %c0_51, %c0_52], %36 {strides = array<i32>} : memref<2x2x3x24x128xf32, #tpu.memory_space<vmem>>, vector<1x1x1x24x128xf32>,
    %c1_53 = arith.constant 1 : index
    %c1_54 = arith.constant 1 : index
    %c2_55 = arith.constant 2 : index
    %c0_56 = arith.constant 0 : index
    %c0_57 = arith.constant 0 : index
    %37 = vector.load %arg12[%c1_53, %c1_54, %c2_55, %c0_56, %c0_57] : memref<2x2x3x24x128xf32, #tpu.memory_space<vmem>>, vector<1x1x1x24x128xf32>
    %38 = vector.shape_cast %37 : vector<1x1x1x24x128xf32> to vector<24x128xf32>
    %39 = vector.shape_cast %26 : vector<24x128xf32> to vector<1x1x1x24x128xf32>
    tpu.vector_store %arg12[%c1_53, %c1_54, %c2_55, %c0_56, %c0_57], %39 {strides = array<i32>} : memref<2x2x3x24x128xf32, #tpu.memory_space<vmem>>, vector<1x1x1x24x128xf32>,
    %c0_58 = arith.constant 0 : index
    %c0_59 = arith.constant 0 : index
    %c0_60 = arith.constant 0 : index
    %c0_61 = arith.constant 0 : index
    %c0_62 = arith.constant 0 : index
    %40 = vector.load %arg12[%c0_58, %c0_59, %c0_60, %c0_61, %c0_62] : memref<2x2x3x24x128xf32, #tpu.memory_space<vmem>>, vector<1x1x3x8x128xf32>
    %41 = vector.shape_cast %40 : vector<1x1x3x8x128xf32> to vector<3x8x128xf32>
    %42 = vector.shape_cast %27 : vector<3x8x128xf32> to vector<1x1x3x8x128xf32>
    tpu.vector_store %arg12[%c0_58, %c0_59, %c0_60, %c0_61, %c0_62], %42 {strides = array<i32>} : memref<2x2x3x24x128xf32, #tpu.memory_space<vmem>>, vector<1x1x3x8x128xf32>,
    %c1_63 = arith.constant 1 : index
    %c0_64 = arith.constant 0 : index
    %c0_65 = arith.constant 0 : index
    %c0_66 = arith.constant 0 : index
    %c0_67 = arith.constant 0 : index
    %43 = vector.load %arg12[%c1_63, %c0_64, %c0_65, %c0_66, %c0_67] : memref<2x2x3x24x128xf32, #tpu.memory_space<vmem>>, vector<1x1x3x8x128xf32>
    %44 = vector.shape_cast %43 : vector<1x1x3x8x128xf32> to vector<3x8x128xf32>
    %45 = vector.shape_cast %27 : vector<3x8x128xf32> to vector<1x1x3x8x128xf32>
    tpu.vector_store %arg12[%c1_63, %c0_64, %c0_65, %c0_66, %c0_67], %45 {strides = array<i32>} : memref<2x2x3x24x128xf32, #tpu.memory_space<vmem>>, vector<1x1x3x8x128xf32>,
    %c0_68 = arith.constant 0 : index
    %c1_69 = arith.constant 1 : index
    %c0_70 = arith.constant 0 : index
    %c16 = arith.constant 16 : index
    %c0_71 = arith.constant 0 : index
    %46 = vector.load %arg12[%c0_68, %c1_69, %c0_70, %c16, %c0_71] : memref<2x2x3x24x128xf32, #tpu.memory_space<vmem>>, vector<1x1x3x8x128xf32>
    %47 = vector.shape_cast %46 : vector<1x1x3x8x128xf32> to vector<3x8x128xf32>
    %48 = vector.shape_cast %27 : vector<3x8x128xf32> to vector<1x1x3x8x128xf32>
    tpu.vector_store %arg12[%c0_68, %c1_69, %c0_70, %c16, %c0_71], %48 {strides = array<i32>} : memref<2x2x3x24x128xf32, #tpu.memory_space<vmem>>, vector<1x1x3x8x128xf32>,
    %c1_72 = arith.constant 1 : index
    %c1_73 = arith.constant 1 : index
    %c0_74 = arith.constant 0 : index
    %c16_75 = arith.constant 16 : index
    %c0_76 = arith.constant 0 : index
    %49 = vector.load %arg12[%c1_72, %c1_73, %c0_74, %c16_75, %c0_76] : memref<2x2x3x24x128xf32, #tpu.memory_space<vmem>>, vector<1x1x3x8x128xf32>
    %50 = vector.shape_cast %49 : vector<1x1x3x8x128xf32> to vector<3x8x128xf32>
    %51 = vector.shape_cast %27 : vector<3x8x128xf32> to vector<1x1x3x8x128xf32>
    tpu.vector_store %arg12[%c1_72, %c1_73, %c0_74, %c16_75, %c0_76], %51 {strides = array<i32>} : memref<2x2x3x24x128xf32, #tpu.memory_space<vmem>>, vector<1x1x3x8x128xf32>,
    %cst_77 = arith.constant 0.000000e+00 : f32
    %52 = vector.broadcast %cst_77 : f32 to vector<1x128xf32>
    %cst_78 = arith.constant 0.000000e+00 : f32
    %53 = vector.broadcast %cst_78 : f32 to vector<1x128xf32>
    %c0_79 = arith.constant 0 : index
    %c0_80 = arith.constant 0 : index
    %54 = vector.load %arg0[%c0_79, %c0_80] : memref<512x384xbf16, #tpu.memory_space<vmem>>, vector<64x384xbf16>
    %c0_81 = arith.constant 0 : index
    %c0_82 = arith.constant 0 : index
    %55 = vector.load %arg1[%c0_81, %c0_82] : memref<384x128xbf16, #tpu.memory_space<vmem>>, vector<384x128xbf16>
    %cst_83 = arith.constant dense<0.000000e+00> : vector<64x128xf32>
    %56 = tpu.matmul %54, %55, %cst_83 {dimension_numbers = #tpu.dot_dimension_numbers<[1], [0], [0], [1], [0, 0, 1, 1], [], []>} : vector<64x384xbf16>, vector<384x128xbf16>, vector<64x128xf32> -> vector<64x128xf32>
    %cst_84 = arith.constant 0.000000e+00 : f32
    %57 = vector.broadcast %cst_84 : f32 to vector<64x128xf32>
    %58 = arith.maximumf %56, %57 : vector<64x128xf32>
    %cst_85 = arith.constant dense<0.000000e+00> : vector<128xf32>
    %59 = vector.multi_reduction <add>, %58, %cst_85 [0] : vector<64x128xf32> to vector<128xf32>
    %60 = vector.shape_cast %59 : vector<128xf32> to vector<1x128xf32>
    %61 = arith.addf %52, %60 : vector<1x128xf32>
    %62 = arith.mulf %58, %58 : vector<64x128xf32>
    %cst_86 = arith.constant dense<0.000000e+00> : vector<128xf32>
    %63 = vector.multi_reduction <add>, %62, %cst_86 [0] : vector<64x128xf32> to vector<128xf32>
    %64 = vector.shape_cast %63 : vector<128xf32> to vector<1x128xf32>
    %65 = arith.addf %53, %64 : vector<1x128xf32>
    %66 = vector.shape_cast %58 : vector<64x128xf32> to vector<4x2x8x128xf32>
    %67 = vector.extract_strided_slice %66 {offsets = [0, 0, 0, 0], sizes = [4, 1, 8, 128], strides = [1, 1, 1, 1]} : vector<4x2x8x128xf32> to vector<4x1x8x128xf32>
    %68 = vector.shape_cast %67 : vector<4x1x8x128xf32> to vector<4x8x128xf32>
    %69 = vector.shape_cast %68 : vector<4x8x128xf32> to vector<32x128xf32>
    %70 = vector.extract_strided_slice %66 {offsets = [0, 1, 0, 0], sizes = [4, 1, 8, 128], strides = [1, 1, 1, 1]} : vector<4x2x8x128xf32> to vector<4x1x8x128xf32>
    %71 = vector.shape_cast %70 : vector<4x1x8x128xf32> to vector<4x8x128xf32>
    %72 = vector.shape_cast %71 : vector<4x8x128xf32> to vector<32x128xf32>
    %c1_87 = arith.constant 1 : index
    %c1_88 = arith.constant 1 : index
    %c0_89 = arith.constant 0 : index
    %c0_90 = arith.constant 0 : index
    %c0_91 = arith.constant 0 : index
    %73 = vector.load %arg11[%c1_87, %c1_88, %c0_89, %c0_90, %c0_91] : memref<2x2x5x40x128xf32, #tpu.memory_space<vmem>>, vector<1x1x1x32x128xf32>
    %74 = vector.shape_cast %73 : vector<1x1x1x32x128xf32> to vector<32x128xf32>
    %75 = vector.shape_cast %69 : vector<32x128xf32> to vector<1x1x1x32x128xf32>
    tpu.vector_store %arg11[%c1_87, %c1_88, %c0_89, %c0_90, %c0_91], %75 {strides = array<i32>} : memref<2x2x5x40x128xf32, #tpu.memory_space<vmem>>, vector<1x1x1x32x128xf32>,
    %c1_92 = arith.constant 1 : index
    %c0_93 = arith.constant 0 : index
    %c0_94 = arith.constant 0 : index
    %c8 = arith.constant 8 : index
    %c0_95 = arith.constant 0 : index
    %76 = vector.load %arg11[%c1_92, %c0_93, %c0_94, %c8, %c0_95] : memref<2x2x5x40x128xf32, #tpu.memory_space<vmem>>, vector<1x1x1x32x128xf32>
    %77 = vector.shape_cast %76 : vector<1x1x1x32x128xf32> to vector<32x128xf32>
    %78 = vector.shape_cast %72 : vector<32x128xf32> to vector<1x1x1x32x128xf32>
    tpu.vector_store %arg11[%c1_92, %c0_93, %c0_94, %c8, %c0_95], %78 {strides = array<i32>} : memref<2x2x5x40x128xf32, #tpu.memory_space<vmem>>, vector<1x1x1x32x128xf32>,
    %c64 = arith.constant 64 : index
    %c0_96 = arith.constant 0 : index
    %79 = vector.load %arg0[%c64, %c0_96] : memref<512x384xbf16, #tpu.memory_space<vmem>>, vector<64x384xbf16>
    %c0_97 = arith.constant 0 : index
    %c0_98 = arith.constant 0 : index
    %80 = vector.load %arg1[%c0_97, %c0_98] : memref<384x128xbf16, #tpu.memory_space<vmem>>, vector<384x128xbf16>
    %cst_99 = arith.constant dense<0.000000e+00> : vector<64x128xf32>
    %81 = tpu.matmul %79, %80, %cst_99 {dimension_numbers = #tpu.dot_dimension_numbers<[1], [0], [0], [1], [0, 0, 1, 1], [], []>} : vector<64x384xbf16>, vector<384x128xbf16>, vector<64x128xf32> -> vector<64x128xf32>
    %cst_100 = arith.constant 0.000000e+00 : f32
    %82 = vector.broadcast %cst_100 : f32 to vector<64x128xf32>
    %83 = arith.maximumf %81, %82 : vector<64x128xf32>
    %cst_101 = arith.constant dense<0.000000e+00> : vector<128xf32>
    %84 = vector.multi_reduction <add>, %83, %cst_101 [0] : vector<64x128xf32> to vector<128xf32>
    %85 = vector.shape_cast %84 : vector<128xf32> to vector<1x128xf32>
    %86 = arith.addf %61, %85 : vector<1x128xf32>
    %87 = arith.mulf %83, %83 : vector<64x128xf32>
    %cst_102 = arith.constant dense<0.000000e+00> : vector<128xf32>
    %88 = vector.multi_reduction <add>, %87, %cst_102 [0] : vector<64x128xf32> to vector<128xf32>
    %89 = vector.shape_cast %88 : vector<128xf32> to vector<1x128xf32>
    %90 = arith.addf %65, %89 : vector<1x128xf32>
    %91 = vector.shape_cast %83 : vector<64x128xf32> to vector<4x2x8x128xf32>
    %92 = vector.extract_strided_slice %91 {offsets = [0, 0, 0, 0], sizes = [4, 1, 8, 128], strides = [1, 1, 1, 1]} : vector<4x2x8x128xf32> to vector<4x1x8x128xf32>
    %93 = vector.shape_cast %92 : vector<4x1x8x128xf32> to vector<4x8x128xf32>
    %94 = vector.shape_cast %93 : vector<4x8x128xf32> to vector<32x128xf32>
    %95 = vector.extract_strided_slice %91 {offsets = [0, 1, 0, 0], sizes = [4, 1, 8, 128], strides = [1, 1, 1, 1]} : vector<4x2x8x128xf32> to vector<4x1x8x128xf32>
    %96 = vector.shape_cast %95 : vector<4x1x8x128xf32> to vector<4x8x128xf32>
    %97 = vector.shape_cast %96 : vector<4x8x128xf32> to vector<32x128xf32>
    %c0_103 = arith.constant 0 : index
    %c1_104 = arith.constant 1 : index
    %c1_105 = arith.constant 1 : index
    %c0_106 = arith.constant 0 : index
    %c0_107 = arith.constant 0 : index
    %98 = vector.load %arg11[%c0_103, %c1_104, %c1_105, %c0_106, %c0_107] : memref<2x2x5x40x128xf32, #tpu.memory_space<vmem>>, vector<1x1x1x32x128xf32>
    %99 = vector.shape_cast %98 : vector<1x1x1x32x128xf32> to vector<32x128xf32>
    %100 = vector.shape_cast %94 : vector<32x128xf32> to vector<1x1x1x32x128xf32>
    tpu.vector_store %arg11[%c0_103, %c1_104, %c1_105, %c0_106, %c0_107], %100 {strides = array<i32>} : memref<2x2x5x40x128xf32, #tpu.memory_space<vmem>>, vector<1x1x1x32x128xf32>,
    %c0_108 = arith.constant 0 : index
    %c0_109 = arith.constant 0 : index
    %c1_110 = arith.constant 1 : index
    %c8_111 = arith.constant 8 : index
    %c0_112 = arith.constant 0 : index
    %101 = vector.load %arg11[%c0_108, %c0_109, %c1_110, %c8_111, %c0_112] : memref<2x2x5x40x128xf32, #tpu.memory_space<vmem>>, vector<1x1x1x32x128xf32>
    %102 = vector.shape_cast %101 : vector<1x1x1x32x128xf32> to vector<32x128xf32>
    %103 = vector.shape_cast %97 : vector<32x128xf32> to vector<1x1x1x32x128xf32>
    tpu.vector_store %arg11[%c0_108, %c0_109, %c1_110, %c8_111, %c0_112], %103 {strides = array<i32>} : memref<2x2x5x40x128xf32, #tpu.memory_space<vmem>>, vector<1x1x1x32x128xf32>,
    %c128 = arith.constant 128 : index
    %c0_113 = arith.constant 0 : index
    %104 = vector.load %arg0[%c128, %c0_113] : memref<512x384xbf16, #tpu.memory_space<vmem>>, vector<64x384xbf16>
    %c0_114 = arith.constant 0 : index
    %c0_115 = arith.constant 0 : index
    %105 = vector.load %arg1[%c0_114, %c0_115] : memref<384x128xbf16, #tpu.memory_space<vmem>>, vector<384x128xbf16>
    %cst_116 = arith.constant dense<0.000000e+00> : vector<64x128xf32>
    %106 = tpu.matmul %104, %105, %cst_116 {dimension_numbers = #tpu.dot_dimension_numbers<[1], [0], [0], [1], [0, 0, 1, 1], [], []>} : vector<64x384xbf16>, vector<384x128xbf16>, vector<64x128xf32> -> vector<64x128xf32>
    %cst_117 = arith.constant 0.000000e+00 : f32
    %107 = vector.broadcast %cst_117 : f32 to vector<64x128xf32>
    %108 = arith.maximumf %106, %107 : vector<64x128xf32>
    %cst_118 = arith.constant dense<0.000000e+00> : vector<128xf32>
    %109 = vector.multi_reduction <add>, %108, %cst_118 [0] : vector<64x128xf32> to vector<128xf32>
    %110 = vector.shape_cast %109 : vector<128xf32> to vector<1x128xf32>
    %111 = arith.addf %86, %110 : vector<1x128xf32>
    %112 = arith.mulf %108, %108 : vector<64x128xf32>
    %cst_119 = arith.constant dense<0.000000e+00> : vector<128xf32>
    %113 = vector.multi_reduction <add>, %112, %cst_119 [0] : vector<64x128xf32> to vector<128xf32>
    %114 = vector.shape_cast %113 : vector<128xf32> to vector<1x128xf32>
    %115 = arith.addf %90, %114 : vector<1x128xf32>
    %116 = vector.shape_cast %108 : vector<64x128xf32> to vector<4x2x8x128xf32>
    %117 = vector.extract_strided_slice %116 {offsets = [0, 0, 0, 0], sizes = [4, 1, 8, 128], strides = [1, 1, 1, 1]} : vector<4x2x8x128xf32> to vector<4x1x8x128xf32>
    %118 = vector.shape_cast %117 : vector<4x1x8x128xf32> to vector<4x8x128xf32>
    %119 = vector.shape_cast %118 : vector<4x8x128xf32> to vector<32x128xf32>
    %120 = vector.extract_strided_slice %116 {offsets = [0, 1, 0, 0], sizes = [4, 1, 8, 128], strides = [1, 1, 1, 1]} : vector<4x2x8x128xf32> to vector<4x1x8x128xf32>
    %121 = vector.shape_cast %120 : vector<4x1x8x128xf32> to vector<4x8x128xf32>
    %122 = vector.shape_cast %121 : vector<4x8x128xf32> to vector<32x128xf32>
    %c1_120 = arith.constant 1 : index
    %c1_121 = arith.constant 1 : index
    %c1_122 = arith.constant 1 : index
    %c0_123 = arith.constant 0 : index
    %c0_124 = arith.constant 0 : index
    %123 = vector.load %arg11[%c1_120, %c1_121, %c1_122, %c0_123, %c0_124] : memref<2x2x5x40x128xf32, #tpu.memory_space<vmem>>, vector<1x1x1x32x128xf32>
    %124 = vector.shape_cast %123 : vector<1x1x1x32x128xf32> to vector<32x128xf32>
    %125 = vector.shape_cast %119 : vector<32x128xf32> to vector<1x1x1x32x128xf32>
    tpu.vector_store %arg11[%c1_120, %c1_121, %c1_122, %c0_123, %c0_124], %125 {strides = array<i32>} : memref<2x2x5x40x128xf32, #tpu.memory_space<vmem>>, vector<1x1x1x32x128xf32>,
    %c1_125 = arith.constant 1 : index
    %c0_126 = arith.constant 0 : index
    %c1_127 = arith.constant 1 : index
    %c8_128 = arith.constant 8 : index
    %c0_129 = arith.constant 0 : index
    %126 = vector.load %arg11[%c1_125, %c0_126, %c1_127, %c8_128, %c0_129] : memref<2x2x5x40x128xf32, #tpu.memory_space<vmem>>, vector<1x1x1x32x128xf32>
    %127 = vector.shape_cast %126 : vector<1x1x1x32x128xf32> to vector<32x128xf32>
    %128 = vector.shape_cast %122 : vector<32x128xf32> to vector<1x1x1x32x128xf32>
    tpu.vector_store %arg11[%c1_125, %c0_126, %c1_127, %c8_128, %c0_129], %128 {strides = array<i32>} : memref<2x2x5x40x128xf32, #tpu.memory_space<vmem>>, vector<1x1x1x32x128xf32>,
    %c192 = arith.constant 192 : index
    %c0_130 = arith.constant 0 : index
    %129 = vector.load %arg0[%c192, %c0_130] : memref<512x384xbf16, #tpu.memory_space<vmem>>, vector<64x384xbf16>
    %c0_131 = arith.constant 0 : index
    %c0_132 = arith.constant 0 : index
    %130 = vector.load %arg1[%c0_131, %c0_132] : memref<384x128xbf16, #tpu.memory_space<vmem>>, vector<384x128xbf16>
    %cst_133 = arith.constant dense<0.000000e+00> : vector<64x128xf32>
    %131 = tpu.matmul %129, %130, %cst_133 {dimension_numbers = #tpu.dot_dimension_numbers<[1], [0], [0], [1], [0, 0, 1, 1], [], []>} : vector<64x384xbf16>, vector<384x128xbf16>, vector<64x128xf32> -> vector<64x128xf32>
    %cst_134 = arith.constant 0.000000e+00 : f32
    %132 = vector.broadcast %cst_134 : f32 to vector<64x128xf32>
    %133 = arith.maximumf %131, %132 : vector<64x128xf32>
    %cst_135 = arith.constant dense<0.000000e+00> : vector<128xf32>
    %134 = vector.multi_reduction <add>, %133, %cst_135 [0] : vector<64x128xf32> to vector<128xf32>
    %135 = vector.shape_cast %134 : vector<128xf32> to vector<1x128xf32>
    %136 = arith.addf %111, %135 : vector<1x128xf32>
    %137 = arith.mulf %133, %133 : vector<64x128xf32>
    %cst_136 = arith.constant dense<0.000000e+00> : vector<128xf32>
    %138 = vector.multi_reduction <add>, %137, %cst_136 [0] : vector<64x128xf32> to vector<128xf32>
    %139 = vector.shape_cast %138 : vector<128xf32> to vector<1x128xf32>
    %140 = arith.addf %115, %139 : vector<1x128xf32>
    %141 = vector.shape_cast %133 : vector<64x128xf32> to vector<4x2x8x128xf32>
    %142 = vector.extract_strided_slice %141 {offsets = [0, 0, 0, 0], sizes = [4, 1, 8, 128], strides = [1, 1, 1, 1]} : vector<4x2x8x128xf32> to vector<4x1x8x128xf32>
    %143 = vector.shape_cast %142 : vector<4x1x8x128xf32> to vector<4x8x128xf32>
    %144 = vector.shape_cast %143 : vector<4x8x128xf32> to vector<32x128xf32>
    %145 = vector.extract_strided_slice %141 {offsets = [0, 1, 0, 0], sizes = [4, 1, 8, 128], strides = [1, 1, 1, 1]} : vector<4x2x8x128xf32> to vector<4x1x8x128xf32>
    %146 = vector.shape_cast %145 : vector<4x1x8x128xf32> to vector<4x8x128xf32>
    %147 = vector.shape_cast %146 : vector<4x8x128xf32> to vector<32x128xf32>
    %c0_137 = arith.constant 0 : index
    %c1_138 = arith.constant 1 : index
    %c2_139 = arith.constant 2 : index
    %c0_140 = arith.constant 0 : index
    %c0_141 = arith.constant 0 : index
    %148 = vector.load %arg11[%c0_137, %c1_138, %c2_139, %c0_140, %c0_141] : memref<2x2x5x40x128xf32, #tpu.memory_space<vmem>>, vector<1x1x1x32x128xf32>
    %149 = vector.shape_cast %148 : vector<1x1x1x32x128xf32> to vector<32x128xf32>
    %150 = vector.shape_cast %144 : vector<32x128xf32> to vector<1x1x1x32x128xf32>
    tpu.vector_store %arg11[%c0_137, %c1_138, %c2_139, %c0_140, %c0_141], %150 {strides = array<i32>} : memref<2x2x5x40x128xf32, #tpu.memory_space<vmem>>, vector<1x1x1x32x128xf32>,
    %c0_142 = arith.constant 0 : index
    %c0_143 = arith.constant 0 : index
    %c2_144 = arith.constant 2 : index
    %c8_145 = arith.constant 8 : index
    %c0_146 = arith.constant 0 : index
    %151 = vector.load %arg11[%c0_142, %c0_143, %c2_144, %c8_145, %c0_146] : memref<2x2x5x40x128xf32, #tpu.memory_space<vmem>>, vector<1x1x1x32x128xf32>
    %152 = vector.shape_cast %151 : vector<1x1x1x32x128xf32> to vector<32x128xf32>
    %153 = vector.shape_cast %147 : vector<32x128xf32> to vector<1x1x1x32x128xf32>
    tpu.vector_store %arg11[%c0_142, %c0_143, %c2_144, %c8_145, %c0_146], %153 {strides = array<i32>} : memref<2x2x5x40x128xf32, #tpu.memory_space<vmem>>, vector<1x1x1x32x128xf32>,
    %c256 = arith.constant 256 : index
    %c0_147 = arith.constant 0 : index
    %154 = vector.load %arg0[%c256, %c0_147] : memref<512x384xbf16, #tpu.memory_space<vmem>>, vector<64x384xbf16>
    %c0_148 = arith.constant 0 : index
    %c0_149 = arith.constant 0 : index
    %155 = vector.load %arg1[%c0_148, %c0_149] : memref<384x128xbf16, #tpu.memory_space<vmem>>, vector<384x128xbf16>
    %cst_150 = arith.constant dense<0.000000e+00> : vector<64x128xf32>
    %156 = tpu.matmul %154, %155, %cst_150 {dimension_numbers = #tpu.dot_dimension_numbers<[1], [0], [0], [1], [0, 0, 1, 1], [], []>} : vector<64x384xbf16>, vector<384x128xbf16>, vector<64x128xf32> -> vector<64x128xf32>
    %cst_151 = arith.constant 0.000000e+00 : f32
    %157 = vector.broadcast %cst_151 : f32 to vector<64x128xf32>
    %158 = arith.maximumf %156, %157 : vector<64x128xf32>
    %cst_152 = arith.constant dense<0.000000e+00> : vector<128xf32>
    %159 = vector.multi_reduction <add>, %158, %cst_152 [0] : vector<64x128xf32> to vector<128xf32>
    %160 = vector.shape_cast %159 : vector<128xf32> to vector<1x128xf32>
    %161 = arith.addf %136, %160 : vector<1x128xf32>
    %162 = arith.mulf %158, %158 : vector<64x128xf32>
    %cst_153 = arith.constant dense<0.000000e+00> : vector<128xf32>
    %163 = vector.multi_reduction <add>, %162, %cst_153 [0] : vector<64x128xf32> to vector<128xf32>
    %164 = vector.shape_cast %163 : vector<128xf32> to vector<1x128xf32>
    %165 = arith.addf %140, %164 : vector<1x128xf32>
    %166 = vector.shape_cast %158 : vector<64x128xf32> to vector<4x2x8x128xf32>
    %167 = vector.extract_strided_slice %166 {offsets = [0, 0, 0, 0], sizes = [4, 1, 8, 128], strides = [1, 1, 1, 1]} : vector<4x2x8x128xf32> to vector<4x1x8x128xf32>
    %168 = vector.shape_cast %167 : vector<4x1x8x128xf32> to vector<4x8x128xf32>
    %169 = vector.shape_cast %168 : vector<4x8x128xf32> to vector<32x128xf32>
    %170 = vector.extract_strided_slice %166 {offsets = [0, 1, 0, 0], sizes = [4, 1, 8, 128], strides = [1, 1, 1, 1]} : vector<4x2x8x128xf32> to vector<4x1x8x128xf32>
    %171 = vector.shape_cast %170 : vector<4x1x8x128xf32> to vector<4x8x128xf32>
    %172 = vector.shape_cast %171 : vector<4x8x128xf32> to vector<32x128xf32>
    %c1_154 = arith.constant 1 : index
    %c1_155 = arith.constant 1 : index
    %c2_156 = arith.constant 2 : index
    %c0_157 = arith.constant 0 : index
    %c0_158 = arith.constant 0 : index
    %173 = vector.load %arg11[%c1_154, %c1_155, %c2_156, %c0_157, %c0_158] : memref<2x2x5x40x128xf32, #tpu.memory_space<vmem>>, vector<1x1x1x32x128xf32>
    %174 = vector.shape_cast %173 : vector<1x1x1x32x128xf32> to vector<32x128xf32>
    %175 = vector.shape_cast %169 : vector<32x128xf32> to vector<1x1x1x32x128xf32>
    tpu.vector_store %arg11[%c1_154, %c1_155, %c2_156, %c0_157, %c0_158], %175 {strides = array<i32>} : memref<2x2x5x40x128xf32, #tpu.memory_space<vmem>>, vector<1x1x1x32x128xf32>,
    %c1_159 = arith.constant 1 : index
    %c0_160 = arith.constant 0 : index
    %c2_161 = arith.constant 2 : index
    %c8_162 = arith.constant 8 : index
    %c0_163 = arith.constant 0 : index
    %176 = vector.load %arg11[%c1_159, %c0_160, %c2_161, %c8_162, %c0_163] : memref<2x2x5x40x128xf32, #tpu.memory_space<vmem>>, vector<1x1x1x32x128xf32>
    %177 = vector.shape_cast %176 : vector<1x1x1x32x128xf32> to vector<32x128xf32>
    %178 = vector.shape_cast %172 : vector<32x128xf32> to vector<1x1x1x32x128xf32>
    tpu.vector_store %arg11[%c1_159, %c0_160, %c2_161, %c8_162, %c0_163], %178 {strides = array<i32>} : memref<2x2x5x40x128xf32, #tpu.memory_space<vmem>>, vector<1x1x1x32x128xf32>,
    %c320 = arith.constant 320 : index
    %c0_164 = arith.constant 0 : index
    %179 = vector.load %arg0[%c320, %c0_164] : memref<512x384xbf16, #tpu.memory_space<vmem>>, vector<64x384xbf16>
    %c0_165 = arith.constant 0 : index
    %c0_166 = arith.constant 0 : index
    %180 = vector.load %arg1[%c0_165, %c0_166] : memref<384x128xbf16, #tpu.memory_space<vmem>>, vector<384x128xbf16>
    %cst_167 = arith.constant dense<0.000000e+00> : vector<64x128xf32>
    %181 = tpu.matmul %179, %180, %cst_167 {dimension_numbers = #tpu.dot_dimension_numbers<[1], [0], [0], [1], [0, 0, 1, 1], [], []>} : vector<64x384xbf16>, vector<384x128xbf16>, vector<64x128xf32> -> vector<64x128xf32>
    %cst_168 = arith.constant 0.000000e+00 : f32
    %182 = vector.broadcast %cst_168 : f32 to vector<64x128xf32>
    %183 = arith.maximumf %181, %182 : vector<64x128xf32>
    %cst_169 = arith.constant dense<0.000000e+00> : vector<128xf32>
    %184 = vector.multi_reduction <add>, %183, %cst_169 [0] : vector<64x128xf32> to vector<128xf32>
    %185 = vector.shape_cast %184 : vector<128xf32> to vector<1x128xf32>
    %186 = arith.addf %161, %185 : vector<1x128xf32>
    %187 = arith.mulf %183, %183 : vector<64x128xf32>
    %cst_170 = arith.constant dense<0.000000e+00> : vector<128xf32>
    %188 = vector.multi_reduction <add>, %187, %cst_170 [0] : vector<64x128xf32> to vector<128xf32>
    %189 = vector.shape_cast %188 : vector<128xf32> to vector<1x128xf32>
    %190 = arith.addf %165, %189 : vector<1x128xf32>
    %191 = vector.shape_cast %183 : vector<64x128xf32> to vector<4x2x8x128xf32>
    %192 = vector.extract_strided_slice %191 {offsets = [0, 0, 0, 0], sizes = [4, 1, 8, 128], strides = [1, 1, 1, 1]} : vector<4x2x8x128xf32> to vector<4x1x8x128xf32>
    %193 = vector.shape_cast %192 : vector<4x1x8x128xf32> to vector<4x8x128xf32>
    %194 = vector.shape_cast %193 : vector<4x8x128xf32> to vector<32x128xf32>
    %195 = vector.extract_strided_slice %191 {offsets = [0, 1, 0, 0], sizes = [4, 1, 8, 128], strides = [1, 1, 1, 1]} : vector<4x2x8x128xf32> to vector<4x1x8x128xf32>
    %196 = vector.shape_cast %195 : vector<4x1x8x128xf32> to vector<4x8x128xf32>
    %197 = vector.shape_cast %196 : vector<4x8x128xf32> to vector<32x128xf32>
    %c0_171 = arith.constant 0 : index
    %c1_172 = arith.constant 1 : index
    %c3 = arith.constant 3 : index
    %c0_173 = arith.constant 0 : index
    %c0_174 = arith.constant 0 : index
    %198 = vector.load %arg11[%c0_171, %c1_172, %c3, %c0_173, %c0_174] : memref<2x2x5x40x128xf32, #tpu.memory_space<vmem>>, vector<1x1x1x32x128xf32>
    %199 = vector.shape_cast %198 : vector<1x1x1x32x128xf32> to vector<32x128xf32>
    %200 = vector.shape_cast %194 : vector<32x128xf32> to vector<1x1x1x32x128xf32>
    tpu.vector_store %arg11[%c0_171, %c1_172, %c3, %c0_173, %c0_174], %200 {strides = array<i32>} : memref<2x2x5x40x128xf32, #tpu.memory_space<vmem>>, vector<1x1x1x32x128xf32>,
    %c0_175 = arith.constant 0 : index
    %c0_176 = arith.constant 0 : index
    %c3_177 = arith.constant 3 : index
    %c8_178 = arith.constant 8 : index
    %c0_179 = arith.constant 0 : index
    %201 = vector.load %arg11[%c0_175, %c0_176, %c3_177, %c8_178, %c0_179] : memref<2x2x5x40x128xf32, #tpu.memory_space<vmem>>, vector<1x1x1x32x128xf32>
    %202 = vector.shape_cast %201 : vector<1x1x1x32x128xf32> to vector<32x128xf32>
    %203 = vector.shape_cast %197 : vector<32x128xf32> to vector<1x1x1x32x128xf32>
    tpu.vector_store %arg11[%c0_175, %c0_176, %c3_177, %c8_178, %c0_179], %203 {strides = array<i32>} : memref<2x2x5x40x128xf32, #tpu.memory_space<vmem>>, vector<1x1x1x32x128xf32>,
    %c384 = arith.constant 384 : index
    %c0_180 = arith.constant 0 : index
    %204 = vector.load %arg0[%c384, %c0_180] : memref<512x384xbf16, #tpu.memory_space<vmem>>, vector<64x384xbf16>
    %c0_181 = arith.constant 0 : index
    %c0_182 = arith.constant 0 : index
    %205 = vector.load %arg1[%c0_181, %c0_182] : memref<384x128xbf16, #tpu.memory_space<vmem>>, vector<384x128xbf16>
    %cst_183 = arith.constant dense<0.000000e+00> : vector<64x128xf32>
    %206 = tpu.matmul %204, %205, %cst_183 {dimension_numbers = #tpu.dot_dimension_numbers<[1], [0], [0], [1], [0, 0, 1, 1], [], []>} : vector<64x384xbf16>, vector<384x128xbf16>, vector<64x128xf32> -> vector<64x128xf32>
    %cst_184 = arith.constant 0.000000e+00 : f32
    %207 = vector.broadcast %cst_184 : f32 to vector<64x128xf32>
    %208 = arith.maximumf %206, %207 : vector<64x128xf32>
    %cst_185 = arith.constant dense<0.000000e+00> : vector<128xf32>
    %209 = vector.multi_reduction <add>, %208, %cst_185 [0] : vector<64x128xf32> to vector<128xf32>
    %210 = vector.shape_cast %209 : vector<128xf32> to vector<1x128xf32>
    %211 = arith.addf %186, %210 : vector<1x128xf32>
    %212 = arith.mulf %208, %208 : vector<64x128xf32>
    %cst_186 = arith.constant dense<0.000000e+00> : vector<128xf32>
    %213 = vector.multi_reduction <add>, %212, %cst_186 [0] : vector<64x128xf32> to vector<128xf32>
    %214 = vector.shape_cast %213 : vector<128xf32> to vector<1x128xf32>
    %215 = arith.addf %190, %214 : vector<1x128xf32>
    %216 = vector.shape_cast %208 : vector<64x128xf32> to vector<4x2x8x128xf32>
    %217 = vector.extract_strided_slice %216 {offsets = [0, 0, 0, 0], sizes = [4, 1, 8, 128], strides = [1, 1, 1, 1]} : vector<4x2x8x128xf32> to vector<4x1x8x128xf32>
    %218 = vector.shape_cast %217 : vector<4x1x8x128xf32> to vector<4x8x128xf32>
    %219 = vector.shape_cast %218 : vector<4x8x128xf32> to vector<32x128xf32>
    %220 = vector.extract_strided_slice %216 {offsets = [0, 1, 0, 0], sizes = [4, 1, 8, 128], strides = [1, 1, 1, 1]} : vector<4x2x8x128xf32> to vector<4x1x8x128xf32>
    %221 = vector.shape_cast %220 : vector<4x1x8x128xf32> to vector<4x8x128xf32>
    %222 = vector.shape_cast %221 : vector<4x8x128xf32> to vector<32x128xf32>
    %c1_187 = arith.constant 1 : index
    %c1_188 = arith.constant 1 : index
    %c3_189 = arith.constant 3 : index
    %c0_190 = arith.constant 0 : index
    %c0_191 = arith.constant 0 : index
    %223 = vector.load %arg11[%c1_187, %c1_188, %c3_189, %c0_190, %c0_191] : memref<2x2x5x40x128xf32, #tpu.memory_space<vmem>>, vector<1x1x1x32x128xf32>
    %224 = vector.shape_cast %223 : vector<1x1x1x32x128xf32> to vector<32x128xf32>
    %225 = vector.shape_cast %219 : vector<32x128xf32> to vector<1x1x1x32x128xf32>
    tpu.vector_store %arg11[%c1_187, %c1_188, %c3_189, %c0_190, %c0_191], %225 {strides = array<i32>} : memref<2x2x5x40x128xf32, #tpu.memory_space<vmem>>, vector<1x1x1x32x128xf32>,
    %c1_192 = arith.constant 1 : index
    %c0_193 = arith.constant 0 : index
    %c3_194 = arith.constant 3 : index
    %c8_195 = arith.constant 8 : index
    %c0_196 = arith.constant 0 : index
    %226 = vector.load %arg11[%c1_192, %c0_193, %c3_194, %c8_195, %c0_196] : memref<2x2x5x40x128xf32, #tpu.memory_space<vmem>>, vector<1x1x1x32x128xf32>
    %227 = vector.shape_cast %226 : vector<1x1x1x32x128xf32> to vector<32x128xf32>
    %228 = vector.shape_cast %222 : vector<32x128xf32> to vector<1x1x1x32x128xf32>
    tpu.vector_store %arg11[%c1_192, %c0_193, %c3_194, %c8_195, %c0_196], %228 {strides = array<i32>} : memref<2x2x5x40x128xf32, #tpu.memory_space<vmem>>, vector<1x1x1x32x128xf32>,
    %c448 = arith.constant 448 : index
    %c0_197 = arith.constant 0 : index
    %229 = vector.load %arg0[%c448, %c0_197] : memref<512x384xbf16, #tpu.memory_space<vmem>>, vector<64x384xbf16>
    %c0_198 = arith.constant 0 : index
    %c0_199 = arith.constant 0 : index
    %230 = vector.load %arg1[%c0_198, %c0_199] : memref<384x128xbf16, #tpu.memory_space<vmem>>, vector<384x128xbf16>
    %cst_200 = arith.constant dense<0.000000e+00> : vector<64x128xf32>
    %231 = tpu.matmul %229, %230, %cst_200 {dimension_numbers = #tpu.dot_dimension_numbers<[1], [0], [0], [1], [0, 0, 1, 1], [], []>} : vector<64x384xbf16>, vector<384x128xbf16>, vector<64x128xf32> -> vector<64x128xf32>
    %cst_201 = arith.constant 0.000000e+00 : f32
    %232 = vector.broadcast %cst_201 : f32 to vector<64x128xf32>
    %233 = arith.maximumf %231, %232 : vector<64x128xf32>
    %cst_202 = arith.constant dense<0.000000e+00> : vector<128xf32>
    %234 = vector.multi_reduction <add>, %233, %cst_202 [0] : vector<64x128xf32> to vector<128xf32>
    %235 = vector.shape_cast %234 : vector<128xf32> to vector<1x128xf32>
    %236 = arith.addf %211, %235 : vector<1x128xf32>
    %237 = arith.mulf %233, %233 : vector<64x128xf32>
    %cst_203 = arith.constant dense<0.000000e+00> : vector<128xf32>
    %238 = vector.multi_reduction <add>, %237, %cst_203 [0] : vector<64x128xf32> to vector<128xf32>
    %239 = vector.shape_cast %238 : vector<128xf32> to vector<1x128xf32>
    %240 = arith.addf %215, %239 : vector<1x128xf32>
    %241 = vector.shape_cast %233 : vector<64x128xf32> to vector<4x2x8x128xf32>
    %242 = vector.extract_strided_slice %241 {offsets = [0, 0, 0, 0], sizes = [4, 1, 8, 128], strides = [1, 1, 1, 1]} : vector<4x2x8x128xf32> to vector<4x1x8x128xf32>
    %243 = vector.shape_cast %242 : vector<4x1x8x128xf32> to vector<4x8x128xf32>
    %244 = vector.shape_cast %243 : vector<4x8x128xf32> to vector<32x128xf32>
    %245 = vector.extract_strided_slice %241 {offsets = [0, 1, 0, 0], sizes = [4, 1, 8, 128], strides = [1, 1, 1, 1]} : vector<4x2x8x128xf32> to vector<4x1x8x128xf32>
    %246 = vector.shape_cast %245 : vector<4x1x8x128xf32> to vector<4x8x128xf32>
    %247 = vector.shape_cast %246 : vector<4x8x128xf32> to vector<32x128xf32>
    %c0_204 = arith.constant 0 : index
    %c1_205 = arith.constant 1 : index
    %c4_206 = arith.constant 4 : index
    %c0_207 = arith.constant 0 : index
    %c0_208 = arith.constant 0 : index
    %248 = vector.load %arg11[%c0_204, %c1_205, %c4_206, %c0_207, %c0_208] : memref<2x2x5x40x128xf32, #tpu.memory_space<vmem>>, vector<1x1x1x32x128xf32>
    %249 = vector.shape_cast %248 : vector<1x1x1x32x128xf32> to vector<32x128xf32>
    %250 = vector.shape_cast %244 : vector<32x128xf32> to vector<1x1x1x32x128xf32>
    tpu.vector_store %arg11[%c0_204, %c1_205, %c4_206, %c0_207, %c0_208], %250 {strides = array<i32>} : memref<2x2x5x40x128xf32, #tpu.memory_space<vmem>>, vector<1x1x1x32x128xf32>,
    %c0_209 = arith.constant 0 : index
    %c0_210 = arith.constant 0 : index
    %c4_211 = arith.constant 4 : index
    %c8_212 = arith.constant 8 : index
    %c0_213 = arith.constant 0 : index
    %251 = vector.load %arg11[%c0_209, %c0_210, %c4_211, %c8_212, %c0_213] : memref<2x2x5x40x128xf32, #tpu.memory_space<vmem>>, vector<1x1x1x32x128xf32>
    %252 = vector.shape_cast %251 : vector<1x1x1x32x128xf32> to vector<32x128xf32>
    %253 = vector.shape_cast %247 : vector<32x128xf32> to vector<1x1x1x32x128xf32>
    tpu.vector_store %arg11[%c0_209, %c0_210, %c4_211, %c8_212, %c0_213], %253 {strides = array<i32>} : memref<2x2x5x40x128xf32, #tpu.memory_space<vmem>>, vector<1x1x1x32x128xf32>,
    %cst_214 = arith.constant 0.001953125 : f32
    %254 = vector.broadcast %cst_214 : f32 to vector<1x128xf32>
    %255 = arith.mulf %236, %254 : vector<1x128xf32>
    %cst_215 = arith.constant 0.001953125 : f32
    %256 = vector.broadcast %cst_215 : f32 to vector<1x128xf32>
    %257 = arith.mulf %240, %256 : vector<1x128xf32>
    %258 = arith.mulf %255, %255 : vector<1x128xf32>
    %259 = arith.subf %257, %258 : vector<1x128xf32>
    %cst_216 = arith.constant 0.000000e+00 : f32
    %260 = vector.broadcast %cst_216 : f32 to vector<1x128xf32>
    %261 = arith.maximumf %259, %260 : vector<1x128xf32>
    %c0_217 = arith.constant 0 : index
    %c0_218 = arith.constant 0 : index
    %262 = vector.load %arg2[%c0_217, %c0_218] : memref<1x128xf32, #tpu.memory_space<vmem>>, vector<1x128xf32>
    %cst_219 = arith.constant 9.99999974E-6 : f32
    %263 = vector.broadcast %cst_219 : f32 to vector<1x128xf32>
    %264 = arith.addf %261, %263 : vector<1x128xf32>
    %265 = math.rsqrt %264 : vector<1x128xf32>
    %266 = arith.mulf %262, %265 : vector<1x128xf32>
    %c0_220 = arith.constant 0 : index
    %c0_221 = arith.constant 0 : index
    %267 = vector.load %arg3[%c0_220, %c0_221] : memref<1x128xf32, #tpu.memory_space<vmem>>, vector<1x128xf32>
    %268 = arith.mulf %255, %266 : vector<1x128xf32>
    %269 = arith.subf %267, %268 : vector<1x128xf32>
    %c0_222 = arith.constant 0 : index
    %c0_223 = arith.constant 0 : index
    %c1_224 = arith.constant 1 : index
    %c8_225 = arith.constant 8 : index
    %c0_226 = arith.constant 0 : index
    %270 = vector.load %arg11[%c0_222, %c0_223, %c1_224, %c8_225, %c0_226] : memref<2x2x5x40x128xf32, #tpu.memory_space<vmem>>, vector<1x1x4x32x128xf32>
    %271 = vector.shape_cast %270 : vector<1x1x4x32x128xf32> to vector<4x32x128xf32>
    %272 = vector.shape_cast %266 : vector<1x128xf32> to vector<1x1x128xf32>
    %273 = vector.broadcast %272 : vector<1x1x128xf32> to vector<4x32x128xf32>
    %274 = arith.mulf %271, %273 : vector<4x32x128xf32>
    %275 = vector.shape_cast %269 : vector<1x128xf32> to vector<1x1x128xf32>
    %276 = vector.broadcast %275 : vector<1x1x128xf32> to vector<4x32x128xf32>
    %277 = arith.addf %274, %276 : vector<4x32x128xf32>
    %c0_227 = arith.constant 0 : index
    %c0_228 = arith.constant 0 : index
    %c1_229 = arith.constant 1 : index
    %c8_230 = arith.constant 8 : index
    %c0_231 = arith.constant 0 : index
    %278 = vector.load %arg11[%c0_227, %c0_228, %c1_229, %c8_230, %c0_231] : memref<2x2x5x40x128xf32, #tpu.memory_space<vmem>>, vector<1x1x4x32x128xf32>
    %279 = vector.shape_cast %278 : vector<1x1x4x32x128xf32> to vector<4x32x128xf32>
    %280 = vector.shape_cast %277 : vector<4x32x128xf32> to vector<1x1x4x32x128xf32>
    tpu.vector_store %arg11[%c0_227, %c0_228, %c1_229, %c8_230, %c0_231], %280 {strides = array<i32>} : memref<2x2x5x40x128xf32, #tpu.memory_space<vmem>>, vector<1x1x4x32x128xf32>,
    %c0_232 = arith.constant 0 : index
    %c1_233 = arith.constant 1 : index
    %c1_234 = arith.constant 1 : index
    %c0_235 = arith.constant 0 : index
    %c0_236 = arith.constant 0 : index
    %281 = vector.load %arg11[%c0_232, %c1_233, %c1_234, %c0_235, %c0_236] : memref<2x2x5x40x128xf32, #tpu.memory_space<vmem>>, vector<1x1x4x32x128xf32>
    %282 = vector.shape_cast %281 : vector<1x1x4x32x128xf32> to vector<4x32x128xf32>
    %283 = vector.shape_cast %266 : vector<1x128xf32> to vector<1x1x128xf32>
    %284 = vector.broadcast %283 : vector<1x1x128xf32> to vector<4x32x128xf32>
    %285 = arith.mulf %282, %284 : vector<4x32x128xf32>
    %286 = vector.shape_cast %269 : vector<1x128xf32> to vector<1x1x128xf32>
    %287 = vector.broadcast %286 : vector<1x1x128xf32> to vector<4x32x128xf32>
    %288 = arith.addf %285, %287 : vector<4x32x128xf32>
    %c0_237 = arith.constant 0 : index
    %c1_238 = arith.constant 1 : index
    %c1_239 = arith.constant 1 : index
    %c0_240 = arith.constant 0 : index
    %c0_241 = arith.constant 0 : index
    %289 = vector.load %arg11[%c0_237, %c1_238, %c1_239, %c0_240, %c0_241] : memref<2x2x5x40x128xf32, #tpu.memory_space<vmem>>, vector<1x1x4x32x128xf32>
    %290 = vector.shape_cast %289 : vector<1x1x4x32x128xf32> to vector<4x32x128xf32>
    %291 = vector.shape_cast %288 : vector<4x32x128xf32> to vector<1x1x4x32x128xf32>
    tpu.vector_store %arg11[%c0_237, %c1_238, %c1_239, %c0_240, %c0_241], %291 {strides = array<i32>} : memref<2x2x5x40x128xf32, #tpu.memory_space<vmem>>, vector<1x1x4x32x128xf32>,
    %c1_242 = arith.constant 1 : index
    %c0_243 = arith.constant 0 : index
    %c0_244 = arith.constant 0 : index
    %c8_245 = arith.constant 8 : index
    %c0_246 = arith.constant 0 : index
    %292 = vector.load %arg11[%c1_242, %c0_243, %c0_244, %c8_245, %c0_246] : memref<2x2x5x40x128xf32, #tpu.memory_space<vmem>>, vector<1x1x4x32x128xf32>
    %293 = vector.shape_cast %292 : vector<1x1x4x32x128xf32> to vector<4x32x128xf32>
    %294 = vector.shape_cast %266 : vector<1x128xf32> to vector<1x1x128xf32>
    %295 = vector.broadcast %294 : vector<1x1x128xf32> to vector<4x32x128xf32>
    %296 = arith.mulf %293, %295 : vector<4x32x128xf32>
    %297 = vector.shape_cast %269 : vector<1x128xf32> to vector<1x1x128xf32>
    %298 = vector.broadcast %297 : vector<1x1x128xf32> to vector<4x32x128xf32>
    %299 = arith.addf %296, %298 : vector<4x32x128xf32>
    %c1_247 = arith.constant 1 : index
    %c0_248 = arith.constant 0 : index
    %c0_249 = arith.constant 0 : index
    %c8_250 = arith.constant 8 : index
    %c0_251 = arith.constant 0 : index
    %300 = vector.load %arg11[%c1_247, %c0_248, %c0_249, %c8_250, %c0_251] : memref<2x2x5x40x128xf32, #tpu.memory_space<vmem>>, vector<1x1x4x32x128xf32>
    %301 = vector.shape_cast %300 : vector<1x1x4x32x128xf32> to vector<4x32x128xf32>
    %302 = vector.shape_cast %299 : vector<4x32x128xf32> to vector<1x1x4x32x128xf32>
    tpu.vector_store %arg11[%c1_247, %c0_248, %c0_249, %c8_250, %c0_251], %302 {strides = array<i32>} : memref<2x2x5x40x128xf32, #tpu.memory_space<vmem>>, vector<1x1x4x32x128xf32>,
    %c1_252 = arith.constant 1 : index
    %c1_253 = arith.constant 1 : index
    %c0_254 = arith.constant 0 : index
    %c0_255 = arith.constant 0 : index
    %c0_256 = arith.constant 0 : index
    %303 = vector.load %arg11[%c1_252, %c1_253, %c0_254, %c0_255, %c0_256] : memref<2x2x5x40x128xf32, #tpu.memory_space<vmem>>, vector<1x1x4x32x128xf32>
    %304 = vector.shape_cast %303 : vector<1x1x4x32x128xf32> to vector<4x32x128xf32>
    %305 = vector.shape_cast %266 : vector<1x128xf32> to vector<1x1x128xf32>
    %306 = vector.broadcast %305 : vector<1x1x128xf32> to vector<4x32x128xf32>
    %307 = arith.mulf %304, %306 : vector<4x32x128xf32>
    %308 = vector.shape_cast %269 : vector<1x128xf32> to vector<1x1x128xf32>
    %309 = vector.broadcast %308 : vector<1x1x128xf32> to vector<4x32x128xf32>
    %310 = arith.addf %307, %309 : vector<4x32x128xf32>
    %c1_257 = arith.constant 1 : index
    %c1_258 = arith.constant 1 : index
    %c0_259 = arith.constant 0 : index
    %c0_260 = arith.constant 0 : index
    %c0_261 = arith.constant 0 : index
    %311 = vector.load %arg11[%c1_257, %c1_258, %c0_259, %c0_260, %c0_261] : memref<2x2x5x40x128xf32, #tpu.memory_space<vmem>>, vector<1x1x4x32x128xf32>
    %312 = vector.shape_cast %311 : vector<1x1x4x32x128xf32> to vector<4x32x128xf32>
    %313 = vector.shape_cast %310 : vector<4x32x128xf32> to vector<1x1x4x32x128xf32>
    tpu.vector_store %arg11[%c1_257, %c1_258, %c0_259, %c0_260, %c0_261], %313 {strides = array<i32>} : memref<2x2x5x40x128xf32, #tpu.memory_space<vmem>>, vector<1x1x4x32x128xf32>,
    %cst_262 = arith.constant 0.000000e+00 : f32
    %314 = vector.broadcast %cst_262 : f32 to vector<1x128xf32>
    %cst_263 = arith.constant 0.000000e+00 : f32
    %315 = vector.broadcast %cst_263 : f32 to vector<1x128xf32>
    %cst_264 = arith.constant 0.000000e+00 : f32
    %316 = vector.broadcast %cst_264 : f32 to vector<32x128xf32>
    %c0_265 = arith.constant 0 : index
    %c0_266 = arith.constant 0 : index
    %c0_267 = arith.constant 0 : index
    %c0_268 = arith.constant 0 : index
    %c0_269 = arith.constant 0 : index
    %317 = vector.load %arg11[%c0_265, %c0_266, %c0_267, %c0_268, %c0_269] : memref<2x2x5x40x128xf32, #tpu.memory_space<vmem>>, vector<1x1x1x32x128xf32>
    %318 = vector.shape_cast %317 : vector<1x1x1x32x128xf32> to vector<32x128xf32>
    %319 = arith.truncf %318 : vector<32x128xf32> to vector<32x128xbf16>
    %c0_270 = arith.constant 0 : index
    %c0_271 = arith.constant 0 : index
    %c0_272 = arith.constant 0 : index
    %c8_273 = arith.constant 8 : index
    %c0_274 = arith.constant 0 : index
    %320 = vector.load %arg11[%c0_270, %c0_271, %c0_272, %c8_273, %c0_274] : memref<2x2x5x40x128xf32, #tpu.memory_space<vmem>>, vector<1x1x1x32x128xf32>
    %321 = vector.shape_cast %320 : vector<1x1x1x32x128xf32> to vector<32x128xf32>
    %322 = arith.truncf %321 : vector<32x128xf32> to vector<32x128xbf16>
    %323 = tpu.concatenate %319, %322 in 1 : vector<32x128xbf16>, vector<32x128xbf16> -> vector<32x256xbf16>
    %c0_275 = arith.constant 0 : index
    %c0_276 = arith.constant 0 : index
    %c0_277 = arith.constant 0 : index
    %c0_278 = arith.constant 0 : index
    %324 = vector.load %arg4[%c0_275, %c0_276, %c0_277, %c0_278] : memref<4x2x256x128xbf16, #tpu.memory_space<vmem>>, vector<1x1x256x128xbf16>
    %325 = vector.shape_cast %324 : vector<1x1x256x128xbf16> to vector<256x128xbf16>
    %cst_279 = arith.constant dense<0.000000e+00> : vector<32x128xf32>
    %326 = tpu.matmul %323, %325, %cst_279 {dimension_numbers = #tpu.dot_dimension_numbers<[1], [0], [0], [1], [0, 0, 1, 1], [], []>} : vector<32x256xbf16>, vector<256x128xbf16>, vector<32x128xf32> -> vector<32x128xf32>
    %327 = arith.addf %316, %326 : vector<32x128xf32>
    %c0_280 = arith.constant 0 : index
    %c1_281 = arith.constant 1 : index
    %c0_282 = arith.constant 0 : index
    %c0_283 = arith.constant 0 : index
    %c0_284 = arith.constant 0 : index
    %328 = vector.load %arg11[%c0_280, %c1_281, %c0_282, %c0_283, %c0_284] : memref<2x2x5x40x128xf32, #tpu.memory_space<vmem>>, vector<1x1x1x32x128xf32>
    %329 = vector.shape_cast %328 : vector<1x1x1x32x128xf32> to vector<32x128xf32>
    %330 = arith.truncf %329 : vector<32x128xf32> to vector<32x128xbf16>
    %c0_285 = arith.constant 0 : index
    %c1_286 = arith.constant 1 : index
    %c0_287 = arith.constant 0 : index
    %c8_288 = arith.constant 8 : index
    %c0_289 = arith.constant 0 : index
    %331 = vector.load %arg11[%c0_285, %c1_286, %c0_287, %c8_288, %c0_289] : memref<2x2x5x40x128xf32, #tpu.memory_space<vmem>>, vector<1x1x1x32x128xf32>
    %332 = vector.shape_cast %331 : vector<1x1x1x32x128xf32> to vector<32x128xf32>
    %333 = arith.truncf %332 : vector<32x128xf32> to vector<32x128xbf16>
    %334 = tpu.concatenate %330, %333 in 1 : vector<32x128xbf16>, vector<32x128xbf16> -> vector<32x256xbf16>
    %c0_290 = arith.constant 0 : index
    %c1_291 = arith.constant 1 : index
    %c0_292 = arith.constant 0 : index
    %c0_293 = arith.constant 0 : index
    %335 = vector.load %arg4[%c0_290, %c1_291, %c0_292, %c0_293] : memref<4x2x256x128xbf16, #tpu.memory_space<vmem>>, vector<1x1x256x128xbf16>
    %336 = vector.shape_cast %335 : vector<1x1x256x128xbf16> to vector<256x128xbf16>
    %cst_294 = arith.constant dense<0.000000e+00> : vector<32x128xf32>
    %337 = tpu.matmul %334, %336, %cst_294 {dimension_numbers = #tpu.dot_dimension_numbers<[1], [0], [0], [1], [0, 0, 1, 1], [], []>} : vector<32x256xbf16>, vector<256x128xbf16>, vector<32x128xf32> -> vector<32x128xf32>
    %338 = arith.addf %327, %337 : vector<32x128xf32>
    %c1_295 = arith.constant 1 : index
    %c0_296 = arith.constant 0 : index
    %c0_297 = arith.constant 0 : index
    %c0_298 = arith.constant 0 : index
    %c0_299 = arith.constant 0 : index
    %339 = vector.load %arg11[%c1_295, %c0_296, %c0_297, %c0_298, %c0_299] : memref<2x2x5x40x128xf32, #tpu.memory_space<vmem>>, vector<1x1x1x32x128xf32>
    %340 = vector.shape_cast %339 : vector<1x1x1x32x128xf32> to vector<32x128xf32>
    %341 = arith.truncf %340 : vector<32x128xf32> to vector<32x128xbf16>
    %c1_300 = arith.constant 1 : index
    %c0_301 = arith.constant 0 : index
    %c0_302 = arith.constant 0 : index
    %c8_303 = arith.constant 8 : index
    %c0_304 = arith.constant 0 : index
    %342 = vector.load %arg11[%c1_300, %c0_301, %c0_302, %c8_303, %c0_304] : memref<2x2x5x40x128xf32, #tpu.memory_space<vmem>>, vector<1x1x1x32x128xf32>
    %343 = vector.shape_cast %342 : vector<1x1x1x32x128xf32> to vector<32x128xf32>
    %344 = arith.truncf %343 : vector<32x128xf32> to vector<32x128xbf16>
    %345 = tpu.concatenate %341, %344 in 1 : vector<32x128xbf16>, vector<32x128xbf16> -> vector<32x256xbf16>
    %c1_305 = arith.constant 1 : index
    %c0_306 = arith.constant 0 : index
    %c0_307 = arith.constant 0 : index
    %c0_308 = arith.constant 0 : index
    %346 = vector.load %arg4[%c1_305, %c0_306, %c0_307, %c0_308] : memref<4x2x256x128xbf16, #tpu.memory_space<vmem>>, vector<1x1x256x128xbf16>
    %347 = vector.shape_cast %346 : vector<1x1x256x128xbf16> to vector<256x128xbf16>
    %cst_309 = arith.constant dense<0.000000e+00> : vector<32x128xf32>
    %348 = tpu.matmul %345, %347, %cst_309 {dimension_numbers = #tpu.dot_dimension_numbers<[1], [0], [0], [1], [0, 0, 1, 1], [], []>} : vector<32x256xbf16>, vector<256x128xbf16>, vector<32x128xf32> -> vector<32x128xf32>
    %349 = arith.addf %338, %348 : vector<32x128xf32>
    %c1_310 = arith.constant 1 : index
    %c1_311 = arith.constant 1 : index
    %c0_312 = arith.constant 0 : index
    %c0_313 = arith.constant 0 : index
    %c0_314 = arith.constant 0 : index
    %350 = vector.load %arg11[%c1_310, %c1_311, %c0_312, %c0_313, %c0_314] : memref<2x2x5x40x128xf32, #tpu.memory_space<vmem>>, vector<1x1x1x32x128xf32>
    %351 = vector.shape_cast %350 : vector<1x1x1x32x128xf32> to vector<32x128xf32>
    %352 = arith.truncf %351 : vector<32x128xf32> to vector<32x128xbf16>
    %c1_315 = arith.constant 1 : index
    %c1_316 = arith.constant 1 : index
    %c0_317 = arith.constant 0 : index
    %c8_318 = arith.constant 8 : index
    %c0_319 = arith.constant 0 : index
    %353 = vector.load %arg11[%c1_315, %c1_316, %c0_317, %c8_318, %c0_319] : memref<2x2x5x40x128xf32, #tpu.memory_space<vmem>>, vector<1x1x1x32x128xf32>
    %354 = vector.shape_cast %353 : vector<1x1x1x32x128xf32> to vector<32x128xf32>
    %355 = arith.truncf %354 : vector<32x128xf32> to vector<32x128xbf16>
    %356 = tpu.concatenate %352, %355 in 1 : vector<32x128xbf16>, vector<32x128xbf16> -> vector<32x256xbf16>
    %c1_320 = arith.constant 1 : index
    %c1_321 = arith.constant 1 : index
    %c0_322 = arith.constant 0 : index
    %c0_323 = arith.constant 0 : index
    %357 = vector.load %arg4[%c1_320, %c1_321, %c0_322, %c0_323] : memref<4x2x256x128xbf16, #tpu.memory_space<vmem>>, vector<1x1x256x128xbf16>
    %358 = vector.shape_cast %357 : vector<1x1x256x128xbf16> to vector<256x128xbf16>
    %cst_324 = arith.constant dense<0.000000e+00> : vector<32x128xf32>
    %359 = tpu.matmul %356, %358, %cst_324 {dimension_numbers = #tpu.dot_dimension_numbers<[1], [0], [0], [1], [0, 0, 1, 1], [], []>} : vector<32x256xbf16>, vector<256x128xbf16>, vector<32x128xf32> -> vector<32x128xf32>
    %360 = arith.addf %349, %359 : vector<32x128xf32>
    %c0_325 = arith.constant 0 : index
    %c0_326 = arith.constant 0 : index
    %c1_327 = arith.constant 1 : index
    %c0_328 = arith.constant 0 : index
    %c0_329 = arith.constant 0 : index
    %361 = vector.load %arg11[%c0_325, %c0_326, %c1_327, %c0_328, %c0_329] : memref<2x2x5x40x128xf32, #tpu.memory_space<vmem>>, vector<1x1x1x32x128xf32>
    %362 = vector.shape_cast %361 : vector<1x1x1x32x128xf32> to vector<32x128xf32>
    %363 = arith.truncf %362 : vector<32x128xf32> to vector<32x128xbf16>
    %c0_330 = arith.constant 0 : index
    %c0_331 = arith.constant 0 : index
    %c1_332 = arith.constant 1 : index
    %c8_333 = arith.constant 8 : index
    %c0_334 = arith.constant 0 : index
    %364 = vector.load %arg11[%c0_330, %c0_331, %c1_332, %c8_333, %c0_334] : memref<2x2x5x40x128xf32, #tpu.memory_space<vmem>>, vector<1x1x1x32x128xf32>
    %365 = vector.shape_cast %364 : vector<1x1x1x32x128xf32> to vector<32x128xf32>
    %366 = arith.truncf %365 : vector<32x128xf32> to vector<32x128xbf16>
    %367 = tpu.concatenate %363, %366 in 1 : vector<32x128xbf16>, vector<32x128xbf16> -> vector<32x256xbf16>
    %c2_335 = arith.constant 2 : index
    %c0_336 = arith.constant 0 : index
    %c0_337 = arith.constant 0 : index
    %c0_338 = arith.constant 0 : index
    %368 = vector.load %arg4[%c2_335, %c0_336, %c0_337, %c0_338] : memref<4x2x256x128xbf16, #tpu.memory_space<vmem>>, vector<1x1x256x128xbf16>
    %369 = vector.shape_cast %368 : vector<1x1x256x128xbf16> to vector<256x128xbf16>
    %cst_339 = arith.constant dense<0.000000e+00> : vector<32x128xf32>
    %370 = tpu.matmul %367, %369, %cst_339 {dimension_numbers = #tpu.dot_dimension_numbers<[1], [0], [0], [1], [0, 0, 1, 1], [], []>} : vector<32x256xbf16>, vector<256x128xbf16>, vector<32x128xf32> -> vector<32x128xf32>
    %371 = arith.addf %360, %370 : vector<32x128xf32>
    %c0_340 = arith.constant 0 : index
    %c1_341 = arith.constant 1 : index
    %c1_342 = arith.constant 1 : index
    %c0_343 = arith.constant 0 : index
    %c0_344 = arith.constant 0 : index
    %372 = vector.load %arg11[%c0_340, %c1_341, %c1_342, %c0_343, %c0_344] : memref<2x2x5x40x128xf32, #tpu.memory_space<vmem>>, vector<1x1x1x32x128xf32>
    %373 = vector.shape_cast %372 : vector<1x1x1x32x128xf32> to vector<32x128xf32>
    %374 = arith.truncf %373 : vector<32x128xf32> to vector<32x128xbf16>
    %c0_345 = arith.constant 0 : index
    %c1_346 = arith.constant 1 : index
    %c1_347 = arith.constant 1 : index
    %c8_348 = arith.constant 8 : index
    %c0_349 = arith.constant 0 : index
    %375 = vector.load %arg11[%c0_345, %c1_346, %c1_347, %c8_348, %c0_349] : memref<2x2x5x40x128xf32, #tpu.memory_space<vmem>>, vector<1x1x1x32x128xf32>
    %376 = vector.shape_cast %375 : vector<1x1x1x32x128xf32> to vector<32x128xf32>
    %377 = arith.truncf %376 : vector<32x128xf32> to vector<32x128xbf16>
    %378 = tpu.concatenate %374, %377 in 1 : vector<32x128xbf16>, vector<32x128xbf16> -> vector<32x256xbf16>
    %c2_350 = arith.constant 2 : index
    %c1_351 = arith.constant 1 : index
    %c0_352 = arith.constant 0 : index
    %c0_353 = arith.constant 0 : index
    %379 = vector.load %arg4[%c2_350, %c1_351, %c0_352, %c0_353] : memref<4x2x256x128xbf16, #tpu.memory_space<vmem>>, vector<1x1x256x128xbf16>
    %380 = vector.shape_cast %379 : vector<1x1x256x128xbf16> to vector<256x128xbf16>
    %cst_354 = arith.constant dense<0.000000e+00> : vector<32x128xf32>
    %381 = tpu.matmul %378, %380, %cst_354 {dimension_numbers = #tpu.dot_dimension_numbers<[1], [0], [0], [1], [0, 0, 1, 1], [], []>} : vector<32x256xbf16>, vector<256x128xbf16>, vector<32x128xf32> -> vector<32x128xf32>
    %382 = arith.addf %371, %381 : vector<32x128xf32>
    %c1_355 = arith.constant 1 : index
    %c0_356 = arith.constant 0 : index
    %c1_357 = arith.constant 1 : index
    %c0_358 = arith.constant 0 : index
    %c0_359 = arith.constant 0 : index
    %383 = vector.load %arg11[%c1_355, %c0_356, %c1_357, %c0_358, %c0_359] : memref<2x2x5x40x128xf32, #tpu.memory_space<vmem>>, vector<1x1x1x32x128xf32>
    %384 = vector.shape_cast %383 : vector<1x1x1x32x128xf32> to vector<32x128xf32>
    %385 = arith.truncf %384 : vector<32x128xf32> to vector<32x128xbf16>
    %c1_360 = arith.constant 1 : index
    %c0_361 = arith.constant 0 : index
    %c1_362 = arith.constant 1 : index
    %c8_363 = arith.constant 8 : index
    %c0_364 = arith.constant 0 : index
    %386 = vector.load %arg11[%c1_360, %c0_361, %c1_362, %c8_363, %c0_364] : memref<2x2x5x40x128xf32, #tpu.memory_space<vmem>>, vector<1x1x1x32x128xf32>
    %387 = vector.shape_cast %386 : vector<1x1x1x32x128xf32> to vector<32x128xf32>
    %388 = arith.truncf %387 : vector<32x128xf32> to vector<32x128xbf16>
    %389 = tpu.concatenate %385, %388 in 1 : vector<32x128xbf16>, vector<32x128xbf16> -> vector<32x256xbf16>
    %c3_365 = arith.constant 3 : index
    %c0_366 = arith.constant 0 : index
    %c0_367 = arith.constant 0 : index
    %c0_368 = arith.constant 0 : index
    %390 = vector.load %arg4[%c3_365, %c0_366, %c0_367, %c0_368] : memref<4x2x256x128xbf16, #tpu.memory_space<vmem>>, vector<1x1x256x128xbf16>
    %391 = vector.shape_cast %390 : vector<1x1x256x128xbf16> to vector<256x128xbf16>
    %cst_369 = arith.constant dense<0.000000e+00> : vector<32x128xf32>
    %392 = tpu.matmul %389, %391, %cst_369 {dimension_numbers = #tpu.dot_dimension_numbers<[1], [0], [0], [1], [0, 0, 1, 1], [], []>} : vector<32x256xbf16>, vector<256x128xbf16>, vector<32x128xf32> -> vector<32x128xf32>
    %393 = arith.addf %382, %392 : vector<32x128xf32>
    %c1_370 = arith.constant 1 : index
    %c1_371 = arith.constant 1 : index
    %c1_372 = arith.constant 1 : index
    %c0_373 = arith.constant 0 : index
    %c0_374 = arith.constant 0 : index
    %394 = vector.load %arg11[%c1_370, %c1_371, %c1_372, %c0_373, %c0_374] : memref<2x2x5x40x128xf32, #tpu.memory_space<vmem>>, vector<1x1x1x32x128xf32>
    %395 = vector.shape_cast %394 : vector<1x1x1x32x128xf32> to vector<32x128xf32>
    %396 = arith.truncf %395 : vector<32x128xf32> to vector<32x128xbf16>
    %c1_375 = arith.constant 1 : index
    %c1_376 = arith.constant 1 : index
    %c1_377 = arith.constant 1 : index
    %c8_378 = arith.constant 8 : index
    %c0_379 = arith.constant 0 : index
    %397 = vector.load %arg11[%c1_375, %c1_376, %c1_377, %c8_378, %c0_379] : memref<2x2x5x40x128xf32, #tpu.memory_space<vmem>>, vector<1x1x1x32x128xf32>
    %398 = vector.shape_cast %397 : vector<1x1x1x32x128xf32> to vector<32x128xf32>
    %399 = arith.truncf %398 : vector<32x128xf32> to vector<32x128xbf16>
    %400 = tpu.concatenate %396, %399 in 1 : vector<32x128xbf16>, vector<32x128xbf16> -> vector<32x256xbf16>
    %c3_380 = arith.constant 3 : index
    %c1_381 = arith.constant 1 : index
    %c0_382 = arith.constant 0 : index
    %c0_383 = arith.constant 0 : index
    %401 = vector.load %arg4[%c3_380, %c1_381, %c0_382, %c0_383] : memref<4x2x256x128xbf16, #tpu.memory_space<vmem>>, vector<1x1x256x128xbf16>
    %402 = vector.shape_cast %401 : vector<1x1x256x128xbf16> to vector<256x128xbf16>
    %cst_384 = arith.constant dense<0.000000e+00> : vector<32x128xf32>
    %403 = tpu.matmul %400, %402, %cst_384 {dimension_numbers = #tpu.dot_dimension_numbers<[1], [0], [0], [1], [0, 0, 1, 1], [], []>} : vector<32x256xbf16>, vector<256x128xbf16>, vector<32x128xf32> -> vector<32x128xf32>
    %404 = arith.addf %393, %403 : vector<32x128xf32>
    %cst_385 = arith.constant 0.000000e+00 : f32
    %405 = vector.broadcast %cst_385 : f32 to vector<32x128xf32>
    %406 = arith.maximumf %404, %405 : vector<32x128xf32>
    %cst_386 = arith.constant dense<0.000000e+00> : vector<128xf32>
    %407 = vector.multi_reduction <add>, %406, %cst_386 [0] : vector<32x128xf32> to vector<128xf32>
    %408 = vector.shape_cast %407 : vector<128xf32> to vector<1x128xf32>
    %409 = arith.addf %314, %408 : vector<1x128xf32>
    %410 = arith.mulf %406, %406 : vector<32x128xf32>
    %cst_387 = arith.constant dense<0.000000e+00> : vector<128xf32>
    %411 = vector.multi_reduction <add>, %410, %cst_387 [0] : vector<32x128xf32> to vector<128xf32>
    %412 = vector.shape_cast %411 : vector<128xf32> to vector<1x128xf32>
    %413 = arith.addf %315, %412 : vector<1x128xf32>
    %414 = vector.shape_cast %406 : vector<32x128xf32> to vector<2x2x8x128xf32>
    %415 = vector.extract_strided_slice %414 {offsets = [0, 0, 0, 0], sizes = [2, 1, 8, 128], strides = [1, 1, 1, 1]} : vector<2x2x8x128xf32> to vector<2x1x8x128xf32>
    %416 = vector.shape_cast %415 : vector<2x1x8x128xf32> to vector<2x8x128xf32>
    %417 = vector.shape_cast %416 : vector<2x8x128xf32> to vector<16x128xf32>
    %418 = vector.extract_strided_slice %414 {offsets = [0, 1, 0, 0], sizes = [2, 1, 8, 128], strides = [1, 1, 1, 1]} : vector<2x2x8x128xf32> to vector<2x1x8x128xf32>
    %419 = vector.shape_cast %418 : vector<2x1x8x128xf32> to vector<2x8x128xf32>
    %420 = vector.shape_cast %419 : vector<2x8x128xf32> to vector<16x128xf32>
    %c1_388 = arith.constant 1 : index
    %c1_389 = arith.constant 1 : index
    %c0_390 = arith.constant 0 : index
    %c0_391 = arith.constant 0 : index
    %c0_392 = arith.constant 0 : index
    %421 = vector.load %arg12[%c1_388, %c1_389, %c0_390, %c0_391, %c0_392] : memref<2x2x3x24x128xf32, #tpu.memory_space<vmem>>, vector<1x1x1x16x128xf32>
    %422 = vector.shape_cast %421 : vector<1x1x1x16x128xf32> to vector<16x128xf32>
    %423 = vector.shape_cast %417 : vector<16x128xf32> to vector<1x1x1x16x128xf32>
    tpu.vector_store %arg12[%c1_388, %c1_389, %c0_390, %c0_391, %c0_392], %423 {strides = array<i32>} : memref<2x2x3x24x128xf32, #tpu.memory_space<vmem>>, vector<1x1x1x16x128xf32>,
    %c1_393 = arith.constant 1 : index
    %c0_394 = arith.constant 0 : index
    %c0_395 = arith.constant 0 : index
    %c8_396 = arith.constant 8 : index
    %c0_397 = arith.constant 0 : index
    %424 = vector.load %arg12[%c1_393, %c0_394, %c0_395, %c8_396, %c0_397] : memref<2x2x3x24x128xf32, #tpu.memory_space<vmem>>, vector<1x1x1x16x128xf32>
    %425 = vector.shape_cast %424 : vector<1x1x1x16x128xf32> to vector<16x128xf32>
    %426 = vector.shape_cast %420 : vector<16x128xf32> to vector<1x1x1x16x128xf32>
    tpu.vector_store %arg12[%c1_393, %c0_394, %c0_395, %c8_396, %c0_397], %426 {strides = array<i32>} : memref<2x2x3x24x128xf32, #tpu.memory_space<vmem>>, vector<1x1x1x16x128xf32>,
    %cst_398 = arith.constant 0.000000e+00 : f32
    %427 = vector.broadcast %cst_398 : f32 to vector<32x128xf32>
    %c0_399 = arith.constant 0 : index
    %c0_400 = arith.constant 0 : index
    %c1_401 = arith.constant 1 : index
    %c0_402 = arith.constant 0 : index
    %c0_403 = arith.constant 0 : index
    %428 = vector.load %arg11[%c0_399, %c0_400, %c1_401, %c0_402, %c0_403] : memref<2x2x5x40x128xf32, #tpu.memory_space<vmem>>, vector<1x1x1x32x128xf32>
    %429 = vector.shape_cast %428 : vector<1x1x1x32x128xf32> to vector<32x128xf32>
    %430 = arith.truncf %429 : vector<32x128xf32> to vector<32x128xbf16>
    %c0_404 = arith.constant 0 : index
    %c0_405 = arith.constant 0 : index
    %c1_406 = arith.constant 1 : index
    %c8_407 = arith.constant 8 : index
    %c0_408 = arith.constant 0 : index
    %431 = vector.load %arg11[%c0_404, %c0_405, %c1_406, %c8_407, %c0_408] : memref<2x2x5x40x128xf32, #tpu.memory_space<vmem>>, vector<1x1x1x32x128xf32>
    %432 = vector.shape_cast %431 : vector<1x1x1x32x128xf32> to vector<32x128xf32>
    %433 = arith.truncf %432 : vector<32x128xf32> to vector<32x128xbf16>
    %434 = tpu.concatenate %430, %433 in 1 : vector<32x128xbf16>, vector<32x128xbf16> -> vector<32x256xbf16>
    %c0_409 = arith.constant 0 : index
    %c0_410 = arith.constant 0 : index
    %c0_411 = arith.constant 0 : index
    %c0_412 = arith.constant 0 : index
    %435 = vector.load %arg4[%c0_409, %c0_410, %c0_411, %c0_412] : memref<4x2x256x128xbf16, #tpu.memory_space<vmem>>, vector<1x1x256x128xbf16>
    %436 = vector.shape_cast %435 : vector<1x1x256x128xbf16> to vector<256x128xbf16>
    %cst_413 = arith.constant dense<0.000000e+00> : vector<32x128xf32>
    %437 = tpu.matmul %434, %436, %cst_413 {dimension_numbers = #tpu.dot_dimension_numbers<[1], [0], [0], [1], [0, 0, 1, 1], [], []>} : vector<32x256xbf16>, vector<256x128xbf16>, vector<32x128xf32> -> vector<32x128xf32>
    %438 = arith.addf %427, %437 : vector<32x128xf32>
    %c0_414 = arith.constant 0 : index
    %c1_415 = arith.constant 1 : index
    %c1_416 = arith.constant 1 : index
    %c0_417 = arith.constant 0 : index
    %c0_418 = arith.constant 0 : index
    %439 = vector.load %arg11[%c0_414, %c1_415, %c1_416, %c0_417, %c0_418] : memref<2x2x5x40x128xf32, #tpu.memory_space<vmem>>, vector<1x1x1x32x128xf32>
    %440 = vector.shape_cast %439 : vector<1x1x1x32x128xf32> to vector<32x128xf32>
    %441 = arith.truncf %440 : vector<32x128xf32> to vector<32x128xbf16>
    %c0_419 = arith.constant 0 : index
    %c1_420 = arith.constant 1 : index
    %c1_421 = arith.constant 1 : index
    %c8_422 = arith.constant 8 : index
    %c0_423 = arith.constant 0 : index
    %442 = vector.load %arg11[%c0_419, %c1_420, %c1_421, %c8_422, %c0_423] : memref<2x2x5x40x128xf32, #tpu.memory_space<vmem>>, vector<1x1x1x32x128xf32>
    %443 = vector.shape_cast %442 : vector<1x1x1x32x128xf32> to vector<32x128xf32>
    %444 = arith.truncf %443 : vector<32x128xf32> to vector<32x128xbf16>
    %445 = tpu.concatenate %441, %444 in 1 : vector<32x128xbf16>, vector<32x128xbf16> -> vector<32x256xbf16>
    %c0_424 = arith.constant 0 : index
    %c1_425 = arith.constant 1 : index
    %c0_426 = arith.constant 0 : index
    %c0_427 = arith.constant 0 : index
    %446 = vector.load %arg4[%c0_424, %c1_425, %c0_426, %c0_427] : memref<4x2x256x128xbf16, #tpu.memory_space<vmem>>, vector<1x1x256x128xbf16>
    %447 = vector.shape_cast %446 : vector<1x1x256x128xbf16> to vector<256x128xbf16>
    %cst_428 = arith.constant dense<0.000000e+00> : vector<32x128xf32>
    %448 = tpu.matmul %445, %447, %cst_428 {dimension_numbers = #tpu.dot_dimension_numbers<[1], [0], [0], [1], [0, 0, 1, 1], [], []>} : vector<32x256xbf16>, vector<256x128xbf16>, vector<32x128xf32> -> vector<32x128xf32>
    %449 = arith.addf %438, %448 : vector<32x128xf32>
    %c1_429 = arith.constant 1 : index
    %c0_430 = arith.constant 0 : index
    %c1_431 = arith.constant 1 : index
    %c0_432 = arith.constant 0 : index
    %c0_433 = arith.constant 0 : index
    %450 = vector.load %arg11[%c1_429, %c0_430, %c1_431, %c0_432, %c0_433] : memref<2x2x5x40x128xf32, #tpu.memory_space<vmem>>, vector<1x1x1x32x128xf32>
    %451 = vector.shape_cast %450 : vector<1x1x1x32x128xf32> to vector<32x128xf32>
    %452 = arith.truncf %451 : vector<32x128xf32> to vector<32x128xbf16>
    %c1_434 = arith.constant 1 : index
    %c0_435 = arith.constant 0 : index
    %c1_436 = arith.constant 1 : index
    %c8_437 = arith.constant 8 : index
    %c0_438 = arith.constant 0 : index
    %453 = vector.load %arg11[%c1_434, %c0_435, %c1_436, %c8_437, %c0_438] : memref<2x2x5x40x128xf32, #tpu.memory_space<vmem>>, vector<1x1x1x32x128xf32>
    %454 = vector.shape_cast %453 : vector<1x1x1x32x128xf32> to vector<32x128xf32>
    %455 = arith.truncf %454 : vector<32x128xf32> to vector<32x128xbf16>
    %456 = tpu.concatenate %452, %455 in 1 : vector<32x128xbf16>, vector<32x128xbf16> -> vector<32x256xbf16>
    %c1_439 = arith.constant 1 : index
    %c0_440 = arith.constant 0 : index
    %c0_441 = arith.constant 0 : index
    %c0_442 = arith.constant 0 : index
    %457 = vector.load %arg4[%c1_439, %c0_440, %c0_441, %c0_442] : memref<4x2x256x128xbf16, #tpu.memory_space<vmem>>, vector<1x1x256x128xbf16>
    %458 = vector.shape_cast %457 : vector<1x1x256x128xbf16> to vector<256x128xbf16>
    %cst_443 = arith.constant dense<0.000000e+00> : vector<32x128xf32>
    %459 = tpu.matmul %456, %458, %cst_443 {dimension_numbers = #tpu.dot_dimension_numbers<[1], [0], [0], [1], [0, 0, 1, 1], [], []>} : vector<32x256xbf16>, vector<256x128xbf16>, vector<32x128xf32> -> vector<32x128xf32>
    %460 = arith.addf %449, %459 : vector<32x128xf32>
    %c1_444 = arith.constant 1 : index
    %c1_445 = arith.constant 1 : index
    %c1_446 = arith.constant 1 : index
    %c0_447 = arith.constant 0 : index
    %c0_448 = arith.constant 0 : index
    %461 = vector.load %arg11[%c1_444, %c1_445, %c1_446, %c0_447, %c0_448] : memref<2x2x5x40x128xf32, #tpu.memory_space<vmem>>, vector<1x1x1x32x128xf32>
    %462 = vector.shape_cast %461 : vector<1x1x1x32x128xf32> to vector<32x128xf32>
    %463 = arith.truncf %462 : vector<32x128xf32> to vector<32x128xbf16>
    %c1_449 = arith.constant 1 : index
    %c1_450 = arith.constant 1 : index
    %c1_451 = arith.constant 1 : index
    %c8_452 = arith.constant 8 : index
    %c0_453 = arith.constant 0 : index
    %464 = vector.load %arg11[%c1_449, %c1_450, %c1_451, %c8_452, %c0_453] : memref<2x2x5x40x128xf32, #tpu.memory_space<vmem>>, vector<1x1x1x32x128xf32>
    %465 = vector.shape_cast %464 : vector<1x1x1x32x128xf32> to vector<32x128xf32>
    %466 = arith.truncf %465 : vector<32x128xf32> to vector<32x128xbf16>
    %467 = tpu.concatenate %463, %466 in 1 : vector<32x128xbf16>, vector<32x128xbf16> -> vector<32x256xbf16>
    %c1_454 = arith.constant 1 : index
    %c1_455 = arith.constant 1 : index
    %c0_456 = arith.constant 0 : index
    %c0_457 = arith.constant 0 : index
    %468 = vector.load %arg4[%c1_454, %c1_455, %c0_456, %c0_457] : memref<4x2x256x128xbf16, #tpu.memory_space<vmem>>, vector<1x1x256x128xbf16>
    %469 = vector.shape_cast %468 : vector<1x1x256x128xbf16> to vector<256x128xbf16>
    %cst_458 = arith.constant dense<0.000000e+00> : vector<32x128xf32>
    %470 = tpu.matmul %467, %469, %cst_458 {dimension_numbers = #tpu.dot_dimension_numbers<[1], [0], [0], [1], [0, 0, 1, 1], [], []>} : vector<32x256xbf16>, vector<256x128xbf16>, vector<32x128xf32> -> vector<32x128xf32>
    %471 = arith.addf %460, %470 : vector<32x128xf32>
    %c0_459 = arith.constant 0 : index
    %c0_460 = arith.constant 0 : index
    %c2_461 = arith.constant 2 : index
    %c0_462 = arith.constant 0 : index
    %c0_463 = arith.constant 0 : index
    %472 = vector.load %arg11[%c0_459, %c0_460, %c2_461, %c0_462, %c0_463] : memref<2x2x5x40x128xf32, #tpu.memory_space<vmem>>, vector<1x1x1x32x128xf32>
    %473 = vector.shape_cast %472 : vector<1x1x1x32x128xf32> to vector<32x128xf32>
    %474 = arith.truncf %473 : vector<32x128xf32> to vector<32x128xbf16>
    %c0_464 = arith.constant 0 : index
    %c0_465 = arith.constant 0 : index
    %c2_466 = arith.constant 2 : index
    %c8_467 = arith.constant 8 : index
    %c0_468 = arith.constant 0 : index
    %475 = vector.load %arg11[%c0_464, %c0_465, %c2_466, %c8_467, %c0_468] : memref<2x2x5x40x128xf32, #tpu.memory_space<vmem>>, vector<1x1x1x32x128xf32>
    %476 = vector.shape_cast %475 : vector<1x1x1x32x128xf32> to vector<32x128xf32>
    %477 = arith.truncf %476 : vector<32x128xf32> to vector<32x128xbf16>
    %478 = tpu.concatenate %474, %477 in 1 : vector<32x128xbf16>, vector<32x128xbf16> -> vector<32x256xbf16>
    %c2_469 = arith.constant 2 : index
    %c0_470 = arith.constant 0 : index
    %c0_471 = arith.constant 0 : index
    %c0_472 = arith.constant 0 : index
    %479 = vector.load %arg4[%c2_469, %c0_470, %c0_471, %c0_472] : memref<4x2x256x128xbf16, #tpu.memory_space<vmem>>, vector<1x1x256x128xbf16>
    %480 = vector.shape_cast %479 : vector<1x1x256x128xbf16> to vector<256x128xbf16>
    %cst_473 = arith.constant dense<0.000000e+00> : vector<32x128xf32>
    %481 = tpu.matmul %478, %480, %cst_473 {dimension_numbers = #tpu.dot_dimension_numbers<[1], [0], [0], [1], [0, 0, 1, 1], [], []>} : vector<32x256xbf16>, vector<256x128xbf16>, vector<32x128xf32> -> vector<32x128xf32>
    %482 = arith.addf %471, %481 : vector<32x128xf32>
    %c0_474 = arith.constant 0 : index
    %c1_475 = arith.constant 1 : index
    %c2_476 = arith.constant 2 : index
    %c0_477 = arith.constant 0 : index
    %c0_478 = arith.constant 0 : index
    %483 = vector.load %arg11[%c0_474, %c1_475, %c2_476, %c0_477, %c0_478] : memref<2x2x5x40x128xf32, #tpu.memory_space<vmem>>, vector<1x1x1x32x128xf32>
    %484 = vector.shape_cast %483 : vector<1x1x1x32x128xf32> to vector<32x128xf32>
    %485 = arith.truncf %484 : vector<32x128xf32> to vector<32x128xbf16>
    %c0_479 = arith.constant 0 : index
    %c1_480 = arith.constant 1 : index
    %c2_481 = arith.constant 2 : index
    %c8_482 = arith.constant 8 : index
    %c0_483 = arith.constant 0 : index
    %486 = vector.load %arg11[%c0_479, %c1_480, %c2_481, %c8_482, %c0_483] : memref<2x2x5x40x128xf32, #tpu.memory_space<vmem>>, vector<1x1x1x32x128xf32>
    %487 = vector.shape_cast %486 : vector<1x1x1x32x128xf32> to vector<32x128xf32>
    %488 = arith.truncf %487 : vector<32x128xf32> to vector<32x128xbf16>
    %489 = tpu.concatenate %485, %488 in 1 : vector<32x128xbf16>, vector<32x128xbf16> -> vector<32x256xbf16>
    %c2_484 = arith.constant 2 : index
    %c1_485 = arith.constant 1 : index
    %c0_486 = arith.constant 0 : index
    %c0_487 = arith.constant 0 : index
    %490 = vector.load %arg4[%c2_484, %c1_485, %c0_486, %c0_487] : memref<4x2x256x128xbf16, #tpu.memory_space<vmem>>, vector<1x1x256x128xbf16>
    %491 = vector.shape_cast %490 : vector<1x1x256x128xbf16> to vector<256x128xbf16>
    %cst_488 = arith.constant dense<0.000000e+00> : vector<32x128xf32>
    %492 = tpu.matmul %489, %491, %cst_488 {dimension_numbers = #tpu.dot_dimension_numbers<[1], [0], [0], [1], [0, 0, 1, 1], [], []>} : vector<32x256xbf16>, vector<256x128xbf16>, vector<32x128xf32> -> vector<32x128xf32>
    %493 = arith.addf %482, %492 : vector<32x128xf32>
    %c1_489 = arith.constant 1 : index
    %c0_490 = arith.constant 0 : index
    %c2_491 = arith.constant 2 : index
    %c0_492 = arith.constant 0 : index
    %c0_493 = arith.constant 0 : index
    %494 = vector.load %arg11[%c1_489, %c0_490, %c2_491, %c0_492, %c0_493] : memref<2x2x5x40x128xf32, #tpu.memory_space<vmem>>, vector<1x1x1x32x128xf32>
    %495 = vector.shape_cast %494 : vector<1x1x1x32x128xf32> to vector<32x128xf32>
    %496 = arith.truncf %495 : vector<32x128xf32> to vector<32x128xbf16>
    %c1_494 = arith.constant 1 : index
    %c0_495 = arith.constant 0 : index
    %c2_496 = arith.constant 2 : index
    %c8_497 = arith.constant 8 : index
    %c0_498 = arith.constant 0 : index
    %497 = vector.load %arg11[%c1_494, %c0_495, %c2_496, %c8_497, %c0_498] : memref<2x2x5x40x128xf32, #tpu.memory_space<vmem>>, vector<1x1x1x32x128xf32>
    %498 = vector.shape_cast %497 : vector<1x1x1x32x128xf32> to vector<32x128xf32>
    %499 = arith.truncf %498 : vector<32x128xf32> to vector<32x128xbf16>
    %500 = tpu.concatenate %496, %499 in 1 : vector<32x128xbf16>, vector<32x128xbf16> -> vector<32x256xbf16>
    %c3_499 = arith.constant 3 : index
    %c0_500 = arith.constant 0 : index
    %c0_501 = arith.constant 0 : index
    %c0_502 = arith.constant 0 : index
    %501 = vector.load %arg4[%c3_499, %c0_500, %c0_501, %c0_502] : memref<4x2x256x128xbf16, #tpu.memory_space<vmem>>, vector<1x1x256x128xbf16>
    %502 = vector.shape_cast %501 : vector<1x1x256x128xbf16> to vector<256x128xbf16>
    %cst_503 = arith.constant dense<0.000000e+00> : vector<32x128xf32>
    %503 = tpu.matmul %500, %502, %cst_503 {dimension_numbers = #tpu.dot_dimension_numbers<[1], [0], [0], [1], [0, 0, 1, 1], [], []>} : vector<32x256xbf16>, vector<256x128xbf16>, vector<32x128xf32> -> vector<32x128xf32>
    %504 = arith.addf %493, %503 : vector<32x128xf32>
    %c1_504 = arith.constant 1 : index
    %c1_505 = arith.constant 1 : index
    %c2_506 = arith.constant 2 : index
    %c0_507 = arith.constant 0 : index
    %c0_508 = arith.constant 0 : index
    %505 = vector.load %arg11[%c1_504, %c1_505, %c2_506, %c0_507, %c0_508] : memref<2x2x5x40x128xf32, #tpu.memory_space<vmem>>, vector<1x1x1x32x128xf32>
    %506 = vector.shape_cast %505 : vector<1x1x1x32x128xf32> to vector<32x128xf32>
    %507 = arith.truncf %506 : vector<32x128xf32> to vector<32x128xbf16>
    %c1_509 = arith.constant 1 : index
    %c1_510 = arith.constant 1 : index
    %c2_511 = arith.constant 2 : index
    %c8_512 = arith.constant 8 : index
    %c0_513 = arith.constant 0 : index
    %508 = vector.load %arg11[%c1_509, %c1_510, %c2_511, %c8_512, %c0_513] : memref<2x2x5x40x128xf32, #tpu.memory_space<vmem>>, vector<1x1x1x32x128xf32>
    %509 = vector.shape_cast %508 : vector<1x1x1x32x128xf32> to vector<32x128xf32>
    %510 = arith.truncf %509 : vector<32x128xf32> to vector<32x128xbf16>
    %511 = tpu.concatenate %507, %510 in 1 : vector<32x128xbf16>, vector<32x128xbf16> -> vector<32x256xbf16>
    %c3_514 = arith.constant 3 : index
    %c1_515 = arith.constant 1 : index
    %c0_516 = arith.constant 0 : index
    %c0_517 = arith.constant 0 : index
    %512 = vector.load %arg4[%c3_514, %c1_515, %c0_516, %c0_517] : memref<4x2x256x128xbf16, #tpu.memory_space<vmem>>, vector<1x1x256x128xbf16>
    %513 = vector.shape_cast %512 : vector<1x1x256x128xbf16> to vector<256x128xbf16>
    %cst_518 = arith.constant dense<0.000000e+00> : vector<32x128xf32>
    %514 = tpu.matmul %511, %513, %cst_518 {dimension_numbers = #tpu.dot_dimension_numbers<[1], [0], [0], [1], [0, 0, 1, 1], [], []>} : vector<32x256xbf16>, vector<256x128xbf16>, vector<32x128xf32> -> vector<32x128xf32>
    %515 = arith.addf %504, %514 : vector<32x128xf32>
    %cst_519 = arith.constant 0.000000e+00 : f32
    %516 = vector.broadcast %cst_519 : f32 to vector<32x128xf32>
    %517 = arith.maximumf %515, %516 : vector<32x128xf32>
    %cst_520 = arith.constant dense<0.000000e+00> : vector<128xf32>
    %518 = vector.multi_reduction <add>, %517, %cst_520 [0] : vector<32x128xf32> to vector<128xf32>
    %519 = vector.shape_cast %518 : vector<128xf32> to vector<1x128xf32>
    %520 = arith.addf %409, %519 : vector<1x128xf32>
    %521 = arith.mulf %517, %517 : vector<32x128xf32>
    %cst_521 = arith.constant dense<0.000000e+00> : vector<128xf32>
    %522 = vector.multi_reduction <add>, %521, %cst_521 [0] : vector<32x128xf32> to vector<128xf32>
    %523 = vector.shape_cast %522 : vector<128xf32> to vector<1x128xf32>
    %524 = arith.addf %413, %523 : vector<1x128xf32>
    %525 = vector.shape_cast %517 : vector<32x128xf32> to vector<2x2x8x128xf32>
    %526 = vector.extract_strided_slice %525 {offsets = [0, 0, 0, 0], sizes = [2, 1, 8, 128], strides = [1, 1, 1, 1]} : vector<2x2x8x128xf32> to vector<2x1x8x128xf32>
    %527 = vector.shape_cast %526 : vector<2x1x8x128xf32> to vector<2x8x128xf32>
    %528 = vector.shape_cast %527 : vector<2x8x128xf32> to vector<16x128xf32>
    %529 = vector.extract_strided_slice %525 {offsets = [0, 1, 0, 0], sizes = [2, 1, 8, 128], strides = [1, 1, 1, 1]} : vector<2x2x8x128xf32> to vector<2x1x8x128xf32>
    %530 = vector.shape_cast %529 : vector<2x1x8x128xf32> to vector<2x8x128xf32>
    %531 = vector.shape_cast %530 : vector<2x8x128xf32> to vector<16x128xf32>
    %c0_522 = arith.constant 0 : index
    %c1_523 = arith.constant 1 : index
    %c1_524 = arith.constant 1 : index
    %c0_525 = arith.constant 0 : index
    %c0_526 = arith.constant 0 : index
    %532 = vector.load %arg12[%c0_522, %c1_523, %c1_524, %c0_525, %c0_526] : memref<2x2x3x24x128xf32, #tpu.memory_space<vmem>>, vector<1x1x1x16x128xf32>
    %533 = vector.shape_cast %532 : vector<1x1x1x16x128xf32> to vector<16x128xf32>
    %534 = vector.shape_cast %528 : vector<16x128xf32> to vector<1x1x1x16x128xf32>
    tpu.vector_store %arg12[%c0_522, %c1_523, %c1_524, %c0_525, %c0_526], %534 {strides = array<i32>} : memref<2x2x3x24x128xf32, #tpu.memory_space<vmem>>, vector<1x1x1x16x128xf32>,
    %c0_527 = arith.constant 0 : index
    %c0_528 = arith.constant 0 : index
    %c1_529 = arith.constant 1 : index
    %c8_530 = arith.constant 8 : index
    %c0_531 = arith.constant 0 : index
    %535 = vector.load %arg12[%c0_527, %c0_528, %c1_529, %c8_530, %c0_531] : memref<2x2x3x24x128xf32, #tpu.memory_space<vmem>>, vector<1x1x1x16x128xf32>
    %536 = vector.shape_cast %535 : vector<1x1x1x16x128xf32> to vector<16x128xf32>
    %537 = vector.shape_cast %531 : vector<16x128xf32> to vector<1x1x1x16x128xf32>
    tpu.vector_store %arg12[%c0_527, %c0_528, %c1_529, %c8_530, %c0_531], %537 {strides = array<i32>} : memref<2x2x3x24x128xf32, #tpu.memory_space<vmem>>, vector<1x1x1x16x128xf32>,
    %cst_532 = arith.constant 0.000000e+00 : f32
    %538 = vector.broadcast %cst_532 : f32 to vector<32x128xf32>
    %c0_533 = arith.constant 0 : index
    %c0_534 = arith.constant 0 : index
    %c2_535 = arith.constant 2 : index
    %c0_536 = arith.constant 0 : index
    %c0_537 = arith.constant 0 : index
    %539 = vector.load %arg11[%c0_533, %c0_534, %c2_535, %c0_536, %c0_537] : memref<2x2x5x40x128xf32, #tpu.memory_space<vmem>>, vector<1x1x1x32x128xf32>
    %540 = vector.shape_cast %539 : vector<1x1x1x32x128xf32> to vector<32x128xf32>
    %541 = arith.truncf %540 : vector<32x128xf32> to vector<32x128xbf16>
    %c0_538 = arith.constant 0 : index
    %c0_539 = arith.constant 0 : index
    %c2_540 = arith.constant 2 : index
    %c8_541 = arith.constant 8 : index
    %c0_542 = arith.constant 0 : index
    %542 = vector.load %arg11[%c0_538, %c0_539, %c2_540, %c8_541, %c0_542] : memref<2x2x5x40x128xf32, #tpu.memory_space<vmem>>, vector<1x1x1x32x128xf32>
    %543 = vector.shape_cast %542 : vector<1x1x1x32x128xf32> to vector<32x128xf32>
    %544 = arith.truncf %543 : vector<32x128xf32> to vector<32x128xbf16>
    %545 = tpu.concatenate %541, %544 in 1 : vector<32x128xbf16>, vector<32x128xbf16> -> vector<32x256xbf16>
    %c0_543 = arith.constant 0 : index
    %c0_544 = arith.constant 0 : index
    %c0_545 = arith.constant 0 : index
    %c0_546 = arith.constant 0 : index
    %546 = vector.load %arg4[%c0_543, %c0_544, %c0_545, %c0_546] : memref<4x2x256x128xbf16, #tpu.memory_space<vmem>>, vector<1x1x256x128xbf16>
    %547 = vector.shape_cast %546 : vector<1x1x256x128xbf16> to vector<256x128xbf16>
    %cst_547 = arith.constant dense<0.000000e+00> : vector<32x128xf32>
    %548 = tpu.matmul %545, %547, %cst_547 {dimension_numbers = #tpu.dot_dimension_numbers<[1], [0], [0], [1], [0, 0, 1, 1], [], []>} : vector<32x256xbf16>, vector<256x128xbf16>, vector<32x128xf32> -> vector<32x128xf32>
    %549 = arith.addf %538, %548 : vector<32x128xf32>
    %c0_548 = arith.constant 0 : index
    %c1_549 = arith.constant 1 : index
    %c2_550 = arith.constant 2 : index
    %c0_551 = arith.constant 0 : index
    %c0_552 = arith.constant 0 : index
    %550 = vector.load %arg11[%c0_548, %c1_549, %c2_550, %c0_551, %c0_552] : memref<2x2x5x40x128xf32, #tpu.memory_space<vmem>>, vector<1x1x1x32x128xf32>
    %551 = vector.shape_cast %550 : vector<1x1x1x32x128xf32> to vector<32x128xf32>
    %552 = arith.truncf %551 : vector<32x128xf32> to vector<32x128xbf16>
    %c0_553 = arith.constant 0 : index
    %c1_554 = arith.constant 1 : index
    %c2_555 = arith.constant 2 : index
    %c8_556 = arith.constant 8 : index
    %c0_557 = arith.constant 0 : index
    %553 = vector.load %arg11[%c0_553, %c1_554, %c2_555, %c8_556, %c0_557] : memref<2x2x5x40x128xf32, #tpu.memory_space<vmem>>, vector<1x1x1x32x128xf32>
    %554 = vector.shape_cast %553 : vector<1x1x1x32x128xf32> to vector<32x128xf32>
    %555 = arith.truncf %554 : vector<32x128xf32> to vector<32x128xbf16>
    %556 = tpu.concatenate %552, %555 in 1 : vector<32x128xbf16>, vector<32x128xbf16> -> vector<32x256xbf16>
    %c0_558 = arith.constant 0 : index
    %c1_559 = arith.constant 1 : index
    %c0_560 = arith.constant 0 : index
    %c0_561 = arith.constant 0 : index
    %557 = vector.load %arg4[%c0_558, %c1_559, %c0_560, %c0_561] : memref<4x2x256x128xbf16, #tpu.memory_space<vmem>>, vector<1x1x256x128xbf16>
    %558 = vector.shape_cast %557 : vector<1x1x256x128xbf16> to vector<256x128xbf16>
    %cst_562 = arith.constant dense<0.000000e+00> : vector<32x128xf32>
    %559 = tpu.matmul %556, %558, %cst_562 {dimension_numbers = #tpu.dot_dimension_numbers<[1], [0], [0], [1], [0, 0, 1, 1], [], []>} : vector<32x256xbf16>, vector<256x128xbf16>, vector<32x128xf32> -> vector<32x128xf32>
    %560 = arith.addf %549, %559 : vector<32x128xf32>
    %c1_563 = arith.constant 1 : index
    %c0_564 = arith.constant 0 : index
    %c2_565 = arith.constant 2 : index
    %c0_566 = arith.constant 0 : index
    %c0_567 = arith.constant 0 : index
    %561 = vector.load %arg11[%c1_563, %c0_564, %c2_565, %c0_566, %c0_567] : memref<2x2x5x40x128xf32, #tpu.memory_space<vmem>>, vector<1x1x1x32x128xf32>
    %562 = vector.shape_cast %561 : vector<1x1x1x32x128xf32> to vector<32x128xf32>
    %563 = arith.truncf %562 : vector<32x128xf32> to vector<32x128xbf16>
    %c1_568 = arith.constant 1 : index
    %c0_569 = arith.constant 0 : index
    %c2_570 = arith.constant 2 : index
    %c8_571 = arith.constant 8 : index
    %c0_572 = arith.constant 0 : index
    %564 = vector.load %arg11[%c1_568, %c0_569, %c2_570, %c8_571, %c0_572] : memref<2x2x5x40x128xf32, #tpu.memory_space<vmem>>, vector<1x1x1x32x128xf32>
    %565 = vector.shape_cast %564 : vector<1x1x1x32x128xf32> to vector<32x128xf32>
    %566 = arith.truncf %565 : vector<32x128xf32> to vector<32x128xbf16>
    %567 = tpu.concatenate %563, %566 in 1 : vector<32x128xbf16>, vector<32x128xbf16> -> vector<32x256xbf16>
    %c1_573 = arith.constant 1 : index
    %c0_574 = arith.constant 0 : index
    %c0_575 = arith.constant 0 : index
    %c0_576 = arith.constant 0 : index
    %568 = vector.load %arg4[%c1_573, %c0_574, %c0_575, %c0_576] : memref<4x2x256x128xbf16, #tpu.memory_space<vmem>>, vector<1x1x256x128xbf16>
    %569 = vector.shape_cast %568 : vector<1x1x256x128xbf16> to vector<256x128xbf16>
    %cst_577 = arith.constant dense<0.000000e+00> : vector<32x128xf32>
    %570 = tpu.matmul %567, %569, %cst_577 {dimension_numbers = #tpu.dot_dimension_numbers<[1], [0], [0], [1], [0, 0, 1, 1], [], []>} : vector<32x256xbf16>, vector<256x128xbf16>, vector<32x128xf32> -> vector<32x128xf32>
    %571 = arith.addf %560, %570 : vector<32x128xf32>
    %c1_578 = arith.constant 1 : index
    %c1_579 = arith.constant 1 : index
    %c2_580 = arith.constant 2 : index
    %c0_581 = arith.constant 0 : index
    %c0_582 = arith.constant 0 : index
    %572 = vector.load %arg11[%c1_578, %c1_579, %c2_580, %c0_581, %c0_582] : memref<2x2x5x40x128xf32, #tpu.memory_space<vmem>>, vector<1x1x1x32x128xf32>
    %573 = vector.shape_cast %572 : vector<1x1x1x32x128xf32> to vector<32x128xf32>
    %574 = arith.truncf %573 : vector<32x128xf32> to vector<32x128xbf16>
    %c1_583 = arith.constant 1 : index
    %c1_584 = arith.constant 1 : index
    %c2_585 = arith.constant 2 : index
    %c8_586 = arith.constant 8 : index
    %c0_587 = arith.constant 0 : index
    %575 = vector.load %arg11[%c1_583, %c1_584, %c2_585, %c8_586, %c0_587] : memref<2x2x5x40x128xf32, #tpu.memory_space<vmem>>, vector<1x1x1x32x128xf32>
    %576 = vector.shape_cast %575 : vector<1x1x1x32x128xf32> to vector<32x128xf32>
    %577 = arith.truncf %576 : vector<32x128xf32> to vector<32x128xbf16>
    %578 = tpu.concatenate %574, %577 in 1 : vector<32x128xbf16>, vector<32x128xbf16> -> vector<32x256xbf16>
    %c1_588 = arith.constant 1 : index
    %c1_589 = arith.constant 1 : index
    %c0_590 = arith.constant 0 : index
    %c0_591 = arith.constant 0 : index
    %579 = vector.load %arg4[%c1_588, %c1_589, %c0_590, %c0_591] : memref<4x2x256x128xbf16, #tpu.memory_space<vmem>>, vector<1x1x256x128xbf16>
    %580 = vector.shape_cast %579 : vector<1x1x256x128xbf16> to vector<256x128xbf16>
    %cst_592 = arith.constant dense<0.000000e+00> : vector<32x128xf32>
    %581 = tpu.matmul %578, %580, %cst_592 {dimension_numbers = #tpu.dot_dimension_numbers<[1], [0], [0], [1], [0, 0, 1, 1], [], []>} : vector<32x256xbf16>, vector<256x128xbf16>, vector<32x128xf32> -> vector<32x128xf32>
    %582 = arith.addf %571, %581 : vector<32x128xf32>
    %c0_593 = arith.constant 0 : index
    %c0_594 = arith.constant 0 : index
    %c3_595 = arith.constant 3 : index
    %c0_596 = arith.constant 0 : index
    %c0_597 = arith.constant 0 : index
    %583 = vector.load %arg11[%c0_593, %c0_594, %c3_595, %c0_596, %c0_597] : memref<2x2x5x40x128xf32, #tpu.memory_space<vmem>>, vector<1x1x1x32x128xf32>
    %584 = vector.shape_cast %583 : vector<1x1x1x32x128xf32> to vector<32x128xf32>
    %585 = arith.truncf %584 : vector<32x128xf32> to vector<32x128xbf16>
    %c0_598 = arith.constant 0 : index
    %c0_599 = arith.constant 0 : index
    %c3_600 = arith.constant 3 : index
    %c8_601 = arith.constant 8 : index
    %c0_602 = arith.constant 0 : index
    %586 = vector.load %arg11[%c0_598, %c0_599, %c3_600, %c8_601, %c0_602] : memref<2x2x5x40x128xf32, #tpu.memory_space<vmem>>, vector<1x1x1x32x128xf32>
    %587 = vector.shape_cast %586 : vector<1x1x1x32x128xf32> to vector<32x128xf32>
    %588 = arith.truncf %587 : vector<32x128xf32> to vector<32x128xbf16>
    %589 = tpu.concatenate %585, %588 in 1 : vector<32x128xbf16>, vector<32x128xbf16> -> vector<32x256xbf16>
    %c2_603 = arith.constant 2 : index
    %c0_604 = arith.constant 0 : index
    %c0_605 = arith.constant 0 : index
    %c0_606 = arith.constant 0 : index
    %590 = vector.load %arg4[%c2_603, %c0_604, %c0_605, %c0_606] : memref<4x2x256x128xbf16, #tpu.memory_space<vmem>>, vector<1x1x256x128xbf16>
    %591 = vector.shape_cast %590 : vector<1x1x256x128xbf16> to vector<256x128xbf16>
    %cst_607 = arith.constant dense<0.000000e+00> : vector<32x128xf32>
    %592 = tpu.matmul %589, %591, %cst_607 {dimension_numbers = #tpu.dot_dimension_numbers<[1], [0], [0], [1], [0, 0, 1, 1], [], []>} : vector<32x256xbf16>, vector<256x128xbf16>, vector<32x128xf32> -> vector<32x128xf32>
    %593 = arith.addf %582, %592 : vector<32x128xf32>
    %c0_608 = arith.constant 0 : index
    %c1_609 = arith.constant 1 : index
    %c3_610 = arith.constant 3 : index
    %c0_611 = arith.constant 0 : index
    %c0_612 = arith.constant 0 : index
    %594 = vector.load %arg11[%c0_608, %c1_609, %c3_610, %c0_611, %c0_612] : memref<2x2x5x40x128xf32, #tpu.memory_space<vmem>>, vector<1x1x1x32x128xf32>
    %595 = vector.shape_cast %594 : vector<1x1x1x32x128xf32> to vector<32x128xf32>
    %596 = arith.truncf %595 : vector<32x128xf32> to vector<32x128xbf16>
    %c0_613 = arith.constant 0 : index
    %c1_614 = arith.constant 1 : index
    %c3_615 = arith.constant 3 : index
    %c8_616 = arith.constant 8 : index
    %c0_617 = arith.constant 0 : index
    %597 = vector.load %arg11[%c0_613, %c1_614, %c3_615, %c8_616, %c0_617] : memref<2x2x5x40x128xf32, #tpu.memory_space<vmem>>, vector<1x1x1x32x128xf32>
    %598 = vector.shape_cast %597 : vector<1x1x1x32x128xf32> to vector<32x128xf32>
    %599 = arith.truncf %598 : vector<32x128xf32> to vector<32x128xbf16>
    %600 = tpu.concatenate %596, %599 in 1 : vector<32x128xbf16>, vector<32x128xbf16> -> vector<32x256xbf16>
    %c2_618 = arith.constant 2 : index
    %c1_619 = arith.constant 1 : index
    %c0_620 = arith.constant 0 : index
    %c0_621 = arith.constant 0 : index
    %601 = vector.load %arg4[%c2_618, %c1_619, %c0_620, %c0_621] : memref<4x2x256x128xbf16, #tpu.memory_space<vmem>>, vector<1x1x256x128xbf16>
    %602 = vector.shape_cast %601 : vector<1x1x256x128xbf16> to vector<256x128xbf16>
    %cst_622 = arith.constant dense<0.000000e+00> : vector<32x128xf32>
    %603 = tpu.matmul %600, %602, %cst_622 {dimension_numbers = #tpu.dot_dimension_numbers<[1], [0], [0], [1], [0, 0, 1, 1], [], []>} : vector<32x256xbf16>, vector<256x128xbf16>, vector<32x128xf32> -> vector<32x128xf32>
    %604 = arith.addf %593, %603 : vector<32x128xf32>
    %c1_623 = arith.constant 1 : index
    %c0_624 = arith.constant 0 : index
    %c3_625 = arith.constant 3 : index
    %c0_626 = arith.constant 0 : index
    %c0_627 = arith.constant 0 : index
    %605 = vector.load %arg11[%c1_623, %c0_624, %c3_625, %c0_626, %c0_627] : memref<2x2x5x40x128xf32, #tpu.memory_space<vmem>>, vector<1x1x1x32x128xf32>
    %606 = vector.shape_cast %605 : vector<1x1x1x32x128xf32> to vector<32x128xf32>
    %607 = arith.truncf %606 : vector<32x128xf32> to vector<32x128xbf16>
    %c1_628 = arith.constant 1 : index
    %c0_629 = arith.constant 0 : index
    %c3_630 = arith.constant 3 : index
    %c8_631 = arith.constant 8 : index
    %c0_632 = arith.constant 0 : index
    %608 = vector.load %arg11[%c1_628, %c0_629, %c3_630, %c8_631, %c0_632] : memref<2x2x5x40x128xf32, #tpu.memory_space<vmem>>, vector<1x1x1x32x128xf32>
    %609 = vector.shape_cast %608 : vector<1x1x1x32x128xf32> to vector<32x128xf32>
    %610 = arith.truncf %609 : vector<32x128xf32> to vector<32x128xbf16>
    %611 = tpu.concatenate %607, %610 in 1 : vector<32x128xbf16>, vector<32x128xbf16> -> vector<32x256xbf16>
    %c3_633 = arith.constant 3 : index
    %c0_634 = arith.constant 0 : index
    %c0_635 = arith.constant 0 : index
    %c0_636 = arith.constant 0 : index
    %612 = vector.load %arg4[%c3_633, %c0_634, %c0_635, %c0_636] : memref<4x2x256x128xbf16, #tpu.memory_space<vmem>>, vector<1x1x256x128xbf16>
    %613 = vector.shape_cast %612 : vector<1x1x256x128xbf16> to vector<256x128xbf16>
    %cst_637 = arith.constant dense<0.000000e+00> : vector<32x128xf32>
    %614 = tpu.matmul %611, %613, %cst_637 {dimension_numbers = #tpu.dot_dimension_numbers<[1], [0], [0], [1], [0, 0, 1, 1], [], []>} : vector<32x256xbf16>, vector<256x128xbf16>, vector<32x128xf32> -> vector<32x128xf32>
    %615 = arith.addf %604, %614 : vector<32x128xf32>
    %c1_638 = arith.constant 1 : index
    %c1_639 = arith.constant 1 : index
    %c3_640 = arith.constant 3 : index
    %c0_641 = arith.constant 0 : index
    %c0_642 = arith.constant 0 : index
    %616 = vector.load %arg11[%c1_638, %c1_639, %c3_640, %c0_641, %c0_642] : memref<2x2x5x40x128xf32, #tpu.memory_space<vmem>>, vector<1x1x1x32x128xf32>
    %617 = vector.shape_cast %616 : vector<1x1x1x32x128xf32> to vector<32x128xf32>
    %618 = arith.truncf %617 : vector<32x128xf32> to vector<32x128xbf16>
    %c1_643 = arith.constant 1 : index
    %c1_644 = arith.constant 1 : index
    %c3_645 = arith.constant 3 : index
    %c8_646 = arith.constant 8 : index
    %c0_647 = arith.constant 0 : index
    %619 = vector.load %arg11[%c1_643, %c1_644, %c3_645, %c8_646, %c0_647] : memref<2x2x5x40x128xf32, #tpu.memory_space<vmem>>, vector<1x1x1x32x128xf32>
    %620 = vector.shape_cast %619 : vector<1x1x1x32x128xf32> to vector<32x128xf32>
    %621 = arith.truncf %620 : vector<32x128xf32> to vector<32x128xbf16>
    %622 = tpu.concatenate %618, %621 in 1 : vector<32x128xbf16>, vector<32x128xbf16> -> vector<32x256xbf16>
    %c3_648 = arith.constant 3 : index
    %c1_649 = arith.constant 1 : index
    %c0_650 = arith.constant 0 : index
    %c0_651 = arith.constant 0 : index
    %623 = vector.load %arg4[%c3_648, %c1_649, %c0_650, %c0_651] : memref<4x2x256x128xbf16, #tpu.memory_space<vmem>>, vector<1x1x256x128xbf16>
    %624 = vector.shape_cast %623 : vector<1x1x256x128xbf16> to vector<256x128xbf16>
    %cst_652 = arith.constant dense<0.000000e+00> : vector<32x128xf32>
    %625 = tpu.matmul %622, %624, %cst_652 {dimension_numbers = #tpu.dot_dimension_numbers<[1], [0], [0], [1], [0, 0, 1, 1], [], []>} : vector<32x256xbf16>, vector<256x128xbf16>, vector<32x128xf32> -> vector<32x128xf32>
    %626 = arith.addf %615, %625 : vector<32x128xf32>
    %cst_653 = arith.constant 0.000000e+00 : f32
    %627 = vector.broadcast %cst_653 : f32 to vector<32x128xf32>
    %628 = arith.maximumf %626, %627 : vector<32x128xf32>
    %cst_654 = arith.constant dense<0.000000e+00> : vector<128xf32>
    %629 = vector.multi_reduction <add>, %628, %cst_654 [0] : vector<32x128xf32> to vector<128xf32>
    %630 = vector.shape_cast %629 : vector<128xf32> to vector<1x128xf32>
    %631 = arith.addf %520, %630 : vector<1x128xf32>
    %632 = arith.mulf %628, %628 : vector<32x128xf32>
    %cst_655 = arith.constant dense<0.000000e+00> : vector<128xf32>
    %633 = vector.multi_reduction <add>, %632, %cst_655 [0] : vector<32x128xf32> to vector<128xf32>
    %634 = vector.shape_cast %633 : vector<128xf32> to vector<1x128xf32>
    %635 = arith.addf %524, %634 : vector<1x128xf32>
    %636 = vector.shape_cast %628 : vector<32x128xf32> to vector<2x2x8x128xf32>
    %637 = vector.extract_strided_slice %636 {offsets = [0, 0, 0, 0], sizes = [2, 1, 8, 128], strides = [1, 1, 1, 1]} : vector<2x2x8x128xf32> to vector<2x1x8x128xf32>
    %638 = vector.shape_cast %637 : vector<2x1x8x128xf32> to vector<2x8x128xf32>
    %639 = vector.shape_cast %638 : vector<2x8x128xf32> to vector<16x128xf32>
    %640 = vector.extract_strided_slice %636 {offsets = [0, 1, 0, 0], sizes = [2, 1, 8, 128], strides = [1, 1, 1, 1]} : vector<2x2x8x128xf32> to vector<2x1x8x128xf32>
    %641 = vector.shape_cast %640 : vector<2x1x8x128xf32> to vector<2x8x128xf32>
    %642 = vector.shape_cast %641 : vector<2x8x128xf32> to vector<16x128xf32>
    %c1_656 = arith.constant 1 : index
    %c1_657 = arith.constant 1 : index
    %c1_658 = arith.constant 1 : index
    %c0_659 = arith.constant 0 : index
    %c0_660 = arith.constant 0 : index
    %643 = vector.load %arg12[%c1_656, %c1_657, %c1_658, %c0_659, %c0_660] : memref<2x2x3x24x128xf32, #tpu.memory_space<vmem>>, vector<1x1x1x16x128xf32>
    %644 = vector.shape_cast %643 : vector<1x1x1x16x128xf32> to vector<16x128xf32>
    %645 = vector.shape_cast %639 : vector<16x128xf32> to vector<1x1x1x16x128xf32>
    tpu.vector_store %arg12[%c1_656, %c1_657, %c1_658, %c0_659, %c0_660], %645 {strides = array<i32>} : memref<2x2x3x24x128xf32, #tpu.memory_space<vmem>>, vector<1x1x1x16x128xf32>,
    %c1_661 = arith.constant 1 : index
    %c0_662 = arith.constant 0 : index
    %c1_663 = arith.constant 1 : index
    %c8_664 = arith.constant 8 : index
    %c0_665 = arith.constant 0 : index
    %646 = vector.load %arg12[%c1_661, %c0_662, %c1_663, %c8_664, %c0_665] : memref<2x2x3x24x128xf32, #tpu.memory_space<vmem>>, vector<1x1x1x16x128xf32>
    %647 = vector.shape_cast %646 : vector<1x1x1x16x128xf32> to vector<16x128xf32>
    %648 = vector.shape_cast %642 : vector<16x128xf32> to vector<1x1x1x16x128xf32>
    tpu.vector_store %arg12[%c1_661, %c0_662, %c1_663, %c8_664, %c0_665], %648 {strides = array<i32>} : memref<2x2x3x24x128xf32, #tpu.memory_space<vmem>>, vector<1x1x1x16x128xf32>,
    %cst_666 = arith.constant 0.000000e+00 : f32
    %649 = vector.broadcast %cst_666 : f32 to vector<32x128xf32>
    %c0_667 = arith.constant 0 : index
    %c0_668 = arith.constant 0 : index
    %c3_669 = arith.constant 3 : index
    %c0_670 = arith.constant 0 : index
    %c0_671 = arith.constant 0 : index
    %650 = vector.load %arg11[%c0_667, %c0_668, %c3_669, %c0_670, %c0_671] : memref<2x2x5x40x128xf32, #tpu.memory_space<vmem>>, vector<1x1x1x32x128xf32>
    %651 = vector.shape_cast %650 : vector<1x1x1x32x128xf32> to vector<32x128xf32>
    %652 = arith.truncf %651 : vector<32x128xf32> to vector<32x128xbf16>
    %c0_672 = arith.constant 0 : index
    %c0_673 = arith.constant 0 : index
    %c3_674 = arith.constant 3 : index
    %c8_675 = arith.constant 8 : index
    %c0_676 = arith.constant 0 : index
    %653 = vector.load %arg11[%c0_672, %c0_673, %c3_674, %c8_675, %c0_676] : memref<2x2x5x40x128xf32, #tpu.memory_space<vmem>>, vector<1x1x1x32x128xf32>
    %654 = vector.shape_cast %653 : vector<1x1x1x32x128xf32> to vector<32x128xf32>
    %655 = arith.truncf %654 : vector<32x128xf32> to vector<32x128xbf16>
    %656 = tpu.concatenate %652, %655 in 1 : vector<32x128xbf16>, vector<32x128xbf16> -> vector<32x256xbf16>
    %c0_677 = arith.constant 0 : index
    %c0_678 = arith.constant 0 : index
    %c0_679 = arith.constant 0 : index
    %c0_680 = arith.constant 0 : index
    %657 = vector.load %arg4[%c0_677, %c0_678, %c0_679, %c0_680] : memref<4x2x256x128xbf16, #tpu.memory_space<vmem>>, vector<1x1x256x128xbf16>
    %658 = vector.shape_cast %657 : vector<1x1x256x128xbf16> to vector<256x128xbf16>
    %cst_681 = arith.constant dense<0.000000e+00> : vector<32x128xf32>
    %659 = tpu.matmul %656, %658, %cst_681 {dimension_numbers = #tpu.dot_dimension_numbers<[1], [0], [0], [1], [0, 0, 1, 1], [], []>} : vector<32x256xbf16>, vector<256x128xbf16>, vector<32x128xf32> -> vector<32x128xf32>
    %660 = arith.addf %649, %659 : vector<32x128xf32>
    %c0_682 = arith.constant 0 : index
    %c1_683 = arith.constant 1 : index
    %c3_684 = arith.constant 3 : index
    %c0_685 = arith.constant 0 : index
    %c0_686 = arith.constant 0 : index
    %661 = vector.load %arg11[%c0_682, %c1_683, %c3_684, %c0_685, %c0_686] : memref<2x2x5x40x128xf32, #tpu.memory_space<vmem>>, vector<1x1x1x32x128xf32>
    %662 = vector.shape_cast %661 : vector<1x1x1x32x128xf32> to vector<32x128xf32>
    %663 = arith.truncf %662 : vector<32x128xf32> to vector<32x128xbf16>
    %c0_687 = arith.constant 0 : index
    %c1_688 = arith.constant 1 : index
    %c3_689 = arith.constant 3 : index
    %c8_690 = arith.constant 8 : index
    %c0_691 = arith.constant 0 : index
    %664 = vector.load %arg11[%c0_687, %c1_688, %c3_689, %c8_690, %c0_691] : memref<2x2x5x40x128xf32, #tpu.memory_space<vmem>>, vector<1x1x1x32x128xf32>
    %665 = vector.shape_cast %664 : vector<1x1x1x32x128xf32> to vector<32x128xf32>
    %666 = arith.truncf %665 : vector<32x128xf32> to vector<32x128xbf16>
    %667 = tpu.concatenate %663, %666 in 1 : vector<32x128xbf16>, vector<32x128xbf16> -> vector<32x256xbf16>
    %c0_692 = arith.constant 0 : index
    %c1_693 = arith.constant 1 : index
    %c0_694 = arith.constant 0 : index
    %c0_695 = arith.constant 0 : index
    %668 = vector.load %arg4[%c0_692, %c1_693, %c0_694, %c0_695] : memref<4x2x256x128xbf16, #tpu.memory_space<vmem>>, vector<1x1x256x128xbf16>
    %669 = vector.shape_cast %668 : vector<1x1x256x128xbf16> to vector<256x128xbf16>
    %cst_696 = arith.constant dense<0.000000e+00> : vector<32x128xf32>
    %670 = tpu.matmul %667, %669, %cst_696 {dimension_numbers = #tpu.dot_dimension_numbers<[1], [0], [0], [1], [0, 0, 1, 1], [], []>} : vector<32x256xbf16>, vector<256x128xbf16>, vector<32x128xf32> -> vector<32x128xf32>
    %671 = arith.addf %660, %670 : vector<32x128xf32>
    %c1_697 = arith.constant 1 : index
    %c0_698 = arith.constant 0 : index
    %c3_699 = arith.constant 3 : index
    %c0_700 = arith.constant 0 : index
    %c0_701 = arith.constant 0 : index
    %672 = vector.load %arg11[%c1_697, %c0_698, %c3_699, %c0_700, %c0_701] : memref<2x2x5x40x128xf32, #tpu.memory_space<vmem>>, vector<1x1x1x32x128xf32>
    %673 = vector.shape_cast %672 : vector<1x1x1x32x128xf32> to vector<32x128xf32>
    %674 = arith.truncf %673 : vector<32x128xf32> to vector<32x128xbf16>
    %c1_702 = arith.constant 1 : index
    %c0_703 = arith.constant 0 : index
    %c3_704 = arith.constant 3 : index
    %c8_705 = arith.constant 8 : index
    %c0_706 = arith.constant 0 : index
    %675 = vector.load %arg11[%c1_702, %c0_703, %c3_704, %c8_705, %c0_706] : memref<2x2x5x40x128xf32, #tpu.memory_space<vmem>>, vector<1x1x1x32x128xf32>
    %676 = vector.shape_cast %675 : vector<1x1x1x32x128xf32> to vector<32x128xf32>
    %677 = arith.truncf %676 : vector<32x128xf32> to vector<32x128xbf16>
    %678 = tpu.concatenate %674, %677 in 1 : vector<32x128xbf16>, vector<32x128xbf16> -> vector<32x256xbf16>
    %c1_707 = arith.constant 1 : index
    %c0_708 = arith.constant 0 : index
    %c0_709 = arith.constant 0 : index
    %c0_710 = arith.constant 0 : index
    %679 = vector.load %arg4[%c1_707, %c0_708, %c0_709, %c0_710] : memref<4x2x256x128xbf16, #tpu.memory_space<vmem>>, vector<1x1x256x128xbf16>
    %680 = vector.shape_cast %679 : vector<1x1x256x128xbf16> to vector<256x128xbf16>
    %cst_711 = arith.constant dense<0.000000e+00> : vector<32x128xf32>
    %681 = tpu.matmul %678, %680, %cst_711 {dimension_numbers = #tpu.dot_dimension_numbers<[1], [0], [0], [1], [0, 0, 1, 1], [], []>} : vector<32x256xbf16>, vector<256x128xbf16>, vector<32x128xf32> -> vector<32x128xf32>
    %682 = arith.addf %671, %681 : vector<32x128xf32>
    %c1_712 = arith.constant 1 : index
    %c1_713 = arith.constant 1 : index
    %c3_714 = arith.constant 3 : index
    %c0_715 = arith.constant 0 : index
    %c0_716 = arith.constant 0 : index
    %683 = vector.load %arg11[%c1_712, %c1_713, %c3_714, %c0_715, %c0_716] : memref<2x2x5x40x128xf32, #tpu.memory_space<vmem>>, vector<1x1x1x32x128xf32>
    %684 = vector.shape_cast %683 : vector<1x1x1x32x128xf32> to vector<32x128xf32>
    %685 = arith.truncf %684 : vector<32x128xf32> to vector<32x128xbf16>
    %c1_717 = arith.constant 1 : index
    %c1_718 = arith.constant 1 : index
    %c3_719 = arith.constant 3 : index
    %c8_720 = arith.constant 8 : index
    %c0_721 = arith.constant 0 : index
    %686 = vector.load %arg11[%c1_717, %c1_718, %c3_719, %c8_720, %c0_721] : memref<2x2x5x40x128xf32, #tpu.memory_space<vmem>>, vector<1x1x1x32x128xf32>
    %687 = vector.shape_cast %686 : vector<1x1x1x32x128xf32> to vector<32x128xf32>
    %688 = arith.truncf %687 : vector<32x128xf32> to vector<32x128xbf16>
    %689 = tpu.concatenate %685, %688 in 1 : vector<32x128xbf16>, vector<32x128xbf16> -> vector<32x256xbf16>
    %c1_722 = arith.constant 1 : index
    %c1_723 = arith.constant 1 : index
    %c0_724 = arith.constant 0 : index
    %c0_725 = arith.constant 0 : index
    %690 = vector.load %arg4[%c1_722, %c1_723, %c0_724, %c0_725] : memref<4x2x256x128xbf16, #tpu.memory_space<vmem>>, vector<1x1x256x128xbf16>
    %691 = vector.shape_cast %690 : vector<1x1x256x128xbf16> to vector<256x128xbf16>
    %cst_726 = arith.constant dense<0.000000e+00> : vector<32x128xf32>
    %692 = tpu.matmul %689, %691, %cst_726 {dimension_numbers = #tpu.dot_dimension_numbers<[1], [0], [0], [1], [0, 0, 1, 1], [], []>} : vector<32x256xbf16>, vector<256x128xbf16>, vector<32x128xf32> -> vector<32x128xf32>
    %693 = arith.addf %682, %692 : vector<32x128xf32>
    %c0_727 = arith.constant 0 : index
    %c0_728 = arith.constant 0 : index
    %c4_729 = arith.constant 4 : index
    %c0_730 = arith.constant 0 : index
    %c0_731 = arith.constant 0 : index
    %694 = vector.load %arg11[%c0_727, %c0_728, %c4_729, %c0_730, %c0_731] : memref<2x2x5x40x128xf32, #tpu.memory_space<vmem>>, vector<1x1x1x32x128xf32>
    %695 = vector.shape_cast %694 : vector<1x1x1x32x128xf32> to vector<32x128xf32>
    %696 = arith.truncf %695 : vector<32x128xf32> to vector<32x128xbf16>
    %c0_732 = arith.constant 0 : index
    %c0_733 = arith.constant 0 : index
    %c4_734 = arith.constant 4 : index
    %c8_735 = arith.constant 8 : index
    %c0_736 = arith.constant 0 : index
    %697 = vector.load %arg11[%c0_732, %c0_733, %c4_734, %c8_735, %c0_736] : memref<2x2x5x40x128xf32, #tpu.memory_space<vmem>>, vector<1x1x1x32x128xf32>
    %698 = vector.shape_cast %697 : vector<1x1x1x32x128xf32> to vector<32x128xf32>
    %699 = arith.truncf %698 : vector<32x128xf32> to vector<32x128xbf16>
    %700 = tpu.concatenate %696, %699 in 1 : vector<32x128xbf16>, vector<32x128xbf16> -> vector<32x256xbf16>
    %c2_737 = arith.constant 2 : index
    %c0_738 = arith.constant 0 : index
    %c0_739 = arith.constant 0 : index
    %c0_740 = arith.constant 0 : index
    %701 = vector.load %arg4[%c2_737, %c0_738, %c0_739, %c0_740] : memref<4x2x256x128xbf16, #tpu.memory_space<vmem>>, vector<1x1x256x128xbf16>
    %702 = vector.shape_cast %701 : vector<1x1x256x128xbf16> to vector<256x128xbf16>
    %cst_741 = arith.constant dense<0.000000e+00> : vector<32x128xf32>
    %703 = tpu.matmul %700, %702, %cst_741 {dimension_numbers = #tpu.dot_dimension_numbers<[1], [0], [0], [1], [0, 0, 1, 1], [], []>} : vector<32x256xbf16>, vector<256x128xbf16>, vector<32x128xf32> -> vector<32x128xf32>
    %704 = arith.addf %693, %703 : vector<32x128xf32>
    %c0_742 = arith.constant 0 : index
    %c1_743 = arith.constant 1 : index
    %c4_744 = arith.constant 4 : index
    %c0_745 = arith.constant 0 : index
    %c0_746 = arith.constant 0 : index
    %705 = vector.load %arg11[%c0_742, %c1_743, %c4_744, %c0_745, %c0_746] : memref<2x2x5x40x128xf32, #tpu.memory_space<vmem>>, vector<1x1x1x32x128xf32>
    %706 = vector.shape_cast %705 : vector<1x1x1x32x128xf32> to vector<32x128xf32>
    %707 = arith.truncf %706 : vector<32x128xf32> to vector<32x128xbf16>
    %c0_747 = arith.constant 0 : index
    %c1_748 = arith.constant 1 : index
    %c4_749 = arith.constant 4 : index
    %c8_750 = arith.constant 8 : index
    %c0_751 = arith.constant 0 : index
    %708 = vector.load %arg11[%c0_747, %c1_748, %c4_749, %c8_750, %c0_751] : memref<2x2x5x40x128xf32, #tpu.memory_space<vmem>>, vector<1x1x1x32x128xf32>
    %709 = vector.shape_cast %708 : vector<1x1x1x32x128xf32> to vector<32x128xf32>
    %710 = arith.truncf %709 : vector<32x128xf32> to vector<32x128xbf16>
    %711 = tpu.concatenate %707, %710 in 1 : vector<32x128xbf16>, vector<32x128xbf16> -> vector<32x256xbf16>
    %c2_752 = arith.constant 2 : index
    %c1_753 = arith.constant 1 : index
    %c0_754 = arith.constant 0 : index
    %c0_755 = arith.constant 0 : index
    %712 = vector.load %arg4[%c2_752, %c1_753, %c0_754, %c0_755] : memref<4x2x256x128xbf16, #tpu.memory_space<vmem>>, vector<1x1x256x128xbf16>
    %713 = vector.shape_cast %712 : vector<1x1x256x128xbf16> to vector<256x128xbf16>
    %cst_756 = arith.constant dense<0.000000e+00> : vector<32x128xf32>
    %714 = tpu.matmul %711, %713, %cst_756 {dimension_numbers = #tpu.dot_dimension_numbers<[1], [0], [0], [1], [0, 0, 1, 1], [], []>} : vector<32x256xbf16>, vector<256x128xbf16>, vector<32x128xf32> -> vector<32x128xf32>
    %715 = arith.addf %704, %714 : vector<32x128xf32>
    %c1_757 = arith.constant 1 : index
    %c0_758 = arith.constant 0 : index
    %c4_759 = arith.constant 4 : index
    %c0_760 = arith.constant 0 : index
    %c0_761 = arith.constant 0 : index
    %716 = vector.load %arg11[%c1_757, %c0_758, %c4_759, %c0_760, %c0_761] : memref<2x2x5x40x128xf32, #tpu.memory_space<vmem>>, vector<1x1x1x32x128xf32>
    %717 = vector.shape_cast %716 : vector<1x1x1x32x128xf32> to vector<32x128xf32>
    %718 = arith.truncf %717 : vector<32x128xf32> to vector<32x128xbf16>
    %c1_762 = arith.constant 1 : index
    %c0_763 = arith.constant 0 : index
    %c4_764 = arith.constant 4 : index
    %c8_765 = arith.constant 8 : index
    %c0_766 = arith.constant 0 : index
    %719 = vector.load %arg11[%c1_762, %c0_763, %c4_764, %c8_765, %c0_766] : memref<2x2x5x40x128xf32, #tpu.memory_space<vmem>>, vector<1x1x1x32x128xf32>
    %720 = vector.shape_cast %719 : vector<1x1x1x32x128xf32> to vector<32x128xf32>
    %721 = arith.truncf %720 : vector<32x128xf32> to vector<32x128xbf16>
    %722 = tpu.concatenate %718, %721 in 1 : vector<32x128xbf16>, vector<32x128xbf16> -> vector<32x256xbf16>
    %c3_767 = arith.constant 3 : index
    %c0_768 = arith.constant 0 : index
    %c0_769 = arith.constant 0 : index
    %c0_770 = arith.constant 0 : index
    %723 = vector.load %arg4[%c3_767, %c0_768, %c0_769, %c0_770] : memref<4x2x256x128xbf16, #tpu.memory_space<vmem>>, vector<1x1x256x128xbf16>
    %724 = vector.shape_cast %723 : vector<1x1x256x128xbf16> to vector<256x128xbf16>
    %cst_771 = arith.constant dense<0.000000e+00> : vector<32x128xf32>
    %725 = tpu.matmul %722, %724, %cst_771 {dimension_numbers = #tpu.dot_dimension_numbers<[1], [0], [0], [1], [0, 0, 1, 1], [], []>} : vector<32x256xbf16>, vector<256x128xbf16>, vector<32x128xf32> -> vector<32x128xf32>
    %726 = arith.addf %715, %725 : vector<32x128xf32>
    %c1_772 = arith.constant 1 : index
    %c1_773 = arith.constant 1 : index
    %c4_774 = arith.constant 4 : index
    %c0_775 = arith.constant 0 : index
    %c0_776 = arith.constant 0 : index
    %727 = vector.load %arg11[%c1_772, %c1_773, %c4_774, %c0_775, %c0_776] : memref<2x2x5x40x128xf32, #tpu.memory_space<vmem>>, vector<1x1x1x32x128xf32>
    %728 = vector.shape_cast %727 : vector<1x1x1x32x128xf32> to vector<32x128xf32>
    %729 = arith.truncf %728 : vector<32x128xf32> to vector<32x128xbf16>
    %c1_777 = arith.constant 1 : index
    %c1_778 = arith.constant 1 : index
    %c4_779 = arith.constant 4 : index
    %c8_780 = arith.constant 8 : index
    %c0_781 = arith.constant 0 : index
    %730 = vector.load %arg11[%c1_777, %c1_778, %c4_779, %c8_780, %c0_781] : memref<2x2x5x40x128xf32, #tpu.memory_space<vmem>>, vector<1x1x1x32x128xf32>
    %731 = vector.shape_cast %730 : vector<1x1x1x32x128xf32> to vector<32x128xf32>
    %732 = arith.truncf %731 : vector<32x128xf32> to vector<32x128xbf16>
    %733 = tpu.concatenate %729, %732 in 1 : vector<32x128xbf16>, vector<32x128xbf16> -> vector<32x256xbf16>
    %c3_782 = arith.constant 3 : index
    %c1_783 = arith.constant 1 : index
    %c0_784 = arith.constant 0 : index
    %c0_785 = arith.constant 0 : index
    %734 = vector.load %arg4[%c3_782, %c1_783, %c0_784, %c0_785] : memref<4x2x256x128xbf16, #tpu.memory_space<vmem>>, vector<1x1x256x128xbf16>
    %735 = vector.shape_cast %734 : vector<1x1x256x128xbf16> to vector<256x128xbf16>
    %cst_786 = arith.constant dense<0.000000e+00> : vector<32x128xf32>
    %736 = tpu.matmul %733, %735, %cst_786 {dimension_numbers = #tpu.dot_dimension_numbers<[1], [0], [0], [1], [0, 0, 1, 1], [], []>} : vector<32x256xbf16>, vector<256x128xbf16>, vector<32x128xf32> -> vector<32x128xf32>
    %737 = arith.addf %726, %736 : vector<32x128xf32>
    %cst_787 = arith.constant 0.000000e+00 : f32
    %738 = vector.broadcast %cst_787 : f32 to vector<32x128xf32>
    %739 = arith.maximumf %737, %738 : vector<32x128xf32>
    %cst_788 = arith.constant dense<0.000000e+00> : vector<128xf32>
    %740 = vector.multi_reduction <add>, %739, %cst_788 [0] : vector<32x128xf32> to vector<128xf32>
    %741 = vector.shape_cast %740 : vector<128xf32> to vector<1x128xf32>
    %742 = arith.addf %631, %741 : vector<1x128xf32>
    %743 = arith.mulf %739, %739 : vector<32x128xf32>
    %cst_789 = arith.constant dense<0.000000e+00> : vector<128xf32>
    %744 = vector.multi_reduction <add>, %743, %cst_789 [0] : vector<32x128xf32> to vector<128xf32>
    %745 = vector.shape_cast %744 : vector<128xf32> to vector<1x128xf32>
    %746 = arith.addf %635, %745 : vector<1x128xf32>
    %747 = vector.shape_cast %739 : vector<32x128xf32> to vector<2x2x8x128xf32>
    %748 = vector.extract_strided_slice %747 {offsets = [0, 0, 0, 0], sizes = [2, 1, 8, 128], strides = [1, 1, 1, 1]} : vector<2x2x8x128xf32> to vector<2x1x8x128xf32>
    %749 = vector.shape_cast %748 : vector<2x1x8x128xf32> to vector<2x8x128xf32>
    %750 = vector.shape_cast %749 : vector<2x8x128xf32> to vector<16x128xf32>
    %751 = vector.extract_strided_slice %747 {offsets = [0, 1, 0, 0], sizes = [2, 1, 8, 128], strides = [1, 1, 1, 1]} : vector<2x2x8x128xf32> to vector<2x1x8x128xf32>
    %752 = vector.shape_cast %751 : vector<2x1x8x128xf32> to vector<2x8x128xf32>
    %753 = vector.shape_cast %752 : vector<2x8x128xf32> to vector<16x128xf32>
    %c0_790 = arith.constant 0 : index
    %c1_791 = arith.constant 1 : index
    %c2_792 = arith.constant 2 : index
    %c0_793 = arith.constant 0 : index
    %c0_794 = arith.constant 0 : index
    %754 = vector.load %arg12[%c0_790, %c1_791, %c2_792, %c0_793, %c0_794] : memref<2x2x3x24x128xf32, #tpu.memory_space<vmem>>, vector<1x1x1x16x128xf32>
    %755 = vector.shape_cast %754 : vector<1x1x1x16x128xf32> to vector<16x128xf32>
    %756 = vector.shape_cast %750 : vector<16x128xf32> to vector<1x1x1x16x128xf32>
    tpu.vector_store %arg12[%c0_790, %c1_791, %c2_792, %c0_793, %c0_794], %756 {strides = array<i32>} : memref<2x2x3x24x128xf32, #tpu.memory_space<vmem>>, vector<1x1x1x16x128xf32>,
    %c0_795 = arith.constant 0 : index
    %c0_796 = arith.constant 0 : index
    %c2_797 = arith.constant 2 : index
    %c8_798 = arith.constant 8 : index
    %c0_799 = arith.constant 0 : index
    %757 = vector.load %arg12[%c0_795, %c0_796, %c2_797, %c8_798, %c0_799] : memref<2x2x3x24x128xf32, #tpu.memory_space<vmem>>, vector<1x1x1x16x128xf32>
    %758 = vector.shape_cast %757 : vector<1x1x1x16x128xf32> to vector<16x128xf32>
    %759 = vector.shape_cast %753 : vector<16x128xf32> to vector<1x1x1x16x128xf32>
    tpu.vector_store %arg12[%c0_795, %c0_796, %c2_797, %c8_798, %c0_799], %759 {strides = array<i32>} : memref<2x2x3x24x128xf32, #tpu.memory_space<vmem>>, vector<1x1x1x16x128xf32>,
    %cst_800 = arith.constant 7.812500e-03 : f32
    %760 = vector.broadcast %cst_800 : f32 to vector<1x128xf32>
    %761 = arith.mulf %742, %760 : vector<1x128xf32>
    %cst_801 = arith.constant 7.812500e-03 : f32
    %762 = vector.broadcast %cst_801 : f32 to vector<1x128xf32>
    %763 = arith.mulf %746, %762 : vector<1x128xf32>
    %764 = arith.mulf %761, %761 : vector<1x128xf32>
    %765 = arith.subf %763, %764 : vector<1x128xf32>
    %cst_802 = arith.constant 0.000000e+00 : f32
    %766 = vector.broadcast %cst_802 : f32 to vector<1x128xf32>
    %767 = arith.maximumf %765, %766 : vector<1x128xf32>
    %c0_803 = arith.constant 0 : index
    %c0_804 = arith.constant 0 : index
    %768 = vector.load %arg5[%c0_803, %c0_804] : memref<1x128xf32, #tpu.memory_space<vmem>>, vector<1x128xf32>
    %cst_805 = arith.constant 9.99999974E-6 : f32
    %769 = vector.broadcast %cst_805 : f32 to vector<1x128xf32>
    %770 = arith.addf %767, %769 : vector<1x128xf32>
    %771 = math.rsqrt %770 : vector<1x128xf32>
    %772 = arith.mulf %768, %771 : vector<1x128xf32>
    %c0_806 = arith.constant 0 : index
    %c0_807 = arith.constant 0 : index
    %773 = vector.load %arg6[%c0_806, %c0_807] : memref<1x128xf32, #tpu.memory_space<vmem>>, vector<1x128xf32>
    %774 = arith.mulf %761, %772 : vector<1x128xf32>
    %775 = arith.subf %773, %774 : vector<1x128xf32>
    %c0_808 = arith.constant 0 : index
    %c0_809 = arith.constant 0 : index
    %c1_810 = arith.constant 1 : index
    %c8_811 = arith.constant 8 : index
    %c0_812 = arith.constant 0 : index
    %776 = vector.load %arg12[%c0_808, %c0_809, %c1_810, %c8_811, %c0_812] : memref<2x2x3x24x128xf32, #tpu.memory_space<vmem>>, vector<1x1x2x16x128xf32>
    %777 = vector.shape_cast %776 : vector<1x1x2x16x128xf32> to vector<2x16x128xf32>
    %778 = vector.shape_cast %772 : vector<1x128xf32> to vector<1x1x128xf32>
    %779 = vector.broadcast %778 : vector<1x1x128xf32> to vector<2x16x128xf32>
    %780 = arith.mulf %777, %779 : vector<2x16x128xf32>
    %781 = vector.shape_cast %775 : vector<1x128xf32> to vector<1x1x128xf32>
    %782 = vector.broadcast %781 : vector<1x1x128xf32> to vector<2x16x128xf32>
    %783 = arith.addf %780, %782 : vector<2x16x128xf32>
    %c0_813 = arith.constant 0 : index
    %c0_814 = arith.constant 0 : index
    %c1_815 = arith.constant 1 : index
    %c8_816 = arith.constant 8 : index
    %c0_817 = arith.constant 0 : index
    %784 = vector.load %arg12[%c0_813, %c0_814, %c1_815, %c8_816, %c0_817] : memref<2x2x3x24x128xf32, #tpu.memory_space<vmem>>, vector<1x1x2x16x128xf32>
    %785 = vector.shape_cast %784 : vector<1x1x2x16x128xf32> to vector<2x16x128xf32>
    %786 = vector.shape_cast %783 : vector<2x16x128xf32> to vector<1x1x2x16x128xf32>
    tpu.vector_store %arg12[%c0_813, %c0_814, %c1_815, %c8_816, %c0_817], %786 {strides = array<i32>} : memref<2x2x3x24x128xf32, #tpu.memory_space<vmem>>, vector<1x1x2x16x128xf32>,
    %c0_818 = arith.constant 0 : index
    %c1_819 = arith.constant 1 : index
    %c1_820 = arith.constant 1 : index
    %c0_821 = arith.constant 0 : index
    %c0_822 = arith.constant 0 : index
    %787 = vector.load %arg12[%c0_818, %c1_819, %c1_820, %c0_821, %c0_822] : memref<2x2x3x24x128xf32, #tpu.memory_space<vmem>>, vector<1x1x2x16x128xf32>
    %788 = vector.shape_cast %787 : vector<1x1x2x16x128xf32> to vector<2x16x128xf32>
    %789 = vector.shape_cast %772 : vector<1x128xf32> to vector<1x1x128xf32>
    %790 = vector.broadcast %789 : vector<1x1x128xf32> to vector<2x16x128xf32>
    %791 = arith.mulf %788, %790 : vector<2x16x128xf32>
    %792 = vector.shape_cast %775 : vector<1x128xf32> to vector<1x1x128xf32>
    %793 = vector.broadcast %792 : vector<1x1x128xf32> to vector<2x16x128xf32>
    %794 = arith.addf %791, %793 : vector<2x16x128xf32>
    %c0_823 = arith.constant 0 : index
    %c1_824 = arith.constant 1 : index
    %c1_825 = arith.constant 1 : index
    %c0_826 = arith.constant 0 : index
    %c0_827 = arith.constant 0 : index
    %795 = vector.load %arg12[%c0_823, %c1_824, %c1_825, %c0_826, %c0_827] : memref<2x2x3x24x128xf32, #tpu.memory_space<vmem>>, vector<1x1x2x16x128xf32>
    %796 = vector.shape_cast %795 : vector<1x1x2x16x128xf32> to vector<2x16x128xf32>
    %797 = vector.shape_cast %794 : vector<2x16x128xf32> to vector<1x1x2x16x128xf32>
    tpu.vector_store %arg12[%c0_823, %c1_824, %c1_825, %c0_826, %c0_827], %797 {strides = array<i32>} : memref<2x2x3x24x128xf32, #tpu.memory_space<vmem>>, vector<1x1x2x16x128xf32>,
    %c1_828 = arith.constant 1 : index
    %c0_829 = arith.constant 0 : index
    %c0_830 = arith.constant 0 : index
    %c8_831 = arith.constant 8 : index
    %c0_832 = arith.constant 0 : index
    %798 = vector.load %arg12[%c1_828, %c0_829, %c0_830, %c8_831, %c0_832] : memref<2x2x3x24x128xf32, #tpu.memory_space<vmem>>, vector<1x1x2x16x128xf32>
    %799 = vector.shape_cast %798 : vector<1x1x2x16x128xf32> to vector<2x16x128xf32>
    %800 = vector.shape_cast %772 : vector<1x128xf32> to vector<1x1x128xf32>
    %801 = vector.broadcast %800 : vector<1x1x128xf32> to vector<2x16x128xf32>
    %802 = arith.mulf %799, %801 : vector<2x16x128xf32>
    %803 = vector.shape_cast %775 : vector<1x128xf32> to vector<1x1x128xf32>
    %804 = vector.broadcast %803 : vector<1x1x128xf32> to vector<2x16x128xf32>
    %805 = arith.addf %802, %804 : vector<2x16x128xf32>
    %c1_833 = arith.constant 1 : index
    %c0_834 = arith.constant 0 : index
    %c0_835 = arith.constant 0 : index
    %c8_836 = arith.constant 8 : index
    %c0_837 = arith.constant 0 : index
    %806 = vector.load %arg12[%c1_833, %c0_834, %c0_835, %c8_836, %c0_837] : memref<2x2x3x24x128xf32, #tpu.memory_space<vmem>>, vector<1x1x2x16x128xf32>
    %807 = vector.shape_cast %806 : vector<1x1x2x16x128xf32> to vector<2x16x128xf32>
    %808 = vector.shape_cast %805 : vector<2x16x128xf32> to vector<1x1x2x16x128xf32>
    tpu.vector_store %arg12[%c1_833, %c0_834, %c0_835, %c8_836, %c0_837], %808 {strides = array<i32>} : memref<2x2x3x24x128xf32, #tpu.memory_space<vmem>>, vector<1x1x2x16x128xf32>,
    %c1_838 = arith.constant 1 : index
    %c1_839 = arith.constant 1 : index
    %c0_840 = arith.constant 0 : index
    %c0_841 = arith.constant 0 : index
    %c0_842 = arith.constant 0 : index
    %809 = vector.load %arg12[%c1_838, %c1_839, %c0_840, %c0_841, %c0_842] : memref<2x2x3x24x128xf32, #tpu.memory_space<vmem>>, vector<1x1x2x16x128xf32>
    %810 = vector.shape_cast %809 : vector<1x1x2x16x128xf32> to vector<2x16x128xf32>
    %811 = vector.shape_cast %772 : vector<1x128xf32> to vector<1x1x128xf32>
    %812 = vector.broadcast %811 : vector<1x1x128xf32> to vector<2x16x128xf32>
    %813 = arith.mulf %810, %812 : vector<2x16x128xf32>
    %814 = vector.shape_cast %775 : vector<1x128xf32> to vector<1x1x128xf32>
    %815 = vector.broadcast %814 : vector<1x1x128xf32> to vector<2x16x128xf32>
    %816 = arith.addf %813, %815 : vector<2x16x128xf32>
    %c1_843 = arith.constant 1 : index
    %c1_844 = arith.constant 1 : index
    %c0_845 = arith.constant 0 : index
    %c0_846 = arith.constant 0 : index
    %c0_847 = arith.constant 0 : index
    %817 = vector.load %arg12[%c1_843, %c1_844, %c0_845, %c0_846, %c0_847] : memref<2x2x3x24x128xf32, #tpu.memory_space<vmem>>, vector<1x1x2x16x128xf32>
    %818 = vector.shape_cast %817 : vector<1x1x2x16x128xf32> to vector<2x16x128xf32>
    %819 = vector.shape_cast %816 : vector<2x16x128xf32> to vector<1x1x2x16x128xf32>
    tpu.vector_store %arg12[%c1_843, %c1_844, %c0_845, %c0_846, %c0_847], %819 {strides = array<i32>} : memref<2x2x3x24x128xf32, #tpu.memory_space<vmem>>, vector<1x1x2x16x128xf32>,
    %cst_848 = arith.constant 0.000000e+00 : f32
    %820 = vector.broadcast %cst_848 : f32 to vector<1x128xf32>
    %cst_849 = arith.constant 0.000000e+00 : f32
    %821 = vector.broadcast %cst_849 : f32 to vector<1x128xf32>
    %cst_850 = arith.constant 0.000000e+00 : f32
    %822 = vector.broadcast %cst_850 : f32 to vector<16x128xf32>
    %c0_851 = arith.constant 0 : index
    %c0_852 = arith.constant 0 : index
    %c0_853 = arith.constant 0 : index
    %c0_854 = arith.constant 0 : index
    %c0_855 = arith.constant 0 : index
    %823 = vector.load %arg12[%c0_851, %c0_852, %c0_853, %c0_854, %c0_855] : memref<2x2x3x24x128xf32, #tpu.memory_space<vmem>>, vector<1x1x1x16x128xf32>
    %824 = vector.shape_cast %823 : vector<1x1x1x16x128xf32> to vector<16x128xf32>
    %825 = arith.truncf %824 : vector<16x128xf32> to vector<16x128xbf16>
    %c0_856 = arith.constant 0 : index
    %c0_857 = arith.constant 0 : index
    %c0_858 = arith.constant 0 : index
    %c8_859 = arith.constant 8 : index
    %c0_860 = arith.constant 0 : index
    %826 = vector.load %arg12[%c0_856, %c0_857, %c0_858, %c8_859, %c0_860] : memref<2x2x3x24x128xf32, #tpu.memory_space<vmem>>, vector<1x1x1x16x128xf32>
    %827 = vector.shape_cast %826 : vector<1x1x1x16x128xf32> to vector<16x128xf32>
    %828 = arith.truncf %827 : vector<16x128xf32> to vector<16x128xbf16>
    %829 = tpu.concatenate %825, %828 in 1 : vector<16x128xbf16>, vector<16x128xbf16> -> vector<16x256xbf16>
    %c0_861 = arith.constant 0 : index
    %c0_862 = arith.constant 0 : index
    %c0_863 = arith.constant 0 : index
    %c0_864 = arith.constant 0 : index
    %830 = vector.load %arg7[%c0_861, %c0_862, %c0_863, %c0_864] : memref<4x2x256x128xbf16, #tpu.memory_space<vmem>>, vector<1x1x256x128xbf16>
    %831 = vector.shape_cast %830 : vector<1x1x256x128xbf16> to vector<256x128xbf16>
    %cst_865 = arith.constant dense<0.000000e+00> : vector<16x128xf32>
    %832 = tpu.matmul %829, %831, %cst_865 {dimension_numbers = #tpu.dot_dimension_numbers<[1], [0], [0], [1], [0, 0, 1, 1], [], []>} : vector<16x256xbf16>, vector<256x128xbf16>, vector<16x128xf32> -> vector<16x128xf32>
    %833 = arith.addf %822, %832 : vector<16x128xf32>
    %c0_866 = arith.constant 0 : index
    %c1_867 = arith.constant 1 : index
    %c0_868 = arith.constant 0 : index
    %c0_869 = arith.constant 0 : index
    %c0_870 = arith.constant 0 : index
    %834 = vector.load %arg12[%c0_866, %c1_867, %c0_868, %c0_869, %c0_870] : memref<2x2x3x24x128xf32, #tpu.memory_space<vmem>>, vector<1x1x1x16x128xf32>
    %835 = vector.shape_cast %834 : vector<1x1x1x16x128xf32> to vector<16x128xf32>
    %836 = arith.truncf %835 : vector<16x128xf32> to vector<16x128xbf16>
    %c0_871 = arith.constant 0 : index
    %c1_872 = arith.constant 1 : index
    %c0_873 = arith.constant 0 : index
    %c8_874 = arith.constant 8 : index
    %c0_875 = arith.constant 0 : index
    %837 = vector.load %arg12[%c0_871, %c1_872, %c0_873, %c8_874, %c0_875] : memref<2x2x3x24x128xf32, #tpu.memory_space<vmem>>, vector<1x1x1x16x128xf32>
    %838 = vector.shape_cast %837 : vector<1x1x1x16x128xf32> to vector<16x128xf32>
    %839 = arith.truncf %838 : vector<16x128xf32> to vector<16x128xbf16>
    %840 = tpu.concatenate %836, %839 in 1 : vector<16x128xbf16>, vector<16x128xbf16> -> vector<16x256xbf16>
    %c0_876 = arith.constant 0 : index
    %c1_877 = arith.constant 1 : index
    %c0_878 = arith.constant 0 : index
    %c0_879 = arith.constant 0 : index
    %841 = vector.load %arg7[%c0_876, %c1_877, %c0_878, %c0_879] : memref<4x2x256x128xbf16, #tpu.memory_space<vmem>>, vector<1x1x256x128xbf16>
    %842 = vector.shape_cast %841 : vector<1x1x256x128xbf16> to vector<256x128xbf16>
    %cst_880 = arith.constant dense<0.000000e+00> : vector<16x128xf32>
    %843 = tpu.matmul %840, %842, %cst_880 {dimension_numbers = #tpu.dot_dimension_numbers<[1], [0], [0], [1], [0, 0, 1, 1], [], []>} : vector<16x256xbf16>, vector<256x128xbf16>, vector<16x128xf32> -> vector<16x128xf32>
    %844 = arith.addf %833, %843 : vector<16x128xf32>
    %c1_881 = arith.constant 1 : index
    %c0_882 = arith.constant 0 : index
    %c0_883 = arith.constant 0 : index
    %c0_884 = arith.constant 0 : index
    %c0_885 = arith.constant 0 : index
    %845 = vector.load %arg12[%c1_881, %c0_882, %c0_883, %c0_884, %c0_885] : memref<2x2x3x24x128xf32, #tpu.memory_space<vmem>>, vector<1x1x1x16x128xf32>
    %846 = vector.shape_cast %845 : vector<1x1x1x16x128xf32> to vector<16x128xf32>
    %847 = arith.truncf %846 : vector<16x128xf32> to vector<16x128xbf16>
    %c1_886 = arith.constant 1 : index
    %c0_887 = arith.constant 0 : index
    %c0_888 = arith.constant 0 : index
    %c8_889 = arith.constant 8 : index
    %c0_890 = arith.constant 0 : index
    %848 = vector.load %arg12[%c1_886, %c0_887, %c0_888, %c8_889, %c0_890] : memref<2x2x3x24x128xf32, #tpu.memory_space<vmem>>, vector<1x1x1x16x128xf32>
    %849 = vector.shape_cast %848 : vector<1x1x1x16x128xf32> to vector<16x128xf32>
    %850 = arith.truncf %849 : vector<16x128xf32> to vector<16x128xbf16>
    %851 = tpu.concatenate %847, %850 in 1 : vector<16x128xbf16>, vector<16x128xbf16> -> vector<16x256xbf16>
    %c1_891 = arith.constant 1 : index
    %c0_892 = arith.constant 0 : index
    %c0_893 = arith.constant 0 : index
    %c0_894 = arith.constant 0 : index
    %852 = vector.load %arg7[%c1_891, %c0_892, %c0_893, %c0_894] : memref<4x2x256x128xbf16, #tpu.memory_space<vmem>>, vector<1x1x256x128xbf16>
    %853 = vector.shape_cast %852 : vector<1x1x256x128xbf16> to vector<256x128xbf16>
    %cst_895 = arith.constant dense<0.000000e+00> : vector<16x128xf32>
    %854 = tpu.matmul %851, %853, %cst_895 {dimension_numbers = #tpu.dot_dimension_numbers<[1], [0], [0], [1], [0, 0, 1, 1], [], []>} : vector<16x256xbf16>, vector<256x128xbf16>, vector<16x128xf32> -> vector<16x128xf32>
    %855 = arith.addf %844, %854 : vector<16x128xf32>
    %c1_896 = arith.constant 1 : index
    %c1_897 = arith.constant 1 : index
    %c0_898 = arith.constant 0 : index
    %c0_899 = arith.constant 0 : index
    %c0_900 = arith.constant 0 : index
    %856 = vector.load %arg12[%c1_896, %c1_897, %c0_898, %c0_899, %c0_900] : memref<2x2x3x24x128xf32, #tpu.memory_space<vmem>>, vector<1x1x1x16x128xf32>
    %857 = vector.shape_cast %856 : vector<1x1x1x16x128xf32> to vector<16x128xf32>
    %858 = arith.truncf %857 : vector<16x128xf32> to vector<16x128xbf16>
    %c1_901 = arith.constant 1 : index
    %c1_902 = arith.constant 1 : index
    %c0_903 = arith.constant 0 : index
    %c8_904 = arith.constant 8 : index
    %c0_905 = arith.constant 0 : index
    %859 = vector.load %arg12[%c1_901, %c1_902, %c0_903, %c8_904, %c0_905] : memref<2x2x3x24x128xf32, #tpu.memory_space<vmem>>, vector<1x1x1x16x128xf32>
    %860 = vector.shape_cast %859 : vector<1x1x1x16x128xf32> to vector<16x128xf32>
    %861 = arith.truncf %860 : vector<16x128xf32> to vector<16x128xbf16>
    %862 = tpu.concatenate %858, %861 in 1 : vector<16x128xbf16>, vector<16x128xbf16> -> vector<16x256xbf16>
    %c1_906 = arith.constant 1 : index
    %c1_907 = arith.constant 1 : index
    %c0_908 = arith.constant 0 : index
    %c0_909 = arith.constant 0 : index
    %863 = vector.load %arg7[%c1_906, %c1_907, %c0_908, %c0_909] : memref<4x2x256x128xbf16, #tpu.memory_space<vmem>>, vector<1x1x256x128xbf16>
    %864 = vector.shape_cast %863 : vector<1x1x256x128xbf16> to vector<256x128xbf16>
    %cst_910 = arith.constant dense<0.000000e+00> : vector<16x128xf32>
    %865 = tpu.matmul %862, %864, %cst_910 {dimension_numbers = #tpu.dot_dimension_numbers<[1], [0], [0], [1], [0, 0, 1, 1], [], []>} : vector<16x256xbf16>, vector<256x128xbf16>, vector<16x128xf32> -> vector<16x128xf32>
    %866 = arith.addf %855, %865 : vector<16x128xf32>
    %c0_911 = arith.constant 0 : index
    %c0_912 = arith.constant 0 : index
    %c1_913 = arith.constant 1 : index
    %c0_914 = arith.constant 0 : index
    %c0_915 = arith.constant 0 : index
    %867 = vector.load %arg12[%c0_911, %c0_912, %c1_913, %c0_914, %c0_915] : memref<2x2x3x24x128xf32, #tpu.memory_space<vmem>>, vector<1x1x1x16x128xf32>
    %868 = vector.shape_cast %867 : vector<1x1x1x16x128xf32> to vector<16x128xf32>
    %869 = arith.truncf %868 : vector<16x128xf32> to vector<16x128xbf16>
    %c0_916 = arith.constant 0 : index
    %c0_917 = arith.constant 0 : index
    %c1_918 = arith.constant 1 : index
    %c8_919 = arith.constant 8 : index
    %c0_920 = arith.constant 0 : index
    %870 = vector.load %arg12[%c0_916, %c0_917, %c1_918, %c8_919, %c0_920] : memref<2x2x3x24x128xf32, #tpu.memory_space<vmem>>, vector<1x1x1x16x128xf32>
    %871 = vector.shape_cast %870 : vector<1x1x1x16x128xf32> to vector<16x128xf32>
    %872 = arith.truncf %871 : vector<16x128xf32> to vector<16x128xbf16>
    %873 = tpu.concatenate %869, %872 in 1 : vector<16x128xbf16>, vector<16x128xbf16> -> vector<16x256xbf16>
    %c2_921 = arith.constant 2 : index
    %c0_922 = arith.constant 0 : index
    %c0_923 = arith.constant 0 : index
    %c0_924 = arith.constant 0 : index
    %874 = vector.load %arg7[%c2_921, %c0_922, %c0_923, %c0_924] : memref<4x2x256x128xbf16, #tpu.memory_space<vmem>>, vector<1x1x256x128xbf16>
    %875 = vector.shape_cast %874 : vector<1x1x256x128xbf16> to vector<256x128xbf16>
    %cst_925 = arith.constant dense<0.000000e+00> : vector<16x128xf32>
    %876 = tpu.matmul %873, %875, %cst_925 {dimension_numbers = #tpu.dot_dimension_numbers<[1], [0], [0], [1], [0, 0, 1, 1], [], []>} : vector<16x256xbf16>, vector<256x128xbf16>, vector<16x128xf32> -> vector<16x128xf32>
    %877 = arith.addf %866, %876 : vector<16x128xf32>
    %c0_926 = arith.constant 0 : index
    %c1_927 = arith.constant 1 : index
    %c1_928 = arith.constant 1 : index
    %c0_929 = arith.constant 0 : index
    %c0_930 = arith.constant 0 : index
    %878 = vector.load %arg12[%c0_926, %c1_927, %c1_928, %c0_929, %c0_930] : memref<2x2x3x24x128xf32, #tpu.memory_space<vmem>>, vector<1x1x1x16x128xf32>
    %879 = vector.shape_cast %878 : vector<1x1x1x16x128xf32> to vector<16x128xf32>
    %880 = arith.truncf %879 : vector<16x128xf32> to vector<16x128xbf16>
    %c0_931 = arith.constant 0 : index
    %c1_932 = arith.constant 1 : index
    %c1_933 = arith.constant 1 : index
    %c8_934 = arith.constant 8 : index
    %c0_935 = arith.constant 0 : index
    %881 = vector.load %arg12[%c0_931, %c1_932, %c1_933, %c8_934, %c0_935] : memref<2x2x3x24x128xf32, #tpu.memory_space<vmem>>, vector<1x1x1x16x128xf32>
    %882 = vector.shape_cast %881 : vector<1x1x1x16x128xf32> to vector<16x128xf32>
    %883 = arith.truncf %882 : vector<16x128xf32> to vector<16x128xbf16>
    %884 = tpu.concatenate %880, %883 in 1 : vector<16x128xbf16>, vector<16x128xbf16> -> vector<16x256xbf16>
    %c2_936 = arith.constant 2 : index
    %c1_937 = arith.constant 1 : index
    %c0_938 = arith.constant 0 : index
    %c0_939 = arith.constant 0 : index
    %885 = vector.load %arg7[%c2_936, %c1_937, %c0_938, %c0_939] : memref<4x2x256x128xbf16, #tpu.memory_space<vmem>>, vector<1x1x256x128xbf16>
    %886 = vector.shape_cast %885 : vector<1x1x256x128xbf16> to vector<256x128xbf16>
    %cst_940 = arith.constant dense<0.000000e+00> : vector<16x128xf32>
    %887 = tpu.matmul %884, %886, %cst_940 {dimension_numbers = #tpu.dot_dimension_numbers<[1], [0], [0], [1], [0, 0, 1, 1], [], []>} : vector<16x256xbf16>, vector<256x128xbf16>, vector<16x128xf32> -> vector<16x128xf32>
    %888 = arith.addf %877, %887 : vector<16x128xf32>
    %c1_941 = arith.constant 1 : index
    %c0_942 = arith.constant 0 : index
    %c1_943 = arith.constant 1 : index
    %c0_944 = arith.constant 0 : index
    %c0_945 = arith.constant 0 : index
    %889 = vector.load %arg12[%c1_941, %c0_942, %c1_943, %c0_944, %c0_945] : memref<2x2x3x24x128xf32, #tpu.memory_space<vmem>>, vector<1x1x1x16x128xf32>
    %890 = vector.shape_cast %889 : vector<1x1x1x16x128xf32> to vector<16x128xf32>
    %891 = arith.truncf %890 : vector<16x128xf32> to vector<16x128xbf16>
    %c1_946 = arith.constant 1 : index
    %c0_947 = arith.constant 0 : index
    %c1_948 = arith.constant 1 : index
    %c8_949 = arith.constant 8 : index
    %c0_950 = arith.constant 0 : index
    %892 = vector.load %arg12[%c1_946, %c0_947, %c1_948, %c8_949, %c0_950] : memref<2x2x3x24x128xf32, #tpu.memory_space<vmem>>, vector<1x1x1x16x128xf32>
    %893 = vector.shape_cast %892 : vector<1x1x1x16x128xf32> to vector<16x128xf32>
    %894 = arith.truncf %893 : vector<16x128xf32> to vector<16x128xbf16>
    %895 = tpu.concatenate %891, %894 in 1 : vector<16x128xbf16>, vector<16x128xbf16> -> vector<16x256xbf16>
    %c3_951 = arith.constant 3 : index
    %c0_952 = arith.constant 0 : index
    %c0_953 = arith.constant 0 : index
    %c0_954 = arith.constant 0 : index
    %896 = vector.load %arg7[%c3_951, %c0_952, %c0_953, %c0_954] : memref<4x2x256x128xbf16, #tpu.memory_space<vmem>>, vector<1x1x256x128xbf16>
    %897 = vector.shape_cast %896 : vector<1x1x256x128xbf16> to vector<256x128xbf16>
    %cst_955 = arith.constant dense<0.000000e+00> : vector<16x128xf32>
    %898 = tpu.matmul %895, %897, %cst_955 {dimension_numbers = #tpu.dot_dimension_numbers<[1], [0], [0], [1], [0, 0, 1, 1], [], []>} : vector<16x256xbf16>, vector<256x128xbf16>, vector<16x128xf32> -> vector<16x128xf32>
    %899 = arith.addf %888, %898 : vector<16x128xf32>
    %c1_956 = arith.constant 1 : index
    %c1_957 = arith.constant 1 : index
    %c1_958 = arith.constant 1 : index
    %c0_959 = arith.constant 0 : index
    %c0_960 = arith.constant 0 : index
    %900 = vector.load %arg12[%c1_956, %c1_957, %c1_958, %c0_959, %c0_960] : memref<2x2x3x24x128xf32, #tpu.memory_space<vmem>>, vector<1x1x1x16x128xf32>
    %901 = vector.shape_cast %900 : vector<1x1x1x16x128xf32> to vector<16x128xf32>
    %902 = arith.truncf %901 : vector<16x128xf32> to vector<16x128xbf16>
    %c1_961 = arith.constant 1 : index
    %c1_962 = arith.constant 1 : index
    %c1_963 = arith.constant 1 : index
    %c8_964 = arith.constant 8 : index
    %c0_965 = arith.constant 0 : index
    %903 = vector.load %arg12[%c1_961, %c1_962, %c1_963, %c8_964, %c0_965] : memref<2x2x3x24x128xf32, #tpu.memory_space<vmem>>, vector<1x1x1x16x128xf32>
    %904 = vector.shape_cast %903 : vector<1x1x1x16x128xf32> to vector<16x128xf32>
    %905 = arith.truncf %904 : vector<16x128xf32> to vector<16x128xbf16>
    %906 = tpu.concatenate %902, %905 in 1 : vector<16x128xbf16>, vector<16x128xbf16> -> vector<16x256xbf16>
    %c3_966 = arith.constant 3 : index
    %c1_967 = arith.constant 1 : index
    %c0_968 = arith.constant 0 : index
    %c0_969 = arith.constant 0 : index
    %907 = vector.load %arg7[%c3_966, %c1_967, %c0_968, %c0_969] : memref<4x2x256x128xbf16, #tpu.memory_space<vmem>>, vector<1x1x256x128xbf16>
    %908 = vector.shape_cast %907 : vector<1x1x256x128xbf16> to vector<256x128xbf16>
    %cst_970 = arith.constant dense<0.000000e+00> : vector<16x128xf32>
    %909 = tpu.matmul %906, %908, %cst_970 {dimension_numbers = #tpu.dot_dimension_numbers<[1], [0], [0], [1], [0, 0, 1, 1], [], []>} : vector<16x256xbf16>, vector<256x128xbf16>, vector<16x128xf32> -> vector<16x128xf32>
    %910 = arith.addf %899, %909 : vector<16x128xf32>
    %cst_971 = arith.constant dense<0.000000e+00> : vector<128xf32>
    %911 = vector.multi_reduction <add>, %910, %cst_971 [0] : vector<16x128xf32> to vector<128xf32>
    %912 = vector.shape_cast %911 : vector<128xf32> to vector<1x128xf32>
    %913 = arith.addf %820, %912 : vector<1x128xf32>
    %914 = arith.mulf %910, %910 : vector<16x128xf32>
    %cst_972 = arith.constant dense<0.000000e+00> : vector<128xf32>
    %915 = vector.multi_reduction <add>, %914, %cst_972 [0] : vector<16x128xf32> to vector<128xf32>
    %916 = vector.shape_cast %915 : vector<128xf32> to vector<1x128xf32>
    %917 = arith.addf %821, %916 : vector<1x128xf32>
    %c0_973 = arith.constant 0 : index
    %c0_974 = arith.constant 0 : index
    %918 = vector.load %arg10[%c0_973, %c0_974] : memref<32x128xf32, #tpu.memory_space<vmem>>, vector<16x128xf32>
    tpu.vector_store %arg10[%c0_973, %c0_974], %910 {strides = array<i32>} : memref<32x128xf32, #tpu.memory_space<vmem>>, vector<16x128xf32>,
    %cst_975 = arith.constant 0.000000e+00 : f32
    %919 = vector.broadcast %cst_975 : f32 to vector<16x128xf32>
    %c0_976 = arith.constant 0 : index
    %c0_977 = arith.constant 0 : index
    %c1_978 = arith.constant 1 : index
    %c0_979 = arith.constant 0 : index
    %c0_980 = arith.constant 0 : index
    %920 = vector.load %arg12[%c0_976, %c0_977, %c1_978, %c0_979, %c0_980] : memref<2x2x3x24x128xf32, #tpu.memory_space<vmem>>, vector<1x1x1x16x128xf32>
    %921 = vector.shape_cast %920 : vector<1x1x1x16x128xf32> to vector<16x128xf32>
    %922 = arith.truncf %921 : vector<16x128xf32> to vector<16x128xbf16>
    %c0_981 = arith.constant 0 : index
    %c0_982 = arith.constant 0 : index
    %c1_983 = arith.constant 1 : index
    %c8_984 = arith.constant 8 : index
    %c0_985 = arith.constant 0 : index
    %923 = vector.load %arg12[%c0_981, %c0_982, %c1_983, %c8_984, %c0_985] : memref<2x2x3x24x128xf32, #tpu.memory_space<vmem>>, vector<1x1x1x16x128xf32>
    %924 = vector.shape_cast %923 : vector<1x1x1x16x128xf32> to vector<16x128xf32>
    %925 = arith.truncf %924 : vector<16x128xf32> to vector<16x128xbf16>
    %926 = tpu.concatenate %922, %925 in 1 : vector<16x128xbf16>, vector<16x128xbf16> -> vector<16x256xbf16>
    %c0_986 = arith.constant 0 : index
    %c0_987 = arith.constant 0 : index
    %c0_988 = arith.constant 0 : index
    %c0_989 = arith.constant 0 : index
    %927 = vector.load %arg7[%c0_986, %c0_987, %c0_988, %c0_989] : memref<4x2x256x128xbf16, #tpu.memory_space<vmem>>, vector<1x1x256x128xbf16>
    %928 = vector.shape_cast %927 : vector<1x1x256x128xbf16> to vector<256x128xbf16>
    %cst_990 = arith.constant dense<0.000000e+00> : vector<16x128xf32>
    %929 = tpu.matmul %926, %928, %cst_990 {dimension_numbers = #tpu.dot_dimension_numbers<[1], [0], [0], [1], [0, 0, 1, 1], [], []>} : vector<16x256xbf16>, vector<256x128xbf16>, vector<16x128xf32> -> vector<16x128xf32>
    %930 = arith.addf %919, %929 : vector<16x128xf32>
    %c0_991 = arith.constant 0 : index
    %c1_992 = arith.constant 1 : index
    %c1_993 = arith.constant 1 : index
    %c0_994 = arith.constant 0 : index
    %c0_995 = arith.constant 0 : index
    %931 = vector.load %arg12[%c0_991, %c1_992, %c1_993, %c0_994, %c0_995] : memref<2x2x3x24x128xf32, #tpu.memory_space<vmem>>, vector<1x1x1x16x128xf32>
    %932 = vector.shape_cast %931 : vector<1x1x1x16x128xf32> to vector<16x128xf32>
    %933 = arith.truncf %932 : vector<16x128xf32> to vector<16x128xbf16>
    %c0_996 = arith.constant 0 : index
    %c1_997 = arith.constant 1 : index
    %c1_998 = arith.constant 1 : index
    %c8_999 = arith.constant 8 : index
    %c0_1000 = arith.constant 0 : index
    %934 = vector.load %arg12[%c0_996, %c1_997, %c1_998, %c8_999, %c0_1000] : memref<2x2x3x24x128xf32, #tpu.memory_space<vmem>>, vector<1x1x1x16x128xf32>
    %935 = vector.shape_cast %934 : vector<1x1x1x16x128xf32> to vector<16x128xf32>
    %936 = arith.truncf %935 : vector<16x128xf32> to vector<16x128xbf16>
    %937 = tpu.concatenate %933, %936 in 1 : vector<16x128xbf16>, vector<16x128xbf16> -> vector<16x256xbf16>
    %c0_1001 = arith.constant 0 : index
    %c1_1002 = arith.constant 1 : index
    %c0_1003 = arith.constant 0 : index
    %c0_1004 = arith.constant 0 : index
    %938 = vector.load %arg7[%c0_1001, %c1_1002, %c0_1003, %c0_1004] : memref<4x2x256x128xbf16, #tpu.memory_space<vmem>>, vector<1x1x256x128xbf16>
    %939 = vector.shape_cast %938 : vector<1x1x256x128xbf16> to vector<256x128xbf16>
    %cst_1005 = arith.constant dense<0.000000e+00> : vector<16x128xf32>
    %940 = tpu.matmul %937, %939, %cst_1005 {dimension_numbers = #tpu.dot_dimension_numbers<[1], [0], [0], [1], [0, 0, 1, 1], [], []>} : vector<16x256xbf16>, vector<256x128xbf16>, vector<16x128xf32> -> vector<16x128xf32>
    %941 = arith.addf %930, %940 : vector<16x128xf32>
    %c1_1006 = arith.constant 1 : index
    %c0_1007 = arith.constant 0 : index
    %c1_1008 = arith.constant 1 : index
    %c0_1009 = arith.constant 0 : index
    %c0_1010 = arith.constant 0 : index
    %942 = vector.load %arg12[%c1_1006, %c0_1007, %c1_1008, %c0_1009, %c0_1010] : memref<2x2x3x24x128xf32, #tpu.memory_space<vmem>>, vector<1x1x1x16x128xf32>
    %943 = vector.shape_cast %942 : vector<1x1x1x16x128xf32> to vector<16x128xf32>
    %944 = arith.truncf %943 : vector<16x128xf32> to vector<16x128xbf16>
    %c1_1011 = arith.constant 1 : index
    %c0_1012 = arith.constant 0 : index
    %c1_1013 = arith.constant 1 : index
    %c8_1014 = arith.constant 8 : index
    %c0_1015 = arith.constant 0 : index
    %945 = vector.load %arg12[%c1_1011, %c0_1012, %c1_1013, %c8_1014, %c0_1015] : memref<2x2x3x24x128xf32, #tpu.memory_space<vmem>>, vector<1x1x1x16x128xf32>
    %946 = vector.shape_cast %945 : vector<1x1x1x16x128xf32> to vector<16x128xf32>
    %947 = arith.truncf %946 : vector<16x128xf32> to vector<16x128xbf16>
    %948 = tpu.concatenate %944, %947 in 1 : vector<16x128xbf16>, vector<16x128xbf16> -> vector<16x256xbf16>
    %c1_1016 = arith.constant 1 : index
    %c0_1017 = arith.constant 0 : index
    %c0_1018 = arith.constant 0 : index
    %c0_1019 = arith.constant 0 : index
    %949 = vector.load %arg7[%c1_1016, %c0_1017, %c0_1018, %c0_1019] : memref<4x2x256x128xbf16, #tpu.memory_space<vmem>>, vector<1x1x256x128xbf16>
    %950 = vector.shape_cast %949 : vector<1x1x256x128xbf16> to vector<256x128xbf16>
    %cst_1020 = arith.constant dense<0.000000e+00> : vector<16x128xf32>
    %951 = tpu.matmul %948, %950, %cst_1020 {dimension_numbers = #tpu.dot_dimension_numbers<[1], [0], [0], [1], [0, 0, 1, 1], [], []>} : vector<16x256xbf16>, vector<256x128xbf16>, vector<16x128xf32> -> vector<16x128xf32>
    %952 = arith.addf %941, %951 : vector<16x128xf32>
    %c1_1021 = arith.constant 1 : index
    %c1_1022 = arith.constant 1 : index
    %c1_1023 = arith.constant 1 : index
    %c0_1024 = arith.constant 0 : index
    %c0_1025 = arith.constant 0 : index
    %953 = vector.load %arg12[%c1_1021, %c1_1022, %c1_1023, %c0_1024, %c0_1025] : memref<2x2x3x24x128xf32, #tpu.memory_space<vmem>>, vector<1x1x1x16x128xf32>
    %954 = vector.shape_cast %953 : vector<1x1x1x16x128xf32> to vector<16x128xf32>
    %955 = arith.truncf %954 : vector<16x128xf32> to vector<16x128xbf16>
    %c1_1026 = arith.constant 1 : index
    %c1_1027 = arith.constant 1 : index
    %c1_1028 = arith.constant 1 : index
    %c8_1029 = arith.constant 8 : index
    %c0_1030 = arith.constant 0 : index
    %956 = vector.load %arg12[%c1_1026, %c1_1027, %c1_1028, %c8_1029, %c0_1030] : memref<2x2x3x24x128xf32, #tpu.memory_space<vmem>>, vector<1x1x1x16x128xf32>
    %957 = vector.shape_cast %956 : vector<1x1x1x16x128xf32> to vector<16x128xf32>
    %958 = arith.truncf %957 : vector<16x128xf32> to vector<16x128xbf16>
    %959 = tpu.concatenate %955, %958 in 1 : vector<16x128xbf16>, vector<16x128xbf16> -> vector<16x256xbf16>
    %c1_1031 = arith.constant 1 : index
    %c1_1032 = arith.constant 1 : index
    %c0_1033 = arith.constant 0 : index
    %c0_1034 = arith.constant 0 : index
    %960 = vector.load %arg7[%c1_1031, %c1_1032, %c0_1033, %c0_1034] : memref<4x2x256x128xbf16, #tpu.memory_space<vmem>>, vector<1x1x256x128xbf16>
    %961 = vector.shape_cast %960 : vector<1x1x256x128xbf16> to vector<256x128xbf16>
    %cst_1035 = arith.constant dense<0.000000e+00> : vector<16x128xf32>
    %962 = tpu.matmul %959, %961, %cst_1035 {dimension_numbers = #tpu.dot_dimension_numbers<[1], [0], [0], [1], [0, 0, 1, 1], [], []>} : vector<16x256xbf16>, vector<256x128xbf16>, vector<16x128xf32> -> vector<16x128xf32>
    %963 = arith.addf %952, %962 : vector<16x128xf32>
    %c0_1036 = arith.constant 0 : index
    %c0_1037 = arith.constant 0 : index
    %c2_1038 = arith.constant 2 : index
    %c0_1039 = arith.constant 0 : index
    %c0_1040 = arith.constant 0 : index
    %964 = vector.load %arg12[%c0_1036, %c0_1037, %c2_1038, %c0_1039, %c0_1040] : memref<2x2x3x24x128xf32, #tpu.memory_space<vmem>>, vector<1x1x1x16x128xf32>
    %965 = vector.shape_cast %964 : vector<1x1x1x16x128xf32> to vector<16x128xf32>
    %966 = arith.truncf %965 : vector<16x128xf32> to vector<16x128xbf16>
    %c0_1041 = arith.constant 0 : index
    %c0_1042 = arith.constant 0 : index
    %c2_1043 = arith.constant 2 : index
    %c8_1044 = arith.constant 8 : index
    %c0_1045 = arith.constant 0 : index
    %967 = vector.load %arg12[%c0_1041, %c0_1042, %c2_1043, %c8_1044, %c0_1045] : memref<2x2x3x24x128xf32, #tpu.memory_space<vmem>>, vector<1x1x1x16x128xf32>
    %968 = vector.shape_cast %967 : vector<1x1x1x16x128xf32> to vector<16x128xf32>
    %969 = arith.truncf %968 : vector<16x128xf32> to vector<16x128xbf16>
    %970 = tpu.concatenate %966, %969 in 1 : vector<16x128xbf16>, vector<16x128xbf16> -> vector<16x256xbf16>
    %c2_1046 = arith.constant 2 : index
    %c0_1047 = arith.constant 0 : index
    %c0_1048 = arith.constant 0 : index
    %c0_1049 = arith.constant 0 : index
    %971 = vector.load %arg7[%c2_1046, %c0_1047, %c0_1048, %c0_1049] : memref<4x2x256x128xbf16, #tpu.memory_space<vmem>>, vector<1x1x256x128xbf16>
    %972 = vector.shape_cast %971 : vector<1x1x256x128xbf16> to vector<256x128xbf16>
    %cst_1050 = arith.constant dense<0.000000e+00> : vector<16x128xf32>
    %973 = tpu.matmul %970, %972, %cst_1050 {dimension_numbers = #tpu.dot_dimension_numbers<[1], [0], [0], [1], [0, 0, 1, 1], [], []>} : vector<16x256xbf16>, vector<256x128xbf16>, vector<16x128xf32> -> vector<16x128xf32>
    %974 = arith.addf %963, %973 : vector<16x128xf32>
    %c0_1051 = arith.constant 0 : index
    %c1_1052 = arith.constant 1 : index
    %c2_1053 = arith.constant 2 : index
    %c0_1054 = arith.constant 0 : index
    %c0_1055 = arith.constant 0 : index
    %975 = vector.load %arg12[%c0_1051, %c1_1052, %c2_1053, %c0_1054, %c0_1055] : memref<2x2x3x24x128xf32, #tpu.memory_space<vmem>>, vector<1x1x1x16x128xf32>
    %976 = vector.shape_cast %975 : vector<1x1x1x16x128xf32> to vector<16x128xf32>
    %977 = arith.truncf %976 : vector<16x128xf32> to vector<16x128xbf16>
    %c0_1056 = arith.constant 0 : index
    %c1_1057 = arith.constant 1 : index
    %c2_1058 = arith.constant 2 : index
    %c8_1059 = arith.constant 8 : index
    %c0_1060 = arith.constant 0 : index
    %978 = vector.load %arg12[%c0_1056, %c1_1057, %c2_1058, %c8_1059, %c0_1060] : memref<2x2x3x24x128xf32, #tpu.memory_space<vmem>>, vector<1x1x1x16x128xf32>
    %979 = vector.shape_cast %978 : vector<1x1x1x16x128xf32> to vector<16x128xf32>
    %980 = arith.truncf %979 : vector<16x128xf32> to vector<16x128xbf16>
    %981 = tpu.concatenate %977, %980 in 1 : vector<16x128xbf16>, vector<16x128xbf16> -> vector<16x256xbf16>
    %c2_1061 = arith.constant 2 : index
    %c1_1062 = arith.constant 1 : index
    %c0_1063 = arith.constant 0 : index
    %c0_1064 = arith.constant 0 : index
    %982 = vector.load %arg7[%c2_1061, %c1_1062, %c0_1063, %c0_1064] : memref<4x2x256x128xbf16, #tpu.memory_space<vmem>>, vector<1x1x256x128xbf16>
    %983 = vector.shape_cast %982 : vector<1x1x256x128xbf16> to vector<256x128xbf16>
    %cst_1065 = arith.constant dense<0.000000e+00> : vector<16x128xf32>
    %984 = tpu.matmul %981, %983, %cst_1065 {dimension_numbers = #tpu.dot_dimension_numbers<[1], [0], [0], [1], [0, 0, 1, 1], [], []>} : vector<16x256xbf16>, vector<256x128xbf16>, vector<16x128xf32> -> vector<16x128xf32>
    %985 = arith.addf %974, %984 : vector<16x128xf32>
    %c1_1066 = arith.constant 1 : index
    %c0_1067 = arith.constant 0 : index
    %c2_1068 = arith.constant 2 : index
    %c0_1069 = arith.constant 0 : index
    %c0_1070 = arith.constant 0 : index
    %986 = vector.load %arg12[%c1_1066, %c0_1067, %c2_1068, %c0_1069, %c0_1070] : memref<2x2x3x24x128xf32, #tpu.memory_space<vmem>>, vector<1x1x1x16x128xf32>
    %987 = vector.shape_cast %986 : vector<1x1x1x16x128xf32> to vector<16x128xf32>
    %988 = arith.truncf %987 : vector<16x128xf32> to vector<16x128xbf16>
    %c1_1071 = arith.constant 1 : index
    %c0_1072 = arith.constant 0 : index
    %c2_1073 = arith.constant 2 : index
    %c8_1074 = arith.constant 8 : index
    %c0_1075 = arith.constant 0 : index
    %989 = vector.load %arg12[%c1_1071, %c0_1072, %c2_1073, %c8_1074, %c0_1075] : memref<2x2x3x24x128xf32, #tpu.memory_space<vmem>>, vector<1x1x1x16x128xf32>
    %990 = vector.shape_cast %989 : vector<1x1x1x16x128xf32> to vector<16x128xf32>
    %991 = arith.truncf %990 : vector<16x128xf32> to vector<16x128xbf16>
    %992 = tpu.concatenate %988, %991 in 1 : vector<16x128xbf16>, vector<16x128xbf16> -> vector<16x256xbf16>
    %c3_1076 = arith.constant 3 : index
    %c0_1077 = arith.constant 0 : index
    %c0_1078 = arith.constant 0 : index
    %c0_1079 = arith.constant 0 : index
    %993 = vector.load %arg7[%c3_1076, %c0_1077, %c0_1078, %c0_1079] : memref<4x2x256x128xbf16, #tpu.memory_space<vmem>>, vector<1x1x256x128xbf16>
    %994 = vector.shape_cast %993 : vector<1x1x256x128xbf16> to vector<256x128xbf16>
    %cst_1080 = arith.constant dense<0.000000e+00> : vector<16x128xf32>
    %995 = tpu.matmul %992, %994, %cst_1080 {dimension_numbers = #tpu.dot_dimension_numbers<[1], [0], [0], [1], [0, 0, 1, 1], [], []>} : vector<16x256xbf16>, vector<256x128xbf16>, vector<16x128xf32> -> vector<16x128xf32>
    %996 = arith.addf %985, %995 : vector<16x128xf32>
    %c1_1081 = arith.constant 1 : index
    %c1_1082 = arith.constant 1 : index
    %c2_1083 = arith.constant 2 : index
    %c0_1084 = arith.constant 0 : index
    %c0_1085 = arith.constant 0 : index
    %997 = vector.load %arg12[%c1_1081, %c1_1082, %c2_1083, %c0_1084, %c0_1085] : memref<2x2x3x24x128xf32, #tpu.memory_space<vmem>>, vector<1x1x1x16x128xf32>
    %998 = vector.shape_cast %997 : vector<1x1x1x16x128xf32> to vector<16x128xf32>
    %999 = arith.truncf %998 : vector<16x128xf32> to vector<16x128xbf16>
    %c1_1086 = arith.constant 1 : index
    %c1_1087 = arith.constant 1 : index
    %c2_1088 = arith.constant 2 : index
    %c8_1089 = arith.constant 8 : index
    %c0_1090 = arith.constant 0 : index
    %1000 = vector.load %arg12[%c1_1086, %c1_1087, %c2_1088, %c8_1089, %c0_1090] : memref<2x2x3x24x128xf32, #tpu.memory_space<vmem>>, vector<1x1x1x16x128xf32>
    %1001 = vector.shape_cast %1000 : vector<1x1x1x16x128xf32> to vector<16x128xf32>
    %1002 = arith.truncf %1001 : vector<16x128xf32> to vector<16x128xbf16>
    %1003 = tpu.concatenate %999, %1002 in 1 : vector<16x128xbf16>, vector<16x128xbf16> -> vector<16x256xbf16>
    %c3_1091 = arith.constant 3 : index
    %c1_1092 = arith.constant 1 : index
    %c0_1093 = arith.constant 0 : index
    %c0_1094 = arith.constant 0 : index
    %1004 = vector.load %arg7[%c3_1091, %c1_1092, %c0_1093, %c0_1094] : memref<4x2x256x128xbf16, #tpu.memory_space<vmem>>, vector<1x1x256x128xbf16>
    %1005 = vector.shape_cast %1004 : vector<1x1x256x128xbf16> to vector<256x128xbf16>
    %cst_1095 = arith.constant dense<0.000000e+00> : vector<16x128xf32>
    %1006 = tpu.matmul %1003, %1005, %cst_1095 {dimension_numbers = #tpu.dot_dimension_numbers<[1], [0], [0], [1], [0, 0, 1, 1], [], []>} : vector<16x256xbf16>, vector<256x128xbf16>, vector<16x128xf32> -> vector<16x128xf32>
    %1007 = arith.addf %996, %1006 : vector<16x128xf32>
    %cst_1096 = arith.constant dense<0.000000e+00> : vector<128xf32>
    %1008 = vector.multi_reduction <add>, %1007, %cst_1096 [0] : vector<16x128xf32> to vector<128xf32>
    %1009 = vector.shape_cast %1008 : vector<128xf32> to vector<1x128xf32>
    %1010 = arith.addf %913, %1009 : vector<1x128xf32>
    %1011 = arith.mulf %1007, %1007 : vector<16x128xf32>
    %cst_1097 = arith.constant dense<0.000000e+00> : vector<128xf32>
    %1012 = vector.multi_reduction <add>, %1011, %cst_1097 [0] : vector<16x128xf32> to vector<128xf32>
    %1013 = vector.shape_cast %1012 : vector<128xf32> to vector<1x128xf32>
    %1014 = arith.addf %917, %1013 : vector<1x128xf32>
    %c16_1098 = arith.constant 16 : index
    %c0_1099 = arith.constant 0 : index
    %1015 = vector.load %arg10[%c16_1098, %c0_1099] : memref<32x128xf32, #tpu.memory_space<vmem>>, vector<16x128xf32>
    tpu.vector_store %arg10[%c16_1098, %c0_1099], %1007 {strides = array<i32>} : memref<32x128xf32, #tpu.memory_space<vmem>>, vector<16x128xf32>,
    %cst_1100 = arith.constant 3.125000e-02 : f32
    %1016 = vector.broadcast %cst_1100 : f32 to vector<1x128xf32>
    %1017 = arith.mulf %1010, %1016 : vector<1x128xf32>
    %cst_1101 = arith.constant 3.125000e-02 : f32
    %1018 = vector.broadcast %cst_1101 : f32 to vector<1x128xf32>
    %1019 = arith.mulf %1014, %1018 : vector<1x128xf32>
    %1020 = arith.mulf %1017, %1017 : vector<1x128xf32>
    %1021 = arith.subf %1019, %1020 : vector<1x128xf32>
    %cst_1102 = arith.constant 0.000000e+00 : f32
    %1022 = vector.broadcast %cst_1102 : f32 to vector<1x128xf32>
    %1023 = arith.maximumf %1021, %1022 : vector<1x128xf32>
    %c0_1103 = arith.constant 0 : index
    %c0_1104 = arith.constant 0 : index
    %1024 = vector.load %arg8[%c0_1103, %c0_1104] : memref<1x128xf32, #tpu.memory_space<vmem>>, vector<1x128xf32>
    %cst_1105 = arith.constant 9.99999974E-6 : f32
    %1025 = vector.broadcast %cst_1105 : f32 to vector<1x128xf32>
    %1026 = arith.addf %1023, %1025 : vector<1x128xf32>
    %1027 = math.rsqrt %1026 : vector<1x128xf32>
    %1028 = arith.mulf %1024, %1027 : vector<1x128xf32>
    %c0_1106 = arith.constant 0 : index
    %c0_1107 = arith.constant 0 : index
    %1029 = vector.load %arg9[%c0_1106, %c0_1107] : memref<1x128xf32, #tpu.memory_space<vmem>>, vector<1x128xf32>
    %1030 = arith.mulf %1017, %1028 : vector<1x128xf32>
    %1031 = arith.subf %1029, %1030 : vector<1x128xf32>
    %c0_1108 = arith.constant 0 : index
    %c0_1109 = arith.constant 0 : index
    %1032 = vector.load %arg10[%c0_1108, %c0_1109] : memref<32x128xf32, #tpu.memory_space<vmem>>, vector<32x128xf32>
    %1033 = vector.broadcast %1028 : vector<1x128xf32> to vector<32x128xf32>
    %1034 = arith.mulf %1032, %1033 : vector<32x128xf32>
    %1035 = vector.broadcast %1031 : vector<1x128xf32> to vector<32x128xf32>
    %1036 = arith.addf %1034, %1035 : vector<32x128xf32>
    %c0_1110 = arith.constant 0 : index
    %c0_1111 = arith.constant 0 : index
    %1037 = vector.load %arg10[%c0_1110, %c0_1111] : memref<32x128xf32, #tpu.memory_space<vmem>>, vector<32x128xf32>
    tpu.vector_store %arg10[%c0_1110, %c0_1111], %1036 {strides = array<i32>} : memref<32x128xf32, #tpu.memory_space<vmem>>, vector<32x128xf32>,
    return
  }
}

</mosaic_0001>

<bundles_post_ra>
// kernel: drawer_image_encoder_forward.1
= control target key start
LH: loop header
LB: loop body
LE: loop exit
PB: predicated region body
PF: predicated region fallthrough
CT: control target
= control target key end

     0   :  { %s23317_s1 = inlined_call_operand.vmem [shape: bf16[384,128], index: 1, kind: input, shape index: {}]   ;;  %s23318_s0 = inlined_call_operand.vmem [shape: bf16[512,384], index: 0, kind: input, shape index: {}]   ;;  %s23319_s4 = inlined_call_operand.vmem [shape: bf16[4,2,256,128], index: 4, kind: input, shape index: {}]   ;;  %s23320_s2 = inlined_call_operand.vmem [shape: f32[1,128], index: 2, kind: input, shape index: {}]   ;;  %s23321_s3 = inlined_call_operand.vmem [shape: f32[1,128], index: 3, kind: input, shape index: {}]   ;;  %s23322_s7 = inlined_call_operand.vmem [shape: bf16[4,2,256,128], index: 7, kind: input, shape index: {}]   ;;  %s23323_s5 = inlined_call_operand.vmem [shape: f32[1,128], index: 5, kind: input, shape index: {}]   ;;  %s23324_s6 = inlined_call_operand.vmem [shape: f32[1,128], index: 6, kind: input, shape index: {}]   ;;  %s23325_s8 = inlined_call_operand.vmem [shape: f32[1,128], index: 8, kind: input, shape index: {}]   ;;  %s23326_s9 = inlined_call_operand.vmem [shape: f32[1,128], index: 9, kind: input, shape index: {}]   ;;  %s23327_s10 = inlined_call_operand.vmem [shape: f32[32,128], index: 10, kind: output, shape index: {}]  }
   0x1   :  { %v17470_v0 = vld [vmem:[%s23317_s1 + $0x40] sm:$0xff]   ;;  %v17473_v3 = vld [vmem:[%s23317_s1 + $0x48] sm:$0xff]   ;;  %v17476_v6 = vld [vmem:[%s23317_s1 + $0x50] sm:$0xff]  }
   0x2   :  { %v17471_v1 = vld [vmem:[%s23317_s1] sm:$0xff]   ;;  %15612 = vmatprep.subr.bf16.mxu0 %v17470_v0  ;;  %v17474_v4 = vld [vmem:[%s23317_s1 + $0x8] sm:$0xff]   ;;  %v17477_v7 = vld [vmem:[%s23317_s1 + $0x10] sm:$0xff]  }
   0x3   :  { %v17472_v2 = vld [vmem:[%s23317_s1 + $0x80] sm:$0xff]   ;;  %15613 = vmatpush3.bf16.msra.mxu0 %v17471_v1  ;;  %v17475_v5 = vld [vmem:[%s23317_s1 + $0x88] sm:$0xff]   ;;  %v17478_v8 = vld [vmem:[%s23317_s1 + $0x90] sm:$0xff]  }
   0x4   :  { %17276 = vmatprep.subr.bf16.mxu1 %v17472_v2  ;;  %15614 = vmatprep.subr.bf16.mxu0 %v17473_v3  ;;  %v17479_v9 = vld [vmem:[%s23317_s1 + $0x58] sm:$0xff]   ;;  %v17482_v12 = vld [vmem:[%s23317_s1 + $0x60] sm:$0xff]   ;;  %v17485_v15 = vld [vmem:[%s23317_s1 + $0x68] sm:$0xff]  }
   0x5   :  { %17277 = vmatpush3.bf16.msra.mxu1 %v17472_v2  ;;  %v17480_v10 = vld [vmem:[%s23317_s1 + $0x18] sm:$0xff]   ;;  %v17484_v13 = vld [vmem:[%s23317_s1 + $0xa0] sm:$0xff]   ;;  %v17487_v16 = vld [vmem:[%s23317_s1 + $0xa8] sm:$0xff]  }
   0x6   :  { %17278 = vmatprep.subr.bf16.mxu1 %v17475_v5  ;;  %v17481_v11 = vld [vmem:[%s23317_s1 + $0x98] sm:$0xff]   ;;  %v17483_v14 = vld [vmem:[%s23317_s1 + $0x20] sm:$0xff]   ;;  %v17486_v17 = vld [vmem:[%s23317_s1 + $0x28] sm:$0xff]  }
   0x7   :  { %15615 = vmatpush3.bf16.msra.mxu0 %v17474_v4  ;;  %v17488_v18 = vld [vmem:[%s23317_s1 + $0x70] sm:$0xff]   ;;  %v17491_v21 = vld [vmem:[%s23317_s1 + $0x78] sm:$0xff]   ;;  %v17494_v26 = vld [vmem:[%s23318_s0] ss:$12 sps:$4 sm:$0xff]  }
   0x8   :  { %15616 = vmatprep.subr.bf16.mxu0 %v17476_v6  ;;  %v17490_v19 = vld [vmem:[%s23317_s1 + $0xb0] sm:$0xff]   ;;  %v17492_v22 = vld [vmem:[%s23317_s1 + $0x38] sm:$0xff]   ;;  %v17497_v27 = vld [vmem:[%s23317_s1 + $0x40] sm:$0xff]  }
   0x9   :  { %17279 = vmatpush3.bf16.msra.mxu1 %v17475_v5  ;;  %v17489_v20 = vld [vmem:[%s23317_s1 + $0x30] sm:$0xff]   ;;  %v17493_v24 = vld [vmem:[%s23317_s1 + $0xb8] sm:$0xff]   ;;  %v17499_v28 = vld [vmem:[%s23317_s1] sm:$0xff]  }
   0xa   :  { %17280 = vmatprep.subr.bf16.mxu1 %v17478_v8  ;;  %v17496_v23 = vld [vmem:[%s23318_s0 + $0x4] ss:$12 sps:$4 sm:$0xff]   ;;  %v17498_v25 = vld [vmem:[%s23318_s0 + $0x8] ss:$12 sps:$4 sm:$0xff]   ;;  %v17500_v30 = vld [vmem:[%s23318_s0 + $0x20] ss:$12 sps:$4 sm:$0xff]  }
   0xb   :  { %15617 = vmatpush3.bf16.msra.mxu0 %v17477_v7  ;;  %414 = vmatprep.mubr.bf16.mxu0 %v17496_v23  ;;  %v17501_v29 = vld [vmem:[%s23317_s1 + $0x80] sm:$0xff]   ;;  %v17502_v31 = vld [vmem:[%s23317_s1 + $0x48] sm:$0xff]   ;;  %v17508_v35 = vld [vmem:[%s23317_s1 + $0x50] sm:$0xff]  }
   0xc   :  { %15618 = vmatprep.subr.bf16.mxu0 %v17479_v9  ;;  %17292 = vmatprep.mubr.bf16.mxu1 %v17498_v25  ;;  %v17504_v32 = vld [vmem:[%s23317_s1 + $0x88] sm:$0xff]   ;;  %v17507_v36 = vld [vmem:[%s23318_s0 + $0x18] ss:$12 sps:$4 sm:$0xff]   ;;  %v17510_v37 = vld [vmem:[%s23317_s1 + $0x90] sm:$0xff]  }
   0xd   :  { %17281 = vmatpush3.bf16.msra.mxu1 %v17478_v8  ;;  %v17505_v33 = vld [vmem:[%s23318_s0 + $0x1c] ss:$12 sps:$4 sm:$0xff]   ;;  %v17509_v38 = vld [vmem:[%s23317_s1 + $0x10] sm:$0xff]   ;;  %v17518_v43 = vld [vmem:[%s23318_s0 + $0x38] ss:$12 sps:$4 sm:$0xff]  }
   0xe   :  { %17282 = vmatprep.subr.bf16.mxu1 %v17481_v11  ;;  %v17503_v34 = vld [vmem:[%s23317_s1 + $0x8] sm:$0xff]   ;;  %v17511_v39 = vld [vmem:[%s23317_s1 + $0x58] sm:$0xff]   ;;  %v17514_v41 = vld [vmem:[%s23318_s0 + $0x34] ss:$12 sps:$4 sm:$0xff]  }
   0xf   :  { %15619 = vmatpush3.bf16.msra.mxu0 %v17480_v10  ;;  %v17512_v40 = vld [vmem:[%s23317_s1 + $0x18] sm:$0xff]   ;;  %v17517_v45 = vld [vmem:[%s23317_s1 + $0x60] sm:$0xff]   ;;  %v17522_v49 = vld [vmem:[%s23317_s1 + $0x68] sm:$0xff]  }
  0x10   :  { %15620 = vmatprep.subr.bf16.mxu0 %v17482_v12  ;;  %v17513_v42 = vld [vmem:[%s23317_s1 + $0x98] sm:$0xff]   ;;  %v17521_v47 = vld [vmem:[%s23317_s1 + $0xa0] sm:$0xff]   ;;  %v17524_v50 = vld [vmem:[%s23317_s1 + $0xa8] sm:$0xff]  }
  0x11   :  { %17283 = vmatpush3.bf16.msra.mxu1 %v17481_v11  ;;  %v17516_v44 = vld [vmem:[%s23318_s0 + $0x30] ss:$12 sps:$4 sm:$0xff]   ;;  %v17519_v48 = vld [vmem:[%s23317_s1 + $0x20] sm:$0xff]   ;;  %v17525_v51 = vld [vmem:[%s23318_s0 + $0x4c] ss:$12 sps:$4 sm:$0xff]  }
  0x12   :  { %17284 = vmatprep.subr.bf16.mxu1 %v17484_v13  ;;  %v17520_v46 = vld [vmem:[%s23318_s0 + $0x50] ss:$12 sps:$4 sm:$0xff]   ;;  %v17523_v52 = vld [vmem:[%s23317_s1 + $0x28] sm:$0xff]   ;;  %v17537_v61 = vld [vmem:[%s23317_s1 + $0x40] sm:$0xff]  }
  0x13   :  { %15621 = vmatpush3.bf16.msra.mxu0 %v17483_v14  ;;  %v17528_v53 = vld [vmem:[%s23317_s1 + $0x70] sm:$0xff]   ;;  %v17531_v57 = vld [vmem:[%s23317_s1 + $0x78] sm:$0xff]   ;;  %v17534_v62 = vld [vmem:[%s23318_s0 + $0x60] ss:$12 sps:$4 sm:$0xff]  }
  0x14   :  { %15622 = vmatprep.subr.bf16.mxu0 %v17485_v15  ;;  %v17527_v54 = vld [vmem:[%s23318_s0 + $0x48] ss:$12 sps:$4 sm:$0xff]   ;;  %v17532_v58 = vld [vmem:[%s23317_s1 + $0x38] sm:$0xff]   ;;  %v17536_v60 = vld [vmem:[%s23318_s0 + $0x64] ss:$12 sps:$4 sm:$0xff]  }
  0x15   :  { %17285 = vmatpush3.bf16.msra.mxu1 %v17484_v13  ;;  %v17530_v55 = vld [vmem:[%s23317_s1 + $0xb0] sm:$0xff]   ;;  %v17533_v59 = vld [vmem:[%s23317_s1 + $0xb8] sm:$0xff]   ;;  %v17539_v0 = vld [vmem:[%s23317_s1] sm:$0xff]  }
  0x16   :  { %17286 = vmatprep.subr.bf16.mxu1 %v17487_v16  ;;  %v17529_v56 = vld [vmem:[%s23317_s1 + $0x30] sm:$0xff]   ;;  %v17540_v1 = vld [vmem:[%s23318_s0 + $0x80] ss:$12 sps:$4 sm:$0xff]   ;;  %v17545_v6 = vld [vmem:[%s23318_s0 + $0x7c] ss:$12 sps:$4 sm:$0xff]  }
  0x17   :  { %15623 = vmatpush3.bf16.msra.mxu0 %v17486_v17  ;;  %v17538_v63 = vld [vmem:[%s23318_s0 + $0x68] ss:$12 sps:$4 sm:$0xff]   ;;  %v17541_v2 = vld [vmem:[%s23317_s1 + $0x80] sm:$0xff]   ;;  %v17551_v11 = vld [vmem:[%s23317_s1 + $0x58] sm:$0xff]  }
  0x18   :  { %15624 = vmatprep.subr.bf16.mxu0 %v17488_v18  ;;  %v17542_v3 = vld [vmem:[%s23317_s1 + $0x48] sm:$0xff]   ;;  %v17548_v7 = vld [vmem:[%s23317_s1 + $0x50] sm:$0xff]   ;;  %v17547_v8 = vld [vmem:[%s23318_s0 + $0x78] ss:$12 sps:$4 sm:$0xff]  }
  0x19   :  { %17287 = vmatpush3.bf16.msra.mxu1 %v17487_v16  ;;  %v17544_v4 = vld [vmem:[%s23317_s1 + $0x88] sm:$0xff]   ;;  %v17550_v9 = vld [vmem:[%s23317_s1 + $0x90] sm:$0xff]   ;;  %v17553_v12 = vld [vmem:[%s23317_s1 + $0x98] sm:$0xff]  }
  0x1a   :  { %17288 = vmatprep.subr.bf16.mxu1 %v17490_v19  ;;  %v17543_v5 = vld [vmem:[%s23317_s1 + $0x8] sm:$0xff]   ;;  %v17549_v10 = vld [vmem:[%s23317_s1 + $0x10] sm:$0xff]   ;;  %v17552_v14 = vld [vmem:[%s23317_s1 + $0x18] sm:$0xff]  }
  0x1b   :  { %15625 = vmatpush3.bf16.msra.mxu0 %v17489_v20  ;;  %v17554_v13 = vld [vmem:[%s23318_s0 + $0x94] ss:$12 sps:$4 sm:$0xff]   ;;  %v17556_v15 = vld [vmem:[%s23318_s0 + $0x90] ss:$12 sps:$4 sm:$0xff]   ;;  %v17558_v17 = vld [vmem:[%s23318_s0 + $0x98] ss:$12 sps:$4 sm:$0xff]  }
  0x1c   :  { %15626 = vmatprep.subr.bf16.mxu0 %v17491_v21  ;;  %v17557_v16 = vld [vmem:[%s23317_s1 + $0x60] sm:$0xff]   ;;  %v17562_v21 = vld [vmem:[%s23317_s1 + $0x68] sm:$0xff]  }
  0x1d   :  { %17289 = vmatpush3.bf16.msra.mxu1 %v17490_v19  ;;  %v17559_v18 = vld [vmem:[%s23317_s1 + $0x20] sm:$0xff]   ;;  %v17560_v19 = vld [vmem:[%s23318_s0 + $0xb0] ss:$12 sps:$4 sm:$0xff]   ;;  %v17564_v23 = vld [vmem:[%s23317_s1 + $0xa8] sm:$0xff]  }
  0x1e   :  { %17290 = vmatprep.subr.bf16.mxu1 %v17493_v24  ;;  %v17561_v20 = vld [vmem:[%s23317_s1 + $0xa0] sm:$0xff]   ;;  %v17567_v25 = vld [vmem:[%s23318_s0 + $0xa8] ss:$12 sps:$4 sm:$0xff]  }
  0x1f   :  { %15627 = vmatpush3.bf16.msra.mxu0 %v17492_v22  ;;  %v17563_v22 = vld [vmem:[%s23317_s1 + $0x28] sm:$0xff]  }
  0x20   :  { %15664 = vmatprep.subr.bf16.mxu0 %v17497_v27  ;;  %v17569_v27 = vld [vmem:[%s23317_s1 + $0x30] sm:$0xff]  }
  0x21   :  { %17291 = vmatpush3.bf16.msra.mxu1 %v17493_v24  ;;  %v17565_v24 = vld [vmem:[%s23318_s0 + $0xac] ss:$12 sps:$4 sm:$0xff]  }
  0x22   :  { %415 = vmatmul.mubr.bf16.vlgmr.msra.gmra.mrb[0].mxu0 %v17494_v26  ;;  %17300 = vmatprep.subr.bf16.mxu1 %v17501_v29  ;;  %v17568_v26 = vld [vmem:[%s23317_s1 + $0x70] sm:$0xff]  }
  0x23   :  { %15665 = vmatpush3.bf16.msra.mxu0 %v17499_v28  ;;  %422 = vmatprep.mubr.bf16.mxu0 %v17505_v33  ;;  %v17570_v28 = vld [vmem:[%s23317_s1 + $0xb0] sm:$0xff]   ;;  %v17574_v33 = vld [vmem:[%s23318_s0 + $0xc0] ss:$12 sps:$4 sm:$0xff]  }
  0x24   :  { %17293 = vmatmul.mubr.bf16.vlgmr.msra.gmra.mrb[0].mxu1 %v17500_v30  ;;  %15666 = vmatprep.subr.bf16.mxu0 %v17502_v31  ;;  %v17573_v30 = vld [vmem:[%s23317_s1 + $0xb8] sm:$0xff]  }
  0x25   :  { %17301 = vmatpush3.bf16.msra.mxu1 %v17501_v29  ;;  %17296 = vmatprep.mubr.bf16.mxu1 %v17518_v43  ;;  %v17571_v29 = vld [vmem:[%s23317_s1 + $0x78] sm:$0xff]  }
  0x26   :  { %17302 = vmatprep.subr.bf16.mxu1 %v17504_v32  ;;  %v17572_v31 = vld [vmem:[%s23317_s1 + $0x38] sm:$0xff]  }
  0x27   :  { %15667 = vmatpush3.bf16.msra.mxu0 %v17503_v34  ;;  %v17577_v34 = vld [vmem:[%s23317_s1 + $0x40] sm:$0xff]  }
  0x28   :  { %15668 = vmatprep.subr.bf16.mxu0 %v17508_v35  ;;  %v17578_v35 = vld [vmem:[%s23318_s0 + $0xc8] ss:$12 sps:$4 sm:$0xff]   ;;  %v17587_v43 = vld [vmem:[%s23318_s0 + $0xd8] ss:$12 sps:$4 sm:$0xff]  }
  0x29   :  { %17303 = vmatpush3.bf16.msra.mxu1 %v17504_v32  ;;  %v17576_v32 = vld [vmem:[%s23318_s0 + $0xc4] ss:$12 sps:$4 sm:$0xff]  }
  0x2a   :  { %423 = vmatmul.mubr.bf16.gmra.mrb[4].mxu0 %v17507_v36  ;;  %17304 = vmatprep.subr.bf16.mxu1 %v17510_v37  ;;  %v17579_v36 = vld [vmem:[%s23317_s1] sm:$0xff]  }
  0x2b   :  { %15669 = vmatpush3.bf16.msra.mxu0 %v17509_v38  ;;  %430 = vmatprep.mubr.bf16.mxu0 %v17514_v41  ;;  %v17581_v38 = vld [vmem:[%s23317_s1 + $0x80] sm:$0xff]   ;;  %v17584_v41 = vld [vmem:[%s23317_s1 + $0x88] sm:$0xff]  }
  0x2c   :  { %15670 = vmatprep.subr.bf16.mxu0 %v17511_v39  ;;  %17297 = vmatmul.mubr.bf16.gmra.mrb[4].mxu1 %v17520_v46  ;;  %v17582_v39 = vld [vmem:[%s23317_s1 + $0x48] sm:$0xff]   ;;  %v17590_v46 = vld [vmem:[%s23317_s1 + $0x90] sm:$0xff]  }
  0x2d   :  { %17305 = vmatpush3.bf16.msra.mxu1 %v17510_v37  ;;  %17316 = vmatprep.mubr.bf16.mxu1 %v17538_v63  ;;  %v17580_v37 = vld [vmem:[%s23318_s0 + $0xe0] ss:$12 sps:$4 sm:$0xff]   ;;  %v17609_v63 = vld [vmem:[%s23317_s1 + $0x30] sm:$0xff]  }
  0x2e   :  { %17306 = vmatprep.subr.bf16.mxu1 %v17513_v42 }
  0x2f   :  { %15671 = vmatpush3.bf16.msra.mxu0 %v17512_v40  ;;  %v17583_v40 = vld [vmem:[%s23317_s1 + $0x8] sm:$0xff]  }
  0x30   :  { %15672 = vmatprep.subr.bf16.mxu0 %v17517_v45  ;;  %v17589_v45 = vld [vmem:[%s23317_s1 + $0x10] sm:$0xff]  }
  0x31   :  { %17307 = vmatpush3.bf16.msra.mxu1 %v17513_v42  ;;  %v17585_v42 = vld [vmem:[%s23318_s0 + $0xdc] ss:$12 sps:$4 sm:$0xff]  }
  0x32   :  { %431 = vmatmul.mubr.bf16.gmra.mrb[8].mxu0 %v17516_v44  ;;  %17308 = vmatprep.subr.bf16.mxu1 %v17521_v47  ;;  %v17588_v44 = vld [vmem:[%s23317_s1 + $0x50] sm:$0xff]  }
  0x33   :  { %15673 = vmatpush3.bf16.msra.mxu0 %v17519_v48  ;;  %438 = vmatprep.mubr.bf16.mxu0 %v17525_v51  ;;  %v17592_v48 = vld [vmem:[%s23317_s1 + $0x18] sm:$0xff]  }
  0x34   :  { %15674 = vmatprep.subr.bf16.mxu0 %v17522_v49  ;;  %v17593_v49 = vld [vmem:[%s23317_s1 + $0x98] sm:$0xff]  }
  0x35   :  { %17309 = vmatpush3.bf16.msra.mxu1 %v17521_v47  ;;  %v17591_v47 = vld [vmem:[%s23317_s1 + $0x58] sm:$0xff]  }
  0x36   :  { %17310 = vmatprep.subr.bf16.mxu1 %v17524_v50  ;;  %v17596_v51 = vld [vmem:[%s23318_s0 + $0xf0] ss:$12 sps:$4 sm:$0xff]  }
  0x37   :  { %15675 = vmatpush3.bf16.msra.mxu0 %v17523_v52  ;;  %v17597_v52 = vld [vmem:[%s23317_s1 + $0x60] sm:$0xff]  }
  0x38   :  { %15676 = vmatprep.subr.bf16.mxu0 %v17528_v53  ;;  %v17598_v53 = vld [vmem:[%s23318_s0 + $0xf8] ss:$12 sps:$4 sm:$0xff]  }
  0x39   :  { %17311 = vmatpush3.bf16.msra.mxu1 %v17524_v50  ;;  %v17594_v50 = vld [vmem:[%s23318_s0 + $0xf4] ss:$12 sps:$4 sm:$0xff]  }
  0x3a   :  { %439 = vmatmul.mubr.bf16.gmra.mrb[12].mxu0 %v17527_v54  ;;  %17312 = vmatprep.subr.bf16.mxu1 %v17530_v55  ;;  %v17599_v54 = vld [vmem:[%s23317_s1 + $0x20] sm:$0xff]  }
  0x3b   :  { %15677 = vmatpush3.bf16.msra.mxu0 %v17529_v56  ;;  %868 = vmatprep.mubr.bf16.mxu0 %v17536_v60  ;;  %v17601_v56 = vld [vmem:[%s23317_s1 + $0xa0] sm:$0xff]   ;;  %v17605_v60 = vld [vmem:[%s23318_s0 + $0x10c] ss:$12 sps:$4 sm:$0xff]  }
  0x3c   :  { %15678 = vmatprep.subr.bf16.mxu0 %v17531_v57  ;;  %v17602_v57 = vld [vmem:[%s23317_s1 + $0x68] sm:$0xff]  }
  0x3d   :  { %17313 = vmatpush3.bf16.msra.mxu1 %v17530_v55  ;;  %v17600_v55 = vld [vmem:[%s23318_s0 + $0x110] ss:$12 sps:$4 sm:$0xff]  }
  0x3e   :  { %17314 = vmatprep.subr.bf16.mxu1 %v17533_v59 }
  0x3f   :  { %15679 = vmatpush3.bf16.msra.mxu0 %v17532_v58  ;;  %v17603_v58 = vld [vmem:[%s23317_s1 + $0x28] sm:$0xff]  }
  0x40   :  { %15716 = vmatprep.subr.bf16.mxu0 %v17537_v61  ;;  %v17607_v61 = vld [vmem:[%s23318_s0 + $0x108] ss:$12 sps:$4 sm:$0xff]  }
  0x41   :  { %17315 = vmatpush3.bf16.msra.mxu1 %v17533_v59  ;;  %v17604_v59 = vld [vmem:[%s23317_s1 + $0xa8] sm:$0xff]  }
  0x42   :  { %869 = vmatmul.mubr.bf16.vlgmr.msra.gmra.mrb[16].mxu0 %v17534_v62  ;;  %17324 = vmatprep.subr.bf16.mxu1 %v17541_v2  ;;  %v17608_v62 = vld [vmem:[%s23317_s1 + $0x70] sm:$0xff]  }
  0x43   :  { %15717 = vmatpush3.bf16.msra.mxu0 %v17539_v0  ;;  %876 = vmatprep.mubr.bf16.mxu0 %v17545_v6  ;;  %v17610_v0 = vld [vmem:[%s23317_s1 + $0xb0] sm:$0xff]   ;;  %v17617_v6 = vld [vmem:[%s23317_s1 + $0x40] sm:$0xff]  }
  0x44   :  { %17317 = vmatmul.mubr.bf16.vlgmr.msra.gmra.mrb[8].mxu1 %v17540_v1  ;;  %15718 = vmatprep.subr.bf16.mxu0 %v17542_v3  ;;  %v17611_v1 = vld [vmem:[%s23317_s1 + $0x78] sm:$0xff]  }
  0x45   :  { %17325 = vmatpush3.bf16.msra.mxu1 %v17541_v2  ;;  %17320 = vmatprep.mubr.bf16.mxu1 %v17558_v17  ;;  %v17612_v2 = vld [vmem:[%s23317_s1 + $0x38] sm:$0xff]   ;;  %v17629_v17 = vld [vmem:[%s23317_s1 + $0x10] sm:$0xff]  }
  0x46   :  { %17326 = vmatprep.subr.bf16.mxu1 %v17544_v4  ;;  %v17613_v3 = vld [vmem:[%s23317_s1 + $0xb8] sm:$0xff]  }
  0x47   :  { %15719 = vmatpush3.bf16.msra.mxu0 %v17543_v5  ;;  %v17616_v5 = vld [vmem:[%s23318_s0 + $0x124] ss:$12 sps:$4 sm:$0xff]  }
  0x48   :  { %15720 = vmatprep.subr.bf16.mxu0 %v17548_v7  ;;  %v17618_v7 = vld [vmem:[%s23318_s0 + $0x128] ss:$12 sps:$4 sm:$0xff]  }
  0x49   :  { %17327 = vmatpush3.bf16.msra.mxu1 %v17544_v4  ;;  %v17614_v4 = vld [vmem:[%s23318_s0 + $0x120] ss:$12 sps:$4 sm:$0xff]  }
  0x4a   :  { %877 = vmatmul.mubr.bf16.gmra.mrb[20].mxu0 %v17547_v8  ;;  %17328 = vmatprep.subr.bf16.mxu1 %v17550_v9  ;;  %v17619_v8 = vld [vmem:[%s23317_s1] sm:$0xff]  }
  0x4b   :  { %15721 = vmatpush3.bf16.msra.mxu0 %v17549_v10  ;;  %884 = vmatprep.mubr.bf16.mxu0 %v17554_v13  ;;  %v17621_v10 = vld [vmem:[%s23317_s1 + $0x80] sm:$0xff]   ;;  %v17624_v13 = vld [vmem:[%s23317_s1 + $0x88] sm:$0xff]  }
  0x4c   :  { %15722 = vmatprep.subr.bf16.mxu0 %v17551_v11  ;;  %17321 = vmatmul.mubr.bf16.gmra.mrb[12].mxu1 %v17560_v19  ;;  %v17622_v11 = vld [vmem:[%s23317_s1 + $0x48] sm:$0xff]   ;;  %v17631_v19 = vld [vmem:[%s23317_s1 + $0x58] sm:$0xff]  }
  0x4d   :  { %17329 = vmatpush3.bf16.msra.mxu1 %v17550_v9  ;;  %17340 = vmatprep.mubr.bf16.mxu1 %v17578_v35  ;;  %v17620_v9 = vld [vmem:[%s23318_s0 + $0x140] ss:$12 sps:$4 sm:$0xff]   ;;  %v17649_v35 = vld [vmem:[%s23317_s1 + $0x30] sm:$0xff]  }
  0x4e   :  { %17330 = vmatprep.subr.bf16.mxu1 %v17553_v12 }
  0x4f   :  { %15723 = vmatpush3.bf16.msra.mxu0 %v17552_v14  ;;  %v17625_v14 = vld [vmem:[%s23318_s0 + $0x13c] ss:$12 sps:$4 sm:$0xff]  }
  0x50   :  { %15724 = vmatprep.subr.bf16.mxu0 %v17557_v16  ;;  %v17628_v16 = vld [vmem:[%s23317_s1 + $0x50] sm:$0xff]  }
  0x51   :  { %17331 = vmatpush3.bf16.msra.mxu1 %v17553_v12  ;;  %v17623_v12 = vld [vmem:[%s23317_s1 + $0x8] sm:$0xff]  }
  0x52   :  { %885 = vmatmul.mubr.bf16.gmra.mrb[24].mxu0 %v17556_v15  ;;  %17332 = vmatprep.subr.bf16.mxu1 %v17561_v20  ;;  %v17627_v15 = vld [vmem:[%s23318_s0 + $0x138] ss:$12 sps:$4 sm:$0xff]  }
  0x53   :  { %15725 = vmatpush3.bf16.msra.mxu0 %v17559_v18  ;;  %892 = vmatprep.mubr.bf16.mxu0 %v17565_v24  ;;  %v17630_v18 = vld [vmem:[%s23317_s1 + $0x90] sm:$0xff]   ;;  %v17637_v24 = vld [vmem:[%s23317_s1 + $0x60] sm:$0xff]  }
  0x54   :  { %15726 = vmatprep.subr.bf16.mxu0 %v17562_v21  ;;  %v17633_v21 = vld [vmem:[%s23317_s1 + $0x98] sm:$0xff]  }
  0x55   :  { %17333 = vmatpush3.bf16.msra.mxu1 %v17561_v20  ;;  %v17632_v20 = vld [vmem:[%s23317_s1 + $0x18] sm:$0xff]  }
  0x56   :  { %17334 = vmatprep.subr.bf16.mxu1 %v17564_v23 }
  0x57   :  { %15727 = vmatpush3.bf16.msra.mxu0 %v17563_v22  ;;  %v17634_v22 = vld [vmem:[%s23318_s0 + $0x154] ss:$12 sps:$4 sm:$0xff]  }
  0x58   :  { %15728 = vmatprep.subr.bf16.mxu0 %v17568_v26  ;;  %v17639_v26 = vld [vmem:[%s23317_s1 + $0x20] sm:$0xff]  }
  0x59   :  { %17335 = vmatpush3.bf16.msra.mxu1 %v17564_v23  ;;  %v17636_v23 = vld [vmem:[%s23318_s0 + $0x150] ss:$12 sps:$4 sm:$0xff]  }
  0x5a   :  { %893 = vmatmul.mubr.bf16.gmra.mrb[28].mxu0 %v17567_v25  ;;  %17336 = vmatprep.subr.bf16.mxu1 %v17570_v28  ;;  %v17638_v25 = vld [vmem:[%s23318_s0 + $0x158] ss:$12 sps:$4 sm:$0xff]  }
  0x5b   :  { %15729 = vmatpush3.bf16.msra.mxu0 %v17569_v27  ;;  %1324 = vmatprep.mubr.bf16.mxu0 %v17576_v32  ;;  %v17640_v27 = vld [vmem:[%s23318_s0 + $0x170] ss:$12 sps:$4 sm:$0xff]   ;;  %v17645_v32 = vld [vmem:[%s23318_s0 + $0x16c] ss:$12 sps:$4 sm:$0xff]  }
  0x5c   :  { %15730 = vmatprep.subr.bf16.mxu0 %v17571_v29  ;;  %v17642_v29 = vld [vmem:[%s23317_s1 + $0x68] sm:$0xff]  }
  0x5d   :  { %17337 = vmatpush3.bf16.msra.mxu1 %v17570_v28  ;;  %v17641_v28 = vld [vmem:[%s23317_s1 + $0xa0] sm:$0xff]  }
  0x5e   :  { %17338 = vmatprep.subr.bf16.mxu1 %v17573_v30 }
  0x5f   :  { %15731 = vmatpush3.bf16.msra.mxu0 %v17572_v31  ;;  %v17644_v31 = vld [vmem:[%s23317_s1 + $0xa8] sm:$0xff]  }
  0x60   :  { %15768 = vmatprep.subr.bf16.mxu0 %v17577_v34  ;;  %v17648_v34 = vld [vmem:[%s23317_s1 + $0x70] sm:$0xff]  }
  0x61   :  { %17339 = vmatpush3.bf16.msra.mxu1 %v17573_v30  ;;  %v17643_v30 = vld [vmem:[%s23317_s1 + $0x28] sm:$0xff]  }
  0x62   :  { %1325 = vmatmul.mubr.bf16.vlgmr.msra.gmra.mrb[32].mxu0 %v17574_v33  ;;  %17348 = vmatprep.subr.bf16.mxu1 %v17581_v38  ;;  %v17647_v33 = vld [vmem:[%s23318_s0 + $0x168] ss:$12 sps:$4 sm:$0xff]  }
  0x63   :  { %15769 = vmatpush3.bf16.msra.mxu0 %v17579_v36  ;;  %1332 = vmatprep.mubr.bf16.mxu0 %v17585_v42  ;;  %v17650_v36 = vld [vmem:[%s23317_s1 + $0xb0] sm:$0xff]   ;;  %v17657_v42 = vld [vmem:[%s23317_s1 + $0x40] sm:$0xff]  }
  0x64   :  { %17341 = vmatmul.mubr.bf16.vlgmr.msra.gmra.mrb[16].mxu1 %v17580_v37  ;;  %15770 = vmatprep.subr.bf16.mxu0 %v17582_v39  ;;  %v17651_v37 = vld [vmem:[%s23317_s1 + $0x78] sm:$0xff]  }
  0x65   :  { %17349 = vmatpush3.bf16.msra.mxu1 %v17581_v38  ;;  %17344 = vmatprep.mubr.bf16.mxu1 %v17598_v53  ;;  %v17652_v38 = vld [vmem:[%s23317_s1 + $0x38] sm:$0xff]   ;;  %v17669_v53 = vld [vmem:[%s23317_s1 + $0x10] sm:$0xff]  }
  0x66   :  { %17350 = vmatprep.subr.bf16.mxu1 %v17584_v41  ;;  %v17653_v39 = vld [vmem:[%s23317_s1 + $0xb8] sm:$0xff]  }
  0x67   :  { %15771 = vmatpush3.bf16.msra.mxu0 %v17583_v40  ;;  %v17654_v40 = vld [vmem:[%s23318_s0 + $0x180] ss:$12 sps:$4 sm:$0xff]  }
  0x68   :  { %15772 = vmatprep.subr.bf16.mxu0 %v17588_v44  ;;  %v17659_v44 = vld [vmem:[%s23317_s1] sm:$0xff]  }
  0x69   :  { %17351 = vmatpush3.bf16.msra.mxu1 %v17584_v41  ;;  %v17656_v41 = vld [vmem:[%s23318_s0 + $0x184] ss:$12 sps:$4 sm:$0xff]  }
  0x6a   :  { %1333 = vmatmul.mubr.bf16.gmra.mrb[36].mxu0 %v17587_v43  ;;  %17352 = vmatprep.subr.bf16.mxu1 %v17590_v46  ;;  %v17658_v43 = vld [vmem:[%s23318_s0 + $0x188] ss:$12 sps:$4 sm:$0xff]  }
  0x6b   :  { %15773 = vmatpush3.bf16.msra.mxu0 %v17589_v45  ;;  %1340 = vmatprep.mubr.bf16.mxu0 %v17594_v50  ;;  %v17660_v45 = vld [vmem:[%s23318_s0 + $0x1a0] ss:$12 sps:$4 sm:$0xff]   ;;  %v17665_v50 = vld [vmem:[%s23318_s0 + $0x19c] ss:$12 sps:$4 sm:$0xff]  }
  0x6c   :  { %15774 = vmatprep.subr.bf16.mxu0 %v17591_v47  ;;  %17345 = vmatmul.mubr.bf16.gmra.mrb[20].mxu1 %v17600_v55  ;;  %v17662_v47 = vld [vmem:[%s23317_s1 + $0x48] sm:$0xff]   ;;  %v17671_v55 = vld [vmem:[%s23317_s1 + $0x58] sm:$0xff]  }
  0x6d   :  { %17353 = vmatpush3.bf16.msra.mxu1 %v17590_v46  ;;  %17364 = vmatprep.mubr.bf16.mxu1 %v17618_v7  ;;  %v17661_v46 = vld [vmem:[%s23317_s1 + $0x80] sm:$0xff]   ;;  %v17689_v7 = vld [vmem:[%s23317_s1 + $0x30] sm:$0xff]  }
  0x6e   :  { %17354 = vmatprep.subr.bf16.mxu1 %v17593_v49 }
  0x6f   :  { %15775 = vmatpush3.bf16.msra.mxu0 %v17592_v48  ;;  %v17663_v48 = vld [vmem:[%s23317_s1 + $0x8] sm:$0xff]  }
  0x70   :  { %15776 = vmatprep.subr.bf16.mxu0 %v17597_v52  ;;  %v17668_v52 = vld [vmem:[%s23317_s1 + $0x50] sm:$0xff]  }
  0x71   :  { %17355 = vmatpush3.bf16.msra.mxu1 %v17593_v49  ;;  %v17664_v49 = vld [vmem:[%s23317_s1 + $0x88] sm:$0xff]  }
  0x72   :  { %1341 = vmatmul.mubr.bf16.gmra.mrb[40].mxu0 %v17596_v51  ;;  %17356 = vmatprep.subr.bf16.mxu1 %v17601_v56  ;;  %v17667_v51 = vld [vmem:[%s23318_s0 + $0x198] ss:$12 sps:$4 sm:$0xff]  }
  0x73   :  { %15777 = vmatpush3.bf16.msra.mxu0 %v17599_v54  ;;  %1348 = vmatprep.mubr.bf16.mxu0 %v17605_v60  ;;  %v17670_v54 = vld [vmem:[%s23317_s1 + $0x90] sm:$0xff]   ;;  %v17677_v60 = vld [vmem:[%s23317_s1 + $0x60] sm:$0xff]  }
  0x74   :  { %15778 = vmatprep.subr.bf16.mxu0 %v17602_v57  ;;  %v17673_v57 = vld [vmem:[%s23317_s1 + $0x98] sm:$0xff]  }
  0x75   :  { %17357 = vmatpush3.bf16.msra.mxu1 %v17601_v56  ;;  %v17672_v56 = vld [vmem:[%s23317_s1 + $0x18] sm:$0xff]  }
  0x76   :  { %17358 = vmatprep.subr.bf16.mxu1 %v17604_v59 }
  0x77   :  { %15779 = vmatpush3.bf16.msra.mxu0 %v17603_v58  ;;  %v17674_v58 = vld [vmem:[%s23318_s0 + $0x1b4] ss:$12 sps:$4 sm:$0xff]  }
  0x78   :  { %15780 = vmatprep.subr.bf16.mxu0 %v17608_v62  ;;  %v17679_v62 = vld [vmem:[%s23317_s1 + $0x20] sm:$0xff]  }
  0x79   :  { %17359 = vmatpush3.bf16.msra.mxu1 %v17604_v59  ;;  %v17676_v59 = vld [vmem:[%s23318_s0 + $0x1b0] ss:$12 sps:$4 sm:$0xff]  }
  0x7a   :  { %1349 = vmatmul.mubr.bf16.gmra.mrb[44].mxu0 %v17607_v61  ;;  %17360 = vmatprep.subr.bf16.mxu1 %v17610_v0  ;;  %v17678_v61 = vld [vmem:[%s23318_s0 + $0x1b8] ss:$12 sps:$4 sm:$0xff]  }
  0x7b   :  { %15781 = vmatpush3.bf16.msra.mxu0 %v17609_v63  ;;  %1780 = vmatprep.mubr.bf16.mxu0 %v17616_v5  ;;  %v17680_v63 = vld [vmem:[%s23318_s0 + $0x1d0] ss:$12 sps:$4 sm:$0xff]   ;;  %v17687_v5 = vld [vmem:[%s23318_s0 + $0x1c8] ss:$12 sps:$4 sm:$0xff]  }
  0x7c   :  { %15782 = vmatprep.subr.bf16.mxu0 %v17611_v1  ;;  %v17682_v1 = vld [vmem:[%s23317_s1 + $0x68] sm:$0xff]  }
  0x7d   :  { %17361 = vmatpush3.bf16.msra.mxu1 %v17610_v0  ;;  %v17681_v0 = vld [vmem:[%s23317_s1 + $0xa0] sm:$0xff]  }
  0x7e   :  { %17362 = vmatprep.subr.bf16.mxu1 %v17613_v3 }
  0x7f   :  { %15783 = vmatpush3.bf16.msra.mxu0 %v17612_v2  ;;  %v17683_v2 = vld [vmem:[%s23317_s1 + $0x28] sm:$0xff]  }
  0x80   :  { %15820 = vmatprep.subr.bf16.mxu0 %v17617_v6  ;;  %v17688_v6 = vld [vmem:[%s23317_s1 + $0x70] sm:$0xff]  }
  0x81   :  { %17363 = vmatpush3.bf16.msra.mxu1 %v17613_v3  ;;  %v17684_v3 = vld [vmem:[%s23317_s1 + $0xa8] sm:$0xff]  }
  0x82   :  { %1781 = vmatmul.mubr.bf16.vlgmr.msra.gmra.mrb[48].mxu0 %v17614_v4  ;;  %17372 = vmatprep.subr.bf16.mxu1 %v17621_v10  ;;  %v17685_v4 = vld [vmem:[%s23318_s0 + $0x1cc] ss:$12 sps:$4 sm:$0xff]  }
  0x83   :  { %15821 = vmatpush3.bf16.msra.mxu0 %v17619_v8  ;;  %1788 = vmatprep.mubr.bf16.mxu0 %v17625_v14  ;;  %v17690_v8 = vld [vmem:[%s23317_s1 + $0xb0] sm:$0xff]   ;;  %v17697_v14 = vld [vmem:[%s23317_s1 + $0x40] sm:$0xff]  }
  0x84   :  { %17365 = vmatmul.mubr.bf16.vlgmr.msra.gmra.mrb[24].mxu1 %v17620_v9  ;;  %15822 = vmatprep.subr.bf16.mxu0 %v17622_v11  ;;  %v17691_v9 = vld [vmem:[%s23317_s1 + $0x78] sm:$0xff]  }
  0x85   :  { %17373 = vmatpush3.bf16.msra.mxu1 %v17621_v10  ;;  %17368 = vmatprep.mubr.bf16.mxu1 %v17638_v25  ;;  %v17692_v10 = vld [vmem:[%s23317_s1 + $0x38] sm:$0xff]   ;;  %v17709_v25 = vld [vmem:[%s23317_s1 + $0x10] sm:$0xff]  }
  0x86   :  { %17374 = vmatprep.subr.bf16.mxu1 %v17624_v13  ;;  %v17693_v11 = vld [vmem:[%s23317_s1 + $0xb8] sm:$0xff]  }
  0x87   :  { %15823 = vmatpush3.bf16.msra.mxu0 %v17623_v12  ;;  %v17694_v12 = vld [vmem:[%s23318_s0 + $0x1e0] ss:$12 sps:$4 sm:$0xff]  }
  0x88   :  { %15824 = vmatprep.subr.bf16.mxu0 %v17628_v16  ;;  %v17699_v16 = vld [vmem:[%s23317_s1] sm:$0xff]  }
  0x89   :  { %17375 = vmatpush3.bf16.msra.mxu1 %v17624_v13  ;;  %v17696_v13 = vld [vmem:[%s23318_s0 + $0x1e4] ss:$12 sps:$4 sm:$0xff]  }
  0x8a   :  { %1789 = vmatmul.mubr.bf16.gmra.mrb[52].mxu0 %v17627_v15  ;;  %17376 = vmatprep.subr.bf16.mxu1 %v17630_v18  ;;  %v17698_v15 = vld [vmem:[%s23318_s0 + $0x1e8] ss:$12 sps:$4 sm:$0xff]  }
  0x8b   :  { %15825 = vmatpush3.bf16.msra.mxu0 %v17629_v17  ;;  %1796 = vmatprep.mubr.bf16.mxu0 %v17634_v22  ;;  %v17700_v17 = vld [vmem:[%s23318_s0 + $0x200] ss:$12 sps:$4 sm:$0xff]   ;;  %v17705_v22 = vld [vmem:[%s23318_s0 + $0x1fc] ss:$12 sps:$4 sm:$0xff]  }
  0x8c   :  { %15826 = vmatprep.subr.bf16.mxu0 %v17631_v19  ;;  %17369 = vmatmul.mubr.bf16.gmra.mrb[28].mxu1 %v17640_v27  ;;  %v17702_v19 = vld [vmem:[%s23317_s1 + $0x48] sm:$0xff]   ;;  %v17711_v27 = vld [vmem:[%s23317_s1 + $0x58] sm:$0xff]  }
  0x8d   :  { %17377 = vmatpush3.bf16.msra.mxu1 %v17630_v18  ;;  %17388 = vmatprep.mubr.bf16.mxu1 %v17658_v43  ;;  %v17701_v18 = vld [vmem:[%s23317_s1 + $0x80] sm:$0xff]   ;;  %v17729_v43 = vld [vmem:[%s23317_s1 + $0x30] sm:$0xff]  }
  0x8e   :  { %17378 = vmatprep.subr.bf16.mxu1 %v17633_v21 }
  0x8f   :  { %15827 = vmatpush3.bf16.msra.mxu0 %v17632_v20  ;;  %v17703_v20 = vld [vmem:[%s23317_s1 + $0x8] sm:$0xff]  }
  0x90   :  { %15828 = vmatprep.subr.bf16.mxu0 %v17637_v24  ;;  %v17708_v24 = vld [vmem:[%s23317_s1 + $0x50] sm:$0xff]  }
  0x91   :  { %17379 = vmatpush3.bf16.msra.mxu1 %v17633_v21  ;;  %v17704_v21 = vld [vmem:[%s23317_s1 + $0x88] sm:$0xff]  }
  0x92   :  { %1797 = vmatmul.mubr.bf16.gmra.mrb[56].mxu0 %v17636_v23  ;;  %17380 = vmatprep.subr.bf16.mxu1 %v17641_v28  ;;  %v17707_v23 = vld [vmem:[%s23318_s0 + $0x1f8] ss:$12 sps:$4 sm:$0xff]  }
  0x93   :  { %15829 = vmatpush3.bf16.msra.mxu0 %v17639_v26  ;;  %1804 = vmatprep.mubr.bf16.mxu0 %v17645_v32  ;;  %v17710_v26 = vld [vmem:[%s23317_s1 + $0x90] sm:$0xff]   ;;  %v17717_v32 = vld [vmem:[%s23317_s1 + $0x60] sm:$0xff]  }
  0x94   :  { %15830 = vmatprep.subr.bf16.mxu0 %v17642_v29  ;;  %v17713_v29 = vld [vmem:[%s23317_s1 + $0x98] sm:$0xff]  }
  0x95   :  { %17381 = vmatpush3.bf16.msra.mxu1 %v17641_v28  ;;  %v17712_v28 = vld [vmem:[%s23317_s1 + $0x18] sm:$0xff]  }
  0x96   :  { %17382 = vmatprep.subr.bf16.mxu1 %v17644_v31 }
  0x97   :  { %15831 = vmatpush3.bf16.msra.mxu0 %v17643_v30  ;;  %v17714_v30 = vld [vmem:[%s23318_s0 + $0x214] ss:$12 sps:$4 sm:$0xff]  }
  0x98   :  { %15832 = vmatprep.subr.bf16.mxu0 %v17648_v34  ;;  %v17719_v34 = vld [vmem:[%s23317_s1 + $0x20] sm:$0xff]  }
  0x99   :  { %17383 = vmatpush3.bf16.msra.mxu1 %v17644_v31  ;;  %v17716_v31 = vld [vmem:[%s23318_s0 + $0x210] ss:$12 sps:$4 sm:$0xff]  }
  0x9a   :  { %1805 = vmatmul.mubr.bf16.gmra.mrb[60].mxu0 %v17647_v33  ;;  %17384 = vmatprep.subr.bf16.mxu1 %v17650_v36  ;;  %v17718_v33 = vld [vmem:[%s23318_s0 + $0x218] ss:$12 sps:$4 sm:$0xff]  }
  0x9b   :  { %15833 = vmatpush3.bf16.msra.mxu0 %v17649_v35  ;;  %2236 = vmatprep.mubr.bf16.mxu0 %v17656_v41  ;;  %v17720_v35 = vld [vmem:[%s23318_s0 + $0x230] ss:$12 sps:$4 sm:$0xff]   ;;  %v17727_v41 = vld [vmem:[%s23318_s0 + $0x228] ss:$12 sps:$4 sm:$0xff]  }
  0x9c   :  { %15834 = vmatprep.subr.bf16.mxu0 %v17651_v37  ;;  %v17722_v37 = vld [vmem:[%s23317_s1 + $0x68] sm:$0xff]  }
  0x9d   :  { %17385 = vmatpush3.bf16.msra.mxu1 %v17650_v36  ;;  %v17721_v36 = vld [vmem:[%s23317_s1 + $0xa0] sm:$0xff]  }
  0x9e   :  { %17386 = vmatprep.subr.bf16.mxu1 %v17653_v39 }
  0x9f   :  { %15835 = vmatpush3.bf16.msra.mxu0 %v17652_v38  ;;  %v17723_v38 = vld [vmem:[%s23317_s1 + $0x28] sm:$0xff]  }
  0xa0   :  { %15872 = vmatprep.subr.bf16.mxu0 %v17657_v42  ;;  %v17728_v42 = vld [vmem:[%s23317_s1 + $0x70] sm:$0xff]  }
  0xa1   :  { %17387 = vmatpush3.bf16.msra.mxu1 %v17653_v39  ;;  %v17724_v39 = vld [vmem:[%s23317_s1 + $0xa8] sm:$0xff]  }
  0xa2   :  { %2237 = vmatmul.mubr.bf16.vlgmr.msra.gmra.mrb[64].mxu0 %v17654_v40  ;;  %17396 = vmatprep.subr.bf16.mxu1 %v17661_v46  ;;  %v17725_v40 = vld [vmem:[%s23318_s0 + $0x22c] ss:$12 sps:$4 sm:$0xff]  }
  0xa3   :  { %15873 = vmatpush3.bf16.msra.mxu0 %v17659_v44  ;;  %2244 = vmatprep.mubr.bf16.mxu0 %v17665_v50  ;;  %v17730_v44 = vld [vmem:[%s23317_s1 + $0xb0] sm:$0xff]   ;;  %v17737_v50 = vld [vmem:[%s23317_s1 + $0x40] sm:$0xff]  }
  0xa4   :  { %17389 = vmatmul.mubr.bf16.vlgmr.msra.gmra.mrb[32].mxu1 %v17660_v45  ;;  %15874 = vmatprep.subr.bf16.mxu0 %v17662_v47  ;;  %v17731_v45 = vld [vmem:[%s23317_s1 + $0x78] sm:$0xff]  }
  0xa5   :  { %17397 = vmatpush3.bf16.msra.mxu1 %v17661_v46  ;;  %17392 = vmatprep.mubr.bf16.mxu1 %v17678_v61  ;;  %v17732_v46 = vld [vmem:[%s23317_s1 + $0x38] sm:$0xff]   ;;  %v17749_v61 = vld [vmem:[%s23317_s1 + $0x10] sm:$0xff]  }
  0xa6   :  { %17398 = vmatprep.subr.bf16.mxu1 %v17664_v49  ;;  %v17733_v47 = vld [vmem:[%s23317_s1 + $0xb8] sm:$0xff]  }
  0xa7   :  { %15875 = vmatpush3.bf16.msra.mxu0 %v17663_v48  ;;  %v17734_v48 = vld [vmem:[%s23318_s0 + $0x240] ss:$12 sps:$4 sm:$0xff]  }
  0xa8   :  { %15876 = vmatprep.subr.bf16.mxu0 %v17668_v52  ;;  %v17739_v52 = vld [vmem:[%s23317_s1] sm:$0xff]  }
  0xa9   :  { %17399 = vmatpush3.bf16.msra.mxu1 %v17664_v49  ;;  %v17736_v49 = vld [vmem:[%s23318_s0 + $0x244] ss:$12 sps:$4 sm:$0xff]  }
  0xaa   :  { %2245 = vmatmul.mubr.bf16.gmra.mrb[68].mxu0 %v17667_v51  ;;  %17400 = vmatprep.subr.bf16.mxu1 %v17670_v54  ;;  %v17738_v51 = vld [vmem:[%s23318_s0 + $0x248] ss:$12 sps:$4 sm:$0xff]  }
  0xab   :  { %15877 = vmatpush3.bf16.msra.mxu0 %v17669_v53  ;;  %2252 = vmatprep.mubr.bf16.mxu0 %v17674_v58  ;;  %v17740_v53 = vld [vmem:[%s23318_s0 + $0x260] ss:$12 sps:$4 sm:$0xff]   ;;  %v17745_v58 = vld [vmem:[%s23318_s0 + $0x25c] ss:$12 sps:$4 sm:$0xff]  }
  0xac   :  { %15878 = vmatprep.subr.bf16.mxu0 %v17671_v55  ;;  %17393 = vmatmul.mubr.bf16.gmra.mrb[36].mxu1 %v17680_v63  ;;  %v17742_v55 = vld [vmem:[%s23317_s1 + $0x48] sm:$0xff]   ;;  %v17751_v63 = vld [vmem:[%s23317_s1 + $0x58] sm:$0xff]  }
  0xad   :  { %17401 = vmatpush3.bf16.msra.mxu1 %v17670_v54  ;;  %17412 = vmatprep.mubr.bf16.mxu1 %v17698_v15  ;;  %v17741_v54 = vld [vmem:[%s23317_s1 + $0x80] sm:$0xff]   ;;  %v17763_v15 = vld [vmem:[%s23317_s1 + $0x28] sm:$0xff]  }
  0xae   :  { %17402 = vmatprep.subr.bf16.mxu1 %v17673_v57 }
  0xaf   :  { %15879 = vmatpush3.bf16.msra.mxu0 %v17672_v56  ;;  %v17743_v56 = vld [vmem:[%s23317_s1 + $0x8] sm:$0xff]  }
  0xb0   :  { %15880 = vmatprep.subr.bf16.mxu0 %v17677_v60  ;;  %v17748_v60 = vld [vmem:[%s23317_s1 + $0x50] sm:$0xff]  }
  0xb1   :  { %17403 = vmatpush3.bf16.msra.mxu1 %v17673_v57  ;;  %v17744_v57 = vld [vmem:[%s23317_s1 + $0x88] sm:$0xff]  }
  0xb2   :  { %2253 = vmatmul.mubr.bf16.gmra.mrb[72].mxu0 %v17676_v59  ;;  %17404 = vmatprep.subr.bf16.mxu1 %v17681_v0  ;;  %v17747_v59 = vld [vmem:[%s23318_s0 + $0x258] ss:$12 sps:$4 sm:$0xff]  }
  0xb3   :  { %15881 = vmatpush3.bf16.msra.mxu0 %v17679_v62  ;;  %2260 = vmatprep.mubr.bf16.mxu0 %v17685_v4  ;;  %v17750_v62 = vld [vmem:[%s23317_s1 + $0x90] sm:$0xff]   ;;  %v17757_v4 = vld [vmem:[%s23317_s1 + $0x60] sm:$0xff]  }
  0xb4   :  { %15882 = vmatprep.subr.bf16.mxu0 %v17682_v1  ;;  %v17753_v1 = vld [vmem:[%s23317_s1 + $0x98] sm:$0xff]  }
  0xb5   :  { %17405 = vmatpush3.bf16.msra.mxu1 %v17681_v0  ;;  %v17752_v0 = vld [vmem:[%s23317_s1 + $0x18] sm:$0xff]  }
  0xb6   :  { %17406 = vmatprep.subr.bf16.mxu1 %v17684_v3 }
  0xb7   :  { %15883 = vmatpush3.bf16.msra.mxu0 %v17683_v2  ;;  %v17754_v2 = vld [vmem:[%s23318_s0 + $0x274] ss:$12 sps:$4 sm:$0xff]  }
  0xb8   :  { %15884 = vmatprep.subr.bf16.mxu0 %v17688_v6  ;;  %v17759_v6 = vld [vmem:[%s23317_s1 + $0x20] sm:$0xff]  }
  0xb9   :  { %17407 = vmatpush3.bf16.msra.mxu1 %v17684_v3  ;;  %v17756_v3 = vld [vmem:[%s23318_s0 + $0x270] ss:$12 sps:$4 sm:$0xff]  }
  0xba   :  { %2261 = vmatmul.mubr.bf16.gmra.mrb[76].mxu0 %v17687_v5  ;;  %17408 = vmatprep.subr.bf16.mxu1 %v17690_v8  ;;  %v17758_v5 = vld [vmem:[%s23318_s0 + $0x278] ss:$12 sps:$4 sm:$0xff]  }
  0xbb   :  { %15885 = vmatpush3.bf16.msra.mxu0 %v17689_v7  ;;  %2692 = vmatprep.mubr.bf16.mxu0 %v17696_v13  ;;  %v17760_v7 = vld [vmem:[%s23318_s0 + $0x290] ss:$12 sps:$4 sm:$0xff]  }
  0xbc   :  { %15886 = vmatprep.subr.bf16.mxu0 %v17691_v9 }
  0xbd   :  { %17409 = vmatpush3.bf16.msra.mxu1 %v17690_v8  ;;  %v17761_v8 = vld [vmem:[%s23317_s1 + $0xa0] sm:$0xff]  }
  0xbe   :  { %17410 = vmatprep.subr.bf16.mxu1 %v17693_v11 }
  0xbf   :  { %15887 = vmatpush3.bf16.msra.mxu0 %v17692_v10 }
  0xc0   :  { %15924 = vmatprep.subr.bf16.mxu0 %v17697_v14 }
  0xc1   :  { %17411 = vmatpush3.bf16.msra.mxu1 %v17693_v11  ;;  %v17762_v11 = vld [vmem:[%s23317_s1 + $0x68] sm:$0xff]  }
  0xc2   :  { %2693 = vmatmul.mubr.bf16.vlgmr.msra.gmra.mrb[80].mxu0 %v17694_v12  ;;  %17420 = vmatprep.subr.bf16.mxu1 %v17701_v18 }
  0xc3   :  { %15925 = vmatpush3.bf16.msra.mxu0 %v17699_v16  ;;  %2700 = vmatprep.mubr.bf16.mxu0 %v17705_v22  ;;  %v17765_v22 = vld [vmem:[%s23318_s0 + $0x28c] ss:$12 sps:$4 sm:$0xff]  }
  0xc4   :  { %17413 = vmatmul.mubr.bf16.vlgmr.msra.gmra.mrb[40].mxu1 %v17700_v17  ;;  %15926 = vmatprep.subr.bf16.mxu0 %v17702_v19 }
  0xc5   :  { %17421 = vmatpush3.bf16.msra.mxu1 %v17701_v18  ;;  %17416 = vmatprep.mubr.bf16.mxu1 %v17718_v33  ;;  %v17764_v18 = vld [vmem:[%s23317_s1 + $0xa8] sm:$0xff]  }
  0xc6   :  { %17422 = vmatprep.subr.bf16.mxu1 %v17704_v21 }
  0xc7   :  { %15927 = vmatpush3.bf16.msra.mxu0 %v17703_v20 }
  0xc8   :  { %15928 = vmatprep.subr.bf16.mxu0 %v17708_v24  ;;  %v17767_v24 = vld [vmem:[%s23318_s0 + $0x288] ss:$12 sps:$4 sm:$0xff]  }
  0xc9   :  { %17423 = vmatpush3.bf16.msra.mxu1 %v17704_v21 }
  0xca   :  { %2701 = vmatmul.mubr.bf16.gmra.mrb[84].mxu0 %v17707_v23  ;;  %17424 = vmatprep.subr.bf16.mxu1 %v17710_v26 }
  0xcb   :  { %15929 = vmatpush3.bf16.msra.mxu0 %v17709_v25  ;;  %2708 = vmatprep.mubr.bf16.mxu0 %v17714_v30  ;;  %v17768_v25 = vld [vmem:[%s23317_s1 + $0x70] sm:$0xff]  }
  0xcc   :  { %15930 = vmatprep.subr.bf16.mxu0 %v17711_v27  ;;  %17417 = vmatmul.mubr.bf16.gmra.mrb[44].mxu1 %v17720_v35  ;;  %v17770_v30 = vld [vmem:[%s23317_s1 + $0xb0] sm:$0xff]  }
  0xcd   :  { %17425 = vmatpush3.bf16.msra.mxu1 %v17710_v26  ;;  %17436 = vmatprep.mubr.bf16.mxu1 %v17738_v51  ;;  %v17778_v51 = vld [vmem:[%s23318_s0 + $0x2c0] ss:$12 sps:$4 sm:$0xff]  }
  0xce   :  { %17426 = vmatprep.subr.bf16.mxu1 %v17713_v29 }
  0xcf   :  { %15931 = vmatpush3.bf16.msra.mxu0 %v17712_v28  ;;  %v17769_v28 = vld [vmem:[%s23317_s1 + $0x30] sm:$0xff]  }
  0xd0   :  { %15932 = vmatprep.subr.bf16.mxu0 %v17717_v32  ;;  %v17771_v32 = vld [vmem:[%s23317_s1 + $0x78] sm:$0xff]  }
  0xd1   :  { %17427 = vmatpush3.bf16.msra.mxu1 %v17713_v29 }
  0xd2   :  { %2709 = vmatmul.mubr.bf16.gmra.mrb[88].mxu0 %v17716_v31  ;;  %17428 = vmatprep.subr.bf16.mxu1 %v17721_v36 }
  0xd3   :  { %15933 = vmatpush3.bf16.msra.mxu0 %v17719_v34  ;;  %2716 = vmatprep.mubr.bf16.mxu0 %v17725_v40  ;;  %v17772_v34 = vld [vmem:[%s23317_s1 + $0x38] sm:$0xff]  }
  0xd4   :  { %15934 = vmatprep.subr.bf16.mxu0 %v17722_v37  ;;  %v17773_v37 = vld [vmem:[%s23317_s1 + $0xb8] sm:$0xff]  }
  0xd5   :  { %17429 = vmatpush3.bf16.msra.mxu1 %v17721_v36 }
  0xd6   :  { %17430 = vmatprep.subr.bf16.mxu1 %v17724_v39 }
  0xd7   :  { %15935 = vmatpush3.bf16.msra.mxu0 %v17723_v38 }
  0xd8   :  { %15936 = vmatprep.subr.bf16.mxu0 %v17728_v42  ;;  %v17776_v42 = vld [vmem:[%s23318_s0 + $0x2a4] ss:$12 sps:$4 sm:$0xff]  }
  0xd9   :  { %17431 = vmatpush3.bf16.msra.mxu1 %v17724_v39 }
  0xda   :  { %2717 = vmatmul.mubr.bf16.gmra.mrb[92].mxu0 %v17727_v41  ;;  %17432 = vmatprep.subr.bf16.mxu1 %v17730_v44  ;;  %v17774_v41 = vld [vmem:[%s23318_s0 + $0x2a0] ss:$12 sps:$4 sm:$0xff]  }
  0xdb   :  { %15937 = vmatpush3.bf16.msra.mxu0 %v17729_v43  ;;  %3148 = vmatprep.mubr.bf16.mxu0 %v17736_v49 }
  0xdc   :  { %15938 = vmatprep.subr.bf16.mxu0 %v17731_v45  ;;  %v17777_v45 = vld [vmem:[%s23318_s0 + $0x2a8] ss:$12 sps:$4 sm:$0xff]  }
  0xdd   :  { %17433 = vmatpush3.bf16.msra.mxu1 %v17730_v44 }
  0xde   :  { %17434 = vmatprep.subr.bf16.mxu1 %v17733_v47 }
  0xdf   :  { %15939 = vmatpush3.bf16.msra.mxu0 %v17732_v46 }
  0xe0   :  { %15976 = vmatprep.subr.bf16.mxu0 %v17737_v50 }
  0xe1   :  { %17435 = vmatpush3.bf16.msra.mxu1 %v17733_v47 }
  0xe2   :  { %3149 = vmatmul.mubr.bf16.vlgmr.msra.gmra.mrb[96].mxu0 %v17734_v48  ;;  %17444 = vmatprep.subr.bf16.mxu1 %v17741_v54 }
  0xe3   :  { %15977 = vmatpush3.bf16.msra.mxu0 %v17739_v52  ;;  %3156 = vmatprep.mubr.bf16.mxu0 %v17745_v58 }
  0xe4   :  { %17437 = vmatmul.mubr.bf16.vlgmr.msra.gmra.mrb[48].mxu1 %v17740_v53  ;;  %15978 = vmatprep.subr.bf16.mxu0 %v17742_v55 }
  0xe5   :  { %17445 = vmatpush3.bf16.msra.mxu1 %v17741_v54  ;;  %17440 = vmatprep.mubr.bf16.mxu1 %v17758_v5  ;;  %v17781_v5 = vld [vmem:[%s23318_s0 + $0x2b8] ss:$12 sps:$4 sm:$0xff]  }
  0xe6   :  { %17446 = vmatprep.subr.bf16.mxu1 %v17744_v57 }
  0xe7   :  { %15979 = vmatpush3.bf16.msra.mxu0 %v17743_v56 }
  0xe8   :  { %15980 = vmatprep.subr.bf16.mxu0 %v17748_v60 }
  0xe9   :  { %17447 = vmatpush3.bf16.msra.mxu1 %v17744_v57  ;;  %v17779_v57 = vld [vmem:[%s23318_s0 + $0x2bc] ss:$12 sps:$4 sm:$0xff]  }
  0xea   :  { %3157 = vmatmul.mubr.bf16.gmra.mrb[100].mxu0 %v17747_v59  ;;  %17448 = vmatprep.subr.bf16.mxu1 %v17750_v62 }
  0xeb   :  { %15981 = vmatpush3.bf16.msra.mxu0 %v17749_v61  ;;  %3164 = vmatprep.mubr.bf16.mxu0 %v17754_v2 }
  0xec   :  { %15982 = vmatprep.subr.bf16.mxu0 %v17751_v63  ;;  %17441 = vmatmul.mubr.bf16.gmra.mrb[52].mxu1 %v17760_v7 }
  0xed   :  { %17449 = vmatpush3.bf16.msra.mxu1 %v17750_v62  ;;  %17460 = vmatprep.mubr.bf16.mxu1 %v17777_v45 }
  0xee   :  { %17450 = vmatprep.subr.bf16.mxu1 %v17753_v1 }
  0xef   :  { %15983 = vmatpush3.bf16.msra.mxu0 %v17752_v0 }
  0xf0   :  { %15984 = vmatprep.subr.bf16.mxu0 %v17757_v4  ;;  %v17785_v4 = vld [vmem:[%s23318_s0 + $0x2d8] ss:$12 sps:$4 sm:$0xff]  }
  0xf1   :  { %17451 = vmatpush3.bf16.msra.mxu1 %v17753_v1 }
  0xf2   :  { %3165 = vmatmul.mubr.bf16.gmra.mrb[104].mxu0 %v17756_v3  ;;  %17452 = vmatprep.subr.bf16.mxu1 %v17761_v8 }
  0xf3   :  { %15985 = vmatpush3.bf16.msra.mxu0 %v17759_v6  ;;  %3172 = vmatprep.mubr.bf16.mxu0 %v17765_v22 }
  0xf4   :  { %15986 = vmatprep.subr.bf16.mxu0 %v17762_v11 }
  0xf5   :  { %v15628_v9 = vpop.f32.mrb[0].mxu0  ;;  %17453 = vmatpush3.bf16.msra.mxu1 %v17761_v8 }
  0xf6   :  { %v15629_v10 = vpop.f32.mrb[1].mxu0  ;;  %17454 = vmatprep.subr.bf16.mxu1 %v17764_v18 }
  0xf7   :  { %v15631_v12 = vpop.f32.mrb[2].mxu0  ;;  %v17294_v13 = vpop.f32.mrb[0].mxu1  ;;  %v15630_v14 = vadd.f32 %v15629_v10, %v15628_v9  ;;  %15987 = vmatpush3.bf16.msra.mxu0 %v17763_v15  ;;  %v17782_v9 = vld [vmem:[%s23318_s0 + $0x2d4] ss:$12 sps:$4 sm:$0xff]   ;;  %v17786_v10 = vld [vmem:[%s23318_s0 + $0x2f0] ss:$12 sps:$4 sm:$0xff]  }
  0xf8   :  { %v15632_v16 = vpop.f32.mrb[3].mxu0  ;;  %v481_v17 = vpop.f32.mrb[1].mxu1  ;;  %15988 = vmatprep.subr.bf16.mxu0 %v17768_v25 }
  0xf9   :  { %v482_v19 = vadd.f32 %v15630_v14, %v481_v17  ;;  %v17295_v20 = vpop.f32.mrb[2].mxu1  ;;  %v15633_v21 = vadd.f32 %v15632_v16, %v15631_v12  ;;  %17455 = vmatpush3.bf16.msra.mxu1 %v17764_v18 }
  0xfa   :  { %v484_v23 = vpop.f32.mrb[3].mxu1  ;;  %3173 = vmatmul.mubr.bf16.gmra.mrb[108].mxu0 %v17767_v24  ;;  %17456 = vmatprep.subr.bf16.mxu1 %v17770_v30 }
  0xfb   :  { %v19434_v26 = vmax.f32 %v482_v19, 0.0  ;;  %v485_v27 = vadd.f32 %v15633_v21, %v484_v23  ;;  %15989 = vmatpush3.bf16.msra.mxu0 %v17769_v28  ;;  %3604 = vmatprep.mubr.bf16.mxu0 %v17776_v42 }
  0xfc   :  { %15990 = vmatprep.subr.bf16.mxu0 %v17771_v32 }
  0xfd   :  { %23393 = vst [vmem:[#allocation4_spill] sm:$0xff] %v19434_v26  ;;  %v19439_v29 = vmax.f32 %v485_v27, 0.0  ;;  %v15634_v31 = vpop.f32.mrb[4].mxu0  ;;  %17457 = vmatpush3.bf16.msra.mxu1 %v17770_v30  ;;  %v534_v49 = vmul.f32 %v19434_v26, %v19434_v26  ;;  %v17784_v27 = vld [vmem:[%s23318_s0 + $0x2d0] ss:$12 sps:$4 sm:$0xff]  }
  0xfe   :  { %v15635_v33 = vpop.f32.mrb[5].mxu0  ;;  %17458 = vmatprep.subr.bf16.mxu1 %v17773_v37 }
  0xff   :  { %23394 = vst [vmem:[#allocation5_spill] sm:$0xff] %v19439_v29  ;;  %v15636_v35 = vadd.f32 %v15635_v33, %v15634_v31  ;;  %v15637_v36 = vpop.f32.mrb[6].mxu0  ;;  %v17298_v43 = vpop.f32.mrb[4].mxu1  ;;  %v535_v44 = vmul.f32 %v19439_v29, %v19439_v29  ;;  %15991 = vmatpush3.bf16.msra.mxu0 %v17772_v34  ;;  %v520_v50 = vadd.f32 %v19439_v29, %v19434_v26  ;;  %v17787_v31 = vld [vmem:[%s23318_s0 + $0x2ec] ss:$12 sps:$4 sm:$0xff]  }
 0x100   :  { %v15638_v38 = vpop.f32.mrb[7].mxu0  ;;  %v497_v48 = vpop.f32.mrb[5].mxu1 }
 0x101   :  { %v490_v39 = vadd.f32 %v17294_v13, %v15636_v35  ;;  %v15639_v40 = vadd.f32 %v15638_v38, %v15637_v36  ;;  %17459 = vmatpush3.bf16.msra.mxu1 %v17773_v37  ;;  %v17299_v53 = vpop.f32.mrb[6].mxu1  ;;  %v542_v59 = vadd.f32 %v535_v44, %v534_v49 }
 0x102   :  { %3605 = vmatmul.mubr.bf16.vlgmr.msra.gmra.mrb[112].mxu0 %v17774_v41  ;;  %v500_v58 = vpop.f32.mrb[7].mxu1 }
 0x103   :  { %v19464_v46 = vmax.f32 %v490_v39, 0.0  ;;  %v493_v47 = vadd.f32 %v17295_v20, %v15639_v40  ;;  %3612 = vmatprep.mubr.bf16.mxu0 %v17779_v57 }
 0x104   :  { %17461 = vmatmul.mubr.bf16.vlgmr.msra.gmra.mrb[56].mxu1 %v17778_v51  ;;  %v17789_v51 = vld [vmem:[%s23318_s0 + $0x2e8] ss:$12 sps:$4 sm:$0xff]  }
 0x105   :  { %23395 = vst [vmem:[#allocation6_spill] sm:$0xff] %v19464_v46  ;;  %v15640_v52 = vpop.f32.mrb[8].mxu0  ;;  %v536_v54 = vmul.f32 %v19464_v46, %v19464_v46  ;;  %v19475_v55 = vmax.f32 %v493_v47, 0.0  ;;  %v521_v62 = vadd.f32 %v520_v50, %v19464_v46  ;;  %17464 = vmatprep.mubr.bf16.mxu1 %v17785_v4 }
 0x106   :  { %v15641_v56 = vpop.f32.mrb[9].mxu0 }
 0x107   :  { %23396 = vst [vmem:[#allocation7_spill] sm:$0xff] %v19475_v55  ;;  %v15643_v60 = vpop.f32.mrb[10].mxu0  ;;  %v15642_v61 = vadd.f32 %v15641_v56, %v15640_v52  ;;  %v537_v0 = vmul.f32 %v19475_v55, %v19475_v55  ;;  %v543_v2 = vadd.f32 %v542_v59, %v536_v54  ;;  %v522_v7 = vadd.f32 %v521_v62, %v19475_v55 }
 0x108   :  { %v15644_v63 = vpop.f32.mrb[11].mxu0 }
 0x109   :  { %v498_v1 = vadd.f32 %v15642_v61, %v497_v48  ;;  %v15645_v3 = vadd.f32 %v15644_v63, %v15643_v60  ;;  %v544_v13 = vadd.f32 %v543_v2, %v537_v0 }
 0x10a   :  { %3613 = vmatmul.mubr.bf16.gmra.mrb[116].mxu0 %v17781_v5 }
 0x10b   :  { %v19489_v6 = vmax.f32 %v498_v1, 0.0  ;;  %v501_v8 = vadd.f32 %v15645_v3, %v500_v58  ;;  %3620 = vmatprep.mubr.bf16.mxu0 %v17782_v9 }
 0x10c   :  { %17465 = vmatmul.mubr.bf16.gmra.mrb[60].mxu1 %v17786_v10 }
 0x10d   :  { %23397 = vst [vmem:[#allocation8_spill] sm:$0xff] %v19489_v6  ;;  %v523_v11 = vadd.f32 %v522_v7, %v19489_v6  ;;  %v538_v12 = vmul.f32 %v19489_v6, %v19489_v6  ;;  %v19501_v14 = vmax.f32 %v501_v8, 0.0  ;;  %v15646_v15 = vpop.f32.mrb[12].mxu0 }
 0x10e   :  { %v15647_v16 = vpop.f32.mrb[13].mxu0 }
 0x10f   :  { %v545_v17 = vadd.f32 %v544_v13, %v538_v12  ;;  %v524_v18 = vadd.f32 %v523_v11, %v19501_v14  ;;  %v539_v19 = vmul.f32 %v19501_v14, %v19501_v14  ;;  %v15648_v20 = vadd.f32 %v15647_v16, %v15646_v15  ;;  %v15649_v21 = vpop.f32.mrb[14].mxu0 }
 0x110   :  { %v15650_v22 = vpop.f32.mrb[15].mxu0 }
 0x111   :  { %v546_v23 = vadd.f32 %v545_v17, %v539_v19  ;;  %v506_v24 = vadd.f32 %v17298_v43, %v15648_v20  ;;  %v15651_v25 = vadd.f32 %v15650_v22, %v15649_v21 }
 0x112   :  { %3621 = vmatmul.mubr.bf16.gmra.mrb[120].mxu0 %v17784_v27 }
 0x113   :  { %v19509_v28 = vmax.f32 %v506_v24, 0.0  ;;  %v509_v30 = vadd.f32 %v17299_v53, %v15651_v25  ;;  %3628 = vmatprep.mubr.bf16.mxu0 %v17787_v31 }
 0x115   :  { %23398 = vst [vmem:[#allocation9_spill] sm:$0xff] %v19509_v28  ;;  %v525_v32 = vadd.f32 %v524_v18, %v19509_v28  ;;  %v540_v33 = vmul.f32 %v19509_v28, %v19509_v28  ;;  %v19517_v34 = vmax.f32 %v509_v30, 0.0  ;;  %v15680_v35 = vpop.f32.mrb[16].mxu0 }
 0x116   :  { %v15681_v36 = vpop.f32.mrb[17].mxu0 }
 0x117   :  { %23399 = vst [vmem:[#allocation10_spill] sm:$0xff] %v19517_v34  ;;  %v547_v37 = vadd.f32 %v546_v23, %v540_v33  ;;  %v19520_v38 = vadd.f32 %v525_v32, %v19517_v34  ;;  %v541_v39 = vmul.f32 %v19517_v34, %v19517_v34  ;;  %v15683_v40 = vpop.f32.mrb[18].mxu0  ;;  %v17318_v41 = vpop.f32.mrb[8].mxu1  ;;  %v15682_v42 = vadd.f32 %v15681_v36, %v15680_v35 }
 0x118   :  { %v15684_v43 = vpop.f32.mrb[19].mxu0  ;;  %v935_v44 = vpop.f32.mrb[9].mxu1 }
 0x119   :  { %v19524_v45 = vadd.f32 %v547_v37, %v541_v39  ;;  %v19526_v47 = vadd.f32 %v15682_v42, %v935_v44  ;;  %v17319_v48 = vpop.f32.mrb[10].mxu1  ;;  %v15685_v49 = vadd.f32 %v15684_v43, %v15683_v40 }
 0x11a   :  { %v938_v50 = vpop.f32.mrb[11].mxu1  ;;  %3629 = vmatmul.mubr.bf16.gmra.mrb[124].mxu0 %v17789_v51 }
 0x11b   :  { %v19531_v52 = vadd.f32 %v15685_v49, %v938_v50 }
 0x11d   :  { %v15686_v53 = vpop.f32.mrb[20].mxu0 }
 0x11e   :  { %v15687_v54 = vpop.f32.mrb[21].mxu0 }
 0x11f   :  { %v15689_v56 = vpop.f32.mrb[22].mxu0  ;;  %v15688_v57 = vadd.f32 %v15687_v54, %v15686_v53  ;;  %v17322_v63 = vpop.f32.mrb[12].mxu1 }
 0x120   :  { %v15690_v58 = vpop.f32.mrb[23].mxu0  ;;  %v951_v1 = vpop.f32.mrb[13].mxu1 }
 0x121   :  { %v15691_v59 = vadd.f32 %v15690_v58, %v15689_v56  ;;  %v19533_v60 = vadd.f32 %v17318_v41, %v15688_v57  ;;  %v17323_v4 = vpop.f32.mrb[14].mxu1 }
 0x122   :  { %v954_v7 = vpop.f32.mrb[15].mxu1 }
 0x123   :  { %v19535_v61 = vadd.f32 %v17319_v48, %v15691_v59 }
 0x125   :  { %v15692_v62 = vpop.f32.mrb[24].mxu0 }
 0x126   :  { %v15693_v0 = vpop.f32.mrb[25].mxu0 }
 0x127   :  { %v15695_v2 = vpop.f32.mrb[26].mxu0  ;;  %v15694_v3 = vadd.f32 %v15693_v0, %v15692_v62 }
 0x128   :  { %v15696_v5 = vpop.f32.mrb[27].mxu0 }
 0x129   :  { %v19537_v8 = vadd.f32 %v15694_v3, %v951_v1  ;;  %v15697_v9 = vadd.f32 %v15696_v5, %v15695_v2 }
 0x12b   :  { %v19539_v10 = vadd.f32 %v15697_v9, %v954_v7 }
 0x12d   :  { %v15698_v11 = vpop.f32.mrb[28].mxu0 }
 0x12e   :  { %v15699_v12 = vpop.f32.mrb[29].mxu0 }
 0x12f   :  { %v15700_v13 = vadd.f32 %v15699_v12, %v15698_v11  ;;  %v15701_v15 = vpop.f32.mrb[30].mxu0 }
 0x130   :  { %v15702_v16 = vpop.f32.mrb[31].mxu0 }
 0x131   :  { %v19541_v17 = vadd.f32 %v17322_v63, %v15700_v13  ;;  %v15703_v18 = vadd.f32 %v15702_v16, %v15701_v15 }
 0x133   :  { %v19543_v19 = vadd.f32 %v17323_v4, %v15703_v18 }
 0x135   :  { %v15732_v20 = vpop.f32.mrb[32].mxu0 }
 0x136   :  { %v15733_v21 = vpop.f32.mrb[33].mxu0 }
 0x137   :  { %v15734_v22 = vadd.f32 %v15733_v21, %v15732_v20  ;;  %v15735_v23 = vpop.f32.mrb[34].mxu0  ;;  %v17342_v24 = vpop.f32.mrb[16].mxu1 }
 0x138   :  { %v15736_v25 = vpop.f32.mrb[35].mxu0  ;;  %v1391_v27 = vpop.f32.mrb[17].mxu1 }
 0x139   :  { %v15737_v30 = vadd.f32 %v15736_v25, %v15735_v23  ;;  %v19545_v31 = vadd.f32 %v15734_v22, %v1391_v27  ;;  %v17343_v32 = vpop.f32.mrb[18].mxu1 }
 0x13a   :  { %v1394_v33 = vpop.f32.mrb[19].mxu1 }
 0x13b   :  { %v19547_v35 = vadd.f32 %v15737_v30, %v1394_v33 }
 0x13d   :  { %v15738_v36 = vpop.f32.mrb[36].mxu0 }
 0x13e   :  { %v15739_v37 = vpop.f32.mrb[37].mxu0 }
 0x13f   :  { %v15741_v39 = vpop.f32.mrb[38].mxu0  ;;  %v15740_v40 = vadd.f32 %v15739_v37, %v15738_v36  ;;  %v17346_v49 = vpop.f32.mrb[20].mxu1 }
 0x140   :  { %v15742_v41 = vpop.f32.mrb[39].mxu0  ;;  %v1407_v51 = vpop.f32.mrb[21].mxu1 }
 0x141   :  { %v15743_v42 = vadd.f32 %v15742_v41, %v15741_v39  ;;  %v19549_v43 = vadd.f32 %v17342_v24, %v15740_v40  ;;  %v17347_v56 = vpop.f32.mrb[22].mxu1 }
 0x142   :  { %v1410_v58 = vpop.f32.mrb[23].mxu1 }
 0x143   :  { %v19551_v44 = vadd.f32 %v17343_v32, %v15743_v42 }
 0x145   :  { %v15744_v48 = vpop.f32.mrb[40].mxu0 }
 0x146   :  { %v15745_v50 = vpop.f32.mrb[41].mxu0 }
 0x147   :  { %v15746_v53 = vadd.f32 %v15745_v50, %v15744_v48  ;;  %v15747_v54 = vpop.f32.mrb[42].mxu0 }
 0x148   :  { %v15748_v57 = vpop.f32.mrb[43].mxu0 }
 0x149   :  { %v15749_v59 = vadd.f32 %v15748_v57, %v15747_v54  ;;  %v19553_v62 = vadd.f32 %v15746_v53, %v1407_v51 }
 0x14b   :  { %v19555_v63 = vadd.f32 %v15749_v59, %v1410_v58  ;;  %v17790_v59 = vld [vmem:[%s23319_s4 + $0xc0] sm:$0xff]   ;;  %v19869_v46 = vmax.f32 %v19553_v62, 0.0  ;;  %v17852_v62 = vld [vmem:[%s23319_s4 + $0x138] sm:$0xff]  }
 0x14c   :  { %16028 = vmatprep.subr.bf16.mxu0 %v17790_v59 }
 0x14d   :  { %v15750_v0 = vpop.f32.mrb[44].mxu0  ;;  %23408 = vst [vmem:[#allocation19_spill] sm:$0xff] %v19869_v46 }
 0x14e   :  { %v15751_v1 = vpop.f32.mrb[45].mxu0 }
 0x14f   :  { %v15752_v2 = vadd.f32 %v15751_v1, %v15750_v0  ;;  %v15753_v3 = vpop.f32.mrb[46].mxu0  ;;  %v17791_v0 = vld [vmem:[%s23319_s4 + $0x40] sm:$0xff]  }
 0x150   :  { %v15754_v4 = vpop.f32.mrb[47].mxu0  ;;  %16056 = vmatprep.subr.bf16.mxu1 %v17791_v0  ;;  %v17800_v0 = vld [vmem:[%s23319_s4 + $0x90] sm:$0xff]  }
 0x151   :  { %v19557_v5 = vadd.f32 %v17346_v49, %v15752_v2  ;;  %v15755_v7 = vadd.f32 %v15754_v4, %v15753_v3  ;;  %v17792_v2 = vld [vmem:[%s23319_s4 + $0x80] sm:$0xff]  }
 0x152   :  { %v17793_v3 = vld [vmem:[%s23319_s4] sm:$0xff]   ;;  %16029 = vmatpush3.bf16.msra.mxu0 %v17792_v2  ;;  %v17801_v2 = vld [vmem:[%s23319_s4 + $0x10] sm:$0xff]  }
 0x153   :  { %v19559_v9 = vadd.f32 %v17347_v56, %v15755_v7  ;;  %16057 = vmatpush3.bf16.msra.mxu1 %v17793_v3 }
 0x155   :  { %v15784_v11 = vpop.f32.mrb[48].mxu0 }
 0x156   :  { %v15785_v12 = vpop.f32.mrb[49].mxu0 }
 0x157   :  { %v15786_v13 = vadd.f32 %v15785_v12, %v15784_v11  ;;  %v15787_v15 = vpop.f32.mrb[50].mxu0  ;;  %v17366_v16 = vpop.f32.mrb[24].mxu1  ;;  %v17794_v11 = vld [vmem:[%s23319_s4 + $0xc8] sm:$0xff]  }
 0x158   :  { %v15788_v18 = vpop.f32.mrb[51].mxu0  ;;  %v1847_v20 = vpop.f32.mrb[25].mxu1  ;;  %16030 = vmatprep.subr.bf16.mxu0 %v17794_v11 }
 0x159   :  { %v15789_v21 = vadd.f32 %v15788_v18, %v15787_v15  ;;  %v19561_v22 = vadd.f32 %v15786_v13, %v1847_v20  ;;  %v17367_v23 = vpop.f32.mrb[26].mxu1  ;;  %v17795_v15 = vld [vmem:[%s23319_s4 + $0x48] sm:$0xff]  }
 0x15a   :  { %v1850_v24 = vpop.f32.mrb[27].mxu1  ;;  %v17796_v18 = vld [vmem:[%s23319_s4 + $0x88] sm:$0xff]   ;;  %16058 = vmatprep.subr.bf16.mxu1 %v17795_v15 }
 0x15b   :  { %v19563_v25 = vadd.f32 %v15789_v21, %v1850_v24  ;;  %16031 = vmatpush3.bf16.msra.mxu0 %v17796_v18  ;;  %v17798_v24 = vld [vmem:[%s23319_s4 + $0xd0] sm:$0xff]   ;;  %v17805_v18 = vld [vmem:[%s23319_s4 + $0x18] sm:$0xff]  }
 0x15c   :  { %16032 = vmatprep.subr.bf16.mxu0 %v17798_v24  ;;  %v17806_v24 = vld [vmem:[%s23319_s4 + $0xe0] sm:$0xff]  }
 0x15d   :  { %v15790_v27 = vpop.f32.mrb[52].mxu0 }
 0x15e   :  { %v15791_v30 = vpop.f32.mrb[53].mxu0 }
 0x15f   :  { %v15793_v32 = vpop.f32.mrb[54].mxu0  ;;  %v15792_v33 = vadd.f32 %v15791_v30, %v15790_v27  ;;  %v17370_v48 = vpop.f32.mrb[28].mxu1  ;;  %v17799_v30 = vld [vmem:[%s23319_s4 + $0x50] sm:$0xff]   ;;  %16033 = vmatpush3.bf16.msra.mxu0 %v17800_v0  ;;  %v17812_v0 = vld [vmem:[%s23319_s4 + $0xa8] sm:$0xff]  }
 0x160   :  { %v15794_v36 = vpop.f32.mrb[55].mxu0  ;;  %v1863_v51 = vpop.f32.mrb[29].mxu1 }
 0x161   :  { %v15795_v37 = vadd.f32 %v15794_v36, %v15793_v32  ;;  %v19565_v39 = vadd.f32 %v17366_v16, %v15792_v33  ;;  %v17371_v54 = vpop.f32.mrb[30].mxu1 }
 0x162   :  { %v1866_v58 = vpop.f32.mrb[31].mxu1 }
 0x163   :  { %v19567_v40 = vadd.f32 %v17367_v23, %v15795_v37  ;;  %v17797_v23 = vld [vmem:[%s23319_s4 + $0x8] sm:$0xff]  }
 0x164   :  { %16059 = vmatpush3.bf16.msra.mxu1 %v17797_v23 }
 0x165   :  { %v15796_v41 = vpop.f32.mrb[56].mxu0  ;;  %16060 = vmatprep.subr.bf16.mxu1 %v17799_v30  ;;  %v17807_v30 = vld [vmem:[%s23319_s4 + $0x60] sm:$0xff]  }
 0x166   :  { %v15797_v42 = vpop.f32.mrb[57].mxu0 }
 0x167   :  { %v15798_v49 = vadd.f32 %v15797_v42, %v15796_v41  ;;  %v15799_v50 = vpop.f32.mrb[58].mxu0 }
 0x168   :  { %v15800_v53 = vpop.f32.mrb[59].mxu0  ;;  %16061 = vmatpush3.bf16.msra.mxu1 %v17801_v2  ;;  %v17813_v2 = vld [vmem:[%s23319_s4 + $0x28] sm:$0xff]  }
 0x169   :  { %v15801_v56 = vadd.f32 %v15800_v53, %v15799_v50  ;;  %v19569_v57 = vadd.f32 %v15798_v49, %v1863_v51 }
 0x16b   :  { %v19577_v1 = vadd.f32 %v15801_v56, %v1866_v58 }
 0x16d   :  { %v15802_v4 = vpop.f32.mrb[60].mxu0 }
 0x16e   :  { %v15803_v7 = vpop.f32.mrb[61].mxu0 }
 0x16f   :  { %v15804_v12 = vadd.f32 %v15803_v7, %v15802_v4  ;;  %v15805_v13 = vpop.f32.mrb[62].mxu0 }
 0x170   :  { %v15806_v16 = vpop.f32.mrb[63].mxu0 }
 0x171   :  { %v19594_v20 = vadd.f32 %v17370_v48, %v15804_v12  ;;  %v15807_v21 = vadd.f32 %v15806_v16, %v15805_v13  ;;  %v17802_v12 = vld [vmem:[%s23319_s4 + $0xd8] sm:$0xff]  }
 0x172   :  { %v17803_v13 = vld [vmem:[%s23319_s4 + $0x58] sm:$0xff]   ;;  %16034 = vmatprep.subr.bf16.mxu0 %v17802_v12  ;;  %v17815_v12 = vld [vmem:[%s23319_s4 + $0x70] sm:$0xff]  }
 0x173   :  { %v19602_v27 = vadd.f32 %v17371_v54, %v15807_v21  ;;  %v17804_v16 = vld [vmem:[%s23319_s4 + $0x98] sm:$0xff]   ;;  %16062 = vmatprep.subr.bf16.mxu1 %v17803_v13 }
 0x174   :  { %16035 = vmatpush3.bf16.msra.mxu0 %v17804_v16  ;;  %16063 = vmatpush3.bf16.msra.mxu1 %v17805_v18  ;;  %v17816_v16 = vld [vmem:[%s23319_s4 + $0xb0] sm:$0xff]  }
 0x175   :  { %v15836_v32 = vpop.f32.mrb[64].mxu0  ;;  %16036 = vmatprep.subr.bf16.mxu0 %v17806_v24  ;;  %16064 = vmatprep.subr.bf16.mxu1 %v17807_v30  ;;  %v17817_v18 = vld [vmem:[%s23319_s4 + $0x30] sm:$0xff]  }
 0x176   :  { %v15837_v33 = vpop.f32.mrb[65].mxu0 }
 0x177   :  { %v15838_v36 = vadd.f32 %v15837_v33, %v15836_v32  ;;  %v15839_v37 = vpop.f32.mrb[66].mxu0  ;;  %v17390_v41 = vpop.f32.mrb[32].mxu1 }
 0x178   :  { %v15840_v42 = vpop.f32.mrb[67].mxu0  ;;  %v2303_v48 = vpop.f32.mrb[33].mxu1 }
 0x179   :  { %v15841_v49 = vadd.f32 %v15840_v42, %v15839_v37  ;;  %v19607_v50 = vadd.f32 %v15838_v36, %v2303_v48  ;;  %v17391_v51 = vpop.f32.mrb[34].mxu1  ;;  %v17808_v36 = vld [vmem:[%s23319_s4 + $0xa0] sm:$0xff]  }
 0x17a   :  { %v2306_v53 = vpop.f32.mrb[35].mxu1  ;;  %v17809_v37 = vld [vmem:[%s23319_s4 + $0x20] sm:$0xff]   ;;  %16037 = vmatpush3.bf16.msra.mxu0 %v17808_v36  ;;  %v17819_v36 = vld [vmem:[%s23319_s4 + $0x78] sm:$0xff]  }
 0x17b   :  { %v19609_v54 = vadd.f32 %v15841_v49, %v2306_v53  ;;  %16065 = vmatpush3.bf16.msra.mxu1 %v17809_v37  ;;  %v17820_v37 = vld [vmem:[%s23319_s4 + $0xb8] sm:$0xff]  }
 0x17d   :  { %v15842_v56 = vpop.f32.mrb[68].mxu0 }
 0x17e   :  { %v15843_v58 = vpop.f32.mrb[69].mxu0 }
 0x17f   :  { %v15845_v59 = vpop.f32.mrb[70].mxu0  ;;  %v15844_v3 = vadd.f32 %v15843_v58, %v15842_v56  ;;  %v17810_v56 = vld [vmem:[%s23319_s4 + $0xe8] sm:$0xff]  }
 0x180   :  { %v15846_v4 = vpop.f32.mrb[71].mxu0  ;;  %v17811_v58 = vld [vmem:[%s23319_s4 + $0x68] sm:$0xff]   ;;  %16038 = vmatprep.subr.bf16.mxu0 %v17810_v56 }
 0x181   :  { %v15847_v7 = vadd.f32 %v15846_v4, %v15845_v59  ;;  %v19617_v11 = vadd.f32 %v17390_v41, %v15844_v3  ;;  %v17394_v41 = vpop.f32.mrb[36].mxu1  ;;  %16066 = vmatprep.subr.bf16.mxu1 %v17811_v58  ;;  %16039 = vmatpush3.bf16.msra.mxu0 %v17812_v0  ;;  %v23328_v58 = vmov 0.0|0.0  }
 0x182   :  { %v2319_v49 = vpop.f32.mrb[37].mxu1  ;;  %16067 = vmatpush3.bf16.msra.mxu1 %v17813_v2  ;;  %4247 = vmatprep.mubr.bf16.mxu0 %v23328_v58 }
 0x183   :  { %v19625_v15 = vadd.f32 %v17391_v51, %v15847_v7  ;;  %v17395_v53 = vpop.f32.mrb[38].mxu1  ;;  %v17814_v7 = vld [vmem:[%s23319_s4 + $0xf0] sm:$0xff]   ;;  %16068 = vmatprep.subr.bf16.mxu1 %v17815_v12  ;;  %4392 = vmatprep.mubr.bf16.mxu1 %v23328_v58 }
 0x184   :  { %v2322_v59 = vpop.f32.mrb[39].mxu1  ;;  %16040 = vmatprep.subr.bf16.mxu0 %v17814_v7  ;;  %v17825_v7 = vld [vmem:[%s23319_s4 + $0x180] sm:$0xff]  }
 0x185   :  { %v15848_v21 = vpop.f32.mrb[72].mxu0  ;;  %16041 = vmatpush3.bf16.msra.mxu0 %v17816_v16 }
 0x186   :  { %v15849_v23 = vpop.f32.mrb[73].mxu0  ;;  %16069 = vmatpush3.bf16.msra.mxu1 %v17817_v18 }
 0x187   :  { %v15850_v32 = vadd.f32 %v15849_v23, %v15848_v21  ;;  %v15851_v33 = vpop.f32.mrb[74].mxu0  ;;  %16070 = vmatprep.subr.bf16.mxu1 %v17819_v36  ;;  %v19726_v36 = vmax.f32 %v19535_v61, 0.0  ;;  %v17828_v61 = vld [vmem:[%s23319_s4 + $0x108] sm:$0xff]  }
 0x188   :  { %v15852_v42 = vpop.f32.mrb[75].mxu0 }
 0x189   :  { %v15853_v48 = vadd.f32 %v15852_v42, %v15851_v33  ;;  %v19645_v51 = vadd.f32 %v15850_v32, %v2319_v49  ;;  %v17818_v33 = vld [vmem:[%s23319_s4 + $0xf8] sm:$0xff]   ;;  %v19693_v49 = vmax.f32 %v19526_v47, 0.0  ;;  %v17823_v47 = vld [vmem:[%s23319_s4 + $0x1c0] sm:$0xff]   ;;  %23401 = vst [vmem:[#allocation12_spill] sm:$0xff] %v19726_v36 }
 0x18a   :  { %v17821_v42 = vld [vmem:[%s23319_s4 + $0x38] sm:$0xff]   ;;  %16042 = vmatprep.subr.bf16.mxu0 %v17818_v33 }
 0x18b   :  { %v19659_v3 = vadd.f32 %v15853_v48, %v2322_v59  ;;  %16043 = vmatpush3.bf16.msra.mxu0 %v17820_v37  ;;  %v19690_v48 = vmax.f32 %v19531_v52, 0.0  ;;  %16071 = vmatpush3.bf16.msra.mxu1 %v17821_v42  ;;  %v19698_v59 = vmax.f32 %v19533_v60, 0.0  ;;  %v17822_v52 = vld [vmem:[%s23319_s4 + $0x140] sm:$0xff]  }
 0x18c   :  { %v17824_v60 = vld [vmem:[%s23319_s4 + $0x100] sm:$0xff]   ;;  %16084 = vmatprep.subr.bf16.mxu0 %v17822_v52  ;;  %16112 = vmatprep.subr.bf16.mxu1 %v17823_v47  ;;  %v17829_v47 = vld [vmem:[%s23319_s4 + $0x188] sm:$0xff]  }
 0x18d   :  { %v15854_v4 = vpop.f32.mrb[76].mxu0  ;;  %23400 = vst [vmem:[#allocation11_spill] sm:$0xff] %v19698_v59  ;;  %v974_v12 = vadd.f32 %v19690_v48, %v19693_v49  ;;  %v990_v33 = vmul.f32 %v19698_v59, %v19698_v59 }
 0x18e   :  { %v15855_v13 = vpop.f32.mrb[77].mxu0  ;;  %4248 = vmatmul.mubr.bf16.vlgmr.msra.gmra.mrb[128].mxu0 %v23328_v58  ;;  %4393 = vmatmul.mubr.bf16.vlgmr.msra.gmra.mrb[64].mxu1 %v23328_v58 }
 0x18f   :  { %v15856_v21 = vadd.f32 %v15855_v13, %v15854_v4  ;;  %v15857_v23 = vpop.f32.mrb[78].mxu0  ;;  %4255 = vmatprep.mubr.bf16.mxu0 %v23328_v58  ;;  %v989_v13 = vmul.f32 %v19690_v48, %v19690_v48  ;;  %16085 = vmatpush3.bf16.msra.mxu0 %v17824_v60  ;;  %v975_v37 = vadd.f32 %v974_v12, %v19698_v59 }
 0x190   :  { %v15858_v24 = vpop.f32.mrb[79].mxu0  ;;  %16113 = vmatpush3.bf16.msra.mxu1 %v17825_v7  ;;  %4400 = vmatprep.mubr.bf16.mxu1 %v23328_v58  ;;  %v991_v7 = vmul.f32 %v19726_v36, %v19726_v36 }
 0x191   :  { %v19673_v30 = vadd.f32 %v17394_v41, %v15856_v21  ;;  %v15859_v32 = vadd.f32 %v15858_v24, %v15857_v23  ;;  %v976_v12 = vadd.f32 %v975_v37, %v19726_v36 }
 0x193   :  { %v19687_v41 = vadd.f32 %v17395_v53, %v15859_v32  ;;  %v988_v32 = vmul.f32 %v19693_v49, %v19693_v49 }
 0x195   :  { %v15888_v56 = vpop.f32.mrb[80].mxu0 }
 0x196   :  { %v15889_v53 = vpop.f32.mrb[81].mxu0  ;;  %4256 = vmatmul.mubr.bf16.gmra.mrb[132].mxu0 %v23328_v58  ;;  %4401 = vmatmul.mubr.bf16.gmra.mrb[68].mxu1 %v23328_v58 }
 0x197   :  { %v15890_v0 = vadd.f32 %v15889_v53, %v15888_v56  ;;  %v15891_v2 = vpop.f32.mrb[82].mxu0  ;;  %v17414_v4 = vpop.f32.mrb[40].mxu1  ;;  %v17826_v56 = vld [vmem:[%s23319_s4 + $0x148] sm:$0xff]  }
 0x198   :  { %v15892_v16 = vpop.f32.mrb[83].mxu0  ;;  %v2759_v18 = vpop.f32.mrb[41].mxu1  ;;  %v17827_v53 = vld [vmem:[%s23319_s4 + $0x1c8] sm:$0xff]   ;;  %16086 = vmatprep.subr.bf16.mxu0 %v17826_v56 }
 0x199   :  { %v15893_v21 = vadd.f32 %v15892_v16, %v15891_v2  ;;  %v19719_v23 = vadd.f32 %v15890_v0, %v2759_v18  ;;  %v17415_v24 = vpop.f32.mrb[42].mxu1  ;;  %v996_v0 = vadd.f32 %v989_v13, %v988_v32  ;;  %v19745_v2 = vmax.f32 %v19537_v8, 0.0  ;;  %16114 = vmatprep.subr.bf16.mxu1 %v17827_v53  ;;  %16087 = vmatpush3.bf16.msra.mxu0 %v17828_v61  ;;  %v17831_v8 = vld [vmem:[%s23319_s4 + $0x1d0] sm:$0xff]  }
 0x19a   :  { %v2762_v42 = vpop.f32.mrb[43].mxu1  ;;  %16115 = vmatpush3.bf16.msra.mxu1 %v17829_v47  ;;  %v19768_v53 = vmax.f32 %v19539_v10, 0.0  ;;  %v17835_v10 = vld [vmem:[%s23319_s4 + $0x1d8] sm:$0xff]  }
 0x19b   :  { %v19736_v52 = vadd.f32 %v15893_v21, %v2762_v42  ;;  %v997_v16 = vadd.f32 %v996_v0, %v990_v33  ;;  %v17830_v21 = vld [vmem:[%s23319_s4 + $0x150] sm:$0xff]   ;;  %v977_v37 = vadd.f32 %v976_v12, %v19745_v2  ;;  %v992_v56 = vmul.f32 %v19745_v2, %v19745_v2  ;;  %16116 = vmatprep.subr.bf16.mxu1 %v17831_v8  ;;  %v17834_v12 = vld [vmem:[%s23319_s4 + $0x158] sm:$0xff]  }
 0x19c   :  { %v17832_v42 = vld [vmem:[%s23319_s4 + $0x110] sm:$0xff]   ;;  %16088 = vmatprep.subr.bf16.mxu0 %v17830_v21  ;;  %v993_v21 = vmul.f32 %v19768_v53, %v19768_v53  ;;  %v527_v8 = vrot.slane %v19520_v38, 4 }
 0x19d   :  { %v15894_v60 = vpop.f32.mrb[84].mxu0  ;;  %v17833_v33 = vld [vmem:[%s23319_s4 + $0x190] sm:$0xff]   ;;  %16089 = vmatpush3.bf16.msra.mxu0 %v17832_v42  ;;  %v19797_v42 = vmax.f32 %v19543_v19, 0.0  ;;  %v17841_v19 = vld [vmem:[%s23319_s4 + $0x1a0] sm:$0xff]  }
 0x19e   :  { %v15895_v18 = vpop.f32.mrb[85].mxu0  ;;  %16117 = vmatpush3.bf16.msra.mxu1 %v17833_v33  ;;  %16090 = vmatprep.subr.bf16.mxu0 %v17834_v12  ;;  %v17840_v12 = vld [vmem:[%s23319_s4 + $0x120] sm:$0xff]   ;;  %v528_v34 = vadd.f32 %v527_v8, %v19520_v38  ;;  %v17850_v38 = vld [vmem:[%s23319_s4 + $0x178] sm:$0xff]  }
 0x19f   :  { %v15896_v13 = vadd.f32 %v15895_v18, %v15894_v60  ;;  %v15897_v32 = vpop.f32.mrb[86].mxu0  ;;  %v998_v60 = vadd.f32 %v997_v16, %v991_v7  ;;  %v19773_v18 = vmax.f32 %v19541_v17, 0.0  ;;  %v17837_v7 = vld [vmem:[%s23319_s4 + $0x198] sm:$0xff]   ;;  %v978_v16 = vadd.f32 %v977_v37, %v19768_v53  ;;  %16118 = vmatprep.subr.bf16.mxu1 %v17835_v10  ;;  %23403 = vst [vmem:[#allocation14_spill] sm:$0xff] %v19797_v42  ;;  %v17838_v37 = vld [vmem:[%s23319_s4 + $0x160] sm:$0xff]  }
 0x1a0   :  { %v15898_v61 = vpop.f32.mrb[87].mxu0  ;;  %v995_v28 = vmul.f32 %v19797_v42, %v19797_v42 }
 0x1a1   :  { %v19770_v47 = vadd.f32 %v17414_v4, %v15896_v13  ;;  %v15899_v0 = vadd.f32 %v15898_v61, %v15897_v32  ;;  %23402 = vst [vmem:[#allocation13_spill] sm:$0xff] %v19773_v18  ;;  %v17836_v4 = vld [vmem:[%s23319_s4 + $0x118] sm:$0xff]   ;;  %v999_v17 = vadd.f32 %v998_v60, %v992_v56  ;;  %v979_v13 = vadd.f32 %v978_v16, %v19773_v18  ;;  %v17839_v56 = vld [vmem:[%s23319_s4 + $0x1e0] sm:$0xff]   ;;  %v17418_v60 = vpop.f32.mrb[44].mxu1 }
 0x1a2   :  { %16091 = vmatpush3.bf16.msra.mxu0 %v17836_v4  ;;  %16119 = vmatpush3.bf16.msra.mxu1 %v17837_v7  ;;  %v994_v32 = vmul.f32 %v19773_v18, %v19773_v18  ;;  %v2775_v7 = vpop.f32.mrb[45].mxu1  ;;  %v19812_v16 = vmax.f32 %v19547_v35, 0.0  ;;  %v17842_v35 = vld [vmem:[%s23319_s4 + $0x168] sm:$0xff]  }
 0x1a3   :  { %v19781_v58 = vadd.f32 %v17415_v24, %v15899_v0  ;;  %v1000_v10 = vadd.f32 %v999_v17, %v993_v21  ;;  %16092 = vmatprep.subr.bf16.mxu0 %v17838_v37  ;;  %16120 = vmatprep.subr.bf16.mxu1 %v17839_v56  ;;  %v980_v36 = vadd.f32 %v979_v13, %v19797_v42  ;;  %v19820_v17 = vmax.f32 %v19545_v31, 0.0  ;;  %v17843_v37 = vld [vmem:[%s23319_s4 + $0x1e8] sm:$0xff]   ;;  %v17849_v42 = vld [vmem:[%s23319_s4 + $0x1b0] sm:$0xff]  }
 0x1a4   :  { %23404 = vst [vmem:[#allocation15_spill] sm:$0xff] %v19812_v16  ;;  %v549_v56 = vrot.slane %v19524_v45, 4  ;;  %v17844_v31 = vld [vmem:[%s23319_s4 + $0x128] sm:$0xff]  }
 0x1a5   :  { %v15900_v24 = vpop.f32.mrb[88].mxu0  ;;  %v1001_v59 = vadd.f32 %v1000_v10, %v994_v32  ;;  %23405 = vst [vmem:[#allocation16_spill] sm:$0xff] %v19820_v17  ;;  %v19830_v32 = vmax.f32 %v19549_v43, 0.0  ;;  %v1444_v10 = vmul.f32 %v19820_v17, %v19820_v17 }
 0x1a6   :  { %v15901_v33 = vpop.f32.mrb[89].mxu0  ;;  %16093 = vmatpush3.bf16.msra.mxu0 %v17840_v12  ;;  %16121 = vmatpush3.bf16.msra.mxu1 %v17841_v19  ;;  %v1445_v12 = vmul.f32 %v19812_v16, %v19812_v16 }
 0x1a7   :  { %v15902_v61 = vadd.f32 %v15901_v33, %v15900_v24  ;;  %v15903_v0 = vpop.f32.mrb[90].mxu0  ;;  %v17419_v33 = vpop.f32.mrb[46].mxu1  ;;  %23406 = vst [vmem:[#allocation17_spill] sm:$0xff] %v19830_v32  ;;  %16094 = vmatprep.subr.bf16.mxu0 %v17842_v35  ;;  %16122 = vmatprep.subr.bf16.mxu1 %v17843_v37  ;;  %v1002_v19 = vadd.f32 %v1001_v59, %v995_v28 }
 0x1a8   :  { %v15904_v4 = vpop.f32.mrb[91].mxu0  ;;  %v2778_v21 = vpop.f32.mrb[47].mxu1  ;;  %v1446_v37 = vmul.f32 %v19830_v32, %v19830_v32 }
 0x1a9   :  { %v15905_v18 = vadd.f32 %v15904_v4, %v15903_v0  ;;  %v19814_v24 = vadd.f32 %v15902_v61, %v2775_v7  ;;  %v17845_v61 = vld [vmem:[%s23319_s4 + $0x1a8] sm:$0xff]   ;;  %v1430_v0 = vadd.f32 %v19812_v16, %v19820_v17  ;;  %v17846_v7 = vld [vmem:[%s23319_s4 + $0x170] sm:$0xff]  }
 0x1aa   :  { %16095 = vmatpush3.bf16.msra.mxu0 %v17844_v31  ;;  %16123 = vmatpush3.bf16.msra.mxu1 %v17845_v61  ;;  %v19856_v31 = vmax.f32 %v19551_v44, 0.0  ;;  %v17848_v61 = vld [vmem:[%s23319_s4 + $0x130] sm:$0xff]  }
 0x1ab   :  { %v19832_v13 = vadd.f32 %v15905_v18, %v2778_v21  ;;  %v981_v18 = vrot.slane %v980_v36, 4  ;;  %v17847_v21 = vld [vmem:[%s23319_s4 + $0x1f0] sm:$0xff]   ;;  %v1431_v35 = vadd.f32 %v1430_v0, %v19830_v32  ;;  %v19866_v0 = vadd.f32 %v549_v56, %v19524_v45  ;;  %16096 = vmatprep.subr.bf16.mxu0 %v17846_v7  ;;  %v17851_v45 = vld [vmem:[%s23319_s4 + $0x1f8] sm:$0xff]  }
 0x1ac   :  { %23407 = vst [vmem:[#allocation18_spill] sm:$0xff] %v19856_v31  ;;  %16124 = vmatprep.subr.bf16.mxu1 %v17847_v21  ;;  %v1003_v32 = vrot.slane %v1002_v19, 4 }
 0x1ad   :  { %v15906_v43 = vpop.f32.mrb[92].mxu0  ;;  %v1432_v56 = vadd.f32 %v1431_v35, %v19856_v31  ;;  %v551_v7 = vrot.slane %v19866_v0, 2  ;;  %v982_v21 = vadd.f32 %v981_v18, %v980_v36 }
 0x1ae   :  { %v15907_v4 = vpop.f32.mrb[93].mxu0  ;;  %16097 = vmatpush3.bf16.msra.mxu0 %v17848_v61  ;;  %16125 = vmatpush3.bf16.msra.mxu1 %v17849_v42  ;;  %v1004_v35 = vadd.f32 %v1003_v32, %v1002_v19  ;;  %v19915_v32 = vmax.f32 %v19561_v22, 0.0  ;;  %v19918_v19 = vmax.f32 %v19565_v39, 0.0 }
 0x1af   :  { %v15908_v28 = vadd.f32 %v15907_v4, %v15906_v43  ;;  %v15909_v59 = vpop.f32.mrb[94].mxu0  ;;  %v1452_v43 = vadd.f32 %v1445_v12, %v1444_v10  ;;  %v17853_v12 = vld [vmem:[%s23319_s4 + $0x1b8] sm:$0xff]   ;;  %v529_v10 = vrot.slane %v528_v34, 2  ;;  %16098 = vmatprep.subr.bf16.mxu0 %v17850_v38  ;;  %16126 = vmatprep.subr.bf16.mxu1 %v17851_v45 }
 0x1b0   :  { %v15910_v44 = vpop.f32.mrb[95].mxu0 }
 0x1b1   :  { %v19871_v4 = vadd.f32 %v17418_v60, %v15908_v28  ;;  %v15911_v55 = vadd.f32 %v15910_v44, %v15909_v59  ;;  %v1453_v8 = vadd.f32 %v1452_v43, %v1446_v37  ;;  %v1447_v60 = vmul.f32 %v19856_v31, %v19856_v31 }
 0x1b2   :  { %v1433_v28 = vadd.f32 %v1432_v56, %v19869_v46  ;;  %v1448_v37 = vmul.f32 %v19869_v46, %v19869_v46  ;;  %v19895_v59 = vmax.f32 %v19555_v63, 0.0  ;;  %16099 = vmatpush3.bf16.msra.mxu0 %v17852_v62  ;;  %16127 = vmatpush3.bf16.msra.mxu1 %v17853_v12  ;;  %v19901_v44 = vmax.f32 %v19563_v25, 0.0  ;;  %v17854_v25 = vld [vmem:[%s23319_s4 + $0x240] sm:$0xff]  }
 0x1b3   :  { %v19885_v42 = vadd.f32 %v17419_v33, %v15911_v55  ;;  %v19898_v55 = vmax.f32 %v19557_v5, 0.0  ;;  %v1454_v61 = vadd.f32 %v1453_v8, %v1447_v60  ;;  %v19903_v18 = vadd.f32 %v529_v10, %v528_v34  ;;  %v17855_v34 = vld [vmem:[%s23319_s4 + $0x2c0] sm:$0xff]   ;;  %16140 = vmatprep.subr.bf16.mxu0 %v17854_v25 }
 0x1b4   :  { %23409 = vst [vmem:[#allocation20_spill] sm:$0xff] %v19895_v59  ;;  %v983_v56 = vrot.slane %v982_v21, 2  ;;  %v1434_v62 = vadd.f32 %v1433_v28, %v19895_v59  ;;  %v1449_v5 = vmul.f32 %v19895_v59, %v19895_v59  ;;  %v1005_v28 = vrot.slane %v1004_v35, 2  ;;  %16168 = vmatprep.subr.bf16.mxu1 %v17855_v34 }
 0x1b5   :  { %23410 = vst [vmem:[#allocation21_spill] sm:$0xff] %v19898_v55  ;;  %v15940_v33 = vpop.f32.mrb[96].mxu0  ;;  %v1455_v63 = vadd.f32 %v1454_v61, %v1448_v37  ;;  %v1450_v61 = vmul.f32 %v19898_v55, %v19898_v55  ;;  %v1901_v22 = vmul.f32 %v19901_v44, %v19901_v44  ;;  %v20107_v31 = vmax.f32 %v19871_v4, 0.0 }
 0x1b6   :  { %v15941_v36 = vpop.f32.mrb[97].mxu0  ;;  %v1435_v37 = vadd.f32 %v1434_v62, %v19898_v55  ;;  %v1900_v62 = vmul.f32 %v19915_v32, %v19915_v32  ;;  %v19943_v34 = vadd.f32 %v983_v56, %v982_v21  ;;  %v19956_v21 = vmax.f32 %v19609_v54, 0.0 }
 0x1b7   :  { %v15942_v43 = vadd.f32 %v15941_v36, %v15940_v33  ;;  %v15943_v38 = vpop.f32.mrb[98].mxu0  ;;  %v17438_v45 = vpop.f32.mrb[48].mxu1  ;;  %v19926_v36 = vmax.f32 %v19559_v9, 0.0  ;;  %v19941_v9 = vadd.f32 %v551_v7, %v19866_v0  ;;  %23431 = vst [vmem:[#allocation41_spill] sm:$0xff] %v20107_v31 }
 0x1b8   :  { %v15944_v12 = vpop.f32.mrb[99].mxu0  ;;  %v3215_v46 = vpop.f32.mrb[49].mxu1  ;;  %23412 = vst [vmem:[#allocation23_spill] sm:$0xff] %v19956_v21 }
 0x1b9   :  { %v15945_v8 = vadd.f32 %v15944_v12, %v15943_v38  ;;  %v19920_v60 = vadd.f32 %v15942_v43, %v3215_v46  ;;  %v17439_v10 = vpop.f32.mrb[50].mxu1  ;;  %23411 = vst [vmem:[#allocation22_spill] sm:$0xff] %v19926_v36  ;;  %v19933_v46 = vmax.f32 %v19567_v40, 0.0  ;;  %v1456_v38 = vadd.f32 %v1455_v63, %v1449_v5 }
 0x1ba   :  { %v3218_v33 = vpop.f32.mrb[51].mxu1  ;;  %v1902_v12 = vmul.f32 %v19918_v19, %v19918_v19  ;;  %v1886_v40 = vadd.f32 %v19901_v44, %v19915_v32  ;;  %v1436_v63 = vadd.f32 %v1435_v37, %v19926_v36  ;;  %v1908_v5 = vadd.f32 %v1901_v22, %v1900_v62 }
 0x1bb   :  { %v19930_v39 = vadd.f32 %v15945_v8, %v3218_v33  ;;  %v19945_v8 = vadd.f32 %v1005_v28, %v1004_v35  ;;  %v1457_v43 = vadd.f32 %v1456_v38, %v1450_v61  ;;  %v1451_v26 = vmul.f32 %v19926_v36, %v19926_v36 }
 0x1bc   :  { %v1887_v0 = vadd.f32 %v1886_v40, %v19918_v19  ;;  %v1903_v7 = vmul.f32 %v19933_v46, %v19933_v46  ;;  %v1909_v56 = vadd.f32 %v1908_v5, %v1902_v12  ;;  %v19959_v28 = vmax.f32 %v19569_v57, 0.0 }
 0x1bd   :  { %v15946_v25 = vpop.f32.mrb[100].mxu0  ;;  %v19964_v22 = vmax.f32 %v19607_v50, 0.0  ;;  %v19967_v38 = vmax.f32 %v19617_v11, 0.0  ;;  %v1437_v12 = vrot.slane %v1436_v63, 4  ;;  %v19974_v57 = vadd.f32 %v1457_v43, %v1451_v26 }
 0x1be   :  { %v15947_v33 = vpop.f32.mrb[101].mxu0  ;;  %23413 = vst [vmem:[#allocation24_spill] sm:$0xff] %v19959_v28  ;;  %v2357_v50 = vmul.f32 %v19956_v21, %v19956_v21  ;;  %v1904_v11 = vmul.f32 %v19959_v28, %v19959_v28 }
 0x1bf   :  { %v15948_v55 = vadd.f32 %v15947_v33, %v15946_v25  ;;  %v15949_v17 = vpop.f32.mrb[102].mxu0  ;;  %23414 = vst [vmem:[#allocation25_spill] sm:$0xff] %v19964_v22  ;;  %23415 = vst [vmem:[#allocation26_spill] sm:$0xff] %v19967_v38  ;;  %v2342_v33 = vadd.f32 %v19956_v21, %v19964_v22  ;;  %v2356_v26 = vmul.f32 %v19964_v22, %v19964_v22  ;;  %v17442_v54 = vpop.f32.mrb[52].mxu1 }
 0x1c0   :  { %v15950_v35 = vpop.f32.mrb[103].mxu0  ;;  %v2358_v43 = vmul.f32 %v19967_v38, %v19967_v38  ;;  %v20001_v25 = vadd.f32 %v1437_v12, %v1436_v63  ;;  %v3231_v21 = vpop.f32.mrb[53].mxu1 }
 0x1c1   :  { %v19961_v37 = vadd.f32 %v17438_v45, %v15948_v55  ;;  %v15951_v61 = vadd.f32 %v15950_v35, %v15949_v17  ;;  %v1888_v55 = vadd.f32 %v1887_v0, %v19933_v46  ;;  %v1910_v17 = vadd.f32 %v1909_v56, %v1903_v7  ;;  %v17443_v59 = vpop.f32.mrb[54].mxu1 }
 0x1c2   :  { %v19982_v45 = vmax.f32 %v19577_v1, 0.0  ;;  %v19992_v0 = vmax.f32 %v19625_v15, 0.0  ;;  %v19995_v7 = vmax.f32 %v19594_v20, 0.0  ;;  %v2343_v1 = vadd.f32 %v2342_v33, %v19967_v38  ;;  %v3234_v63 = vpop.f32.mrb[55].mxu1 }
 0x1c3   :  { %v19972_v40 = vadd.f32 %v17439_v10, %v15951_v61  ;;  %v1889_v5 = vadd.f32 %v1888_v55, %v19959_v28  ;;  %v19999_v56 = vmax.f32 %v19645_v51, 0.0  ;;  %v2364_v62 = vadd.f32 %v2357_v50, %v2356_v26 }
 0x1c4   :  { %23416 = vst [vmem:[#allocation27_spill] sm:$0xff] %v19992_v0  ;;  %23417 = vst [vmem:[#allocation28_spill] sm:$0xff] %v19995_v7  ;;  %v1911_v6 = vadd.f32 %v1910_v17, %v1904_v11  ;;  %v1905_v15 = vmul.f32 %v19982_v45, %v19982_v45  ;;  %v1906_v12 = vmul.f32 %v19995_v7, %v19995_v7  ;;  %v20013_v11 = vmax.f32 %v19736_v52, 0.0 }
 0x1c5   :  { %v15952_v10 = vpop.f32.mrb[104].mxu0  ;;  %23418 = vst [vmem:[#allocation29_spill] sm:$0xff] %v19999_v56  ;;  %v1890_v51 = vadd.f32 %v1889_v5, %v19982_v45  ;;  %v2365_v38 = vadd.f32 %v2364_v62, %v2358_v43  ;;  %v2344_v50 = vadd.f32 %v2343_v1, %v19992_v0  ;;  %v20019_v17 = vmax.f32 %v19602_v27, 0.0 }
 0x1c6   :  { %v15953_v35 = vpop.f32.mrb[105].mxu0  ;;  %v2360_v62 = vmul.f32 %v19999_v56, %v19999_v56  ;;  %v20024_v5 = vmax.f32 %v19659_v3, 0.0  ;;  %v1912_v26 = vadd.f32 %v1911_v6, %v1905_v15  ;;  %v20031_v52 = vmax.f32 %v19770_v47, 0.0 }
 0x1c7   :  { %v15954_v61 = vadd.f32 %v15953_v35, %v15952_v10  ;;  %v15955_v55 = vpop.f32.mrb[106].mxu0  ;;  %v2359_v10 = vmul.f32 %v19992_v0, %v19992_v0  ;;  %v2345_v43 = vadd.f32 %v2344_v50, %v19999_v56  ;;  %v20028_v35 = vmax.f32 %v19719_v23, 0.0 }
 0x1c8   :  { %v15956_v22 = vpop.f32.mrb[107].mxu0  ;;  %23419 = vst [vmem:[#allocation30_spill] sm:$0xff] %v20024_v5  ;;  %23421 = vst [vmem:[#allocation32_spill] sm:$0xff] %v20031_v52  ;;  %v20039_v3 = vadd.f32 %v1912_v26, %v1906_v12  ;;  %v20042_v6 = vmax.f32 %v19673_v30, 0.0  ;;  %v2813_v23 = vmul.f32 %v20013_v11, %v20013_v11  ;;  %v2814_v30 = vmul.f32 %v20031_v52, %v20031_v52 }
 0x1c9   :  { %v15957_v36 = vadd.f32 %v15956_v22, %v15955_v55  ;;  %v3232_v20 = vadd.f32 %v15954_v61, %v3231_v21  ;;  %v1891_v21 = vadd.f32 %v1890_v51, %v19995_v7  ;;  %23420 = vst [vmem:[#allocation31_spill] sm:$0xff] %v20028_v35  ;;  %v2366_v1 = vadd.f32 %v2365_v38, %v2359_v10 }
 0x1ca   :  { %v23422_v61 = vrot.slane %v19903_v18, 1  ;;  %23423 = vst [vmem:[#allocation33_spill] sm:$0xff] %v20042_v6  ;;  %v20050_v38 = vmax.f32 %v19930_v39, 0.0  ;;  %v2812_v12 = vmul.f32 %v20028_v35, %v20028_v35  ;;  %v20058_v50 = vmax.f32 %v19781_v58, 0.0 }
 0x1cb   :  { %v20015_v22 = vadd.f32 %v15957_v36, %v3234_v63  ;;  %v20047_v47 = vadd.f32 %v1891_v21, %v20019_v17  ;;  %v2367_v51 = vadd.f32 %v2366_v1, %v2360_v62  ;;  %v20061_v21 = vmax.f32 %v19920_v60, 0.0 }
 0x1cc   :  { %v20037_v55 = vadd.f32 %v23422_v61, %v19903_v18  ;;  %23424 = vst [vmem:[#allocation34_spill] sm:$0xff] %v20050_v38  ;;  %v2346_v18 = vadd.f32 %v2345_v43, %v20024_v5  ;;  %v20064_v39 = vmax.f32 %v19961_v37, 0.0  ;;  %v2361_v43 = vmul.f32 %v20024_v5, %v20024_v5 }
 0x1cd   :  { %v15958_v27 = vpop.f32.mrb[108].mxu0  ;;  %23425 = vst [vmem:[#allocation35_spill] sm:$0xff] %v20061_v21  ;;  %v2820_v61 = vadd.f32 %v2813_v23, %v2812_v12  ;;  %v2362_v58 = vmul.f32 %v20042_v6, %v20042_v6  ;;  %v20076_v60 = vmax.f32 %v19687_v41, 0.0  ;;  %v3269_v37 = vmul.f32 %v20050_v38, %v20050_v38 }
 0x1ce   :  { %v15959_v15 = vpop.f32.mrb[109].mxu0  ;;  %23426 = vst [vmem:[#allocation36_spill] sm:$0xff] %v20064_v39  ;;  %v2815_v23 = vmul.f32 %v20058_v50, %v20058_v50  ;;  %v20088_v12 = vmax.f32 %v19832_v13, 0.0  ;;  %v3268_v41 = vmul.f32 %v20061_v21, %v20061_v21  ;;  %v20100_v36 = vmax.f32 %v3232_v20, 0.0 }
 0x1cf   :  { %v15960_v10 = vadd.f32 %v15959_v15, %v15958_v27  ;;  %v15961_v63 = vpop.f32.mrb[110].mxu0  ;;  %v2798_v27 = vadd.f32 %v20013_v11, %v20028_v35  ;;  %v20071_v15 = vmax.f32 %v19814_v24, 0.0  ;;  %23428 = vst [vmem:[#allocation38_spill] sm:$0xff] %v20076_v60  ;;  %v3254_v24 = vadd.f32 %v20050_v38, %v20061_v21 }
 0x1d0   :  { %v15962_v26 = vpop.f32.mrb[111].mxu0  ;;  %23430 = vst [vmem:[#allocation40_spill] sm:$0xff] %v20100_v36  ;;  %v1907_v33 = vmul.f32 %v20019_v17, %v20019_v17  ;;  %v2347_v56 = vadd.f32 %v2346_v18, %v20042_v6  ;;  %v3276_v21 = vadd.f32 %v3269_v37, %v3268_v41  ;;  %v2363_v4 = vmul.f32 %v20076_v60, %v20076_v60 }
 0x1d1   :  { %v3240_v62 = vadd.f32 %v17442_v54, %v15960_v10  ;;  %v15963_v1 = vadd.f32 %v15962_v26, %v15961_v63  ;;  %23427 = vst [vmem:[#allocation37_spill] sm:$0xff] %v20071_v15  ;;  %v2799_v10 = vadd.f32 %v2798_v27, %v20031_v52  ;;  %v2821_v63 = vadd.f32 %v2820_v61, %v2814_v30 }
 0x1d2   :  { %v3270_v26 = vmul.f32 %v20064_v39, %v20064_v39  ;;  %v2368_v30 = vadd.f32 %v2367_v51, %v2361_v43  ;;  %v2816_v27 = vmul.f32 %v20071_v15, %v20071_v15  ;;  %v3255_v61 = vadd.f32 %v3254_v24, %v20064_v39 }
 0x1d3   :  { %v20080_v54 = vadd.f32 %v17443_v59, %v15963_v1  ;;  %v20095_v59 = vmax.f32 %v19972_v40, 0.0  ;;  %v2800_v51 = vadd.f32 %v2799_v10, %v20058_v50  ;;  %v2822_v43 = vadd.f32 %v2821_v63, %v2815_v23 }
 0x1d4   :  { %v2369_v0 = vadd.f32 %v2368_v30, %v2362_v58  ;;  %v3277_v39 = vadd.f32 %v3276_v21, %v3270_v26  ;;  %v2817_v58 = vmul.f32 %v20088_v12, %v20088_v12  ;;  %v3272_v21 = vmul.f32 %v20100_v36, %v20100_v36 }
 0x1d5   :  { %23429 = vst [vmem:[#allocation39_spill] sm:$0xff] %v20095_v59  ;;  %v15992_v1 = vpop.f32.mrb[112].mxu0  ;;  %v3271_v16 = vmul.f32 %v20095_v59, %v20095_v59  ;;  %v2801_v37 = vadd.f32 %v2800_v51, %v20071_v15  ;;  %v2823_v41 = vadd.f32 %v2822_v43, %v2816_v27  ;;  %v3256_v10 = vadd.f32 %v3255_v61, %v20095_v59 }
 0x1d6   :  { %v15993_v13 = vpop.f32.mrb[113].mxu0  ;;  %v20120_v23 = vmax.f32 %v20015_v22, 0.0  ;;  %v2818_v30 = vmul.f32 %v20107_v31, %v20107_v31  ;;  %v1914_v61 = vadd.f32 %v20039_v3, %v1907_v33  ;;  %v20135_v51 = vmax.f32 %v3240_v62, 0.0 }
 0x1d7   :  { %v15994_v38 = vadd.f32 %v15993_v13, %v15992_v1  ;;  %v15995_v5 = vpop.f32.mrb[114].mxu0  ;;  %v17462_v40 = vpop.f32.mrb[56].mxu1  ;;  %v1893_v1 = vrot.slane %v20047_v47, 4  ;;  %v3257_v27 = vadd.f32 %v3256_v10, %v20100_v36  ;;  %v20133_v13 = vmax.f32 %v19885_v42, 0.0 }
 0x1d8   :  { %v15996_v24 = vpop.f32.mrb[115].mxu0  ;;  %v3671_v20 = vpop.f32.mrb[57].mxu1  ;;  %23432 = vst [vmem:[#allocation42_spill] sm:$0xff] %v20120_v23  ;;  %v3278_v22 = vadd.f32 %v3277_v39, %v3271_v16  ;;  %23434 = vst [vmem:[#allocation43_spill] sm:$0xff] %v20135_v51  ;;  %v2348_v43 = vadd.f32 %v2347_v56, %v20076_v60  ;;  %v3273_v33 = vmul.f32 %v20120_v23, %v20120_v23 }
 0x1d9   :  { %v15997_v29 = vadd.f32 %v15996_v24, %v15995_v5  ;;  %v3672_v52 = vadd.f32 %v15994_v38, %v3671_v20  ;;  %v17463_v18 = vpop.f32.mrb[58].mxu1  ;;  %v23433_v38 = vrot.slane %v19974_v57, 4  ;;  %v2824_v24 = vadd.f32 %v2823_v41, %v2817_v58 }
 0x1da   :  { %v3674_v63 = vpop.f32.mrb[59].mxu1  ;;  %v3279_v6 = vadd.f32 %v3278_v22, %v3272_v21  ;;  %v3258_v56 = vadd.f32 %v3257_v27, %v20120_v23  ;;  %v3274_v10 = vmul.f32 %v20135_v51, %v20135_v51 }
 0x1db   :  { %v3675_v5 = vadd.f32 %v15997_v29, %v3674_v63  ;;  %v20125_v26 = vadd.f32 %v23433_v38, %v19974_v57  ;;  %v2802_v57 = vadd.f32 %v2801_v37, %v20088_v12  ;;  %v2370_v38 = vadd.f32 %v2369_v0, %v2363_v4 }
 0x1dc   :  { %v20143_v3 = vmax.f32 %v3672_v52, 0.0  ;;  %v2825_v62 = vadd.f32 %v2824_v24, %v2818_v30  ;;  %v2819_v0 = vmul.f32 %v20133_v13, %v20133_v13  ;;  %v20154_v52 = vmax.f32 %v20080_v54, 0.0 }
 0x1dd   :  { %v15998_v29 = vpop.f32.mrb[116].mxu0  ;;  %v20139_v20 = vmax.f32 %v3675_v5, 0.0  ;;  %v2803_v39 = vadd.f32 %v2802_v57, %v20107_v31  ;;  %v1915_v5 = vrot.slane %v1914_v61, 4  ;;  %v3259_v30 = vadd.f32 %v3258_v56, %v20135_v51 }
 0x1de   :  { %v15999_v63 = vpop.f32.mrb[117].mxu0  ;;  %23435 = vst [vmem:[#allocation44_spill] sm:$0xff] %v20143_v3  ;;  %23436 = vst [vmem:[#allocation45_spill] sm:$0xff] %v20154_v52  ;;  %v2349_v57 = vrot.slane %v2348_v43, 4  ;;  %v2371_v24 = vrot.slane %v2370_v38, 4  ;;  %v3724_v54 = vmul.f32 %v20143_v3, %v20143_v3  ;;  %v2826_v56 = vadd.f32 %v2825_v62, %v2819_v0 }
 0x1df   :  { %v16001_v42 = vpop.f32.mrb[118].mxu0  ;;  %v20145_v16 = vpop.f32.mrb[60].mxu1  ;;  %v16000_v37 = vadd.f32 %v15999_v63, %v15998_v29  ;;  %v3725_v27 = vmul.f32 %v20139_v20, %v20139_v20  ;;  %v3280_v63 = vadd.f32 %v3279_v6, %v3273_v33  ;;  %v2804_v23 = vadd.f32 %v2803_v39, %v20133_v13 }
 0x1e0   :  { %v16002_v41 = vpop.f32.mrb[119].mxu0  ;;  %v3687_v58 = vpop.f32.mrb[61].mxu1  ;;  %v3260_v6 = vadd.f32 %v3259_v30, %v20154_v52  ;;  %v1916_v60 = vadd.f32 %v1915_v5, %v1914_v61  ;;  %v2372_v15 = vadd.f32 %v2371_v24, %v2370_v38  ;;  %v2827_v35 = vrot.slane %v2826_v56, 4 }
 0x1e1   :  { %v16003_v4 = vadd.f32 %v16002_v41, %v16001_v42  ;;  %v20156_v21 = vpop.f32.mrb[62].mxu1  ;;  %v3680_v22 = vadd.f32 %v17462_v40, %v16000_v37  ;;  %v3710_v42 = vadd.f32 %v20139_v20, %v20143_v3  ;;  %v3281_v51 = vadd.f32 %v3280_v63, %v3274_v10 }
 0x1e2   :  { %v3690_v29 = vpop.f32.mrb[63].mxu1  ;;  %v3275_v40 = vmul.f32 %v20154_v52, %v20154_v52  ;;  %v2805_v63 = vrot.slane %v2804_v23, 4  ;;  %v23437_v61 = vrot.slane %v19941_v9, 1 }
 0x1e3   :  { %v3683_v36 = vadd.f32 %v17463_v18, %v16003_v4  ;;  %v20166_v41 = vmax.f32 %v3680_v22, 0.0  ;;  %v3732_v18 = vadd.f32 %v3725_v27, %v3724_v54  ;;  %v1894_v22 = vadd.f32 %v1893_v1, %v20047_v47 }
 0x1e4   :  { %v1461_v27 = vrot.slane %v20125_v26, 2  ;;  %v3282_v54 = vadd.f32 %v3281_v51, %v3275_v40  ;;  %v3261_v47 = vrot.slane %v3260_v6, 4  ;;  %v2373_v40 = vrot.slane %v2372_v15, 2 }
 0x1e5   :  { %v20170_v37 = vmax.f32 %v3683_v36, 0.0  ;;  %v16004_v59 = vpop.f32.mrb[120].mxu0  ;;  %v3711_v33 = vadd.f32 %v3710_v42, %v20166_v41  ;;  %v3726_v39 = vmul.f32 %v20166_v41, %v20166_v41  ;;  %v2350_v36 = vadd.f32 %v2349_v57, %v2348_v43 }
 0x1e6   :  { %v16005_v4 = vpop.f32.mrb[121].mxu0  ;;  %v1895_v5 = vrot.slane %v1894_v22, 2 }
 0x1e7   :  { %v3727_v62 = vmul.f32 %v20170_v37, %v20170_v37  ;;  %v16006_v0 = vadd.f32 %v16005_v4, %v16004_v59  ;;  %v16007_v10 = vpop.f32.mrb[122].mxu0  ;;  %v3733_v3 = vadd.f32 %v3732_v18, %v3726_v39  ;;  %v3712_v30 = vadd.f32 %v3711_v33, %v20170_v37 }
 0x1e8   :  { %v16008_v31 = vpop.f32.mrb[123].mxu0  ;;  %v554_v59 = vadd.f32 %v23437_v61, %v19941_v9  ;;  %v23438_v18 = vrot.slane %v19943_v34, 1  ;;  %v1917_v39 = vrot.slane %v1916_v60, 2  ;;  %v2351_v51 = vrot.slane %v2350_v36, 2 }
 0x1e9   :  { %v16009_v42 = vadd.f32 %v16008_v31, %v16007_v10  ;;  %v3688_v52 = vadd.f32 %v16006_v0, %v3687_v58  ;;  %v3734_v1 = vadd.f32 %v3733_v3, %v3727_v62  ;;  %v2806_v31 = vadd.f32 %v2805_v63, %v2804_v23 }
 0x1ea   :  { %v986_v33 = vadd.f32 %v23438_v18, %v19943_v34  ;;  %v3283_v58 = vrot.slane %v3282_v54, 4  ;;  %v2828_v4 = vadd.f32 %v2827_v35, %v2826_v56  ;;  %v3262_v62 = vadd.f32 %v3261_v47, %v3260_v6 }
 0x1eb   :  { %v20184_v43 = vmax.f32 %v3688_v52, 0.0  ;;  %v3691_v57 = vadd.f32 %v16009_v42, %v3690_v29  ;;  %v23439_v52 = vrot.slane %v20001_v25, 2  ;;  %v23440_v42 = vrot.slane %v19945_v8, 1 }
 0x1ec   :  { %v1896_v18 = vadd.f32 %v1895_v5, %v1894_v22  ;;  %v3284_v35 = vadd.f32 %v3283_v58, %v3282_v54  ;;  %v2829_v7 = vrot.slane %v2828_v4, 2 }
 0x1ed   :  { %v3713_v38 = vadd.f32 %v3712_v30, %v20184_v43  ;;  %v3728_v3 = vmul.f32 %v20184_v43, %v20184_v43  ;;  %v20192_v24 = vmax.f32 %v3691_v57, 0.0  ;;  %v16010_v9 = vpop.f32.mrb[124].mxu0  ;;  %v1440_v29 = vadd.f32 %v23439_v52, %v20001_v25 }
 0x1ee   :  { %v16011_v34 = vpop.f32.mrb[125].mxu0  ;;  %v1008_v61 = vadd.f32 %v23440_v42, %v19945_v8  ;;  %v1462_v57 = vadd.f32 %v1461_v27, %v20125_v26  ;;  %v2807_v25 = vrot.slane %v2806_v31, 2  ;;  %v1897_v22 = vrot.slane %v1896_v18, 1 }
 0x1ef   :  { %v3735_v0 = vadd.f32 %v3734_v1, %v3728_v3  ;;  %v3714_v23 = vadd.f32 %v3713_v38, %v20192_v24  ;;  %v3729_v10 = vmul.f32 %v20192_v24, %v20192_v24  ;;  %v16012_v63 = vadd.f32 %v16011_v34, %v16010_v9  ;;  %v16013_v30 = vpop.f32.mrb[126].mxu0 }
 0x1f0   :  { %v16014_v52 = vpop.f32.mrb[127].mxu0  ;;  %v1441_v1 = vrot.slane %v1440_v29, 1  ;;  %v1918_v38 = vadd.f32 %v1917_v39, %v1916_v60  ;;  %v2352_v3 = vadd.f32 %v2351_v51, %v2350_v36  ;;  %v987_v9 = vadd.f32 %v986_v33, %v20037_v55 }
 0x1f1   :  { %v3736_v56 = vadd.f32 %v3735_v0, %v3729_v10  ;;  %v3696_v6 = vadd.f32 %v20145_v16, %v16012_v63  ;;  %v16015_v47 = vadd.f32 %v16014_v52, %v16013_v30  ;;  %v3263_v34 = vrot.slane %v3262_v62, 2 }
 0x1f2   :  { %v1463_v26 = vrot.slane %v1462_v57, 1  ;;  %v2374_v27 = vadd.f32 %v2373_v40, %v2372_v15  ;;  %v2808_v5 = vadd.f32 %v2807_v25, %v2806_v31  ;;  %v3285_v54 = vrot.slane %v3284_v35, 2 }
 0x1f3   :  { %v20206_v28 = vmax.f32 %v3696_v6, 0.0  ;;  %v3699_v8 = vadd.f32 %v20156_v21, %v16015_v47  ;;  %v1442_v36 = vadd.f32 %v1441_v1, %v1440_v29  ;;  %v1919_v39 = vrot.slane %v1918_v38, 1 }
 0x1f4   :  { %v2353_v55 = vrot.slane %v2352_v3, 1  ;;  %v2830_v33 = vadd.f32 %v2829_v7, %v2828_v4  ;;  %v3264_v51 = vadd.f32 %v3263_v34, %v3262_v62  ;;  %v1009_v31 = vadd.f32 %v1008_v61, %v554_v59 }
 0x1f5   :  { %v3715_v58 = vadd.f32 %v3714_v23, %v20206_v28  ;;  %v3730_v16 = vmul.f32 %v20206_v28, %v20206_v28  ;;  %v20212_v60 = vmax.f32 %v3699_v8, 0.0  ;;  %v1464_v40 = vadd.f32 %v1463_v26, %v1462_v57 }
 0x1f6   :  { %v1898_v10 = vadd.f32 %v1897_v22, %v1896_v18  ;;  %v2375_v23 = vrot.slane %v2374_v27, 1  ;;  %v2809_v63 = vrot.slane %v2808_v5, 1  ;;  %v3286_v30 = vadd.f32 %v3285_v54, %v3284_v35 }
 0x1f7   :  { %v3737_v0 = vadd.f32 %v3736_v56, %v3730_v16  ;;  %v3716_v21 = vadd.f32 %v3715_v58, %v20212_v60  ;;  %v3731_v15 = vmul.f32 %v20212_v60, %v20212_v60  ;;  %v1443_v52 = vadd.f32 %v1442_v36, %v987_v9 }
 0x1f8   :  { %v1920_v29 = vadd.f32 %v1919_v39, %v1918_v38  ;;  %v2354_v6 = vadd.f32 %v2353_v55, %v2352_v3  ;;  %v2831_v47 = vrot.slane %v2830_v33, 1  ;;  %v3265_v7 = vrot.slane %v3264_v51, 1 }
 0x1f9   :  { %v3717_v42 = vrot.slane %v3716_v21, 4  ;;  %v3738_v25 = vadd.f32 %v3737_v0, %v3731_v15  ;;  %v1465_v56 = vadd.f32 %v1464_v40, %v1009_v31  ;;  %v1899_v1 = vadd.f32 %v1898_v10, %v1443_v52 }
 0x1fa   :  { %v2376_v34 = vadd.f32 %v2375_v23, %v2374_v27  ;;  %v2810_v8 = vadd.f32 %v2809_v63, %v2808_v5  ;;  %v3287_v58 = vrot.slane %v3286_v30, 1  ;;  %v2832_v26 = vadd.f32 %v2831_v47, %v2830_v33  ;;  %v3765_v47 = vld [vmem:[%s23321_s3] sm:$0x1] }
 0x1fb   :  { %v3718_v4 = vadd.f32 %v3717_v42, %v3716_v21  ;;  %v3739_v62 = vrot.slane %v3738_v25, 4  ;;  %v1921_v57 = vadd.f32 %v1920_v29, %v1465_v56  ;;  %v2355_v18 = vadd.f32 %v2354_v6, %v1899_v1 }
 0x1fc   :  { %v3266_v35 = vadd.f32 %v3265_v7, %v3264_v51  ;;  %v3288_v3 = vadd.f32 %v3287_v58, %v3286_v30  ;;  %v3785_v42 = vlaneseq  ;;  %v3761_v30 = vld [vmem:[%s23320_s2] sm:$0x1] }
 0x1fd   :  { %v3719_v59 = vrot.slane %v3718_v4, 2  ;;  %v3740_v61 = vadd.f32 %v3739_v62, %v3738_v25  ;;  %v2377_v9 = vadd.f32 %v2376_v34, %v1921_v57  ;;  %v2811_v38 = vadd.f32 %v2810_v8, %v2355_v18 }
 0x1fe   :  { %v3786_v25 = vshrl.u32 %v3785_v42, 7 }
 0x1ff   :  { %v3720_v22 = vadd.f32 %v3719_v59, %v3718_v4  ;;  %v3741_v54 = vrot.slane %v3740_v61, 2  ;;  %v2833_v39 = vadd.f32 %v2832_v26, %v2377_v9  ;;  %v3267_v55 = vadd.f32 %v3266_v35, %v2811_v38  ;;  %v23450_v9 = vld [vmem:[#allocation44_spill] sm:$0xff] }
 0x200   :  { %v20220_v52 = vsub.s32 0, %v3786_v25  ;;  %v23460_v25 = vld [vmem:[#allocation38_spill] sm:$0xff] }
 0x201   :  { %v3721_v16 = vrot.slane %v3720_v22, 1  ;;  %v3742_v36 = vadd.f32 %v3741_v54, %v3740_v61  ;;  %v3289_v27 = vadd.f32 %v3288_v3, %v2833_v39  ;;  %v23451_v3 = vld [vmem:[#allocation5_spill] sm:$0xff] }
 0x202   :  { %23441 = vst [vmem:[#allocation46_spill] sm:$0xff] %v20220_v52 }
 0x203   :  { %v3722_v0 = vadd.f32 %v3721_v16, %v3720_v22  ;;  %v3743_v21 = vrot.slane %v3742_v36, 1 }
 0x205   :  { %v3723_v5 = vadd.f32 %v3722_v0, %v3267_v55  ;;  %v3744_v15 = vadd.f32 %v3743_v21, %v3742_v36  ;;  %v23452_v36 = vld [vmem:[#allocation15_spill] sm:$0xff]  ;;  %v23453_v55 = vld [vmem:[#allocation18_spill] sm:$0xff]  ;;  %v23454_v21 = vld [vmem:[#allocation20_spill] sm:$0xff] }
 0x207   :  { %v3745_v31 = vadd.f32 %v3744_v15, %v3289_v27  ;;  %v3756_v40 = vmul.f32 0.001953125, %v3723_v5  ;;  %v23455_v5 = vld [vmem:[#allocation22_spill] sm:$0xff] }
 0x209   :  { %v3757_v10 = vmul.f32 0.001953125, %v3745_v31  ;;  %v3758_v23 = vmul.f32 %v3756_v40, %v3756_v40  ;;  %v23456_v31 = vld [vmem:[#allocation8_spill] sm:$0xff] }
 0x20b   :  { %v3759_v33 = vsub.f32 %v3757_v10, %v3758_v23  ;;  %v23457_v10 = vld [vmem:[#allocation23_spill] sm:$0xff] }
 0x20d   :  { %v3760_v51 = vmax.f32 %v3759_v33, 0.0  ;;  %v23458_v33 = vld [vmem:[#allocation27_spill] sm:$0xff] }
 0x20f   :  { %v3762_v63 = vadd.f32 1e-05, %v3760_v51 }
 0x211   :  { %18558 = vrsqrt.f32 %v3762_v63  ;;  %v23459_v63 = vld [vmem:[#allocation30_spill] sm:$0xff] }
 0x21b   :  { %v18559_v29 = vpop.eup %18558 }
 0x21c   :  { %v3764_v6 = vmul.f32 %v18559_v29, %v3761_v30  ;;  %v23461_v29 = vld [vmem:[#allocation34_spill] sm:$0xff] }
 0x21e   :  { %v3766_v7 = vmul.f32 %v3764_v6, %v3756_v40  ;;  %v20226_v4 = vrot.slane %v3764_v6, %v20220_v52 }
 0x220   :  { %v20230_v62 = vmul.f32 %v20226_v4, %v20212_v60  ;;  %v3767_v56 = vsub.f32 %v3765_v47, %v3766_v7  ;;  %v20234_v1 = vmul.f32 %v20226_v4, %v19690_v48  ;;  %v20238_v34 = vmul.f32 %v20226_v4, %v20170_v37  ;;  %v23462_v47 = vld [vmem:[#allocation4_spill] sm:$0xff] }
 0x221   :  { %v20242_v8 = vmul.f32 %v20226_v4, %v20192_v24  ;;  %v20246_v58 = vmul.f32 %v20226_v4, %v19768_v53  ;;  %v20250_v60 = vmul.f32 %v20226_v4, %v19901_v44  ;;  %v20254_v48 = vmul.f32 %v20226_v4, %v19933_v46 }
 0x222   :  { %23442 = vst [vmem:[#allocation47_spill] sm:$0xff] %v20230_v62  ;;  %v20258_v37 = vmul.f32 %v20226_v4, %v19982_v45  ;;  %v20261_v59 = vrot.slane %v3767_v56, %v20220_v52  ;;  %v20265_v24 = vmul.f32 %v20226_v4, %v20019_v17  ;;  %v20269_v53 = vmul.f32 %v20226_v4, %v20013_v11  ;;  %v23463_v56 = vld [vmem:[#allocation16_spill] sm:$0xff]  ;;  %v23475_v52 = vld [vmem:[#allocation19_spill] sm:$0xff] }
 0x223   :  { %v20273_v44 = vmul.f32 %v20226_v4, %v20058_v50  ;;  %v20277_v46 = vmul.f32 %v20226_v4, %v20088_v12  ;;  %v20281_v45 = vmul.f32 %v20226_v4, %v20133_v13  ;;  %v20285_v17 = vmul.f32 %v20226_v4, %v20139_v20 }
 0x224   :  { %v20289_v11 = vmul.f32 %v20226_v4, %v20166_v41  ;;  %v3860_v50 = vmul.f32 %v20226_v4, %v19693_v49  ;;  %v20295_v61 = vmul.f32 %v20226_v4, %v20184_v43  ;;  %v20299_v12 = vmul.f32 %v20226_v4, %v20206_v28  ;;  %v23444_v43 = vld [vmem:[#allocation24_spill] sm:$0xff] }
 0x225   :  { %v3926_v13 = vmul.f32 %v20226_v4, %v19501_v14  ;;  %v20305_v20 = vmul.f32 %v20226_v4, %v19745_v2  ;;  %v3864_v41 = vmul.f32 %v20226_v4, %v19915_v32  ;;  %v20311_v49 = vmul.f32 %v20226_v4, %v19918_v19  ;;  %v23445_v28 = vld [vmem:[#allocation28_spill] sm:$0xff]  ;;  %v23446_v14 = vld [vmem:[#allocation31_spill] sm:$0xff]  ;;  %v23448_v32 = vld [vmem:[#allocation37_spill] sm:$0xff] }
 0x226   :  { %23443 = vst [vmem:[#allocation48_spill] sm:$0xff] %v20299_v12  ;;  %v20315_v57 = vmul.f32 %v20226_v4, %v23444_v43  ;;  %v20319_v18 = vmul.f32 %v20226_v4, %v23445_v28  ;;  %v3868_v26 = vmul.f32 %v20226_v4, %v23446_v14  ;;  %v23447_v2 = vld [vmem:[#allocation32_spill] sm:$0xff]  ;;  %v20329_v22 = vmul.f32 %v20226_v4, %v23448_v32  ;;  %v23449_v19 = vld [vmem:[#allocation41_spill] sm:$0xff] }
 0x227   :  { %v20325_v35 = vmul.f32 %v20226_v4, %v23447_v2  ;;  %v20333_v54 = vmul.f32 %v20226_v4, %v23449_v19  ;;  %v3872_v38 = vmul.f32 %v20226_v4, %v23450_v9  ;;  %v3924_v16 = vmul.f32 %v20226_v4, %v23451_v3  ;;  %v23464_v28 = vld [vmem:[#allocation17_spill] sm:$0xff]  ;;  %v23466_v19 = vld [vmem:[#allocation35_spill] sm:$0xff] }
 0x228   :  { %v20341_v39 = vmul.f32 %v20226_v4, %v23452_v36  ;;  %v20345_v0 = vmul.f32 %v20226_v4, %v23453_v55  ;;  %v20349_v27 = vmul.f32 %v20226_v4, %v23454_v21  ;;  %v20353_v15 = vmul.f32 %v20226_v4, %v23455_v5  ;;  %v23465_v2 = vld [vmem:[#allocation25_spill] sm:$0xff] }
 0x229   :  { %v3990_v40 = vmul.f32 %v20226_v4, %v23456_v31  ;;  %v20359_v23 = vmul.f32 %v20226_v4, %v23457_v10  ;;  %v20363_v51 = vmul.f32 %v20226_v4, %v23458_v33  ;;  %v20367_v42 = vmul.f32 %v20226_v4, %v23459_v63  ;;  %v23469_v63 = vld [vmem:[#allocation6_spill] sm:$0xff] }
 0x22a   :  { %v20371_v30 = vmul.f32 %v20226_v4, %v23460_v25  ;;  %v20375_v6 = vmul.f32 %v20226_v4, %v23461_v29  ;;  %v3988_v7 = vmul.f32 %v20226_v4, %v23462_v47  ;;  %v3992_v43 = vmul.f32 %v20226_v4, %v23463_v56  ;;  %v23470_v29 = vld [vmem:[#allocation10_spill] sm:$0xff] }
 0x22b   :  { %v20383_v14 = vmul.f32 %v20226_v4, %v23464_v28  ;;  %v3996_v32 = vmul.f32 %v20226_v4, %v23465_v2  ;;  %v4000_v9 = vmul.f32 %v20226_v4, %v23466_v19  ;;  %v3876_v3 = vadd.f32 %v3860_v50, %v20261_v59  ;;  %v23468_v50 = vld [vmem:[#allocation7_spill] sm:$0xff]  ;;  %v23471_v2 = vld [vmem:[#allocation9_spill] sm:$0xff] }
 0x22c   :  { %v20391_v36 = vadd.f32 %v3864_v41, %v20261_v59  ;;  %v20394_v55 = vadd.f32 %v3868_v26, %v20261_v59  ;;  %v20397_v21 = vadd.f32 %v3872_v38, %v20261_v59  ;;  %v4004_v5 = vadd.f32 %v3988_v7, %v20261_v59 }
 0x22d   :  { %v20401_v31 = vadd.f32 %v3992_v43, %v20261_v59  ;;  %v20404_v10 = vadd.f32 %v3996_v32, %v20261_v59  ;;  %v20407_v33 = vadd.f32 %v4000_v9, %v20261_v59  ;;  %v3925_v41 = vmul.f32 %v20226_v4, %v23468_v50  ;;  %v23472_v32 = vld [vmem:[#allocation12_spill] sm:$0xff] }
 0x22e   :  { %23467 = vst [vmem:[#allocation24_spill] sm:$0xff] %v20397_v21  ;;  %v3940_v26 = vadd.f32 %v3924_v16, %v20261_v59  ;;  %v3989_v38 = vmul.f32 %v20226_v4, %v23469_v63  ;;  %v20415_v25 = vadd.f32 %v3990_v40, %v20261_v59  ;;  %v3927_v47 = vmul.f32 %v20226_v4, %v23470_v29  ;;  %v17856_v16 = vld [vmem:[%s23319_s4 + $0x200] sm:$0xff]   ;;  %v23474_v63 = vld [vmem:[#allocation11_spill] sm:$0xff] }
 0x22f   :  { %v20420_v7 = vadd.f32 %v3926_v13, %v20261_v59  ;;  %v20423_v56 = vadd.f32 %v3925_v41, %v20261_v59  ;;  %v23372_v43 = vmov 0.0   ;;  %v3991_v40 = vmul.f32 %v20226_v4, %v23471_v2  ;;  %v17857_v13 = vld [vmem:[%s23319_s4 + $0x280] sm:$0xff]  }
 0x230   :  { %v4413_v28 = vpack.c.bf16 %v3940_v26, %v23372_v43  ;;  %v3791_v19 = vmul.f32 %v20226_v4, %v23472_v32  ;;  %v4005_v9 = vadd.f32 %v3989_v38, %v20261_v59  ;;  %v3943_v50 = vadd.f32 %v3927_v47, %v20261_v59  ;;  %v17858_v38 = vld [vmem:[%s23319_s4 + $0x248] sm:$0xff]  }
 0x231   :  { %v20440_v41 = vadd.f32 %v20261_v59, %v20234_v1  ;;  %v3861_v29 = vmul.f32 %v20226_v4, %v23474_v63  ;;  %v4416_v2 = vpack.c.bf16 %v20423_v56, %v3940_v26  ;;  %v20446_v43 = vadd.f32 %v3991_v40, %v20261_v59  ;;  %v17859_v40 = vld [vmem:[%s23319_s4 + $0x2c8] sm:$0xff]  }
 0x232   :  { %v4414_v32 = vpack.c.bf16 %v20420_v7, %v20423_v56  ;;  %v3813_v47 = vadd.f32 %v20261_v59, %v3791_v19  ;;  %v3994_v1 = vmul.f32 %v20226_v4, %v23475_v52  ;;  %v4604_v12 = vpack.c.bf16 %v4005_v9, %v4004_v5  ;;  %v17860_v56 = vld [vmem:[%s23319_s4 + $0x208] sm:$0xff]  }
 0x233   :  { %23473 = vst [vmem:[#allocation28_spill] sm:$0xff] %v20440_v41  ;;  %v4607_v63 = vpack.c.bf16 %v20415_v25, %v4005_v9  ;;  %v4417_v26 = vpack.c.bf16 %v3943_v50, %v20420_v7  ;;  %4579 = vmatprep.mubr.bf16.mxu0 %v4416_v2  ;;  %v23476_v62 = vmov 0.0   ;;  %v4605_v52 = vpack.c.bf16 %v20446_v43, %v20415_v25  ;;  %v17861_v19 = vld [vmem:[%s23319_s4 + $0x288] sm:$0xff]   ;;  %v17862_v9 = vld [vmem:[%s23319_s4 + $0x250] sm:$0xff]  }
 0x234   :  { %v4608_v21 = vpack.c.bf16 %v23476_v62, %v20446_v43  ;;  %v20469_v5 = vpack.c.bf16 %v3813_v47, %v20440_v41  ;;  %v3877_v7 = vadd.f32 %v3861_v29, %v20261_v59  ;;  %4580 = vmatmul.mubr.bf16.vlgmr.msra.gmra.mrb[136].mxu0 %v4413_v28  ;;  %v3878_v50 = vadd.f32 %v20305_v20, %v20261_v59  ;;  %v23477_v2 = vld [vmem:[#allocation14_spill] sm:$0xff] }
 0x235   :  { %4770 = vmatprep.mubr.bf16.mxu1 %v4607_v63  ;;  %v3793_v25 = vmul.f32 %v20226_v4, %v23477_v2  ;;  %v3814_v43 = vadd.f32 %v20261_v59, %v20246_v58  ;;  %16141 = vmatpush3.bf16.msra.mxu0 %v17856_v16  ;;  %v17863_v28 = vld [vmem:[%s23319_s4 + $0x2d0] sm:$0xff]   ;;  %v23478_v63 = vld [vmem:[#allocation13_spill] sm:$0xff]  ;;  %v20493_v20 = vadd.f32 %v20341_v39, %v20261_v59 }
 0x236   :  { %4771 = vmatmul.mubr.bf16.vlgmr.msra.gmra.mrb[72].mxu1 %v4604_v12  ;;  %v20487_v29 = vpack.c.bf16 %v3877_v7, %v3876_v3  ;;  %v3863_v41 = vmul.f32 %v20226_v4, %v23478_v63  ;;  %4587 = vmatprep.mubr.bf16.mxu0 %v4417_v26  ;;  %v20495_v2 = vpack.c.bf16 %v3878_v50, %v3877_v7  ;;  %v23479_v16 = vld [vmem:[#allocation21_spill] sm:$0xff]  ;;  %v17868_v63 = vld [vmem:[%s23319_s4 + $0x218] sm:$0xff]  }
 0x237   :  { %16169 = vmatpush3.bf16.msra.mxu1 %v17857_v13  ;;  %v3815_v58 = vadd.f32 %v20261_v59, %v3793_v25  ;;  %v20498_v12 = vpack.c.bf16 %v3814_v43, %v3813_v47  ;;  %v3995_v62 = vmul.f32 %v20226_v4, %v23479_v16  ;;  %4778 = vmatprep.mubr.bf16.mxu1 %v4608_v21  ;;  %v17864_v13 = vld [vmem:[%s23319_s4 + $0x210] sm:$0xff]   ;;  %v17870_v16 = vld [vmem:[%s23319_s4 + $0x260] sm:$0xff]  }
 0x238   :  { %16142 = vmatprep.subr.bf16.mxu0 %v17858_v38  ;;  %v20503_v3 = vadd.f32 %v3863_v41, %v20261_v59  ;;  %v3945_v39 = vadd.f32 %v20345_v0, %v20261_v59  ;;  %16170 = vmatprep.subr.bf16.mxu1 %v17859_v40  ;;  %v4009_v47 = vadd.f32 %v20383_v14, %v20261_v59  ;;  %v23480_v41 = vld [vmem:[#allocation39_spill] sm:$0xff]  ;;  %v17865_v0 = vld [vmem:[%s23319_s4 + $0x290] sm:$0xff]  }
 0x239   :  { %v20510_v26 = vpack.c.bf16 %v3815_v58, %v3814_v43  ;;  %v4010_v7 = vadd.f32 %v3994_v1, %v20261_v59  ;;  %v3946_v21 = vadd.f32 %v20349_v27, %v20261_v59  ;;  %v20519_v38 = vmul.f32 %v20226_v4, %v23480_v41  ;;  %16143 = vmatpush3.bf16.msra.mxu0 %v17860_v56  ;;  %v17866_v40 = vld [vmem:[%s23319_s4 + $0x258] sm:$0xff]   ;;  %v23481_v58 = vld [vmem:[#allocation26_spill] sm:$0xff] }
 0x23a   :  { %v20528_v14 = vpack.c.bf16 %v20503_v3, %v3878_v50  ;;  %v20531_v1 = vpack.c.bf16 %v3945_v39, %v20493_v20  ;;  %v3947_v27 = vadd.f32 %v20353_v15, %v20261_v59  ;;  %16144 = vmatprep.subr.bf16.mxu0 %v17862_v9  ;;  %v17867_v56 = vld [vmem:[%s23319_s4 + $0x2d8] sm:$0xff]   ;;  %v20539_v25 = vpack.c.bf16 %v4009_v47, %v20401_v31 }
 0x23b   :  { %16171 = vmatpush3.bf16.msra.mxu1 %v17861_v19  ;;  %v20541_v43 = vpack.c.bf16 %v4010_v7, %v4009_v47  ;;  %v20544_v50 = vadd.f32 %v3995_v62, %v20261_v59  ;;  %v20551_v19 = vpack.c.bf16 %v3946_v21, %v3945_v39  ;;  %v20555_v9 = vadd.f32 %v20261_v59, %v20250_v60  ;;  %v23482_v47 = vld [vmem:[#allocation29_spill] sm:$0xff] }
 0x23c   :  { %16172 = vmatprep.subr.bf16.mxu1 %v17863_v28  ;;  %v20549_v15 = vpack.c.bf16 %v3947_v27, %v3946_v21  ;;  %v3817_v31 = vadd.f32 %v20261_v59, %v20254_v48  ;;  %v3997_v62 = vmul.f32 %v20226_v4, %v23481_v58  ;;  %4588 = vmatmul.mubr.bf16.gmra.mrb[140].mxu0 %v4414_v32  ;;  %v17869_v28 = vld [vmem:[%s23319_s4 + $0x298] sm:$0xff]   ;;  %v17871_v21 = vld [vmem:[%s23319_s4 + $0x2e0] sm:$0xff]  }
 0x23d   :  { %v20568_v39 = vpack.c.bf16 %v20544_v50, %v4010_v7  ;;  %v3881_v60 = vadd.f32 %v20311_v49, %v20261_v59  ;;  %v3882_v48 = vadd.f32 %v20315_v57, %v20261_v59  ;;  %v3998_v32 = vmul.f32 %v20226_v4, %v23482_v47  ;;  %16145 = vmatpush3.bf16.msra.mxu0 %v17864_v13 }
 0x23e   :  { %4779 = vmatmul.mubr.bf16.gmra.mrb[76].mxu1 %v4605_v52  ;;  %v20580_v41 = vpack.c.bf16 %v3817_v31, %v20555_v9  ;;  %v3818_v7 = vadd.f32 %v20261_v59, %v20258_v37  ;;  %4961 = vmatprep.mubr.bf16.mxu0 %v20469_v5  ;;  %v3819_v52 = vadd.f32 %v20261_v59, %v20265_v24 }
 0x23f   :  { %16173 = vmatpush3.bf16.msra.mxu1 %v17865_v0  ;;  %v20586_v49 = vpack.c.bf16 %v3881_v60, %v20391_v36  ;;  %v20588_v57 = vpack.c.bf16 %v3882_v48, %v3881_v60  ;;  %5152 = vmatprep.mubr.bf16.mxu1 %v20495_v2  ;;  %v20595_v13 = vadd.f32 %v20319_v18, %v20261_v59  ;;  %v17872_v36 = vld [vmem:[%s23319_s4 + $0x220] sm:$0xff]   ;;  %v23484_v60 = vld [vmem:[#allocation33_spill] sm:$0xff] }
 0x240   :  { %16146 = vmatprep.subr.bf16.mxu0 %v17866_v40  ;;  %v20597_v27 = vpack.c.bf16 %v3818_v7, %v3817_v31  ;;  %v20601_v37 = vadd.f32 %v20359_v23, %v20261_v59  ;;  %16174 = vmatprep.subr.bf16.mxu1 %v17867_v56  ;;  %v20606_v0 = vpack.c.bf16 %v3819_v52, %v3818_v7  ;;  %v23483_v31 = vld [vmem:[#allocation42_spill] sm:$0xff]  ;;  %v17873_v56 = vld [vmem:[%s23319_s4 + $0x2a0] sm:$0xff]  }
 0x241   :  { %v3949_v24 = vadd.f32 %v20363_v51, %v20261_v59  ;;  %v4013_v40 = vadd.f32 %v3997_v62, %v20261_v59  ;;  %v4014_v18 = vadd.f32 %v3998_v32, %v20261_v59  ;;  %v3938_v58 = vmul.f32 %v20226_v4, %v23483_v31  ;;  %16147 = vmatpush3.bf16.msra.mxu0 %v17868_v63  ;;  %v17874_v62 = vld [vmem:[%s23319_s4 + $0x268] sm:$0xff]   ;;  %v23487_v31 = vld [vmem:[#allocation36_spill] sm:$0xff] }
 0x242   :  { %v3999_v23 = vmul.f32 %v20226_v4, %v23484_v60  ;;  %v20620_v47 = vpack.c.bf16 %v20595_v13, %v3882_v48  ;;  %v3950_v51 = vadd.f32 %v20367_v42, %v20261_v59  ;;  %16148 = vmatprep.subr.bf16.mxu0 %v17870_v16  ;;  %v17875_v48 = vld [vmem:[%s23319_s4 + $0x2e8] sm:$0xff]   ;;  %v3951_v42 = vadd.f32 %v20371_v30, %v20261_v59  ;;  %v23488_v60 = vld [vmem:[#allocation40_spill] sm:$0xff] }
 0x243   :  { %16175 = vmatpush3.bf16.msra.mxu1 %v17869_v28  ;;  %v20628_v32 = vpack.c.bf16 %v3949_v24, %v20601_v37  ;;  %v20631_v63 = vpack.c.bf16 %v4013_v40, %v20404_v10  ;;  %v20633_v7 = vpack.c.bf16 %v4014_v18, %v4013_v40  ;;  %v20647_v52 = vadd.f32 %v20261_v59, %v20269_v53  ;;  %v17876_v10 = vld [vmem:[%s23319_s4 + $0x228] sm:$0xff]  }
 0x244   :  { %16176 = vmatprep.subr.bf16.mxu1 %v17871_v21  ;;  %v20641_v28 = vadd.f32 %v3999_v23, %v20261_v59  ;;  %v20643_v16 = vpack.c.bf16 %v3950_v51, %v3949_v24  ;;  %v3821_v21 = vadd.f32 %v20261_v59, %v20273_v44  ;;  %v3885_v40 = vadd.f32 %v20325_v35, %v20261_v59  ;;  %v17877_v44 = vld [vmem:[%s23319_s4 + $0x2a8] sm:$0xff]  }
 0x245   :  { %23486 = vst [vmem:[#allocation32_spill] sm:$0xff] %v20647_v52  ;;  %v3886_v30 = vadd.f32 %v20329_v22, %v20261_v59  ;;  %v3822_v24 = vadd.f32 %v20261_v59, %v20277_v46  ;;  %v4001_v53 = vmul.f32 %v20226_v4, %v23487_v31  ;;  %v4002_v23 = vmul.f32 %v20226_v4, %v23488_v60  ;;  %v17878_v46 = vld [vmem:[%s23319_s4 + $0x270] sm:$0xff]   ;;  %v23491_v60 = vld [vmem:[#allocation45_spill] sm:$0xff] }
 0x246   :  { %23485 = vst [vmem:[#allocation31_spill] sm:$0xff] %v20643_v16  ;;  %16149 = vmatpush3.bf16.msra.mxu0 %v17872_v36  ;;  %v20667_v16 = vpack.c.bf16 %v3951_v42, %v3950_v51  ;;  %v20670_v35 = vpack.c.bf16 %v20641_v28, %v4014_v18  ;;  %v20676_v22 = vpack.c.bf16 %v3821_v21, %v20647_v52  ;;  %v17879_v18 = vld [vmem:[%s23319_s4 + $0x2f0] sm:$0xff]  }
 0x247   :  { %16177 = vmatpush3.bf16.msra.mxu1 %v17873_v56  ;;  %16150 = vmatprep.subr.bf16.mxu0 %v17874_v62  ;;  %v20679_v36 = vpack.c.bf16 %v3885_v40, %v20394_v55  ;;  %v20681_v31 = vpack.c.bf16 %v3886_v30, %v3885_v40  ;;  %v3823_v56 = vadd.f32 %v20261_v59, %v20281_v45 }
 0x248   :  { %16178 = vmatprep.subr.bf16.mxu1 %v17875_v48  ;;  %v20690_v51 = vadd.f32 %v20333_v54, %v20261_v59  ;;  %v20692_v62 = vpack.c.bf16 %v3822_v24, %v3821_v21  ;;  %v20696_v55 = vadd.f32 %v20375_v6, %v20261_v59  ;;  %v17880_v48 = vld [vmem:[%s23319_s4 + $0x230] sm:$0xff]   ;;  %v3953_v42 = vadd.f32 %v20519_v38, %v20261_v59 }
 0x249   :  { %23489 = vst [vmem:[#allocation37_spill] sm:$0xff] %v20679_v36  ;;  %v4017_v40 = vadd.f32 %v4001_v53, %v20261_v59  ;;  %v4018_v45 = vadd.f32 %v4002_v23, %v20261_v59  ;;  %v3954_v54 = vadd.f32 %v3938_v58, %v20261_v59  ;;  %v3939_v21 = vmul.f32 %v20226_v4, %v23491_v60  ;;  %v17881_v36 = vld [vmem:[%s23319_s4 + $0x2b0] sm:$0xff]   ;;  %v17882_v58 = vld [vmem:[%s23319_s4 + $0x278] sm:$0xff]  }
 0x24a   :  { %23490 = vst [vmem:[#allocation41_spill] sm:$0xff] %v20692_v62  ;;  %v23492_v62 = vld [vmem:[#allocation43_spill] sm:$0xff]  ;;  %16151 = vmatpush3.bf16.msra.mxu0 %v17876_v10  ;;  %v20713_v52 = vpack.c.bf16 %v3823_v56, %v3822_v24  ;;  %v20716_v38 = vpack.c.bf16 %v20690_v51, %v3886_v30  ;;  %v20722_v53 = vpack.c.bf16 %v3953_v42, %v20696_v55 }
 0x24b   :  { %v4003_v6 = vmul.f32 %v20226_v4, %v23492_v62  ;;  %16179 = vmatpush3.bf16.msra.mxu1 %v17877_v44  ;;  %16152 = vmatprep.subr.bf16.mxu0 %v17878_v46  ;;  %v20725_v4 = vpack.c.bf16 %v4017_v40, %v20407_v33  ;;  %v20727_v10 = vpack.c.bf16 %v4018_v45, %v4017_v40  ;;  %v17883_v30 = vld [vmem:[%s23319_s4 + $0x2f8] sm:$0xff]  }
 0x24c   :  { %16180 = vmatprep.subr.bf16.mxu1 %v17879_v18  ;;  %v3955_v24 = vadd.f32 %v3939_v21, %v20261_v59  ;;  %v20736_v44 = vpack.c.bf16 %v3954_v54, %v3953_v42  ;;  %v20740_v46 = vadd.f32 %v20261_v59, %v20285_v17  ;;  %v17884_v33 = vld [vmem:[%s23319_s4 + $0x238] sm:$0xff]   ;;  %v20747_v18 = vadd.f32 %v20261_v59, %v20238_v34  ;;  %v23500_v21 = vld [vmem:[#allocation48_spill] sm:$0xff] }
 0x24d   :  { %v20734_v23 = vadd.f32 %v4003_v6, %v20261_v59  ;;  %v20751_v56 = vadd.f32 %v20289_v11, %v20261_v59  ;;  %v20755_v62 = vadd.f32 %v20295_v61, %v20261_v59  ;;  %v20759_v17 = vadd.f32 %v20261_v59, %v20242_v8  ;;  %v17885_v42 = vld [vmem:[%s23319_s4 + $0x2b8] sm:$0xff]   ;;  %v17886_v11 = vld [vmem:[%s23319_s4 + $0x340] sm:$0xff]  }
 0x24e   :  { %23493 = vst [vmem:[#allocation44_spill] sm:$0xff] %v20740_v46  ;;  %16153 = vmatpush3.bf16.msra.mxu0 %v17880_v48  ;;  %v20764_v40 = vpack.c.bf16 %v3955_v24, %v3954_v54  ;;  %v20787_v6 = vadd.f32 %v23500_v21, %v20261_v59  ;;  %v17888_v24 = vld [vmem:[%s23319_s4 + $0x300] sm:$0xff]   ;;  %v17916_v61 = vld [vmem:[%s23319_s4 + $0x338] sm:$0xff]  }
 0x24f   :  { %23494 = vst [vmem:[#allocation5_spill] sm:$0xff] %v20751_v56  ;;  %23495 = vst [vmem:[#allocation15_spill] sm:$0xff] %v20755_v62  ;;  %v20767_v34 = vpack.c.bf16 %v20734_v23, %v4018_v45  ;;  %16181 = vmatpush3.bf16.msra.mxu1 %v17881_v36  ;;  %16154 = vmatprep.subr.bf16.mxu0 %v17882_v58  ;;  %v17887_v45 = vld [vmem:[%s23319_s4 + $0x3c0] sm:$0xff]   ;;  %v23498_v36 = vld [vmem:[#allocation47_spill] sm:$0xff] }
 0x250   :  { %23496 = vst [vmem:[#allocation18_spill] sm:$0xff] %v20759_v17  ;;  %16182 = vmatprep.subr.bf16.mxu1 %v17883_v30  ;;  %v20783_v54 = vadd.f32 %v20261_v59, %v23498_v36  ;;  %23501 = vst [vmem:[#allocation22_spill] sm:$0xff] %v20787_v6  ;;  %v17889_v30 = vld [vmem:[%s23319_s4 + $0x380] sm:$0xff]   ;;  %v23502_v59 = vmov 0.0   ;;  %v17891_v58 = vld [vmem:[%s23319_s4 + $0x3c8] sm:$0xff]  }
 0x251   :  { %v23503_v21 = vld [vmem:[#allocation28_spill] sm:$0xff]  ;;  %v20814_v48 = vpack.c.bf16 %v23502_v59, %v20503_v3  ;;  %v17895_v3 = vld [vmem:[%s23319_s4 + $0x3d0] sm:$0xff]   ;;  %v17917_v6 = vld [vmem:[%s23319_s4 + $0x3b8] sm:$0xff]  }
 0x252   :  { %23499 = vst [vmem:[#allocation20_spill] sm:$0xff] %v20783_v54  ;;  %16155 = vmatpush3.bf16.msra.mxu0 %v17884_v33  ;;  %v20803_v60 = vpack.c.bf16 %v23503_v21, %v23502_v59  ;;  %v17890_v33 = vld [vmem:[%s23319_s4 + $0x348] sm:$0xff]   ;;  %v17896_v21 = vld [vmem:[%s23319_s4 + $0x310] sm:$0xff]   ;;  %v17920_v62 = vld [vmem:[%s23319_s4 + $0x80] sm:$0xff]  }
 0x253   :  { %16183 = vmatpush3.bf16.msra.mxu1 %v17885_v42  ;;  %16196 = vmatprep.subr.bf16.mxu0 %v17886_v11  ;;  %v17892_v42 = vld [vmem:[%s23319_s4 + $0x308] sm:$0xff]   ;;  %v17897_v36 = vld [vmem:[%s23319_s4 + $0x390] sm:$0xff]  }
 0x254   :  { %16224 = vmatprep.subr.bf16.mxu1 %v17887_v45  ;;  %v17893_v11 = vld [vmem:[%s23319_s4 + $0x388] sm:$0xff]   ;;  %v17894_v45 = vld [vmem:[%s23319_s4 + $0x350] sm:$0xff]  }
 0x255   :  { %4962 = vmatmul.mubr.bf16.vlgmr.msra.gmra.mrb[144].mxu0 %v20803_v60 }
 0x256   :  { %5153 = vmatmul.mubr.bf16.vlgmr.msra.gmra.mrb[80].mxu1 %v20487_v29  ;;  %4969 = vmatprep.mubr.bf16.mxu0 %v20510_v26 }
 0x257   :  { %5160 = vmatprep.mubr.bf16.mxu1 %v20814_v48  ;;  %16197 = vmatpush3.bf16.msra.mxu0 %v17888_v24  ;;  %v17898_v24 = vld [vmem:[%s23319_s4 + $0x358] sm:$0xff]  }
 0x258   :  { %16225 = vmatpush3.bf16.msra.mxu1 %v17889_v30  ;;  %16198 = vmatprep.subr.bf16.mxu0 %v17890_v33  ;;  %v17899_v30 = vld [vmem:[%s23319_s4 + $0x3d8] sm:$0xff]  }
 0x259   :  { %16226 = vmatprep.subr.bf16.mxu1 %v17891_v58  ;;  %v17900_v58 = vld [vmem:[%s23319_s4 + $0x318] sm:$0xff]  }
 0x25a   :  { %v17901_v33 = vld [vmem:[%s23319_s4 + $0x398] sm:$0xff]  }
 0x25b   :  { %16199 = vmatpush3.bf16.msra.mxu0 %v17892_v42  ;;  %v17902_v42 = vld [vmem:[%s23319_s4 + $0x360] sm:$0xff]  }
 0x25c   :  { %16227 = vmatpush3.bf16.msra.mxu1 %v17893_v11  ;;  %16200 = vmatprep.subr.bf16.mxu0 %v17894_v45  ;;  %v17903_v11 = vld [vmem:[%s23319_s4 + $0x3e0] sm:$0xff]  }
 0x25d   :  { %4970 = vmatmul.mubr.bf16.gmra.mrb[148].mxu0 %v20498_v12  ;;  %16228 = vmatprep.subr.bf16.mxu1 %v17895_v3  ;;  %v17904_v45 = vld [vmem:[%s23319_s4 + $0x320] sm:$0xff]  }
 0x25e   :  { %5161 = vmatmul.mubr.bf16.gmra.mrb[84].mxu1 %v20528_v14  ;;  %5343 = vmatprep.mubr.bf16.mxu0 %v20531_v1  ;;  %v17905_v3 = vld [vmem:[%s23319_s4 + $0x3a0] sm:$0xff]  }
 0x25f   :  { %16201 = vmatpush3.bf16.msra.mxu0 %v17896_v21  ;;  %5534 = vmatprep.mubr.bf16.mxu1 %v20541_v43  ;;  %v17906_v21 = vld [vmem:[%s23319_s4 + $0x368] sm:$0xff]  }
 0x260   :  { %16229 = vmatpush3.bf16.msra.mxu1 %v17897_v36  ;;  %16202 = vmatprep.subr.bf16.mxu0 %v17898_v24  ;;  %v17907_v36 = vld [vmem:[%s23319_s4 + $0x3e8] sm:$0xff]  }
 0x261   :  { %16230 = vmatprep.subr.bf16.mxu1 %v17899_v30  ;;  %v17908_v24 = vld [vmem:[%s23319_s4 + $0x328] sm:$0xff]  }
 0x262   :  { %v17909_v30 = vld [vmem:[%s23319_s4 + $0x3a8] sm:$0xff]  }
 0x263   :  { %16203 = vmatpush3.bf16.msra.mxu0 %v17900_v58  ;;  %v17910_v58 = vld [vmem:[%s23319_s4 + $0x370] sm:$0xff]  }
 0x264   :  { %16231 = vmatpush3.bf16.msra.mxu1 %v17901_v33  ;;  %16204 = vmatprep.subr.bf16.mxu0 %v17902_v42  ;;  %v17911_v33 = vld [vmem:[%s23319_s4 + $0x3f0] sm:$0xff]  }
 0x265   :  { %16232 = vmatprep.subr.bf16.mxu1 %v17903_v11  ;;  %v17912_v42 = vld [vmem:[%s23319_s4 + $0x330] sm:$0xff]  }
 0x266   :  { %v17913_v11 = vld [vmem:[%s23319_s4 + $0x3b0] sm:$0xff]  }
 0x267   :  { %16205 = vmatpush3.bf16.msra.mxu0 %v17904_v45  ;;  %v17914_v45 = vld [vmem:[%s23319_s4 + $0x378] sm:$0xff]  }
 0x268   :  { %16233 = vmatpush3.bf16.msra.mxu1 %v17905_v3  ;;  %16206 = vmatprep.subr.bf16.mxu0 %v17906_v21  ;;  %v16044_v3 = vpop.f32.mrb[128].mxu0  ;;  %v16072_v21 = vpop.f32.mrb[64].mxu1 }
 0x269   :  { %16234 = vmatprep.subr.bf16.mxu1 %v17907_v36  ;;  %v17915_v36 = vld [vmem:[%s23319_s4 + $0x3f8] sm:$0xff]   ;;  %v16073_v8 = vpop.f32.mrb[65].mxu1 }
 0x26a   :  { %v16075_v54 = vpop.f32.mrb[66].mxu1 }
 0x26b   :  { %16207 = vmatpush3.bf16.msra.mxu0 %v17908_v24  ;;  %v16045_v24 = vpop.f32.mrb[129].mxu0  ;;  %v16076_v56 = vpop.f32.mrb[67].mxu1 }
 0x26c   :  { %16235 = vmatpush3.bf16.msra.mxu1 %v17909_v30  ;;  %16208 = vmatprep.subr.bf16.mxu0 %v17910_v58  ;;  %v16046_v17 = vadd.f32 %v16045_v24, %v16044_v3  ;;  %v16074_v30 = vadd.f32 %v16073_v8, %v16072_v21  ;;  %v16047_v58 = vpop.f32.mrb[130].mxu0  ;;  %v17918_v3 = vld [vmem:[%s23319_s4 + $0xc0] sm:$0xff]  }
 0x26d   :  { %16236 = vmatprep.subr.bf16.mxu1 %v17911_v33  ;;  %v16048_v33 = vpop.f32.mrb[131].mxu0  ;;  %v17919_v24 = vld [vmem:[%s23319_s4 + $0x40] sm:$0xff]  }
 0x26e   :  { %v20904_v8 = vadd.f32 %v16074_v30, %v16046_v17  ;;  %v16049_v21 = vadd.f32 %v16048_v33, %v16047_v58  ;;  %v20919_v17 = vpack.c.bf16 %v20493_v20, %v23502_v59  ;;  %v17924_v20 = vld [vmem:[%s23319_s4 + $0x88] sm:$0xff]   ;;  %v17929_v30 = vld [vmem:[%s23319_s4 + $0x10] sm:$0xff]   ;;  %v17931_v58 = vld [vmem:[%s23319_s4 + $0x58] sm:$0xff]  }
 0x26f   :  { %16209 = vmatpush3.bf16.msra.mxu0 %v17912_v42  ;;  %v16077_v42 = vadd.f32 %v16076_v56, %v16075_v54  ;;  %v17922_v56 = vld [vmem:[%s23319_s4 + $0xc8] sm:$0xff]   ;;  %v17932_v33 = vld [vmem:[%s23319_s4 + $0x98] sm:$0xff]  }
 0x270   :  { %16237 = vmatpush3.bf16.msra.mxu1 %v17913_v11  ;;  %16210 = vmatprep.subr.bf16.mxu0 %v17914_v45  ;;  %v17921_v11 = vld [vmem:[%s23319_s4] sm:$0xff]   ;;  %v17923_v54 = vld [vmem:[%s23319_s4 + $0x48] sm:$0xff]   ;;  %v17926_v45 = vld [vmem:[%s23319_s4 + $0xd0] sm:$0xff]  }
 0x271   :  { %16238 = vmatprep.subr.bf16.mxu1 %v17915_v36  ;;  %v20912_v46 = vadd.f32 %v16077_v42, %v16049_v21  ;;  %v17928_v36 = vld [vmem:[%s23319_s4 + $0x90] sm:$0xff]   ;;  %v17934_v21 = vld [vmem:[%s23319_s4 + $0xe0] sm:$0xff]  }
 0x272   :  { %v17935_v42 = vld [vmem:[%s23319_s4 + $0x60] sm:$0xff]  }
 0x273   :  { %16211 = vmatpush3.bf16.msra.mxu0 %v17916_v61  ;;  %v20930_v61 = vpack.c.bf16 %v23502_v59, %v20544_v50  ;;  %v17927_v50 = vld [vmem:[%s23319_s4 + $0x50] sm:$0xff]  }
 0x274   :  { %16239 = vmatpush3.bf16.msra.mxu1 %v17917_v6  ;;  %16252 = vmatprep.subr.bf16.mxu0 %v17918_v3  ;;  %v17925_v6 = vld [vmem:[%s23319_s4 + $0x8] sm:$0xff]   ;;  %v17933_v3 = vld [vmem:[%s23319_s4 + $0x18] sm:$0xff]  }
 0x275   :  { %16280 = vmatprep.subr.bf16.mxu1 %v17919_v24  ;;  %v17937_v24 = vld [vmem:[%s23319_s4 + $0x20] sm:$0xff]  }
 0x276   :  { %5344 = vmatmul.mubr.bf16.vlgmr.msra.gmra.mrb[152].mxu0 %v20919_v17 }
 0x277   :  { %5535 = vmatmul.mubr.bf16.vlgmr.msra.gmra.mrb[88].mxu1 %v20539_v25  ;;  %5351 = vmatprep.mubr.bf16.mxu0 %v20549_v15 }
 0x278   :  { %5542 = vmatprep.mubr.bf16.mxu1 %v20930_v61  ;;  %16253 = vmatpush3.bf16.msra.mxu0 %v17920_v62  ;;  %v17930_v62 = vld [vmem:[%s23319_s4 + $0xd8] sm:$0xff]  }
 0x279   :  { %16281 = vmatpush3.bf16.msra.mxu1 %v17921_v11  ;;  %16254 = vmatprep.subr.bf16.mxu0 %v17922_v56  ;;  %v16050_v11 = vpop.f32.mrb[132].mxu0  ;;  %v16078_v56 = vpop.f32.mrb[68].mxu1 }
 0x27a   :  { %16282 = vmatprep.subr.bf16.mxu1 %v17923_v54  ;;  %v17939_v54 = vld [vmem:[%s23319_s4 + $0x68] sm:$0xff]  }
 0x27c   :  { %16255 = vmatpush3.bf16.msra.mxu0 %v17924_v20  ;;  %v16051_v20 = vpop.f32.mrb[133].mxu0 }
 0x27d   :  { %16283 = vmatpush3.bf16.msra.mxu1 %v17925_v6  ;;  %16256 = vmatprep.subr.bf16.mxu0 %v17926_v45  ;;  %v16079_v6 = vpop.f32.mrb[69].mxu1  ;;  %v16052_v45 = vadd.f32 %v16051_v20, %v16050_v11  ;;  %v17944_v20 = vld [vmem:[%s23319_s4 + $0xb0] sm:$0xff]  }
 0x27e   :  { %5352 = vmatmul.mubr.bf16.gmra.mrb[156].mxu0 %v20551_v19  ;;  %16284 = vmatprep.subr.bf16.mxu1 %v17927_v50  ;;  %v16080_v50 = vadd.f32 %v16079_v6, %v16078_v56  ;;  %v17943_v56 = vld [vmem:[%s23319_s4 + $0x70] sm:$0xff]  }
 0x27f   :  { %5543 = vmatmul.mubr.bf16.gmra.mrb[92].mxu1 %v20568_v39  ;;  %5797 = vmatprep.mubr.bf16.mxu0 %v20495_v2  ;;  %v17936_v2 = vld [vmem:[%s23319_s4 + $0xa0] sm:$0xff]  }
 0x280   :  { %16257 = vmatpush3.bf16.msra.mxu0 %v17928_v36  ;;  %5942 = vmatprep.mubr.bf16.mxu1 %v20469_v5  ;;  %v17938_v5 = vld [vmem:[%s23319_s4 + $0xe8] sm:$0xff]   ;;  %v16053_v36 = vpop.f32.mrb[134].mxu0 }
 0x281   :  { %16285 = vmatpush3.bf16.msra.mxu1 %v17929_v30  ;;  %16258 = vmatprep.subr.bf16.mxu0 %v17930_v62  ;;  %v16081_v30 = vpop.f32.mrb[70].mxu1  ;;  %v17940_v62 = vld [vmem:[%s23319_s4 + $0xa8] sm:$0xff]  }
 0x282   :  { %16286 = vmatprep.subr.bf16.mxu1 %v17931_v58  ;;  %v17941_v58 = vld [vmem:[%s23319_s4 + $0x28] sm:$0xff]  }
 0x284   :  { %16259 = vmatpush3.bf16.msra.mxu0 %v17932_v33  ;;  %v16054_v33 = vpop.f32.mrb[135].mxu0 }
 0x285   :  { %16287 = vmatpush3.bf16.msra.mxu1 %v17933_v3  ;;  %16260 = vmatprep.subr.bf16.mxu0 %v17934_v21  ;;  %v16082_v3 = vpop.f32.mrb[71].mxu1  ;;  %v17942_v21 = vld [vmem:[%s23319_s4 + $0xf0] sm:$0xff]   ;;  %v16055_v11 = vadd.f32 %v16054_v33, %v16053_v36  ;;  %v17950_v36 = vld [vmem:[%s23319_s4 + $0x140] sm:$0xff]   ;;  %v17954_v33 = vld [vmem:[%s23319_s4 + $0x148] sm:$0xff]  }
 0x286   :  { %16288 = vmatprep.subr.bf16.mxu1 %v17935_v42  ;;  %v20996_v42 = vadd.f32 %v16080_v50, %v16052_v45  ;;  %v17948_v45 = vld [vmem:[%s23319_s4 + $0xb8] sm:$0xff]  }
 0x287   :  { %v17949_v50 = vld [vmem:[%s23319_s4 + $0x38] sm:$0xff]  }
 0x288   :  { %16261 = vmatpush3.bf16.msra.mxu0 %v17936_v2  ;;  %v16083_v2 = vadd.f32 %v16082_v3, %v16081_v30  ;;  %v17951_v30 = vld [vmem:[%s23319_s4 + $0x1c0] sm:$0xff]   ;;  %v17955_v3 = vld [vmem:[%s23319_s4 + $0x1c8] sm:$0xff]  }
 0x289   :  { %16289 = vmatpush3.bf16.msra.mxu1 %v17937_v24  ;;  %16262 = vmatprep.subr.bf16.mxu0 %v17938_v5  ;;  %v17945_v24 = vld [vmem:[%s23319_s4 + $0x30] sm:$0xff]   ;;  %v17946_v5 = vld [vmem:[%s23319_s4 + $0xf8] sm:$0xff]  }
 0x28a   :  { %16290 = vmatprep.subr.bf16.mxu1 %v17939_v54  ;;  %v21004_v6 = vadd.f32 %v16083_v2, %v16055_v11  ;;  %v17947_v54 = vld [vmem:[%s23319_s4 + $0x78] sm:$0xff]   ;;  %v17957_v11 = vld [vmem:[%s23319_s4 + $0x188] sm:$0xff]   ;;  %v17958_v2 = vld [vmem:[%s23319_s4 + $0x150] sm:$0xff]  }
 0x28c   :  { %16263 = vmatpush3.bf16.msra.mxu0 %v17940_v62  ;;  %v17952_v62 = vld [vmem:[%s23319_s4 + $0x100] sm:$0xff]  }
 0x28d   :  { %16291 = vmatpush3.bf16.msra.mxu1 %v17941_v58  ;;  %16264 = vmatprep.subr.bf16.mxu0 %v17942_v21  ;;  %v17953_v58 = vld [vmem:[%s23319_s4 + $0x180] sm:$0xff]   ;;  %v17956_v21 = vld [vmem:[%s23319_s4 + $0x108] sm:$0xff]  }
 0x28e   :  { %16292 = vmatprep.subr.bf16.mxu1 %v17943_v56  ;;  %v17963_v56 = vld [vmem:[%s23319_s4 + $0x1d8] sm:$0xff]  }
 0x290   :  { %16265 = vmatpush3.bf16.msra.mxu0 %v17944_v20  ;;  %v17964_v20 = vld [vmem:[%s23319_s4 + $0x118] sm:$0xff]  }
 0x291   :  { %16293 = vmatpush3.bf16.msra.mxu1 %v17945_v24  ;;  %16266 = vmatprep.subr.bf16.mxu0 %v17946_v5  ;;  %v17965_v24 = vld [vmem:[%s23319_s4 + $0x198] sm:$0xff]   ;;  %v17966_v5 = vld [vmem:[%s23319_s4 + $0x160] sm:$0xff]  }
 0x292   :  { %16294 = vmatprep.subr.bf16.mxu1 %v17947_v54  ;;  %v17971_v54 = vld [vmem:[%s23319_s4 + $0x1e8] sm:$0xff]  }
 0x294   :  { %16267 = vmatpush3.bf16.msra.mxu0 %v17948_v45  ;;  %v17972_v45 = vld [vmem:[%s23319_s4 + $0x128] sm:$0xff]  }
 0x295   :  { %16295 = vmatpush3.bf16.msra.mxu1 %v17949_v50  ;;  %16308 = vmatprep.subr.bf16.mxu0 %v17950_v36  ;;  %v17973_v50 = vld [vmem:[%s23319_s4 + $0x1a8] sm:$0xff]   ;;  %v17974_v36 = vld [vmem:[%s23319_s4 + $0x170] sm:$0xff]  }
 0x296   :  { %16336 = vmatprep.subr.bf16.mxu1 %v17951_v30  ;;  %v17975_v30 = vld [vmem:[%s23319_s4 + $0x1f0] sm:$0xff]  }
 0x297   :  { %5798 = vmatmul.mubr.bf16.vlgmr.msra.gmra.mrb[160].mxu0 %v20487_v29  ;;  %v17959_v29 = vld [vmem:[%s23319_s4 + $0x1d0] sm:$0xff]  }
 0x298   :  { %5943 = vmatmul.mubr.bf16.vlgmr.msra.gmra.mrb[96].mxu1 %v20803_v60  ;;  %5805 = vmatprep.mubr.bf16.mxu0 %v20814_v48  ;;  %v17960_v48 = vld [vmem:[%s23319_s4 + $0x110] sm:$0xff]  }
 0x299   :  { %5950 = vmatprep.mubr.bf16.mxu1 %v20510_v26  ;;  %16309 = vmatpush3.bf16.msra.mxu0 %v17952_v62  ;;  %v17961_v60 = vld [vmem:[%s23319_s4 + $0x190] sm:$0xff]   ;;  %v17962_v26 = vld [vmem:[%s23319_s4 + $0x158] sm:$0xff]  }
 0x29a   :  { %16337 = vmatpush3.bf16.msra.mxu1 %v17953_v58  ;;  %16310 = vmatprep.subr.bf16.mxu0 %v17954_v33  ;;  %v17976_v62 = vld [vmem:[%s23319_s4 + $0x130] sm:$0xff]   ;;  %v17978_v33 = vld [vmem:[%s23319_s4 + $0x178] sm:$0xff]  }
 0x29b   :  { %16338 = vmatprep.subr.bf16.mxu1 %v17955_v3  ;;  %v17977_v58 = vld [vmem:[%s23319_s4 + $0x1b0] sm:$0xff]   ;;  %v17979_v3 = vld [vmem:[%s23319_s4 + $0x1f8] sm:$0xff]  }
 0x29d   :  { %16311 = vmatpush3.bf16.msra.mxu0 %v17956_v21  ;;  %v17980_v21 = vld [vmem:[%s23319_s4 + $0x138] sm:$0xff]  }
 0x29e   :  { %16339 = vmatpush3.bf16.msra.mxu1 %v17957_v11  ;;  %16312 = vmatprep.subr.bf16.mxu0 %v17958_v2  ;;  %v17981_v11 = vld [vmem:[%s23319_s4 + $0x1b8] sm:$0xff]   ;;  %v17982_v2 = vld [vmem:[%s23319_s4 + $0x240] sm:$0xff]  }
 0x29f   :  { %5806 = vmatmul.mubr.bf16.gmra.mrb[164].mxu0 %v20528_v14  ;;  %16340 = vmatprep.subr.bf16.mxu1 %v17959_v29  ;;  %v17967_v14 = vld [vmem:[%s23319_s4 + $0x1e0] sm:$0xff]  }
 0x2a0   :  { %5951 = vmatmul.mubr.bf16.gmra.mrb[100].mxu1 %v20498_v12  ;;  %6128 = vmatprep.mubr.bf16.mxu0 %v20531_v1  ;;  %v17968_v12 = vld [vmem:[%s23319_s4 + $0x120] sm:$0xff]  }
 0x2a1   :  { %16313 = vmatpush3.bf16.msra.mxu0 %v17960_v48  ;;  %6318 = vmatprep.mubr.bf16.mxu1 %v20541_v43  ;;  %v17969_v1 = vld [vmem:[%s23319_s4 + $0x1a0] sm:$0xff]   ;;  %v17970_v43 = vld [vmem:[%s23319_s4 + $0x168] sm:$0xff]  }
 0x2a2   :  { %16341 = vmatpush3.bf16.msra.mxu1 %v17961_v60  ;;  %16314 = vmatprep.subr.bf16.mxu0 %v17962_v26  ;;  %v17983_v29 = vld [vmem:[%s23319_s4 + $0x2c0] sm:$0xff]   ;;  %v17986_v26 = vld [vmem:[%s23319_s4 + $0x248] sm:$0xff]  }
 0x2a3   :  { %16342 = vmatprep.subr.bf16.mxu1 %v17963_v56  ;;  %v17984_v48 = vld [vmem:[%s23319_s4 + $0x200] sm:$0xff]   ;;  %v17987_v56 = vld [vmem:[%s23319_s4 + $0x2c8] sm:$0xff]  }
 0x2a4   :  { %v17985_v60 = vld [vmem:[%s23319_s4 + $0x280] sm:$0xff]  }
 0x2a5   :  { %16315 = vmatpush3.bf16.msra.mxu0 %v17964_v20  ;;  %v17988_v20 = vld [vmem:[%s23319_s4 + $0x208] sm:$0xff]  }
 0x2a6   :  { %16343 = vmatpush3.bf16.msra.mxu1 %v17965_v24  ;;  %16316 = vmatprep.subr.bf16.mxu0 %v17966_v5  ;;  %v17989_v24 = vld [vmem:[%s23319_s4 + $0x288] sm:$0xff]   ;;  %v17990_v5 = vld [vmem:[%s23319_s4 + $0x250] sm:$0xff]  }
 0x2a7   :  { %16344 = vmatprep.subr.bf16.mxu1 %v17967_v14  ;;  %v17995_v14 = vld [vmem:[%s23319_s4 + $0x2d8] sm:$0xff]  }
 0x2a9   :  { %16317 = vmatpush3.bf16.msra.mxu0 %v17968_v12  ;;  %v17996_v12 = vld [vmem:[%s23319_s4 + $0x218] sm:$0xff]  }
 0x2aa   :  { %16345 = vmatpush3.bf16.msra.mxu1 %v17969_v1  ;;  %16318 = vmatprep.subr.bf16.mxu0 %v17970_v43  ;;  %v17997_v1 = vld [vmem:[%s23319_s4 + $0x298] sm:$0xff]   ;;  %v17998_v43 = vld [vmem:[%s23319_s4 + $0x260] sm:$0xff]  }
 0x2ab   :  { %16346 = vmatprep.subr.bf16.mxu1 %v17971_v54  ;;  %v18001_v54 = vld [vmem:[%s23319_s4 + $0x2a0] sm:$0xff]  }
 0x2ad   :  { %16319 = vmatpush3.bf16.msra.mxu0 %v17972_v45  ;;  %v18002_v45 = vld [vmem:[%s23319_s4 + $0x268] sm:$0xff]  }
 0x2ae   :  { %16347 = vmatpush3.bf16.msra.mxu1 %v17973_v50  ;;  %16320 = vmatprep.subr.bf16.mxu0 %v17974_v36  ;;  %v18003_v50 = vld [vmem:[%s23319_s4 + $0x2e8] sm:$0xff]  }
 0x2af   :  { %16348 = vmatprep.subr.bf16.mxu1 %v17975_v30  ;;  %v18004_v36 = vld [vmem:[%s23319_s4 + $0x228] sm:$0xff]  }
 0x2b0   :  { %v18005_v30 = vld [vmem:[%s23319_s4 + $0x2a8] sm:$0xff]  }
 0x2b1   :  { %16321 = vmatpush3.bf16.msra.mxu0 %v17976_v62  ;;  %v18006_v62 = vld [vmem:[%s23319_s4 + $0x270] sm:$0xff]  }
 0x2b2   :  { %16349 = vmatpush3.bf16.msra.mxu1 %v17977_v58  ;;  %16322 = vmatprep.subr.bf16.mxu0 %v17978_v33  ;;  %v18007_v58 = vld [vmem:[%s23319_s4 + $0x2f0] sm:$0xff]  }
 0x2b3   :  { %16350 = vmatprep.subr.bf16.mxu1 %v17979_v3  ;;  %v18008_v33 = vld [vmem:[%s23319_s4 + $0x230] sm:$0xff]  }
 0x2b4   :  { %v18009_v3 = vld [vmem:[%s23319_s4 + $0x2b0] sm:$0xff]  }
 0x2b5   :  { %16323 = vmatpush3.bf16.msra.mxu0 %v17980_v21  ;;  %v18010_v21 = vld [vmem:[%s23319_s4 + $0x278] sm:$0xff]  }
 0x2b6   :  { %16351 = vmatpush3.bf16.msra.mxu1 %v17981_v11  ;;  %16364 = vmatprep.subr.bf16.mxu0 %v17982_v2  ;;  %v18011_v11 = vld [vmem:[%s23319_s4 + $0x2f8] sm:$0xff]  }
 0x2b7   :  { %16392 = vmatprep.subr.bf16.mxu1 %v17983_v29  ;;  %v18012_v2 = vld [vmem:[%s23319_s4 + $0x238] sm:$0xff]  }
 0x2b8   :  { %6129 = vmatmul.mubr.bf16.vlgmr.msra.gmra.mrb[168].mxu0 %v20919_v17  ;;  %v17991_v17 = vld [vmem:[%s23319_s4 + $0x2d0] sm:$0xff]   ;;  %v18013_v29 = vld [vmem:[%s23319_s4 + $0x2b8] sm:$0xff]  }
 0x2b9   :  { %6319 = vmatmul.mubr.bf16.vlgmr.msra.gmra.mrb[104].mxu1 %v20539_v25  ;;  %6136 = vmatprep.mubr.bf16.mxu0 %v20549_v15  ;;  %v17992_v25 = vld [vmem:[%s23319_s4 + $0x210] sm:$0xff]  }
 0x2ba   :  { %6326 = vmatprep.mubr.bf16.mxu1 %v20930_v61  ;;  %16365 = vmatpush3.bf16.msra.mxu0 %v17984_v48  ;;  %v17993_v15 = vld [vmem:[%s23319_s4 + $0x290] sm:$0xff]   ;;  %v17994_v61 = vld [vmem:[%s23319_s4 + $0x258] sm:$0xff]   ;;  %v18014_v48 = vld [vmem:[%s23319_s4 + $0x340] sm:$0xff]  }
 0x2bb   :  { %16393 = vmatpush3.bf16.msra.mxu1 %v17985_v60  ;;  %16366 = vmatprep.subr.bf16.mxu0 %v17986_v26  ;;  %v18015_v60 = vld [vmem:[%s23319_s4 + $0x3c0] sm:$0xff]   ;;  %v21237_v26 = vpack.c.bf16 %v20555_v9, %v23502_v59  ;;  %v18019_v9 = vld [vmem:[%s23319_s4 + $0x3c8] sm:$0xff]  }
 0x2bc   :  { %16394 = vmatprep.subr.bf16.mxu1 %v17987_v56  ;;  %v18016_v56 = vld [vmem:[%s23319_s4 + $0x300] sm:$0xff]  }
 0x2be   :  { %16367 = vmatpush3.bf16.msra.mxu0 %v17988_v20  ;;  %v18017_v20 = vld [vmem:[%s23319_s4 + $0x380] sm:$0xff]  }
 0x2bf   :  { %16395 = vmatpush3.bf16.msra.mxu1 %v17989_v24  ;;  %16368 = vmatprep.subr.bf16.mxu0 %v17990_v5  ;;  %v18018_v24 = vld [vmem:[%s23319_s4 + $0x348] sm:$0xff]   ;;  %v21254_v5 = vpack.c.bf16 %v23502_v59, %v20595_v13  ;;  %v18023_v13 = vld [vmem:[%s23319_s4 + $0x3d0] sm:$0xff]  }
 0x2c0   :  { %6137 = vmatmul.mubr.bf16.gmra.mrb[172].mxu0 %v20551_v19  ;;  %16396 = vmatprep.subr.bf16.mxu1 %v17991_v17  ;;  %v17999_v19 = vld [vmem:[%s23319_s4 + $0x2e0] sm:$0xff]   ;;  %v18020_v17 = vld [vmem:[%s23319_s4 + $0x308] sm:$0xff]  }
 0x2c1   :  { %6327 = vmatmul.mubr.bf16.gmra.mrb[108].mxu1 %v20568_v39  ;;  %6508 = vmatprep.mubr.bf16.mxu0 %v20580_v41  ;;  %v18000_v39 = vld [vmem:[%s23319_s4 + $0x220] sm:$0xff]  }
 0x2c2   :  { %16369 = vmatpush3.bf16.msra.mxu0 %v17992_v25  ;;  %6698 = vmatprep.mubr.bf16.mxu1 %v20588_v57  ;;  %v18021_v25 = vld [vmem:[%s23319_s4 + $0x388] sm:$0xff]  }
 0x2c3   :  { %16397 = vmatpush3.bf16.msra.mxu1 %v17993_v15  ;;  %16370 = vmatprep.subr.bf16.mxu0 %v17994_v61  ;;  %v18022_v15 = vld [vmem:[%s23319_s4 + $0x350] sm:$0xff]  }
 0x2c4   :  { %16398 = vmatprep.subr.bf16.mxu1 %v17995_v14  ;;  %v18024_v61 = vld [vmem:[%s23319_s4 + $0x310] sm:$0xff]  }
 0x2c5   :  { %v18025_v14 = vld [vmem:[%s23319_s4 + $0x390] sm:$0xff]  }
 0x2c6   :  { %16371 = vmatpush3.bf16.msra.mxu0 %v17996_v12  ;;  %v18026_v12 = vld [vmem:[%s23319_s4 + $0x358] sm:$0xff]  }
 0x2c7   :  { %16399 = vmatpush3.bf16.msra.mxu1 %v17997_v1  ;;  %16372 = vmatprep.subr.bf16.mxu0 %v17998_v43  ;;  %v18027_v1 = vld [vmem:[%s23319_s4 + $0x3d8] sm:$0xff]  }
 0x2c8   :  { %16400 = vmatprep.subr.bf16.mxu1 %v17999_v19  ;;  %v18028_v43 = vld [vmem:[%s23319_s4 + $0x318] sm:$0xff]  }
 0x2c9   :  { %v18029_v19 = vld [vmem:[%s23319_s4 + $0x398] sm:$0xff]  }
 0x2ca   :  { %16373 = vmatpush3.bf16.msra.mxu0 %v18000_v39  ;;  %v18030_v39 = vld [vmem:[%s23319_s4 + $0x360] sm:$0xff]  }
 0x2cb   :  { %16401 = vmatpush3.bf16.msra.mxu1 %v18001_v54  ;;  %16374 = vmatprep.subr.bf16.mxu0 %v18002_v45  ;;  %v18031_v54 = vld [vmem:[%s23319_s4 + $0x3e0] sm:$0xff]  }
 0x2cc   :  { %16402 = vmatprep.subr.bf16.mxu1 %v18003_v50  ;;  %v18032_v45 = vld [vmem:[%s23319_s4 + $0x320] sm:$0xff]  }
 0x2cd   :  { %v18033_v50 = vld [vmem:[%s23319_s4 + $0x3a0] sm:$0xff]  }
 0x2ce   :  { %16375 = vmatpush3.bf16.msra.mxu0 %v18004_v36  ;;  %v18034_v36 = vld [vmem:[%s23319_s4 + $0x368] sm:$0xff]  }
 0x2cf   :  { %16403 = vmatpush3.bf16.msra.mxu1 %v18005_v30  ;;  %16376 = vmatprep.subr.bf16.mxu0 %v18006_v62  ;;  %v18035_v30 = vld [vmem:[%s23319_s4 + $0x3e8] sm:$0xff]  }
 0x2d0   :  { %16404 = vmatprep.subr.bf16.mxu1 %v18007_v58  ;;  %v18036_v62 = vld [vmem:[%s23319_s4 + $0x328] sm:$0xff]  }
 0x2d1   :  { %v18037_v58 = vld [vmem:[%s23319_s4 + $0x3a8] sm:$0xff]  }
 0x2d2   :  { %16377 = vmatpush3.bf16.msra.mxu0 %v18008_v33  ;;  %v18038_v33 = vld [vmem:[%s23319_s4 + $0x370] sm:$0xff]  }
 0x2d3   :  { %16405 = vmatpush3.bf16.msra.mxu1 %v18009_v3  ;;  %16378 = vmatprep.subr.bf16.mxu0 %v18010_v21  ;;  %v18039_v3 = vld [vmem:[%s23319_s4 + $0x3f0] sm:$0xff]  }
 0x2d4   :  { %16406 = vmatprep.subr.bf16.mxu1 %v18011_v11  ;;  %v18040_v21 = vld [vmem:[%s23319_s4 + $0x330] sm:$0xff]  }
 0x2d5   :  { %v18041_v11 = vld [vmem:[%s23319_s4 + $0x3b0] sm:$0xff]  }
 0x2d6   :  { %16379 = vmatpush3.bf16.msra.mxu0 %v18012_v2  ;;  %v18042_v2 = vld [vmem:[%s23319_s4 + $0x378] sm:$0xff]  }
 0x2d7   :  { %16407 = vmatpush3.bf16.msra.mxu1 %v18013_v29  ;;  %16420 = vmatprep.subr.bf16.mxu0 %v18014_v48  ;;  %v18043_v29 = vld [vmem:[%s23319_s4 + $0x3f8] sm:$0xff]  }
 0x2d8   :  { %16448 = vmatprep.subr.bf16.mxu1 %v18015_v60  ;;  %v18044_v48 = vld [vmem:[%s23319_s4 + $0x338] sm:$0xff]  }
 0x2d9   :  { %6509 = vmatmul.mubr.bf16.vlgmr.msra.gmra.mrb[176].mxu0 %v21237_v26  ;;  %v18045_v60 = vld [vmem:[%s23319_s4 + $0x3b8] sm:$0xff]  }
 0x2da   :  { %6699 = vmatmul.mubr.bf16.vlgmr.msra.gmra.mrb[112].mxu1 %v20586_v49  ;;  %6516 = vmatprep.mubr.bf16.mxu0 %v20606_v0 }
 0x2db   :  { %6706 = vmatprep.mubr.bf16.mxu1 %v21254_v5  ;;  %16421 = vmatpush3.bf16.msra.mxu0 %v18016_v56  ;;  %v18046_v56 = vld [vmem:[%s23319_s4 + $0xc0] sm:$0xff]  }
 0x2dc   :  { %16449 = vmatpush3.bf16.msra.mxu1 %v18017_v20  ;;  %16422 = vmatprep.subr.bf16.mxu0 %v18018_v24  ;;  %v18047_v20 = vld [vmem:[%s23319_s4 + $0x40] sm:$0xff]  }
 0x2dd   :  { %16450 = vmatprep.subr.bf16.mxu1 %v18019_v9  ;;  %v18048_v24 = vld [vmem:[%s23319_s4 + $0x80] sm:$0xff]   ;;  %v21352_v9 = vpack.c.bf16 %v20601_v37, %v23502_v59  ;;  %v21366_v37 = vpack.c.bf16 %v23502_v59, %v20641_v28  ;;  %v18055_v28 = vld [vmem:[%s23319_s4 + $0x50] sm:$0xff]  }
 0x2df   :  { %16423 = vmatpush3.bf16.msra.mxu0 %v18020_v17  ;;  %v18049_v17 = vld [vmem:[%s23319_s4] sm:$0xff]  }
 0x2e0   :  { %16451 = vmatpush3.bf16.msra.mxu1 %v18021_v25  ;;  %16424 = vmatprep.subr.bf16.mxu0 %v18022_v15  ;;  %v18050_v25 = vld [vmem:[%s23319_s4 + $0xc8] sm:$0xff]  }
 0x2e1   :  { %6517 = vmatmul.mubr.bf16.gmra.mrb[180].mxu0 %v20597_v27  ;;  %16452 = vmatprep.subr.bf16.mxu1 %v18023_v13  ;;  %v18051_v15 = vld [vmem:[%s23319_s4 + $0x48] sm:$0xff]  }
 0x2e2   :  { %6707 = vmatmul.mubr.bf16.gmra.mrb[116].mxu1 %v20620_v47  ;;  %6888 = vmatprep.mubr.bf16.mxu0 %v20628_v32  ;;  %v18052_v13 = vld [vmem:[%s23319_s4 + $0x88] sm:$0xff]  }
 0x2e3   :  { %16425 = vmatpush3.bf16.msra.mxu0 %v18024_v61  ;;  %7078 = vmatprep.mubr.bf16.mxu1 %v20633_v7  ;;  %v18053_v61 = vld [vmem:[%s23319_s4 + $0x8] sm:$0xff]  }
 0x2e4   :  { %16453 = vmatpush3.bf16.msra.mxu1 %v18025_v14  ;;  %16426 = vmatprep.subr.bf16.mxu0 %v18026_v12  ;;  %v18054_v14 = vld [vmem:[%s23319_s4 + $0xd0] sm:$0xff]  }
 0x2e5   :  { %16454 = vmatprep.subr.bf16.mxu1 %v18027_v1  ;;  %v18056_v12 = vld [vmem:[%s23319_s4 + $0x90] sm:$0xff]  }
 0x2e6   :  { %v18057_v1 = vld [vmem:[%s23319_s4 + $0x10] sm:$0xff]  }
 0x2e7   :  { %16427 = vmatpush3.bf16.msra.mxu0 %v18028_v43  ;;  %v18058_v43 = vld [vmem:[%s23319_s4 + $0xd8] sm:$0xff]  }
 0x2e8   :  { %16455 = vmatpush3.bf16.msra.mxu1 %v18029_v19  ;;  %16428 = vmatprep.subr.bf16.mxu0 %v18030_v39  ;;  %v18059_v19 = vld [vmem:[%s23319_s4 + $0x58] sm:$0xff]  }
 0x2e9   :  { %16456 = vmatprep.subr.bf16.mxu1 %v18031_v54  ;;  %v23504_v39 = vld [vmem:[#allocation31_spill] sm:$0xff] }
 0x2ea   :  { %v18060_v54 = vld [vmem:[%s23319_s4 + $0x98] sm:$0xff]  }
 0x2eb   :  { %16429 = vmatpush3.bf16.msra.mxu0 %v18032_v45  ;;  %v18061_v45 = vld [vmem:[%s23319_s4 + $0x18] sm:$0xff]  }
 0x2ec   :  { %16457 = vmatpush3.bf16.msra.mxu1 %v18033_v50  ;;  %16430 = vmatprep.subr.bf16.mxu0 %v18034_v36  ;;  %v18062_v50 = vld [vmem:[%s23319_s4 + $0xe0] sm:$0xff]  }
 0x2ed   :  { %16458 = vmatprep.subr.bf16.mxu1 %v18035_v30  ;;  %v18063_v36 = vld [vmem:[%s23319_s4 + $0x60] sm:$0xff]  }
 0x2ef   :  { %16431 = vmatpush3.bf16.msra.mxu0 %v18036_v62  ;;  %v18065_v62 = vld [vmem:[%s23319_s4 + $0x20] sm:$0xff]  }
 0x2f0   :  { %16459 = vmatpush3.bf16.msra.mxu1 %v18037_v58  ;;  %16432 = vmatprep.subr.bf16.mxu0 %v18038_v33  ;;  %v18066_v58 = vld [vmem:[%s23319_s4 + $0xe8] sm:$0xff]  }
 0x2f1   :  { %16460 = vmatprep.subr.bf16.mxu1 %v18039_v3  ;;  %v18067_v3 = vld [vmem:[%s23319_s4 + $0x68] sm:$0xff]  }
 0x2f3   :  { %16433 = vmatpush3.bf16.msra.mxu0 %v18040_v21 }
 0x2f4   :  { %16461 = vmatpush3.bf16.msra.mxu1 %v18041_v11  ;;  %16434 = vmatprep.subr.bf16.mxu0 %v18042_v2 }
 0x2f5   :  { %16462 = vmatprep.subr.bf16.mxu1 %v18043_v29 }
 0x2f7   :  { %16435 = vmatpush3.bf16.msra.mxu0 %v18044_v48 }
 0x2f8   :  { %16463 = vmatpush3.bf16.msra.mxu1 %v18045_v60  ;;  %16476 = vmatprep.subr.bf16.mxu0 %v18046_v56 }
 0x2f9   :  { %16504 = vmatprep.subr.bf16.mxu1 %v18047_v20  ;;  %v18068_v20 = vld [vmem:[%s23319_s4 + $0xa8] sm:$0xff]  }
 0x2fa   :  { %6889 = vmatmul.mubr.bf16.vlgmr.msra.gmra.mrb[184].mxu0 %v21352_v9 }
 0x2fb   :  { %7079 = vmatmul.mubr.bf16.vlgmr.msra.gmra.mrb[120].mxu1 %v20631_v63  ;;  %6896 = vmatprep.mubr.bf16.mxu0 %v20667_v16 }
 0x2fc   :  { %7086 = vmatprep.mubr.bf16.mxu1 %v21366_v37  ;;  %16477 = vmatpush3.bf16.msra.mxu0 %v18048_v24 }
 0x2fd   :  { %16505 = vmatpush3.bf16.msra.mxu1 %v18049_v17  ;;  %16478 = vmatprep.subr.bf16.mxu0 %v18050_v25  ;;  %v18069_v25 = vld [vmem:[%s23319_s4 + $0x28] sm:$0xff]  }
 0x2fe   :  { %16506 = vmatprep.subr.bf16.mxu1 %v18051_v15 }
 0x300   :  { %16479 = vmatpush3.bf16.msra.mxu0 %v18052_v13  ;;  %v18070_v13 = vld [vmem:[%s23319_s4 + $0xf0] sm:$0xff]  }
 0x301   :  { %16507 = vmatpush3.bf16.msra.mxu1 %v18053_v61  ;;  %16480 = vmatprep.subr.bf16.mxu0 %v18054_v14  ;;  %v18071_v14 = vld [vmem:[%s23319_s4 + $0x70] sm:$0xff]  }
 0x302   :  { %6897 = vmatmul.mubr.bf16.gmra.mrb[188].mxu0 %v23504_v39  ;;  %16508 = vmatprep.subr.bf16.mxu1 %v18055_v28 }
 0x303   :  { %7087 = vmatmul.mubr.bf16.gmra.mrb[124].mxu1 %v20670_v35  ;;  %7343 = vmatprep.mubr.bf16.mxu0 %v20588_v57  ;;  %v18064_v57 = vld [vmem:[%s23319_s4 + $0xa0] sm:$0xff]  }
 0x304   :  { %16481 = vmatpush3.bf16.msra.mxu0 %v18056_v12  ;;  %7488 = vmatprep.mubr.bf16.mxu1 %v20580_v41  ;;  %v18072_v12 = vld [vmem:[%s23319_s4 + $0xb0] sm:$0xff]  }
 0x305   :  { %16509 = vmatpush3.bf16.msra.mxu1 %v18057_v1  ;;  %16482 = vmatprep.subr.bf16.mxu0 %v18058_v43  ;;  %v18073_v43 = vld [vmem:[%s23319_s4 + $0x30] sm:$0xff]  }
 0x306   :  { %16510 = vmatprep.subr.bf16.mxu1 %v18059_v19 }
 0x307   :  { %v16100_v30 = vpop.f32.mrb[136].mxu0 }
 0x308   :  { %16483 = vmatpush3.bf16.msra.mxu0 %v18060_v54  ;;  %v16101_v33 = vpop.f32.mrb[137].mxu0 }
 0x309   :  { %16511 = vmatpush3.bf16.msra.mxu1 %v18061_v45  ;;  %16484 = vmatprep.subr.bf16.mxu0 %v18062_v50  ;;  %v16128_v41 = vpop.f32.mrb[72].mxu1  ;;  %v16102_v21 = vadd.f32 %v16101_v33, %v16100_v30  ;;  %v16103_v2 = vpop.f32.mrb[138].mxu0  ;;  %v18075_v45 = vld [vmem:[%s23319_s4 + $0x78] sm:$0xff]  }
 0x30a   :  { %16512 = vmatprep.subr.bf16.mxu1 %v18063_v36  ;;  %v16129_v11 = vpop.f32.mrb[73].mxu1  ;;  %v16104_v60 = vpop.f32.mrb[139].mxu0  ;;  %v18076_v33 = vld [vmem:[%s23319_s4 + $0xb8] sm:$0xff]  }
 0x30b   :  { %v16130_v29 = vadd.f32 %v16129_v11, %v16128_v41  ;;  %v16131_v48 = vpop.f32.mrb[74].mxu1  ;;  %v4596_v56 = vadd.f32 %v16102_v21, %v20904_v8  ;;  %v16105_v24 = vadd.f32 %v16104_v60, %v16103_v2  ;;  %v18077_v11 = vld [vmem:[%s23319_s4 + $0x38] sm:$0xff]   ;;  %v18079_v60 = vld [vmem:[%s23319_s4 + $0x1c0] sm:$0xff]  }
 0x30c   :  { %16485 = vmatpush3.bf16.msra.mxu0 %v18064_v57  ;;  %v16132_v17 = vpop.f32.mrb[75].mxu1 }
 0x30d   :  { %16513 = vmatpush3.bf16.msra.mxu1 %v18065_v62  ;;  %16486 = vmatprep.subr.bf16.mxu0 %v18066_v58  ;;  %v16133_v15 = vadd.f32 %v16132_v17, %v16131_v48  ;;  %v21433_v61 = vadd.f32 %v16130_v29, %v4596_v56  ;;  %v4597_v8 = vadd.f32 %v16105_v24, %v20912_v46  ;;  %v18074_v46 = vld [vmem:[%s23319_s4 + $0xf8] sm:$0xff]   ;;  %v18078_v29 = vld [vmem:[%s23319_s4 + $0x140] sm:$0xff]   ;;  %v18083_v17 = vld [vmem:[%s23319_s4 + $0x1c8] sm:$0xff]  }
 0x30e   :  { %16514 = vmatprep.subr.bf16.mxu1 %v18067_v3  ;;  %v18081_v24 = vld [vmem:[%s23319_s4 + $0x180] sm:$0xff]  }
 0x30f   :  { %v21439_v28 = vadd.f32 %v16133_v15, %v4597_v8  ;;  %v16106_v1 = vpop.f32.mrb[140].mxu0  ;;  %v18085_v15 = vld [vmem:[%s23319_s4 + $0x188] sm:$0xff]   ;;  %v18091_v8 = vld [vmem:[%s23319_s4 + $0x1d8] sm:$0xff]  }
 0x310   :  { %16487 = vmatpush3.bf16.msra.mxu0 %v18068_v20  ;;  %v16107_v54 = vpop.f32.mrb[141].mxu0  ;;  %v18080_v20 = vld [vmem:[%s23319_s4 + $0x100] sm:$0xff]  }
 0x311   :  { %16515 = vmatpush3.bf16.msra.mxu1 %v18069_v25  ;;  %16488 = vmatprep.subr.bf16.mxu0 %v18070_v13  ;;  %v16134_v19 = vpop.f32.mrb[76].mxu1  ;;  %v16108_v50 = vadd.f32 %v16107_v54, %v16106_v1  ;;  %v16109_v57 = vpop.f32.mrb[142].mxu0  ;;  %v18084_v25 = vld [vmem:[%s23319_s4 + $0x108] sm:$0xff]   ;;  %v18086_v13 = vld [vmem:[%s23319_s4 + $0x150] sm:$0xff]   ;;  %v18094_v1 = vld [vmem:[%s23319_s4 + $0x160] sm:$0xff]  }
 0x312   :  { %16516 = vmatprep.subr.bf16.mxu1 %v18071_v14  ;;  %v16135_v36 = vpop.f32.mrb[77].mxu1  ;;  %v16110_v41 = vpop.f32.mrb[143].mxu0  ;;  %v18092_v14 = vld [vmem:[%s23319_s4 + $0x118] sm:$0xff]  }
 0x313   :  { %v16136_v30 = vadd.f32 %v16135_v36, %v16134_v19  ;;  %v16137_v62 = vpop.f32.mrb[78].mxu1  ;;  %v4598_v58 = vadd.f32 %v16108_v50, %v20996_v42  ;;  %v16111_v3 = vadd.f32 %v16110_v41, %v16109_v57  ;;  %v18099_v57 = vld [vmem:[%s23319_s4 + $0x1e8] sm:$0xff]  }
 0x314   :  { %16489 = vmatpush3.bf16.msra.mxu0 %v18072_v12  ;;  %v16138_v21 = vpop.f32.mrb[79].mxu1  ;;  %v18093_v12 = vld [vmem:[%s23319_s4 + $0x198] sm:$0xff]  }
 0x315   :  { %16517 = vmatpush3.bf16.msra.mxu1 %v18073_v43  ;;  %16490 = vmatprep.subr.bf16.mxu0 %v18074_v46  ;;  %v16139_v2 = vadd.f32 %v16138_v21, %v16137_v62  ;;  %v21463_v48 = vadd.f32 %v16136_v30, %v4598_v58  ;;  %v4599_v42 = vadd.f32 %v16111_v3, %v21004_v6  ;;  %v18082_v6 = vld [vmem:[%s23319_s4 + $0x148] sm:$0xff]  }
 0x316   :  { %16518 = vmatprep.subr.bf16.mxu1 %v18075_v45  ;;  %v18098_v45 = vld [vmem:[%s23319_s4 + $0x168] sm:$0xff]  }
 0x317   :  { %v21469_v56 = vadd.f32 %v16139_v2, %v4599_v42  ;;  %v18100_v3 = vld [vmem:[%s23319_s4 + $0x128] sm:$0xff]   ;;  %v18103_v42 = vld [vmem:[%s23319_s4 + $0x1f0] sm:$0xff]  }
 0x318   :  { %16491 = vmatpush3.bf16.msra.mxu0 %v18076_v33  ;;  %v18101_v2 = vld [vmem:[%s23319_s4 + $0x1a8] sm:$0xff]  }
 0x319   :  { %16519 = vmatpush3.bf16.msra.mxu1 %v18077_v11  ;;  %16532 = vmatprep.subr.bf16.mxu0 %v18078_v29 }
 0x31a   :  { %16560 = vmatprep.subr.bf16.mxu1 %v18079_v60 }
 0x31b   :  { %7344 = vmatmul.mubr.bf16.vlgmr.msra.gmra.mrb[192].mxu0 %v20586_v49  ;;  %v18087_v49 = vld [vmem:[%s23319_s4 + $0x1d0] sm:$0xff]  }
 0x31c   :  { %7489 = vmatmul.mubr.bf16.vlgmr.msra.gmra.mrb[128].mxu1 %v21237_v26  ;;  %7351 = vmatprep.mubr.bf16.mxu0 %v21254_v5  ;;  %v18088_v26 = vld [vmem:[%s23319_s4 + $0x110] sm:$0xff]  }
 0x31d   :  { %7496 = vmatprep.mubr.bf16.mxu1 %v20606_v0  ;;  %16533 = vmatpush3.bf16.msra.mxu0 %v18080_v20  ;;  %v18089_v5 = vld [vmem:[%s23319_s4 + $0x190] sm:$0xff]   ;;  %v18090_v0 = vld [vmem:[%s23319_s4 + $0x158] sm:$0xff]  }
 0x31e   :  { %16561 = vmatpush3.bf16.msra.mxu1 %v18081_v24  ;;  %16534 = vmatprep.subr.bf16.mxu0 %v18082_v6  ;;  %v18104_v24 = vld [vmem:[%s23319_s4 + $0x130] sm:$0xff]  }
 0x31f   :  { %16562 = vmatprep.subr.bf16.mxu1 %v18083_v17 }
 0x321   :  { %16535 = vmatpush3.bf16.msra.mxu0 %v18084_v25 }
 0x322   :  { %16563 = vmatpush3.bf16.msra.mxu1 %v18085_v15  ;;  %16536 = vmatprep.subr.bf16.mxu0 %v18086_v13  ;;  %v18106_v13 = vld [vmem:[%s23319_s4 + $0x178] sm:$0xff]  }
 0x323   :  { %7352 = vmatmul.mubr.bf16.gmra.mrb[196].mxu0 %v20620_v47  ;;  %16564 = vmatprep.subr.bf16.mxu1 %v18087_v49  ;;  %v18095_v47 = vld [vmem:[%s23319_s4 + $0x1e0] sm:$0xff]  }
 0x324   :  { %7497 = vmatmul.mubr.bf16.gmra.mrb[132].mxu1 %v20597_v27  ;;  %7674 = vmatprep.mubr.bf16.mxu0 %v20628_v32  ;;  %v18096_v32 = vld [vmem:[%s23319_s4 + $0x120] sm:$0xff]  }
 0x325   :  { %16537 = vmatpush3.bf16.msra.mxu0 %v18088_v26  ;;  %7864 = vmatprep.mubr.bf16.mxu1 %v20633_v7  ;;  %v18097_v7 = vld [vmem:[%s23319_s4 + $0x1a0] sm:$0xff]  }
 0x326   :  { %16565 = vmatpush3.bf16.msra.mxu1 %v18089_v5  ;;  %16538 = vmatprep.subr.bf16.mxu0 %v18090_v0  ;;  %v18107_v5 = vld [vmem:[%s23319_s4 + $0x1f8] sm:$0xff]  }
 0x327   :  { %16566 = vmatprep.subr.bf16.mxu1 %v18091_v8 }
 0x328   :  { %v16156_v27 = vpop.f32.mrb[144].mxu0 }
 0x329   :  { %16539 = vmatpush3.bf16.msra.mxu0 %v18092_v14  ;;  %v16184_v43 = vpop.f32.mrb[80].mxu1  ;;  %v16157_v19 = vpop.f32.mrb[145].mxu0 }
 0x32a   :  { %16567 = vmatpush3.bf16.msra.mxu1 %v18093_v12  ;;  %16540 = vmatprep.subr.bf16.mxu0 %v18094_v1  ;;  %v16158_v46 = vadd.f32 %v16157_v19, %v16156_v27  ;;  %v16185_v54 = vpop.f32.mrb[81].mxu1  ;;  %v16159_v50 = vpop.f32.mrb[146].mxu0 }
 0x32b   :  { %16568 = vmatprep.subr.bf16.mxu1 %v18095_v47  ;;  %v16186_v36 = vadd.f32 %v16185_v54, %v16184_v43  ;;  %v16187_v30 = vpop.f32.mrb[82].mxu1  ;;  %v16160_v62 = vpop.f32.mrb[147].mxu0  ;;  %v18108_v47 = vld [vmem:[%s23319_s4 + $0x138] sm:$0xff]   ;;  %v18112_v54 = vld [vmem:[%s23319_s4 + $0x200] sm:$0xff]  }
 0x32c   :  { %v4978_v41 = vadd.f32 %v16158_v46, %v21433_v61  ;;  %v16161_v58 = vadd.f32 %v16160_v62, %v16159_v50  ;;  %v16188_v33 = vpop.f32.mrb[83].mxu1  ;;  %v18102_v61 = vld [vmem:[%s23319_s4 + $0x170] sm:$0xff]   ;;  %v18109_v43 = vld [vmem:[%s23319_s4 + $0x1b8] sm:$0xff]   ;;  %v18115_v50 = vld [vmem:[%s23319_s4 + $0x2c8] sm:$0xff]  }
 0x32d   :  { %16541 = vmatpush3.bf16.msra.mxu0 %v18096_v32  ;;  %v16189_v21 = vadd.f32 %v16188_v33, %v16187_v30  ;;  %v18118_v30 = vld [vmem:[%s23319_s4 + $0x250] sm:$0xff]   ;;  %v18123_v62 = vld [vmem:[%s23319_s4 + $0x2d8] sm:$0xff]   ;;  %v18126_v33 = vld [vmem:[%s23319_s4 + $0x260] sm:$0xff]  }
 0x32e   :  { %16569 = vmatpush3.bf16.msra.mxu1 %v18097_v7  ;;  %v21543_v11 = vadd.f32 %v16186_v36, %v4978_v41  ;;  %16542 = vmatprep.subr.bf16.mxu0 %v18098_v45  ;;  %v4979_v29 = vadd.f32 %v16161_v58, %v21439_v28  ;;  %v18105_v28 = vld [vmem:[%s23319_s4 + $0x1b0] sm:$0xff]   ;;  %v18111_v7 = vld [vmem:[%s23319_s4 + $0x2c0] sm:$0xff]   ;;  %v18114_v45 = vld [vmem:[%s23319_s4 + $0x248] sm:$0xff]  }
 0x32f   :  { %16570 = vmatprep.subr.bf16.mxu1 %v18099_v57  ;;  %v18116_v36 = vld [vmem:[%s23319_s4 + $0x208] sm:$0xff]   ;;  %v18124_v41 = vld [vmem:[%s23319_s4 + $0x218] sm:$0xff]  }
 0x330   :  { %v21555_v60 = vadd.f32 %v16189_v21, %v4979_v29  ;;  %v16162_v20 = vpop.f32.mrb[148].mxu0  ;;  %v18117_v57 = vld [vmem:[%s23319_s4 + $0x288] sm:$0xff]   ;;  %v18125_v58 = vld [vmem:[%s23319_s4 + $0x298] sm:$0xff]   ;;  %v18129_v29 = vld [vmem:[%s23319_s4 + $0x2a0] sm:$0xff]  }
 0x331   :  { %16543 = vmatpush3.bf16.msra.mxu0 %v18100_v3  ;;  %v16190_v6 = vpop.f32.mrb[84].mxu1  ;;  %v16163_v17 = vpop.f32.mrb[149].mxu0  ;;  %v18128_v3 = vld [vmem:[%s23319_s4 + $0x220] sm:$0xff]  }
 0x332   :  { %16571 = vmatpush3.bf16.msra.mxu1 %v18101_v2  ;;  %16544 = vmatprep.subr.bf16.mxu0 %v18102_v61  ;;  %v16164_v25 = vadd.f32 %v16163_v17, %v16162_v20  ;;  %v16191_v15 = vpop.f32.mrb[85].mxu1  ;;  %v16165_v49 = vpop.f32.mrb[150].mxu0  ;;  %v18130_v20 = vld [vmem:[%s23319_s4 + $0x268] sm:$0xff]  }
 0x333   :  { %16572 = vmatprep.subr.bf16.mxu1 %v18103_v42  ;;  %v16192_v26 = vadd.f32 %v16191_v15, %v16190_v6  ;;  %v16193_v0 = vpop.f32.mrb[86].mxu1  ;;  %v16166_v8 = vpop.f32.mrb[151].mxu0  ;;  %v18131_v17 = vld [vmem:[%s23319_s4 + $0x2e8] sm:$0xff]  }
 0x334   :  { %v4980_v14 = vadd.f32 %v16164_v25, %v21463_v48  ;;  %v16167_v12 = vadd.f32 %v16166_v8, %v16165_v49  ;;  %v16194_v1 = vpop.f32.mrb[87].mxu1  ;;  %v18110_v48 = vld [vmem:[%s23319_s4 + $0x240] sm:$0xff]  }
 0x335   :  { %16545 = vmatpush3.bf16.msra.mxu0 %v18104_v24  ;;  %v16195_v27 = vadd.f32 %v16194_v1, %v16193_v0  ;;  %v18136_v1 = vld [vmem:[%s23319_s4 + $0x230] sm:$0xff]  }
 0x336   :  { %16573 = vmatpush3.bf16.msra.mxu1 %v18105_v28  ;;  %v21573_v32 = vadd.f32 %v16192_v26, %v4980_v14  ;;  %16546 = vmatprep.subr.bf16.mxu0 %v18106_v13  ;;  %v4981_v19 = vadd.f32 %v16167_v12, %v21469_v56  ;;  %v18113_v56 = vld [vmem:[%s23319_s4 + $0x280] sm:$0xff]   ;;  %v18132_v13 = vld [vmem:[%s23319_s4 + $0x228] sm:$0xff]   ;;  %v18135_v12 = vld [vmem:[%s23319_s4 + $0x2f0] sm:$0xff]  }
 0x337   :  { %16574 = vmatprep.subr.bf16.mxu1 %v18107_v5  ;;  %v18133_v5 = vld [vmem:[%s23319_s4 + $0x2a8] sm:$0xff]  }
 0x338   :  { %v21585_v46 = vadd.f32 %v16195_v27, %v4981_v19 }
 0x339   :  { %16547 = vmatpush3.bf16.msra.mxu0 %v18108_v47 }
 0x33a   :  { %16575 = vmatpush3.bf16.msra.mxu1 %v18109_v43  ;;  %16588 = vmatprep.subr.bf16.mxu0 %v18110_v48 }
 0x33b   :  { %16616 = vmatprep.subr.bf16.mxu1 %v18111_v7  ;;  %v18138_v7 = vld [vmem:[%s23319_s4 + $0x278] sm:$0xff]  }
 0x33c   :  { %7675 = vmatmul.mubr.bf16.vlgmr.msra.gmra.mrb[200].mxu0 %v21352_v9  ;;  %v18119_v9 = vld [vmem:[%s23319_s4 + $0x2d0] sm:$0xff]  }
 0x33d   :  { %7865 = vmatmul.mubr.bf16.vlgmr.msra.gmra.mrb[136].mxu1 %v20631_v63  ;;  %7682 = vmatprep.mubr.bf16.mxu0 %v20667_v16  ;;  %v18120_v63 = vld [vmem:[%s23319_s4 + $0x210] sm:$0xff]  }
 0x33e   :  { %7872 = vmatprep.mubr.bf16.mxu1 %v21366_v37  ;;  %16589 = vmatpush3.bf16.msra.mxu0 %v18112_v54  ;;  %v18121_v16 = vld [vmem:[%s23319_s4 + $0x290] sm:$0xff]   ;;  %v18122_v37 = vld [vmem:[%s23319_s4 + $0x258] sm:$0xff]  }
 0x33f   :  { %16617 = vmatpush3.bf16.msra.mxu1 %v18113_v56  ;;  %16590 = vmatprep.subr.bf16.mxu0 %v18114_v45 }
 0x340   :  { %16618 = vmatprep.subr.bf16.mxu1 %v18115_v50  ;;  %v18139_v50 = vld [vmem:[%s23319_s4 + $0x2f8] sm:$0xff]  }
 0x342   :  { %16591 = vmatpush3.bf16.msra.mxu0 %v18116_v36 }
 0x343   :  { %16619 = vmatpush3.bf16.msra.mxu1 %v18117_v57  ;;  %16592 = vmatprep.subr.bf16.mxu0 %v18118_v30 }
 0x344   :  { %7683 = vmatmul.mubr.bf16.gmra.mrb[204].mxu0 %v23504_v39  ;;  %16620 = vmatprep.subr.bf16.mxu1 %v18119_v9  ;;  %v18127_v39 = vld [vmem:[%s23319_s4 + $0x2e0] sm:$0xff]  }
 0x345   :  { %7873 = vmatmul.mubr.bf16.gmra.mrb[140].mxu1 %v20670_v35  ;;  %8054 = vmatprep.mubr.bf16.mxu0 %v20676_v22 }
 0x346   :  { %16593 = vmatpush3.bf16.msra.mxu0 %v18120_v63  ;;  %8244 = vmatprep.mubr.bf16.mxu1 %v20681_v31 }
 0x347   :  { %16621 = vmatpush3.bf16.msra.mxu1 %v18121_v16  ;;  %16594 = vmatprep.subr.bf16.mxu0 %v18122_v37 }
 0x348   :  { %16622 = vmatprep.subr.bf16.mxu1 %v18123_v62 }
 0x349   :  { %v16212_v35 = vpop.f32.mrb[152].mxu0 }
 0x34a   :  { %16595 = vmatpush3.bf16.msra.mxu0 %v18124_v41  ;;  %v16240_v21 = vpop.f32.mrb[88].mxu1  ;;  %v16213_v2 = vpop.f32.mrb[153].mxu0  ;;  %v18140_v41 = vld [vmem:[%s23319_s4 + $0x238] sm:$0xff]  }
 0x34b   :  { %16623 = vmatpush3.bf16.msra.mxu1 %v18125_v58  ;;  %16596 = vmatprep.subr.bf16.mxu0 %v18126_v33  ;;  %v16214_v61 = vadd.f32 %v16213_v2, %v16212_v35  ;;  %v16241_v42 = vpop.f32.mrb[89].mxu1  ;;  %v16215_v24 = vpop.f32.mrb[154].mxu0 }
 0x34c   :  { %16624 = vmatprep.subr.bf16.mxu1 %v18127_v39  ;;  %v16242_v6 = vadd.f32 %v16241_v42, %v16240_v21  ;;  %v16243_v28 = vpop.f32.mrb[90].mxu1  ;;  %v16216_v25 = vpop.f32.mrb[155].mxu0  ;;  %v18141_v21 = vld [vmem:[%s23319_s4 + $0x2b8] sm:$0xff]  }
 0x34d   :  { %v5360_v15 = vadd.f32 %v16214_v61, %v21543_v11  ;;  %v16217_v49 = vadd.f32 %v16216_v25, %v16215_v24  ;;  %v16244_v26 = vpop.f32.mrb[91].mxu1  ;;  %v18134_v11 = vld [vmem:[%s23319_s4 + $0x270] sm:$0xff]   ;;  %v18145_v25 = vld [vmem:[%s23319_s4 + $0x380] sm:$0xff]  }
 0x34e   :  { %16597 = vmatpush3.bf16.msra.mxu0 %v18128_v3  ;;  %v16245_v0 = vadd.f32 %v16244_v26, %v16243_v28  ;;  %v18144_v28 = vld [vmem:[%s23319_s4 + $0x300] sm:$0xff]  }
 0x34f   :  { %16625 = vmatpush3.bf16.msra.mxu1 %v18129_v29  ;;  %v5551_v8 = vadd.f32 %v16242_v6, %v5360_v15  ;;  %16598 = vmatprep.subr.bf16.mxu0 %v18130_v20  ;;  %v5361_v14 = vadd.f32 %v16217_v49, %v21555_v60  ;;  %v18137_v60 = vld [vmem:[%s23319_s4 + $0x2b0] sm:$0xff]   ;;  %v18143_v29 = vld [vmem:[%s23319_s4 + $0x3c0] sm:$0xff]   ;;  %v18146_v15 = vld [vmem:[%s23319_s4 + $0x348] sm:$0xff]  }
 0x350   :  { %16626 = vmatprep.subr.bf16.mxu1 %v18131_v17  ;;  %v23505_v20 = vld [vmem:[#allocation32_spill] sm:$0xff] }
 0x351   :  { %v21672_v47 = vmax.f32 %v5551_v8, 0.0  ;;  %v5552_v27 = vadd.f32 %v16245_v0, %v5361_v14  ;;  %v16218_v43 = vpop.f32.mrb[156].mxu0  ;;  %v21709_v24 = vpack.c.bf16 %v23505_v20, %v23502_v59  ;;  %v21736_v0 = vpack.c.bf16 %v23502_v59, %v20690_v51  ;;  %v18148_v8 = vld [vmem:[%s23319_s4 + $0x308] sm:$0xff]   ;;  %v18150_v51 = vld [vmem:[%s23319_s4 + $0x350] sm:$0xff]  }
 0x352   :  { %16599 = vmatpush3.bf16.msra.mxu0 %v18132_v13  ;;  %v16246_v19 = vpop.f32.mrb[92].mxu1  ;;  %v16219_v48 = vpop.f32.mrb[157].mxu0  ;;  %v18147_v13 = vld [vmem:[%s23319_s4 + $0x3c8] sm:$0xff]   ;;  %v18166_v20 = vld [vmem:[%s23319_s4 + $0x370] sm:$0xff]  }
 0x353   :  { %16627 = vmatpush3.bf16.msra.mxu1 %v18133_v5  ;;  %v21680_v54 = vmax.f32 %v5552_v27, 0.0  ;;  %16600 = vmatprep.subr.bf16.mxu0 %v18134_v11  ;;  %v16220_v56 = vadd.f32 %v16219_v48, %v16218_v43  ;;  %v16247_v45 = vpop.f32.mrb[93].mxu1  ;;  %v16221_v36 = vpop.f32.mrb[158].mxu0  ;;  %v5569_v57 = vmul.f32 %v21672_v47, %v21672_v47  ;;  %v23506_v14 = vld [vmem:[#allocation37_spill] sm:$0xff]  ;;  %v18152_v27 = vld [vmem:[%s23319_s4 + $0x310] sm:$0xff]  }
 0x354   :  { %16628 = vmatprep.subr.bf16.mxu1 %v18135_v12  ;;  %v16248_v30 = vadd.f32 %v16247_v45, %v16246_v19  ;;  %v16249_v9 = vpop.f32.mrb[94].mxu1  ;;  %v16222_v63 = vpop.f32.mrb[159].mxu0  ;;  %v18149_v11 = vld [vmem:[%s23319_s4 + $0x388] sm:$0xff]   ;;  %v18153_v43 = vld [vmem:[%s23319_s4 + $0x390] sm:$0xff]   ;;  %v18155_v19 = vld [vmem:[%s23319_s4 + $0x3d8] sm:$0xff]  }
 0x355   :  { %v5559_v16 = vadd.f32 %v21680_v54, %v21672_v47  ;;  %v5570_v37 = vmul.f32 %v21680_v54, %v21680_v54  ;;  %v5362_v62 = vadd.f32 %v16220_v56, %v21573_v32  ;;  %v16223_v58 = vadd.f32 %v16222_v63, %v16221_v36  ;;  %v16250_v33 = vpop.f32.mrb[95].mxu1  ;;  %v18142_v32 = vld [vmem:[%s23319_s4 + $0x340] sm:$0xff]   ;;  %v23507_v48 = vld [vmem:[#allocation41_spill] sm:$0xff]  ;;  %v18157_v56 = vld [vmem:[%s23319_s4 + $0x398] sm:$0xff]  }
 0x356   :  { %16601 = vmatpush3.bf16.msra.mxu0 %v18136_v1  ;;  %v16251_v39 = vadd.f32 %v16250_v33, %v16249_v9  ;;  %v18151_v1 = vld [vmem:[%s23319_s4 + $0x3d0] sm:$0xff]   ;;  %v18158_v45 = vld [vmem:[%s23319_s4 + $0x360] sm:$0xff]   ;;  %v18162_v9 = vld [vmem:[%s23319_s4 + $0x368] sm:$0xff]  }
 0x357   :  { %v5573_v35 = vadd.f32 %v5570_v37, %v5569_v57  ;;  %16629 = vmatpush3.bf16.msra.mxu1 %v18137_v60  ;;  %v5553_v3 = vadd.f32 %v16248_v30, %v5362_v62  ;;  %16602 = vmatprep.subr.bf16.mxu0 %v18138_v7  ;;  %v5363_v2 = vadd.f32 %v16223_v58, %v21585_v46  ;;  %v18154_v60 = vld [vmem:[%s23319_s4 + $0x358] sm:$0xff]   ;;  %v18160_v36 = vld [vmem:[%s23319_s4 + $0x320] sm:$0xff]   ;;  %v18163_v37 = vld [vmem:[%s23319_s4 + $0x3e8] sm:$0xff]  }
 0x358   :  { %16630 = vmatprep.subr.bf16.mxu1 %v18139_v50  ;;  %v18156_v7 = vld [vmem:[%s23319_s4 + $0x318] sm:$0xff]   ;;  %v18159_v50 = vld [vmem:[%s23319_s4 + $0x3e0] sm:$0xff]  }
 0x359   :  { %v21705_v61 = vmax.f32 %v5553_v3, 0.0  ;;  %v5554_v42 = vadd.f32 %v16251_v39, %v5363_v2  ;;  %v18161_v57 = vld [vmem:[%s23319_s4 + $0x3a0] sm:$0xff]   ;;  %v18164_v3 = vld [vmem:[%s23319_s4 + $0x328] sm:$0xff]  }
 0x35a   :  { %16603 = vmatpush3.bf16.msra.mxu0 %v18140_v41 }
 0x35b   :  { %v5560_v6 = vadd.f32 %v5559_v16, %v21705_v61  ;;  %v5571_v46 = vmul.f32 %v21705_v61, %v21705_v61  ;;  %16631 = vmatpush3.bf16.msra.mxu1 %v18141_v21  ;;  %v21714_v17 = vmax.f32 %v5554_v42, 0.0  ;;  %16644 = vmatprep.subr.bf16.mxu0 %v18142_v32 }
 0x35c   :  { %16672 = vmatprep.subr.bf16.mxu1 %v18143_v29  ;;  %v18165_v29 = vld [vmem:[%s23319_s4 + $0x3a8] sm:$0xff]  }
 0x35d   :  { %v5574_v49 = vadd.f32 %v5573_v35, %v5571_v46  ;;  %v21729_v26 = vadd.f32 %v5560_v6, %v21714_v17  ;;  %v5572_v5 = vmul.f32 %v21714_v17, %v21714_v17  ;;  %8055 = vmatmul.mubr.bf16.vlgmr.msra.gmra.mrb[208].mxu0 %v21709_v24  ;;  %v18167_v46 = vld [vmem:[%s23319_s4 + $0x3f0] sm:$0xff]  }
 0x35e   :  { %8245 = vmatmul.mubr.bf16.vlgmr.msra.gmra.mrb[144].mxu1 %v23506_v14  ;;  %8062 = vmatprep.mubr.bf16.mxu0 %v20713_v52 }
 0x35f   :  { %v21746_v12 = vadd.f32 %v5574_v49, %v5572_v5  ;;  %8252 = vmatprep.mubr.bf16.mxu1 %v21736_v0  ;;  %16645 = vmatpush3.bf16.msra.mxu0 %v18144_v28  ;;  %v18169_v49 = vld [vmem:[%s23319_s4 + $0x3b0] sm:$0xff]  }
 0x360   :  { %16673 = vmatpush3.bf16.msra.mxu1 %v18145_v25  ;;  %16646 = vmatprep.subr.bf16.mxu0 %v18146_v15  ;;  %v18168_v25 = vld [vmem:[%s23319_s4 + $0x330] sm:$0xff]  }
 0x361   :  { %16674 = vmatprep.subr.bf16.mxu1 %v18147_v13 }
 0x363   :  { %16647 = vmatpush3.bf16.msra.mxu0 %v18148_v8 }
 0x364   :  { %16675 = vmatpush3.bf16.msra.mxu1 %v18149_v11  ;;  %16648 = vmatprep.subr.bf16.mxu0 %v18150_v51  ;;  %v18170_v11 = vld [vmem:[%s23319_s4 + $0x378] sm:$0xff]  }
 0x365   :  { %8063 = vmatmul.mubr.bf16.gmra.mrb[212].mxu0 %v23507_v48  ;;  %16676 = vmatprep.subr.bf16.mxu1 %v18151_v1 }
 0x366   :  { %8253 = vmatmul.mubr.bf16.gmra.mrb[148].mxu1 %v20716_v38  ;;  %8434 = vmatprep.mubr.bf16.mxu0 %v20722_v53 }
 0x367   :  { %16649 = vmatpush3.bf16.msra.mxu0 %v18152_v27  ;;  %8624 = vmatprep.mubr.bf16.mxu1 %v20727_v10  ;;  %v18171_v27 = vld [vmem:[%s23319_s4 + $0x3f8] sm:$0xff]  }
 0x368   :  { %16677 = vmatpush3.bf16.msra.mxu1 %v18153_v43  ;;  %16650 = vmatprep.subr.bf16.mxu0 %v18154_v60 }
 0x369   :  { %16678 = vmatprep.subr.bf16.mxu1 %v18155_v19  ;;  %v18172_v19 = vld [vmem:[%s23319_s4 + $0x338] sm:$0xff]  }
 0x36a   :  { %v16268_v30 = vpop.f32.mrb[160].mxu0 }
 0x36b   :  { %16651 = vmatpush3.bf16.msra.mxu0 %v18156_v7  ;;  %v16296_v63 = vpop.f32.mrb[96].mxu1  ;;  %v16269_v16 = vpop.f32.mrb[161].mxu0 }
 0x36c   :  { %16679 = vmatpush3.bf16.msra.mxu1 %v18157_v56  ;;  %16652 = vmatprep.subr.bf16.mxu0 %v18158_v45  ;;  %v16270_v62 = vadd.f32 %v16269_v16, %v16268_v30  ;;  %v16297_v41 = vpop.f32.mrb[97].mxu1  ;;  %v16271_v58 = vpop.f32.mrb[162].mxu0  ;;  %v21844_v16 = vpack.c.bf16 %v20696_v55, %v23502_v59  ;;  %v18179_v55 = vld [vmem:[%s23319_s4 + $0x48] sm:$0xff]  }
 0x36d   :  { %16680 = vmatprep.subr.bf16.mxu1 %v18159_v50  ;;  %v16298_v33 = vadd.f32 %v16297_v41, %v16296_v63  ;;  %v16299_v39 = vpop.f32.mrb[98].mxu1  ;;  %v16272_v35 = vpop.f32.mrb[163].mxu0  ;;  %v18173_v50 = vld [vmem:[%s23319_s4 + $0x3b8] sm:$0xff]   ;;  %v18176_v63 = vld [vmem:[%s23319_s4 + $0x80] sm:$0xff]   ;;  %v21855_v41 = vpack.c.bf16 %v23502_v59, %v20734_v23  ;;  %v18181_v23 = vld [vmem:[%s23319_s4 + $0x8] sm:$0xff]  }
 0x36e   :  { %v16273_v21 = vadd.f32 %v16272_v35, %v16271_v58  ;;  %v16300_v2 = vpop.f32.mrb[99].mxu1  ;;  %v18180_v58 = vld [vmem:[%s23319_s4 + $0x88] sm:$0xff]   ;;  %v18184_v35 = vld [vmem:[%s23319_s4 + $0x90] sm:$0xff]  }
 0x36f   :  { %16653 = vmatpush3.bf16.msra.mxu0 %v18160_v36  ;;  %v21798_v32 = vadd.f32 %v16298_v33, %v16270_v62  ;;  %v16301_v42 = vadd.f32 %v16300_v2, %v16299_v39  ;;  %v18178_v62 = vld [vmem:[%s23319_s4 + $0xc8] sm:$0xff]   ;;  %v18182_v33 = vld [vmem:[%s23319_s4 + $0xd0] sm:$0xff]   ;;  %v18187_v2 = vld [vmem:[%s23319_s4 + $0x58] sm:$0xff]  }
 0x370   :  { %16681 = vmatpush3.bf16.msra.mxu1 %v18161_v57  ;;  %16654 = vmatprep.subr.bf16.mxu0 %v18162_v9  ;;  %v18174_v57 = vld [vmem:[%s23319_s4 + $0xc0] sm:$0xff]   ;;  %v18183_v39 = vld [vmem:[%s23319_s4 + $0x50] sm:$0xff]  }
 0x371   :  { %16682 = vmatprep.subr.bf16.mxu1 %v18163_v37  ;;  %v21806_v6 = vadd.f32 %v16301_v42, %v16273_v21  ;;  %v18175_v9 = vld [vmem:[%s23319_s4 + $0x40] sm:$0xff]   ;;  %v18186_v21 = vld [vmem:[%s23319_s4 + $0xd8] sm:$0xff]  }
 0x372   :  { %v16274_v28 = vpop.f32.mrb[164].mxu0  ;;  %v18177_v37 = vld [vmem:[%s23319_s4] sm:$0xff]   ;;  %v18189_v42 = vld [vmem:[%s23319_s4 + $0x18] sm:$0xff]  }
 0x373   :  { %16655 = vmatpush3.bf16.msra.mxu0 %v18164_v3  ;;  %v16302_v15 = vpop.f32.mrb[100].mxu1  ;;  %v16275_v13 = vpop.f32.mrb[165].mxu0  ;;  %v18185_v3 = vld [vmem:[%s23319_s4 + $0x10] sm:$0xff]  }
 0x374   :  { %16683 = vmatpush3.bf16.msra.mxu1 %v18165_v29  ;;  %16656 = vmatprep.subr.bf16.mxu0 %v18166_v20  ;;  %v16276_v5 = vadd.f32 %v16275_v13, %v16274_v28  ;;  %v16303_v8 = vpop.f32.mrb[101].mxu1  ;;  %v16277_v51 = vpop.f32.mrb[166].mxu0  ;;  %v18188_v29 = vld [vmem:[%s23319_s4 + $0x98] sm:$0xff]   ;;  %v18190_v20 = vld [vmem:[%s23319_s4 + $0xe0] sm:$0xff]  }
 0x375   :  { %16684 = vmatprep.subr.bf16.mxu1 %v18167_v46  ;;  %v16304_v1 = vadd.f32 %v16303_v8, %v16302_v15  ;;  %v16305_v43 = vpop.f32.mrb[102].mxu1  ;;  %v16278_v60 = vpop.f32.mrb[167].mxu0  ;;  %v18192_v46 = vld [vmem:[%s23319_s4 + $0xa0] sm:$0xff]  }
 0x376   :  { %v16279_v7 = vadd.f32 %v16278_v60, %v16277_v51  ;;  %v16306_v56 = vpop.f32.mrb[103].mxu1  ;;  %v18193_v15 = vld [vmem:[%s23319_s4 + $0x20] sm:$0xff]   ;;  %v18195_v51 = vld [vmem:[%s23319_s4 + $0x68] sm:$0xff]  }
 0x377   :  { %16657 = vmatpush3.bf16.msra.mxu0 %v18168_v25  ;;  %v21826_v45 = vadd.f32 %v16304_v1, %v16276_v5  ;;  %v16307_v36 = vadd.f32 %v16306_v56, %v16305_v43  ;;  %v18194_v5 = vld [vmem:[%s23319_s4 + $0xe8] sm:$0xff]  }
 0x378   :  { %16685 = vmatpush3.bf16.msra.mxu1 %v18169_v49  ;;  %16658 = vmatprep.subr.bf16.mxu0 %v18170_v11 }
 0x379   :  { %16686 = vmatprep.subr.bf16.mxu1 %v18171_v27  ;;  %v21834_v30 = vadd.f32 %v16307_v36, %v16279_v7  ;;  %v18196_v7 = vld [vmem:[%s23319_s4 + $0xa8] sm:$0xff]  }
 0x37a   :  { %v18197_v36 = vld [vmem:[%s23319_s4 + $0x28] sm:$0xff]  }
 0x37b   :  { %16659 = vmatpush3.bf16.msra.mxu0 %v18172_v19 }
 0x37c   :  { %16687 = vmatpush3.bf16.msra.mxu1 %v18173_v50  ;;  %16700 = vmatprep.subr.bf16.mxu0 %v18174_v57 }
 0x37d   :  { %16728 = vmatprep.subr.bf16.mxu1 %v18175_v9  ;;  %v18199_v9 = vld [vmem:[%s23319_s4 + $0x70] sm:$0xff]  }
 0x37e   :  { %8435 = vmatmul.mubr.bf16.vlgmr.msra.gmra.mrb[216].mxu0 %v21844_v16 }
 0x37f   :  { %8625 = vmatmul.mubr.bf16.vlgmr.msra.gmra.mrb[152].mxu1 %v20725_v4  ;;  %8442 = vmatprep.mubr.bf16.mxu0 %v20764_v40 }
 0x380   :  { %8632 = vmatprep.mubr.bf16.mxu1 %v21855_v41  ;;  %16701 = vmatpush3.bf16.msra.mxu0 %v18176_v63 }
 0x381   :  { %16729 = vmatpush3.bf16.msra.mxu1 %v18177_v37  ;;  %16702 = vmatprep.subr.bf16.mxu0 %v18178_v62  ;;  %v18200_v62 = vld [vmem:[%s23319_s4 + $0xb0] sm:$0xff]  }
 0x382   :  { %16730 = vmatprep.subr.bf16.mxu1 %v18179_v55 }
 0x384   :  { %16703 = vmatpush3.bf16.msra.mxu0 %v18180_v58 }
 0x385   :  { %16731 = vmatpush3.bf16.msra.mxu1 %v18181_v23  ;;  %16704 = vmatprep.subr.bf16.mxu0 %v18182_v33 }
 0x386   :  { %8443 = vmatmul.mubr.bf16.gmra.mrb[220].mxu0 %v20736_v44  ;;  %16732 = vmatprep.subr.bf16.mxu1 %v18183_v39  ;;  %v18202_v39 = vld [vmem:[%s23319_s4 + $0xf8] sm:$0xff]  }
 0x387   :  { %8633 = vmatmul.mubr.bf16.gmra.mrb[156].mxu1 %v20767_v34  ;;  %8889 = vmatprep.mubr.bf16.mxu0 %v20681_v31  ;;  %v18191_v31 = vld [vmem:[%s23319_s4 + $0x60] sm:$0xff]  }
 0x388   :  { %16705 = vmatpush3.bf16.msra.mxu0 %v18184_v35  ;;  %9034 = vmatprep.mubr.bf16.mxu1 %v20676_v22 }
 0x389   :  { %16733 = vmatpush3.bf16.msra.mxu1 %v18185_v3  ;;  %16706 = vmatprep.subr.bf16.mxu0 %v18186_v21  ;;  %v18203_v21 = vld [vmem:[%s23319_s4 + $0x78] sm:$0xff]  }
 0x38a   :  { %16734 = vmatprep.subr.bf16.mxu1 %v18187_v2 }
 0x38b   :  { %v16324_v22 = vpop.f32.mrb[168].mxu0 }
 0x38c   :  { %16707 = vmatpush3.bf16.msra.mxu0 %v18188_v29  ;;  %v16352_v28 = vpop.f32.mrb[104].mxu1  ;;  %v16325_v25 = vpop.f32.mrb[169].mxu0 }
 0x38d   :  { %16735 = vmatpush3.bf16.msra.mxu1 %v18189_v42  ;;  %16708 = vmatprep.subr.bf16.mxu0 %v18190_v20  ;;  %v16326_v13 = vadd.f32 %v16325_v25, %v16324_v22  ;;  %v16353_v49 = vpop.f32.mrb[105].mxu1  ;;  %v16327_v8 = vpop.f32.mrb[170].mxu0  ;;  %v18204_v22 = vld [vmem:[%s23319_s4 + $0xb8] sm:$0xff]  }
 0x38e   :  { %16736 = vmatprep.subr.bf16.mxu1 %v18191_v31  ;;  %v16354_v11 = vadd.f32 %v16353_v49, %v16352_v28  ;;  %v16355_v1 = vpop.f32.mrb[106].mxu1  ;;  %v16328_v27 = vpop.f32.mrb[171].mxu0  ;;  %v18205_v25 = vld [vmem:[%s23319_s4 + $0x38] sm:$0xff]  }
 0x38f   :  { %v6145_v43 = vadd.f32 %v16326_v13, %v21798_v32  ;;  %v16329_v60 = vadd.f32 %v16328_v27, %v16327_v8  ;;  %v16356_v19 = vpop.f32.mrb[107].mxu1  ;;  %v18198_v32 = vld [vmem:[%s23319_s4 + $0xf0] sm:$0xff]   ;;  %v18207_v13 = vld [vmem:[%s23319_s4 + $0x1c0] sm:$0xff]   ;;  %v18210_v8 = vld [vmem:[%s23319_s4 + $0x148] sm:$0xff]  }
 0x390   :  { %16709 = vmatpush3.bf16.msra.mxu0 %v18192_v46  ;;  %v16357_v56 = vadd.f32 %v16356_v19, %v16355_v1  ;;  %v18214_v1 = vld [vmem:[%s23319_s4 + $0x150] sm:$0xff]   ;;  %v18218_v27 = vld [vmem:[%s23319_s4 + $0x158] sm:$0xff]   ;;  %v18222_v19 = vld [vmem:[%s23319_s4 + $0x160] sm:$0xff]  }
 0x391   :  { %16737 = vmatpush3.bf16.msra.mxu1 %v18193_v15  ;;  %v21919_v50 = vadd.f32 %v16354_v11, %v6145_v43  ;;  %16710 = vmatprep.subr.bf16.mxu0 %v18194_v5  ;;  %v6146_v57 = vadd.f32 %v16329_v60, %v21806_v6  ;;  %v18201_v6 = vld [vmem:[%s23319_s4 + $0x30] sm:$0xff]   ;;  %v18208_v5 = vld [vmem:[%s23319_s4 + $0x100] sm:$0xff]   ;;  %v18211_v11 = vld [vmem:[%s23319_s4 + $0x1c8] sm:$0xff]  }
 0x392   :  { %16738 = vmatprep.subr.bf16.mxu1 %v18195_v51  ;;  %v18212_v51 = vld [vmem:[%s23319_s4 + $0x108] sm:$0xff]   ;;  %v18219_v43 = vld [vmem:[%s23319_s4 + $0x1d8] sm:$0xff]  }
 0x393   :  { %v21931_v63 = vadd.f32 %v16357_v56, %v6146_v57  ;;  %v16330_v37 = vpop.f32.mrb[172].mxu0  ;;  %v18220_v60 = vld [vmem:[%s23319_s4 + $0x118] sm:$0xff]  }
 0x394   :  { %16711 = vmatpush3.bf16.msra.mxu0 %v18196_v7  ;;  %v16358_v55 = vpop.f32.mrb[108].mxu1  ;;  %v16331_v58 = vpop.f32.mrb[173].mxu0 }
 0x395   :  { %16739 = vmatpush3.bf16.msra.mxu1 %v18197_v36  ;;  %16712 = vmatprep.subr.bf16.mxu0 %v18198_v32  ;;  %v16332_v23 = vadd.f32 %v16331_v58, %v16330_v37  ;;  %v16359_v33 = vpop.f32.mrb[109].mxu1  ;;  %v16333_v35 = vpop.f32.mrb[174].mxu0  ;;  %v18225_v36 = vld [vmem:[%s23319_s4 + $0x1a0] sm:$0xff]  }
 0x396   :  { %16740 = vmatprep.subr.bf16.mxu1 %v18199_v9  ;;  %v16360_v3 = vadd.f32 %v16359_v33, %v16358_v55  ;;  %v16361_v2 = vpop.f32.mrb[110].mxu1  ;;  %v16334_v29 = vpop.f32.mrb[175].mxu0  ;;  %v18226_v9 = vld [vmem:[%s23319_s4 + $0x168] sm:$0xff]  }
 0x397   :  { %v6147_v42 = vadd.f32 %v16332_v23, %v21826_v45  ;;  %v16335_v20 = vadd.f32 %v16334_v29, %v16333_v35  ;;  %v16362_v31 = vpop.f32.mrb[111].mxu1  ;;  %v18206_v45 = vld [vmem:[%s23319_s4 + $0x140] sm:$0xff]   ;;  %v18227_v55 = vld [vmem:[%s23319_s4 + $0x1e8] sm:$0xff]  }
 0x398   :  { %16713 = vmatpush3.bf16.msra.mxu0 %v18200_v62  ;;  %v16363_v46 = vadd.f32 %v16362_v31, %v16361_v2  ;;  %v18228_v35 = vld [vmem:[%s23319_s4 + $0x128] sm:$0xff]  }
 0x399   :  { %16741 = vmatpush3.bf16.msra.mxu1 %v18201_v6  ;;  %v21949_v28 = vadd.f32 %v16360_v3, %v6147_v42  ;;  %16714 = vmatprep.subr.bf16.mxu0 %v18202_v39  ;;  %v6148_v15 = vadd.f32 %v16335_v20, %v21834_v30  ;;  %v18209_v30 = vld [vmem:[%s23319_s4 + $0x180] sm:$0xff]   ;;  %v18229_v2 = vld [vmem:[%s23319_s4 + $0x1a8] sm:$0xff]   ;;  %v18231_v42 = vld [vmem:[%s23319_s4 + $0x1f0] sm:$0xff]  }
 0x39a   :  { %16742 = vmatprep.subr.bf16.mxu1 %v18203_v21 }
 0x39b   :  { %v21961_v49 = vadd.f32 %v16363_v46, %v6148_v15 }
 0x39c   :  { %16715 = vmatpush3.bf16.msra.mxu0 %v18204_v22  ;;  %v18232_v22 = vld [vmem:[%s23319_s4 + $0x130] sm:$0xff]  }
 0x39d   :  { %16743 = vmatpush3.bf16.msra.mxu1 %v18205_v25  ;;  %16756 = vmatprep.subr.bf16.mxu0 %v18206_v45 }
 0x39e   :  { %16784 = vmatprep.subr.bf16.mxu1 %v18207_v13  ;;  %v18234_v13 = vld [vmem:[%s23319_s4 + $0x178] sm:$0xff]  }
 0x39f   :  { %8890 = vmatmul.mubr.bf16.vlgmr.msra.gmra.mrb[224].mxu0 %v23506_v14  ;;  %v18213_v14 = vld [vmem:[%s23319_s4 + $0x188] sm:$0xff]  }
 0x3a0   :  { %9035 = vmatmul.mubr.bf16.vlgmr.msra.gmra.mrb[160].mxu1 %v21709_v24  ;;  %8897 = vmatprep.mubr.bf16.mxu0 %v21736_v0  ;;  %v18216_v24 = vld [vmem:[%s23319_s4 + $0x110] sm:$0xff]  }
 0x3a1   :  { %9042 = vmatprep.mubr.bf16.mxu1 %v20713_v52  ;;  %16757 = vmatpush3.bf16.msra.mxu0 %v18208_v5  ;;  %v18215_v52 = vld [vmem:[%s23319_s4 + $0x1d0] sm:$0xff]  }
 0x3a2   :  { %16785 = vmatpush3.bf16.msra.mxu1 %v18209_v30  ;;  %16758 = vmatprep.subr.bf16.mxu0 %v18210_v8  ;;  %v18217_v0 = vld [vmem:[%s23319_s4 + $0x190] sm:$0xff]   ;;  %v18235_v8 = vld [vmem:[%s23319_s4 + $0x1f8] sm:$0xff]  }
 0x3a3   :  { %16786 = vmatprep.subr.bf16.mxu1 %v18211_v11 }
 0x3a5   :  { %16759 = vmatpush3.bf16.msra.mxu0 %v18212_v51 }
 0x3a6   :  { %16787 = vmatpush3.bf16.msra.mxu1 %v18213_v14  ;;  %16760 = vmatprep.subr.bf16.mxu0 %v18214_v1 }
 0x3a7   :  { %8898 = vmatmul.mubr.bf16.gmra.mrb[228].mxu0 %v20716_v38  ;;  %16788 = vmatprep.subr.bf16.mxu1 %v18215_v52  ;;  %v18221_v38 = vld [vmem:[%s23319_s4 + $0x198] sm:$0xff]  }
 0x3a8   :  { %9043 = vmatmul.mubr.bf16.gmra.mrb[164].mxu1 %v23507_v48  ;;  %9220 = vmatprep.mubr.bf16.mxu0 %v20722_v53  ;;  %v18223_v53 = vld [vmem:[%s23319_s4 + $0x1e0] sm:$0xff]  }
 0x3a9   :  { %16761 = vmatpush3.bf16.msra.mxu0 %v18216_v24  ;;  %9410 = vmatprep.mubr.bf16.mxu1 %v20727_v10  ;;  %v18224_v48 = vld [vmem:[%s23319_s4 + $0x120] sm:$0xff]   ;;  %v18236_v24 = vld [vmem:[%s23319_s4 + $0x138] sm:$0xff]  }
 0x3aa   :  { %16789 = vmatpush3.bf16.msra.mxu1 %v18217_v0  ;;  %16762 = vmatprep.subr.bf16.mxu0 %v18218_v27 }
 0x3ab   :  { %16790 = vmatprep.subr.bf16.mxu1 %v18219_v43  ;;  %v18237_v43 = vld [vmem:[%s23319_s4 + $0x1b8] sm:$0xff]  }
 0x3ac   :  { %v16380_v10 = vpop.f32.mrb[176].mxu0 }
 0x3ad   :  { %16763 = vmatpush3.bf16.msra.mxu0 %v18220_v60  ;;  %v16408_v7 = vpop.f32.mrb[112].mxu1  ;;  %v16381_v56 = vpop.f32.mrb[177].mxu0 }
 0x3ae   :  { %16791 = vmatpush3.bf16.msra.mxu1 %v18221_v38  ;;  %16764 = vmatprep.subr.bf16.mxu0 %v18222_v19  ;;  %v16382_v57 = vadd.f32 %v16381_v56, %v16380_v10  ;;  %v16409_v32 = vpop.f32.mrb[113].mxu1  ;;  %v16383_v37 = vpop.f32.mrb[178].mxu0  ;;  %v18239_v38 = vld [vmem:[%s23319_s4 + $0x2c0] sm:$0xff]   ;;  %v18242_v10 = vld [vmem:[%s23319_s4 + $0x248] sm:$0xff]   ;;  %v18246_v56 = vld [vmem:[%s23319_s4 + $0x250] sm:$0xff]  }
 0x3af   :  { %16792 = vmatprep.subr.bf16.mxu1 %v18223_v53  ;;  %v16410_v62 = vadd.f32 %v16409_v32, %v16408_v7  ;;  %v16411_v58 = vpop.f32.mrb[114].mxu1  ;;  %v16384_v6 = vpop.f32.mrb[179].mxu0  ;;  %v18240_v53 = vld [vmem:[%s23319_s4 + $0x200] sm:$0xff]   ;;  %v18244_v7 = vld [vmem:[%s23319_s4 + $0x208] sm:$0xff]  }
 0x3b0   :  { %v6525_v23 = vadd.f32 %v16382_v57, %v21919_v50  ;;  %v16385_v33 = vadd.f32 %v16384_v6, %v16383_v37  ;;  %v16412_v39 = vpop.f32.mrb[115].mxu1  ;;  %v18230_v50 = vld [vmem:[%s23319_s4 + $0x170] sm:$0xff]   ;;  %v18251_v57 = vld [vmem:[%s23319_s4 + $0x2d8] sm:$0xff]   ;;  %v23508_v32 = vld [vmem:[#allocation44_spill] sm:$0xff] }
 0x3b1   :  { %16765 = vmatpush3.bf16.msra.mxu0 %v18224_v48  ;;  %v16413_v3 = vadd.f32 %v16412_v39, %v16411_v58  ;;  %v18243_v48 = vld [vmem:[%s23319_s4 + $0x2c8] sm:$0xff]   ;;  %v23510_v37 = vld [vmem:[#allocation15_spill] sm:$0xff]  ;;  %v18255_v6 = vld [vmem:[%s23319_s4 + $0x2e0] sm:$0xff]  }
 0x3b2   :  { %16793 = vmatpush3.bf16.msra.mxu1 %v18225_v36  ;;  %v22035_v21 = vadd.f32 %v16410_v62, %v6525_v23  ;;  %16766 = vmatprep.subr.bf16.mxu0 %v18226_v9  ;;  %v6526_v29 = vadd.f32 %v16385_v33, %v21931_v63  ;;  %v18233_v63 = vld [vmem:[%s23319_s4 + $0x1b0] sm:$0xff]   ;;  %v18250_v36 = vld [vmem:[%s23319_s4 + $0x258] sm:$0xff]   ;;  %v23509_v9 = vpack.c.bf16 %v20747_v18, %v23508_v32  ;;  %v23511_v62 = vld [vmem:[#allocation5_spill] sm:$0xff] }
 0x3b3   :  { %16794 = vmatprep.subr.bf16.mxu1 %v18227_v55  ;;  %v23512_v55 = vpack.c.bf16 %v23510_v37, %v23511_v62  ;;  %v18253_v58 = vld [vmem:[%s23319_s4 + $0x298] sm:$0xff]   ;;  %v18256_v33 = vld [vmem:[%s23319_s4 + $0x220] sm:$0xff]  }
 0x3b4   :  { %v22047_v20 = vadd.f32 %v16413_v3, %v6526_v29  ;;  %v16386_v31 = vpop.f32.mrb[180].mxu0  ;;  %v18257_v3 = vld [vmem:[%s23319_s4 + $0x2a0] sm:$0xff]  }
 0x3b5   :  { %16767 = vmatpush3.bf16.msra.mxu0 %v18228_v35  ;;  %v16414_v46 = vpop.f32.mrb[116].mxu1  ;;  %v16387_v25 = vpop.f32.mrb[181].mxu0 }
 0x3b6   :  { %16795 = vmatpush3.bf16.msra.mxu1 %v18229_v2  ;;  %16768 = vmatprep.subr.bf16.mxu0 %v18230_v50  ;;  %v16388_v15 = vadd.f32 %v16387_v25, %v16386_v31  ;;  %v16415_v45 = vpop.f32.mrb[117].mxu1  ;;  %v16389_v5 = vpop.f32.mrb[182].mxu0  ;;  %v18258_v50 = vld [vmem:[%s23319_s4 + $0x268] sm:$0xff]  }
 0x3b7   :  { %16796 = vmatprep.subr.bf16.mxu1 %v18231_v42  ;;  %v16416_v30 = vadd.f32 %v16415_v45, %v16414_v46  ;;  %v16417_v11 = vpop.f32.mrb[118].mxu1  ;;  %v16390_v51 = vpop.f32.mrb[183].mxu0 }
 0x3b8   :  { %v6527_v14 = vadd.f32 %v16388_v15, %v21949_v28  ;;  %v16391_v1 = vadd.f32 %v16390_v51, %v16389_v5  ;;  %v16418_v52 = vpop.f32.mrb[119].mxu1  ;;  %v18238_v28 = vld [vmem:[%s23319_s4 + $0x240] sm:$0xff]   ;;  %v18263_v51 = vld [vmem:[%s23319_s4 + $0x2f0] sm:$0xff]  }
 0x3b9   :  { %16769 = vmatpush3.bf16.msra.mxu0 %v18232_v22  ;;  %v16419_v0 = vadd.f32 %v16418_v52, %v16417_v11  ;;  %v18259_v22 = vld [vmem:[%s23319_s4 + $0x2e8] sm:$0xff]   ;;  %v18264_v52 = vld [vmem:[%s23319_s4 + $0x230] sm:$0xff]  }
 0x3ba   :  { %16797 = vmatpush3.bf16.msra.mxu1 %v18233_v63  ;;  %v22065_v27 = vadd.f32 %v16416_v30, %v6527_v14  ;;  %16770 = vmatprep.subr.bf16.mxu0 %v18234_v13  ;;  %v6528_v60 = vadd.f32 %v16391_v1, %v21961_v49  ;;  %v18241_v49 = vld [vmem:[%s23319_s4 + $0x280] sm:$0xff]   ;;  %v18260_v13 = vld [vmem:[%s23319_s4 + $0x228] sm:$0xff]  }
 0x3bb   :  { %16798 = vmatprep.subr.bf16.mxu1 %v18235_v8  ;;  %v18261_v8 = vld [vmem:[%s23319_s4 + $0x2a8] sm:$0xff]  }
 0x3bc   :  { %v22077_v19 = vadd.f32 %v16419_v0, %v6528_v60 }
 0x3bd   :  { %16771 = vmatpush3.bf16.msra.mxu0 %v18236_v24 }
 0x3be   :  { %16799 = vmatpush3.bf16.msra.mxu1 %v18237_v43  ;;  %16812 = vmatprep.subr.bf16.mxu0 %v18238_v28  ;;  %v18265_v43 = vld [vmem:[%s23319_s4 + $0x2b0] sm:$0xff]  }
 0x3bf   :  { %16840 = vmatprep.subr.bf16.mxu1 %v18239_v38  ;;  %v18266_v38 = vld [vmem:[%s23319_s4 + $0x278] sm:$0xff]  }
 0x3c0   :  { %9221 = vmatmul.mubr.bf16.vlgmr.msra.gmra.mrb[232].mxu0 %v21844_v16  ;;  %v18245_v16 = vld [vmem:[%s23319_s4 + $0x288] sm:$0xff]  }
 0x3c1   :  { %9411 = vmatmul.mubr.bf16.vlgmr.msra.gmra.mrb[168].mxu1 %v20725_v4  ;;  %9228 = vmatprep.mubr.bf16.mxu0 %v20764_v40  ;;  %v18247_v4 = vld [vmem:[%s23319_s4 + $0x2d0] sm:$0xff]  }
 0x3c2   :  { %9418 = vmatprep.mubr.bf16.mxu1 %v21855_v41  ;;  %16813 = vmatpush3.bf16.msra.mxu0 %v18240_v53  ;;  %v18248_v40 = vld [vmem:[%s23319_s4 + $0x210] sm:$0xff]  }
 0x3c3   :  { %16841 = vmatpush3.bf16.msra.mxu1 %v18241_v49  ;;  %16814 = vmatprep.subr.bf16.mxu0 %v18242_v10  ;;  %v18249_v41 = vld [vmem:[%s23319_s4 + $0x290] sm:$0xff]   ;;  %v5562_v49 = vrot.slane %v21729_v26, 4 }
 0x3c4   :  { %16842 = vmatprep.subr.bf16.mxu1 %v18243_v48  ;;  %v18267_v48 = vld [vmem:[%s23319_s4 + $0x2f8] sm:$0xff]  }
 0x3c6   :  { %16815 = vmatpush3.bf16.msra.mxu0 %v18244_v7 }
 0x3c7   :  { %16843 = vmatpush3.bf16.msra.mxu1 %v18245_v16  ;;  %16816 = vmatprep.subr.bf16.mxu0 %v18246_v56 }
 0x3c8   :  { %9229 = vmatmul.mubr.bf16.gmra.mrb[236].mxu0 %v20736_v44  ;;  %16844 = vmatprep.subr.bf16.mxu1 %v18247_v4  ;;  %v18252_v44 = vld [vmem:[%s23319_s4 + $0x218] sm:$0xff]  }
 0x3c9   :  { %9419 = vmatmul.mubr.bf16.gmra.mrb[172].mxu1 %v20767_v34  ;;  %9600 = vmatprep.mubr.bf16.mxu0 %v23509_v9  ;;  %v18254_v34 = vld [vmem:[%s23319_s4 + $0x260] sm:$0xff]  }
 0x3ca   :  { %16817 = vmatpush3.bf16.msra.mxu0 %v18248_v40  ;;  %9790 = vmatprep.mubr.bf16.mxu1 %v23512_v55 }
 0x3cb   :  { %16845 = vmatpush3.bf16.msra.mxu1 %v18249_v41  ;;  %16818 = vmatprep.subr.bf16.mxu0 %v18250_v36  ;;  %v5576_v36 = vrot.slane %v21746_v12, 4 }
 0x3cc   :  { %16846 = vmatprep.subr.bf16.mxu1 %v18251_v57  ;;  %v18268_v57 = vld [vmem:[%s23319_s4 + $0x238] sm:$0xff]  }
 0x3cd   :  { %v16436_v23 = vpop.f32.mrb[184].mxu0 }
 0x3ce   :  { %16819 = vmatpush3.bf16.msra.mxu0 %v18252_v44  ;;  %v16464_v39 = vpop.f32.mrb[120].mxu1  ;;  %v16437_v35 = vpop.f32.mrb[185].mxu0 }
 0x3cf   :  { %16847 = vmatpush3.bf16.msra.mxu1 %v18253_v58  ;;  %16820 = vmatprep.subr.bf16.mxu0 %v18254_v34  ;;  %v16438_v2 = vadd.f32 %v16437_v35, %v16436_v23  ;;  %v16465_v29 = vpop.f32.mrb[121].mxu1  ;;  %v16439_v42 = vpop.f32.mrb[186].mxu0  ;;  %v18270_v34 = vld [vmem:[%s23319_s4 + $0x340] sm:$0xff]  }
 0x3d0   :  { %16848 = vmatprep.subr.bf16.mxu1 %v18255_v6  ;;  %v16466_v31 = vadd.f32 %v16465_v29, %v16464_v39  ;;  %v16467_v46 = vpop.f32.mrb[122].mxu1  ;;  %v16440_v25 = vpop.f32.mrb[187].mxu0  ;;  %v5563_v6 = vadd.f32 %v5562_v49, %v21729_v26  ;;  %v18271_v23 = vld [vmem:[%s23319_s4 + $0x3c0] sm:$0xff]  }
 0x3d1   :  { %v6905_v63 = vadd.f32 %v16438_v2, %v22035_v21  ;;  %v16441_v15 = vadd.f32 %v16440_v25, %v16439_v42  ;;  %v16468_v45 = vpop.f32.mrb[123].mxu1  ;;  %v18262_v21 = vld [vmem:[%s23319_s4 + $0x270] sm:$0xff]   ;;  %v9435_v2 = vpack.c.bf16 %v23508_v32, %v23502_v59  ;;  %v18273_v32 = vld [vmem:[%s23319_s4 + $0x380] sm:$0xff]  }
 0x3d2   :  { %16821 = vmatpush3.bf16.msra.mxu0 %v18256_v33  ;;  %v16469_v5 = vadd.f32 %v16468_v45, %v16467_v46  ;;  %v18274_v46 = vld [vmem:[%s23319_s4 + $0x348] sm:$0xff]   ;;  %v5564_v25 = vrot.slane %v5563_v6, 2 }
 0x3d3   :  { %16849 = vmatpush3.bf16.msra.mxu1 %v18257_v3  ;;  %v7095_v30 = vadd.f32 %v16466_v31, %v6905_v63  ;;  %16822 = vmatprep.subr.bf16.mxu0 %v18258_v50  ;;  %v6906_v11 = vadd.f32 %v16441_v15, %v22047_v20  ;;  %v5577_v3 = vadd.f32 %v5576_v36, %v21746_v12  ;;  %v18272_v31 = vld [vmem:[%s23319_s4 + $0x300] sm:$0xff]   ;;  %v23513_v12 = vld [vmem:[#allocation22_spill] sm:$0xff]  ;;  %v18283_v36 = vld [vmem:[%s23319_s4 + $0x3d8] sm:$0xff]  }
 0x3d4   :  { %16850 = vmatprep.subr.bf16.mxu1 %v18259_v22  ;;  %v9629_v22 = vpack.c.bf16 %v23502_v59, %v23513_v12 }
 0x3d5   :  { %v7096_v14 = vadd.f32 %v16469_v5, %v6906_v11  ;;  %v16442_v1 = vpop.f32.mrb[188].mxu0  ;;  %v22180_v56 = vmax.f32 %v7095_v30, 0.0  ;;  %v23514_v5 = vld [vmem:[#allocation24_spill] sm:$0xff]  ;;  %v23517_v11 = vld [vmem:[#allocation18_spill] sm:$0xff] }
 0x3d6   :  { %16823 = vmatpush3.bf16.msra.mxu0 %v18260_v13  ;;  %v16470_v24 = vpop.f32.mrb[124].mxu1  ;;  %v16443_v0 = vpop.f32.mrb[189].mxu0  ;;  %v18275_v13 = vld [vmem:[%s23319_s4 + $0x3c8] sm:$0xff]   ;;  %v23515_v30 = vpack.c.bf16 %v23511_v62, %v23514_v5 }
 0x3d7   :  { %16851 = vmatpush3.bf16.msra.mxu1 %v18261_v8  ;;  %v22168_v20 = vmax.f32 %v7096_v14, 0.0  ;;  %16824 = vmatprep.subr.bf16.mxu0 %v18262_v21  ;;  %v16444_v60 = vadd.f32 %v16443_v0, %v16442_v1  ;;  %v16471_v28 = vpop.f32.mrb[125].mxu1  ;;  %v16445_v53 = vpop.f32.mrb[190].mxu0  ;;  %v7113_v33 = vmul.f32 %v22180_v56, %v22180_v56  ;;  %v23516_v8 = vld [vmem:[#allocation20_spill] sm:$0xff]  ;;  %v18277_v62 = vld [vmem:[%s23319_s4 + $0x388] sm:$0xff]   ;;  %v5565_v0 = vadd.f32 %v5564_v25, %v5563_v6 }
 0x3d8   :  { %16852 = vmatprep.subr.bf16.mxu1 %v18263_v51  ;;  %v16472_v10 = vadd.f32 %v16471_v28, %v16470_v24  ;;  %v16473_v7 = vpop.f32.mrb[126].mxu1  ;;  %v16446_v16 = vpop.f32.mrb[191].mxu0  ;;  %v23518_v21 = vpack.c.bf16 %v23516_v8, %v23517_v11  ;;  %v5578_v51 = vrot.slane %v5577_v3, 2  ;;  %v18278_v24 = vld [vmem:[%s23319_s4 + $0x350] sm:$0xff]  }
 0x3d9   :  { %v6907_v4 = vadd.f32 %v16444_v60, %v22065_v27  ;;  %v16447_v40 = vadd.f32 %v16446_v16, %v16445_v53  ;;  %v16474_v41 = vpop.f32.mrb[127].mxu1  ;;  %v7114_v55 = vmul.f32 %v22168_v20, %v22168_v20  ;;  %v18269_v27 = vld [vmem:[%s23319_s4 + $0x2b8] sm:$0xff]   ;;  %v7103_v39 = vadd.f32 %v22168_v20, %v22180_v56  ;;  %v18279_v28 = vld [vmem:[%s23319_s4 + $0x3d0] sm:$0xff]  }
 0x3da   :  { %16825 = vmatpush3.bf16.msra.mxu0 %v18264_v52  ;;  %v16475_v9 = vadd.f32 %v16474_v41, %v16473_v7  ;;  %v18276_v52 = vld [vmem:[%s23319_s4 + $0x308] sm:$0xff]   ;;  %v18282_v7 = vld [vmem:[%s23319_s4 + $0x358] sm:$0xff]   ;;  %v5566_v16 = vrot.slane %v5565_v0, 1  ;;  %v23519_v41 = vpack.c.bf16 %v23517_v11, %v20747_v18 }
 0x3db   :  { %16853 = vmatpush3.bf16.msra.mxu1 %v18265_v43  ;;  %v7097_v44 = vadd.f32 %v16472_v10, %v6907_v4  ;;  %16826 = vmatprep.subr.bf16.mxu0 %v18266_v38  ;;  %v6908_v58 = vadd.f32 %v16447_v40, %v22077_v19  ;;  %v7117_v26 = vadd.f32 %v7114_v55, %v7113_v33  ;;  %v18280_v10 = vld [vmem:[%s23319_s4 + $0x310] sm:$0xff]   ;;  %v18284_v18 = vld [vmem:[%s23319_s4 + $0x318] sm:$0xff]   ;;  %v18287_v33 = vld [vmem:[%s23319_s4 + $0x3e0] sm:$0xff]  }
 0x3dc   :  { %16854 = vmatprep.subr.bf16.mxu1 %v18267_v48  ;;  %v5579_v38 = vadd.f32 %v5578_v51, %v5577_v3  ;;  %v18281_v48 = vld [vmem:[%s23319_s4 + $0x390] sm:$0xff]   ;;  %v18292_v11 = vld [vmem:[%s23319_s4 + $0x328] sm:$0xff]  }
 0x3dd   :  { %v22204_v35 = vmax.f32 %v7097_v44, 0.0  ;;  %v7098_v19 = vadd.f32 %v16475_v9, %v6908_v58  ;;  %v23521_v9 = vmov 0.0|0.0   ;;  %v18285_v58 = vld [vmem:[%s23319_s4 + $0x398] sm:$0xff]   ;;  %v18293_v51 = vld [vmem:[%s23319_s4 + $0x3a8] sm:$0xff]  }
 0x3de   :  { %16827 = vmatpush3.bf16.msra.mxu0 %v18268_v57  ;;  %v23520_v57 = vpack.c.bf16 %v23513_v12, %v23510_v37  ;;  %v5580_v55 = vrot.slane %v5579_v38, 1  ;;  %v18286_v37 = vld [vmem:[%s23319_s4 + $0x360] sm:$0xff]  }
 0x3df   :  { %v7104_v29 = vadd.f32 %v7103_v39, %v22204_v35  ;;  %v7115_v50 = vmul.f32 %v22204_v35, %v22204_v35  ;;  %16855 = vmatpush3.bf16.msra.mxu1 %v18269_v27  ;;  %v22212_v42 = vmax.f32 %v7098_v19, 0.0  ;;  %16868 = vmatprep.subr.bf16.mxu0 %v18270_v34  ;;  %v5567_v34 = vadd.f32 %v5566_v16, %v5565_v0 }
 0x3e0   :  { %16896 = vmatprep.subr.bf16.mxu1 %v18271_v23  ;;  %v5581_v19 = vadd.f32 %v5580_v55, %v5579_v38  ;;  %v18301_v55 = vld [vmem:[%s23319_s4 + $0x3b8] sm:$0xff]  }
 0x3e1   :  { %v7118_v63 = vadd.f32 %v7117_v26, %v7115_v50  ;;  %v7105_v15 = vadd.f32 %v7104_v29, %v22212_v42  ;;  %v7116_v45 = vmul.f32 %v22212_v42, %v22212_v42  ;;  %9601 = vmatmul.mubr.bf16.vlgmr.msra.gmra.mrb[240].mxu0 %v9435_v2  ;;  %v18288_v26 = vld [vmem:[%s23319_s4 + $0x320] sm:$0xff]  }
 0x3e2   :  { %9791 = vmatmul.mubr.bf16.vlgmr.msra.gmra.mrb[176].mxu1 %v23515_v30  ;;  %9608 = vmatprep.mubr.bf16.mxu0 %v23518_v21 }
 0x3e3   :  { %v7106_v14 = vrot.slane %v7105_v15, 4  ;;  %v7119_v1 = vadd.f32 %v7118_v63, %v7116_v45  ;;  %9798 = vmatprep.mubr.bf16.mxu1 %v9629_v22  ;;  %16869 = vmatpush3.bf16.msra.mxu0 %v18272_v31  ;;  %v18289_v31 = vld [vmem:[%s23319_s4 + $0x3a0] sm:$0xff]  }
 0x3e4   :  { %16897 = vmatpush3.bf16.msra.mxu1 %v18273_v32  ;;  %16870 = vmatprep.subr.bf16.mxu0 %v18274_v46  ;;  %v18290_v32 = vld [vmem:[%s23319_s4 + $0x368] sm:$0xff]  }
 0x3e5   :  { %v7107_v43 = vadd.f32 %v7106_v14, %v7105_v15  ;;  %v7120_v60 = vrot.slane %v7119_v1, 4  ;;  %16898 = vmatprep.subr.bf16.mxu1 %v18275_v13  ;;  %v18291_v15 = vld [vmem:[%s23319_s4 + $0x3e8] sm:$0xff]   ;;  %v18294_v14 = vld [vmem:[%s23319_s4 + $0x370] sm:$0xff]  }
 0x3e7   :  { %v7108_v53 = vrot.slane %v7107_v43, 2  ;;  %v7121_v49 = vadd.f32 %v7120_v60, %v7119_v1  ;;  %16871 = vmatpush3.bf16.msra.mxu0 %v18276_v52  ;;  %v18295_v52 = vld [vmem:[%s23319_s4 + $0x3f0] sm:$0xff]  }
 0x3e8   :  { %16899 = vmatpush3.bf16.msra.mxu1 %v18277_v62  ;;  %16872 = vmatprep.subr.bf16.mxu0 %v18278_v24  ;;  %v18296_v24 = vld [vmem:[%s23319_s4 + $0x330] sm:$0xff]  }
 0x3e9   :  { %v7109_v4 = vadd.f32 %v7108_v53, %v7107_v43  ;;  %v7122_v40 = vrot.slane %v7121_v49, 2  ;;  %9609 = vmatmul.mubr.bf16.gmra.mrb[244].mxu0 %v23519_v41  ;;  %16900 = vmatprep.subr.bf16.mxu1 %v18279_v28  ;;  %v18297_v60 = vld [vmem:[%s23319_s4 + $0x3b0] sm:$0xff]   ;;  %v18298_v53 = vld [vmem:[%s23319_s4 + $0x378] sm:$0xff]  }
 0x3ea   :  { %9799 = vmatmul.mubr.bf16.gmra.mrb[180].mxu1 %v23520_v57  ;;  %9980 = vmatprep.mubr.bf16.mxu0 %v23521_v9 }
 0x3eb   :  { %v7110_v44 = vrot.slane %v7109_v4, 1  ;;  %v7123_v27 = vadd.f32 %v7122_v40, %v7121_v49  ;;  %16873 = vmatpush3.bf16.msra.mxu0 %v18280_v10  ;;  %10170 = vmatprep.mubr.bf16.mxu1 %v23521_v9 }
 0x3ec   :  { %16901 = vmatpush3.bf16.msra.mxu1 %v18281_v48  ;;  %16874 = vmatprep.subr.bf16.mxu0 %v18282_v7  ;;  %v18299_v48 = vld [vmem:[%s23319_s4 + $0x3f8] sm:$0xff]  }
 0x3ed   :  { %v7111_v6 = vadd.f32 %v7110_v44, %v7109_v4  ;;  %v7124_v23 = vrot.slane %v7123_v27, 1  ;;  %16902 = vmatprep.subr.bf16.mxu1 %v18283_v36  ;;  %v18300_v36 = vld [vmem:[%s23319_s4 + $0x338] sm:$0xff]  }
 0x3ee   :  { %v16492_v39 = vpop.f32.mrb[192].mxu0 }
 0x3ef   :  { %v22281_v3 = vadd.f32 %v7111_v6, %v5567_v34  ;;  %v7125_v2 = vadd.f32 %v7124_v23, %v7123_v27  ;;  %16875 = vmatpush3.bf16.msra.mxu0 %v18284_v18  ;;  %v16520_v29 = vpop.f32.mrb[128].mxu1  ;;  %v16493_v50 = vpop.f32.mrb[193].mxu0 }
 0x3f0   :  { %16903 = vmatpush3.bf16.msra.mxu1 %v18285_v58  ;;  %16876 = vmatprep.subr.bf16.mxu0 %v18286_v37  ;;  %v16494_v12 = vadd.f32 %v16493_v50, %v16492_v39  ;;  %v16521_v22 = vpop.f32.mrb[129].mxu1  ;;  %v16495_v46 = vpop.f32.mrb[194].mxu0 }
 0x3f1   :  { %v22292_v25 = vadd.f32 %v7125_v2, %v5581_v19  ;;  %16904 = vmatprep.subr.bf16.mxu1 %v18287_v33  ;;  %v16522_v63 = vadd.f32 %v16521_v22, %v16520_v29  ;;  %v16523_v45 = vpop.f32.mrb[130].mxu1  ;;  %v16496_v13 = vpop.f32.mrb[195].mxu0 }
 0x3f2   :  { %v16497_v5 = vadd.f32 %v16496_v13, %v16495_v46  ;;  %v16524_v30 = vpop.f32.mrb[131].mxu1 }
 0x3f3   :  { %16877 = vmatpush3.bf16.msra.mxu0 %v18288_v26  ;;  %v7491_v8 = vadd.f32 %v16522_v63, %v16494_v12  ;;  %v16525_v21 = vadd.f32 %v16524_v30, %v16523_v45 }
 0x3f4   :  { %16905 = vmatpush3.bf16.msra.mxu1 %v18289_v31  ;;  %16878 = vmatprep.subr.bf16.mxu0 %v18290_v32 }
 0x3f5   :  { %16906 = vmatprep.subr.bf16.mxu1 %v18291_v15  ;;  %v7494_v1 = vadd.f32 %v16525_v21, %v16497_v5 }
 0x3f6   :  { %v16498_v62 = vpop.f32.mrb[196].mxu0 }
 0x3f7   :  { %16879 = vmatpush3.bf16.msra.mxu0 %v18292_v11  ;;  %v16526_v0 = vpop.f32.mrb[132].mxu1  ;;  %v16499_v43 = vpop.f32.mrb[197].mxu0 }
 0x3f8   :  { %16907 = vmatpush3.bf16.msra.mxu1 %v18293_v51  ;;  %16880 = vmatprep.subr.bf16.mxu0 %v18294_v14  ;;  %v16500_v28 = vadd.f32 %v16499_v43, %v16498_v62  ;;  %v16527_v38 = vpop.f32.mrb[133].mxu1  ;;  %v16501_v49 = vpop.f32.mrb[198].mxu0 }
 0x3f9   :  { %16908 = vmatprep.subr.bf16.mxu1 %v18295_v52  ;;  %v16528_v10 = vadd.f32 %v16527_v38, %v16526_v0  ;;  %v16529_v7 = vpop.f32.mrb[134].mxu1  ;;  %v16502_v16 = vpop.f32.mrb[199].mxu0 }
 0x3fa   :  { %v16503_v4 = vadd.f32 %v16502_v16, %v16501_v49  ;;  %v16530_v40 = vpop.f32.mrb[135].mxu1 }
 0x3fb   :  { %16881 = vmatpush3.bf16.msra.mxu0 %v18296_v24  ;;  %v7499_v41 = vadd.f32 %v16528_v10, %v16500_v28  ;;  %v16531_v57 = vadd.f32 %v16530_v40, %v16529_v7 }
 0x3fc   :  { %16909 = vmatpush3.bf16.msra.mxu1 %v18297_v60  ;;  %16882 = vmatprep.subr.bf16.mxu0 %v18298_v53 }
 0x3fd   :  { %16910 = vmatprep.subr.bf16.mxu1 %v18299_v48  ;;  %v7502_v44 = vadd.f32 %v16531_v57, %v16503_v4 }
 0x3ff   :  { %16883 = vmatpush3.bf16.msra.mxu0 %v18300_v36 }
 0x400   :  { %16911 = vmatpush3.bf16.msra.mxu1 %v18301_v55 }
 0x402   :  { %9981 = vmatmul.mubr.bf16.vlgmr.msra.gmra.mrb[248].mxu0 %v23521_v9 }
 0x403   :  { %10171 = vmatmul.mubr.bf16.vlgmr.msra.gmra.mrb[184].mxu1 %v23521_v9  ;;  %9988 = vmatprep.mubr.bf16.mxu0 %v23521_v9 }
 0x404   :  { %10178 = vmatprep.mubr.bf16.mxu1 %v23521_v9 }
 0x40a   :  { %9989 = vmatmul.mubr.bf16.gmra.mrb[252].mxu0 %v23521_v9 }
 0x40b   :  { %10179 = vmatmul.mubr.bf16.gmra.mrb[188].mxu1 %v23521_v9  ;;  %10516 = vmatprep.mubr.bf16.mxu0 %v23521_v9 }
 0x40c   :  { %10653 = vmatprep.mubr.bf16.mxu1 %v23521_v9 }
 0x40f   :  { %v16548_v27 = vpop.f32.mrb[200].mxu0 }
 0x410   :  { %v16576_v18 = vpop.f32.mrb[136].mxu1  ;;  %v16549_v58 = vpop.f32.mrb[201].mxu0 }
 0x411   :  { %v16550_v37 = vadd.f32 %v16549_v58, %v16548_v27  ;;  %v16577_v34 = vpop.f32.mrb[137].mxu1  ;;  %v16551_v6 = vpop.f32.mrb[202].mxu0 }
 0x412   :  { %v16578_v23 = vadd.f32 %v16577_v34, %v16576_v18  ;;  %v16579_v33 = vpop.f32.mrb[138].mxu1  ;;  %v16552_v39 = vpop.f32.mrb[203].mxu0 }
 0x413   :  { %v7691_v19 = vadd.f32 %v16550_v37, %v7491_v8  ;;  %v16553_v2 = vadd.f32 %v16552_v39, %v16551_v6  ;;  %v16580_v26 = vpop.f32.mrb[139].mxu1 }
 0x414   :  { %v16581_v29 = vadd.f32 %v16580_v26, %v16579_v33 }
 0x415   :  { %v7881_v50 = vadd.f32 %v16578_v23, %v7691_v19  ;;  %v7692_v31 = vadd.f32 %v16553_v2, %v7494_v1 }
 0x417   :  { %v7882_v12 = vadd.f32 %v16581_v29, %v7692_v31  ;;  %v16554_v22 = vpop.f32.mrb[204].mxu0 }
 0x418   :  { %v16582_v32 = vpop.f32.mrb[140].mxu1  ;;  %v16555_v46 = vpop.f32.mrb[205].mxu0 }
 0x419   :  { %v16556_v63 = vadd.f32 %v16555_v46, %v16554_v22  ;;  %v16583_v15 = vpop.f32.mrb[141].mxu1  ;;  %v16557_v45 = vpop.f32.mrb[206].mxu0 }
 0x41a   :  { %v16584_v13 = vadd.f32 %v16583_v15, %v16582_v32  ;;  %v16585_v5 = vpop.f32.mrb[142].mxu1  ;;  %v16558_v30 = vpop.f32.mrb[207].mxu0 }
 0x41b   :  { %v7693_v11 = vadd.f32 %v16556_v63, %v7499_v41  ;;  %v16559_v21 = vadd.f32 %v16558_v30, %v16557_v45  ;;  %v16586_v51 = vpop.f32.mrb[143].mxu1 }
 0x41c   :  { %v16587_v14 = vadd.f32 %v16586_v51, %v16585_v5 }
 0x41d   :  { %v7883_v8 = vadd.f32 %v16584_v13, %v7693_v11  ;;  %v7694_v52 = vadd.f32 %v16559_v21, %v7502_v44 }
 0x41f   :  { %v7884_v62 = vadd.f32 %v16587_v14, %v7694_v52 }
 0x430   :  { %v16604_v24 = vpop.f32.mrb[208].mxu0 }
 0x431   :  { %v16632_v0 = vpop.f32.mrb[144].mxu1  ;;  %v16605_v1 = vpop.f32.mrb[209].mxu0 }
 0x432   :  { %v16606_v43 = vadd.f32 %v16605_v1, %v16604_v24  ;;  %v16633_v60 = vpop.f32.mrb[145].mxu1  ;;  %v16607_v28 = vpop.f32.mrb[210].mxu0 }
 0x433   :  { %v16634_v38 = vadd.f32 %v16633_v60, %v16632_v0  ;;  %v16635_v53 = vpop.f32.mrb[146].mxu1  ;;  %v16608_v49 = vpop.f32.mrb[211].mxu0 }
 0x434   :  { %v8071_v10 = vadd.f32 %v16606_v43, %v7881_v50  ;;  %v16609_v48 = vadd.f32 %v16608_v49, %v16607_v28  ;;  %v16636_v7 = vpop.f32.mrb[147].mxu1 }
 0x435   :  { %v16637_v16 = vadd.f32 %v16636_v7, %v16635_v53 }
 0x436   :  { %v8261_v4 = vadd.f32 %v16634_v38, %v8071_v10  ;;  %v8072_v40 = vadd.f32 %v16609_v48, %v7882_v12 }
 0x438   :  { %v8262_v41 = vadd.f32 %v16637_v16, %v8072_v40  ;;  %v16610_v36 = vpop.f32.mrb[212].mxu0  ;;  %v18302_v16 = vld [vmem:[%s23322_s7 + $0xc0] sm:$0xff]  }
 0x439   :  { %v16638_v57 = vpop.f32.mrb[148].mxu1  ;;  %v16611_v55 = vpop.f32.mrb[213].mxu0  ;;  %16924 = vmatprep.subr.bf16.mxu0 %v18302_v16  ;;  %v18304_v40 = vld [vmem:[%s23322_s7 + $0x80] sm:$0xff]  }
 0x43a   :  { %v16612_v44 = vadd.f32 %v16611_v55, %v16610_v36  ;;  %v16639_v27 = vpop.f32.mrb[149].mxu1  ;;  %v16613_v18 = vpop.f32.mrb[214].mxu0  ;;  %16925 = vmatpush3.bf16.msra.mxu0 %v18304_v40  ;;  %v18306_v36 = vld [vmem:[%s23322_s7 + $0xc8] sm:$0xff]  }
 0x43b   :  { %v16640_v58 = vadd.f32 %v16639_v27, %v16638_v57  ;;  %v16641_v37 = vpop.f32.mrb[150].mxu1  ;;  %v16614_v34 = vpop.f32.mrb[215].mxu0  ;;  %v18307_v57 = vld [vmem:[%s23322_s7 + $0x48] sm:$0xff]   ;;  %16926 = vmatprep.subr.bf16.mxu0 %v18306_v36  ;;  %v18310_v27 = vld [vmem:[%s23322_s7 + $0xd0] sm:$0xff]  }
 0x43c   :  { %v8073_v6 = vadd.f32 %v16612_v44, %v7883_v8  ;;  %v16615_v23 = vadd.f32 %v16614_v34, %v16613_v18  ;;  %v16642_v33 = vpop.f32.mrb[151].mxu1  ;;  %v18308_v55 = vld [vmem:[%s23322_s7 + $0x88] sm:$0xff]   ;;  %v18311_v18 = vld [vmem:[%s23322_s7 + $0x50] sm:$0xff]  }
 0x43d   :  { %v16643_v39 = vadd.f32 %v16642_v33, %v16641_v37  ;;  %v18309_v44 = vld [vmem:[%s23322_s7 + $0x8] sm:$0xff]   ;;  %v18313_v37 = vld [vmem:[%s23322_s7 + $0x10] sm:$0xff]  }
 0x43e   :  { %v8263_v19 = vadd.f32 %v16640_v58, %v8073_v6  ;;  %v8074_v2 = vadd.f32 %v16615_v23, %v7884_v62  ;;  %16927 = vmatpush3.bf16.msra.mxu0 %v18308_v55  ;;  %v18312_v58 = vld [vmem:[%s23322_s7 + $0x90] sm:$0xff]  }
 0x43f   :  { %16928 = vmatprep.subr.bf16.mxu0 %v18310_v27  ;;  %v18327_v36 = vld [vmem:[%s23322_s7 + $0x70] sm:$0xff]   ;;  %v18330_v27 = vld [vmem:[%s23322_s7 + $0xf8] sm:$0xff]  }
 0x440   :  { %v8264_v26 = vadd.f32 %v16643_v39, %v8074_v2  ;;  %v18314_v2 = vld [vmem:[%s23322_s7 + $0xd8] sm:$0xff]   ;;  %v18328_v55 = vld [vmem:[%s23322_s7 + $0xb0] sm:$0xff]  }
 0x442   :  { %16929 = vmatpush3.bf16.msra.mxu0 %v18312_v58  ;;  %v18332_v58 = vld [vmem:[%s23322_s7 + $0xb8] sm:$0xff]  }
 0x443   :  { %16930 = vmatprep.subr.bf16.mxu0 %v18314_v2  ;;  %v18340_v2 = vld [vmem:[%s23322_s7 + $0x108] sm:$0xff]  }
 0x451   :  { %v16660_v29 = vpop.f32.mrb[216].mxu0 }
 0x452   :  { %v16688_v50 = vpop.f32.mrb[152].mxu1  ;;  %v16661_v31 = vpop.f32.mrb[217].mxu0 }
 0x453   :  { %v16662_v12 = vadd.f32 %v16661_v31, %v16660_v29  ;;  %v16689_v22 = vpop.f32.mrb[153].mxu1  ;;  %v16663_v32 = vpop.f32.mrb[218].mxu0 }
 0x454   :  { %v16690_v46 = vadd.f32 %v16689_v22, %v16688_v50  ;;  %v16691_v63 = vpop.f32.mrb[154].mxu1  ;;  %v16664_v15 = vpop.f32.mrb[219].mxu0  ;;  %v18317_v22 = vld [vmem:[%s23322_s7 + $0x18] sm:$0xff]  }
 0x455   :  { %v8451_v45 = vadd.f32 %v16662_v12, %v8261_v4  ;;  %v16665_v13 = vadd.f32 %v16664_v15, %v16663_v32  ;;  %v16692_v5 = vpop.f32.mrb[155].mxu1  ;;  %v18303_v4 = vld [vmem:[%s23322_s7 + $0x40] sm:$0xff]   ;;  %v18316_v12 = vld [vmem:[%s23322_s7 + $0x98] sm:$0xff]  }
 0x456   :  { %v16693_v30 = vadd.f32 %v16692_v5, %v16691_v63  ;;  %16946 = vmatprep.subr.bf16.mxu1 %v18303_v4  ;;  %16931 = vmatpush3.bf16.msra.mxu0 %v18316_v12  ;;  %v18344_v12 = vld [vmem:[%s23322_s7 + $0x110] sm:$0xff]  }
 0x457   :  { %v22335_v11 = vadd.f32 %v16690_v46, %v8451_v45  ;;  %v8452_v21 = vadd.f32 %v16665_v13, %v8262_v41  ;;  %v18305_v41 = vld [vmem:[%s23322_s7] sm:$0xff]  }
 0x458   :  { %16947 = vmatpush3.bf16.msra.mxu1 %v18305_v41  ;;  %v18318_v45 = vld [vmem:[%s23322_s7 + $0xe0] sm:$0xff]   ;;  %v18326_v41 = vld [vmem:[%s23322_s7 + $0xf0] sm:$0xff]  }
 0x459   :  { %v22337_v51 = vadd.f32 %v16693_v30, %v8452_v21  ;;  %v16666_v14 = vpop.f32.mrb[220].mxu0  ;;  %16948 = vmatprep.subr.bf16.mxu1 %v18307_v57  ;;  %v18319_v13 = vld [vmem:[%s23322_s7 + $0x60] sm:$0xff]   ;;  %16932 = vmatprep.subr.bf16.mxu0 %v18318_v45  ;;  %v18347_v45 = vld [vmem:[%s23322_s7 + $0x1d8] sm:$0xff]  }
 0x45a   :  { %v16694_v8 = vpop.f32.mrb[156].mxu1  ;;  %v16667_v52 = vpop.f32.mrb[221].mxu0  ;;  %v18320_v30 = vld [vmem:[%s23322_s7 + $0xa0] sm:$0xff]  }
 0x45b   :  { %v16668_v62 = vadd.f32 %v16667_v52, %v16666_v14  ;;  %v16695_v24 = vpop.f32.mrb[157].mxu1  ;;  %v16669_v0 = vpop.f32.mrb[222].mxu0  ;;  %v18321_v21 = vld [vmem:[%s23322_s7 + $0x20] sm:$0xff]   ;;  %16933 = vmatpush3.bf16.msra.mxu0 %v18320_v30 }
 0x45c   :  { %v16696_v1 = vadd.f32 %v16695_v24, %v16694_v8  ;;  %v16697_v43 = vpop.f32.mrb[158].mxu1  ;;  %v16670_v60 = vpop.f32.mrb[223].mxu0  ;;  %16949 = vmatpush3.bf16.msra.mxu1 %v18309_v44  ;;  %v18329_v44 = vld [vmem:[%s23322_s7 + $0x30] sm:$0xff]  }
 0x45d   :  { %v8453_v28 = vadd.f32 %v16668_v62, %v8263_v19  ;;  %v16671_v38 = vadd.f32 %v16670_v60, %v16669_v0  ;;  %v16698_v53 = vpop.f32.mrb[159].mxu1  ;;  %16950 = vmatprep.subr.bf16.mxu1 %v18311_v18  ;;  %v18331_v18 = vld [vmem:[%s23322_s7 + $0x78] sm:$0xff]  }
 0x45e   :  { %v16699_v49 = vadd.f32 %v16698_v53, %v16697_v43  ;;  %v18323_v43 = vld [vmem:[%s23322_s7 + $0x68] sm:$0xff]  }
 0x45f   :  { %v22339_v10 = vadd.f32 %v16696_v1, %v8453_v28  ;;  %v8454_v48 = vadd.f32 %v16671_v38, %v8264_v26  ;;  %v18315_v26 = vld [vmem:[%s23322_s7 + $0x58] sm:$0xff]   ;;  %v18322_v1 = vld [vmem:[%s23322_s7 + $0xe8] sm:$0xff]  }
 0x460   :  { %16951 = vmatpush3.bf16.msra.mxu1 %v18313_v37  ;;  %v18324_v53 = vld [vmem:[%s23322_s7 + $0xa8] sm:$0xff]   ;;  %16934 = vmatprep.subr.bf16.mxu0 %v18322_v1  ;;  %v18333_v37 = vld [vmem:[%s23322_s7 + $0x38] sm:$0xff]  }
 0x461   :  { %v22341_v7 = vadd.f32 %v16699_v49, %v8454_v48  ;;  %16952 = vmatprep.subr.bf16.mxu1 %v18315_v26  ;;  %v18325_v49 = vld [vmem:[%s23322_s7 + $0x28] sm:$0xff]   ;;  %16935 = vmatpush3.bf16.msra.mxu0 %v18324_v53 }
 0x462   :  { %16936 = vmatprep.subr.bf16.mxu0 %v18326_v41  ;;  %v18341_v26 = vld [vmem:[%s23322_s7 + $0x188] sm:$0xff]  }
 0x464   :  { %16953 = vmatpush3.bf16.msra.mxu1 %v18317_v22  ;;  %v18345_v22 = vld [vmem:[%s23322_s7 + $0x190] sm:$0xff]  }
 0x465   :  { %16954 = vmatprep.subr.bf16.mxu1 %v18319_v13  ;;  %16937 = vmatpush3.bf16.msra.mxu0 %v18328_v55  ;;  %v18355_v55 = vld [vmem:[%s23322_s7 + $0x1e8] sm:$0xff]  }
 0x466   :  { %16938 = vmatprep.subr.bf16.mxu0 %v18330_v27 }
 0x468   :  { %16955 = vmatpush3.bf16.msra.mxu1 %v18321_v21 }
 0x469   :  { %16956 = vmatprep.subr.bf16.mxu1 %v18323_v43  ;;  %16939 = vmatpush3.bf16.msra.mxu0 %v18332_v58 }
 0x46c   :  { %16957 = vmatpush3.bf16.msra.mxu1 %v18325_v49  ;;  %10517 = vmatmul.mubr.bf16.vlgmr.msra.gmra.mrb[0].mxu0 %v23521_v9  ;;  %v18351_v49 = vld [vmem:[%s23322_s7 + $0x1e0] sm:$0xff]  }
 0x46d   :  { %16958 = vmatprep.subr.bf16.mxu1 %v18327_v36  ;;  %v18354_v36 = vld [vmem:[%s23322_s7 + $0x168] sm:$0xff]  }
 0x470   :  { %16959 = vmatpush3.bf16.msra.mxu1 %v18329_v44 }
 0x471   :  { %16960 = vmatprep.subr.bf16.mxu1 %v18331_v18 }
 0x472   :  { %v16716_v34 = vpop.f32.mrb[224].mxu0 }
 0x473   :  { %v16744_v6 = vpop.f32.mrb[160].mxu1  ;;  %v16717_v23 = vpop.f32.mrb[225].mxu0 }
 0x474   :  { %v16718_v33 = vadd.f32 %v16717_v23, %v16716_v34  ;;  %v16745_v39 = vpop.f32.mrb[161].mxu1  ;;  %v16719_v19 = vpop.f32.mrb[226].mxu0  ;;  %16961 = vmatpush3.bf16.msra.mxu1 %v18333_v37  ;;  %v18334_v34 = vld [vmem:[%s23322_s7 + $0x140] sm:$0xff]  }
 0x475   :  { %v16746_v29 = vadd.f32 %v16745_v39, %v16744_v6  ;;  %v16747_v50 = vpop.f32.mrb[162].mxu1  ;;  %v16720_v31 = vpop.f32.mrb[227].mxu0  ;;  %v18335_v6 = vld [vmem:[%s23322_s7 + $0x1c0] sm:$0xff]   ;;  %16968 = vmatprep.subr.bf16.mxu0 %v18334_v34  ;;  %v18338_v39 = vld [vmem:[%s23322_s7 + $0x148] sm:$0xff]  }
 0x476   :  { %v16721_v32 = vadd.f32 %v16720_v31, %v16719_v19  ;;  %v16748_v46 = vpop.f32.mrb[163].mxu1  ;;  %v18336_v23 = vld [vmem:[%s23322_s7 + $0x100] sm:$0xff]   ;;  %16990 = vmatprep.subr.bf16.mxu1 %v18335_v6  ;;  %v18339_v19 = vld [vmem:[%s23322_s7 + $0x1c8] sm:$0xff]  }
 0x477   :  { %v22391_v63 = vadd.f32 %v16746_v29, %v16718_v33  ;;  %v16749_v15 = vadd.f32 %v16748_v46, %v16747_v50  ;;  %10654 = vmatmul.mubr.bf16.vlgmr.msra.gmra.mrb[192].mxu1 %v23521_v9  ;;  %v18337_v33 = vld [vmem:[%s23322_s7 + $0x180] sm:$0xff]   ;;  %16969 = vmatpush3.bf16.msra.mxu0 %v18336_v23  ;;  %v18342_v29 = vld [vmem:[%s23322_s7 + $0x150] sm:$0xff]  }
 0x478   :  { %16991 = vmatpush3.bf16.msra.mxu1 %v18337_v33  ;;  %16970 = vmatprep.subr.bf16.mxu0 %v18338_v39  ;;  %v18343_v50 = vld [vmem:[%s23322_s7 + $0x1d0] sm:$0xff]   ;;  %v18356_v39 = vld [vmem:[%s23322_s7 + $0x128] sm:$0xff]  }
 0x479   :  { %v22399_v5 = vadd.f32 %v16749_v15, %v16721_v32  ;;  %16992 = vmatprep.subr.bf16.mxu1 %v18339_v19  ;;  %v18346_v15 = vld [vmem:[%s23322_s7 + $0x158] sm:$0xff]  }
 0x47a   :  { %v16722_v14 = vpop.f32.mrb[228].mxu0 }
 0x47b   :  { %v16750_v8 = vpop.f32.mrb[164].mxu1  ;;  %v16723_v52 = vpop.f32.mrb[229].mxu0  ;;  %16971 = vmatpush3.bf16.msra.mxu0 %v18340_v2  ;;  %v18357_v2 = vld [vmem:[%s23322_s7 + $0x1a8] sm:$0xff]  }
 0x47c   :  { %v16724_v62 = vadd.f32 %v16723_v52, %v16722_v14  ;;  %v16751_v24 = vpop.f32.mrb[165].mxu1  ;;  %v16725_v0 = vpop.f32.mrb[230].mxu0  ;;  %16993 = vmatpush3.bf16.msra.mxu1 %v18341_v26  ;;  %16972 = vmatprep.subr.bf16.mxu0 %v18342_v29 }
 0x47d   :  { %v16752_v60 = vadd.f32 %v16751_v24, %v16750_v8  ;;  %v16753_v28 = vpop.f32.mrb[166].mxu1  ;;  %v16726_v38 = vpop.f32.mrb[231].mxu0  ;;  %16994 = vmatprep.subr.bf16.mxu1 %v18343_v50  ;;  %v18349_v24 = vld [vmem:[%s23322_s7 + $0x198] sm:$0xff]   ;;  %v18358_v50 = vld [vmem:[%s23322_s7 + $0x170] sm:$0xff]  }
 0x47e   :  { %v16727_v48 = vadd.f32 %v16726_v38, %v16725_v0  ;;  %v16754_v16 = vpop.f32.mrb[167].mxu1 }
 0x47f   :  { %v22419_v4 = vadd.f32 %v16752_v60, %v16724_v62  ;;  %v16755_v40 = vadd.f32 %v16754_v16, %v16753_v28  ;;  %16973 = vmatpush3.bf16.msra.mxu0 %v18344_v12  ;;  %v18348_v62 = vld [vmem:[%s23322_s7 + $0x118] sm:$0xff]   ;;  %v18350_v60 = vld [vmem:[%s23322_s7 + $0x160] sm:$0xff]   ;;  %v18360_v12 = vld [vmem:[%s23322_s7 + $0x130] sm:$0xff]  }
 0x480   :  { %16995 = vmatpush3.bf16.msra.mxu1 %v18345_v22  ;;  %16974 = vmatprep.subr.bf16.mxu0 %v18346_v15  ;;  %v18362_v22 = vld [vmem:[%s23322_s7 + $0x178] sm:$0xff]  }
 0x481   :  { %v22427_v57 = vadd.f32 %v16755_v40, %v16727_v48  ;;  %16996 = vmatprep.subr.bf16.mxu1 %v18347_v45  ;;  %v18353_v40 = vld [vmem:[%s23322_s7 + $0x1a0] sm:$0xff]   ;;  %v18365_v15 = vld [vmem:[%s23322_s7 + $0x1b8] sm:$0xff]  }
 0x482   :  { %v18366_v45 = vld [vmem:[%s23322_s7 + $0x240] sm:$0xff]  }
 0x483   :  { %16975 = vmatpush3.bf16.msra.mxu0 %v18348_v62 }
 0x484   :  { %16997 = vmatpush3.bf16.msra.mxu1 %v18349_v24  ;;  %16976 = vmatprep.subr.bf16.mxu0 %v18350_v60 }
 0x485   :  { %16998 = vmatprep.subr.bf16.mxu1 %v18351_v49 }
 0x488   :  { %16999 = vmatpush3.bf16.msra.mxu1 %v18353_v40 }
 0x489   :  { %17000 = vmatprep.subr.bf16.mxu1 %v18355_v55 }
 0x48c   :  { %17001 = vmatpush3.bf16.msra.mxu1 %v18357_v2  ;;  %v22568_v2 = vmax.f32 %v22339_v10, 0.0 }
 0x493   :  { %v16772_v31 = vpop.f32.mrb[232].mxu0 }
 0x494   :  { %v16800_v32 = vpop.f32.mrb[168].mxu1  ;;  %v16773_v46 = vpop.f32.mrb[233].mxu0 }
 0x495   :  { %v16774_v13 = vadd.f32 %v16773_v46, %v16772_v31  ;;  %v16801_v30 = vpop.f32.mrb[169].mxu1  ;;  %v16775_v21 = vpop.f32.mrb[234].mxu0  ;;  %v18364_v46 = vld [vmem:[%s23322_s7 + $0x138] sm:$0xff]  }
 0x496   :  { %v16802_v14 = vadd.f32 %v16801_v30, %v16800_v32  ;;  %v16803_v8 = vpop.f32.mrb[170].mxu1  ;;  %v16776_v52 = vpop.f32.mrb[235].mxu0  ;;  %v18363_v32 = vld [vmem:[%s23322_s7 + $0x1f8] sm:$0xff]  }
 0x497   :  { %v9237_v0 = vadd.f32 %v16774_v13, %v22391_v63  ;;  %v16777_v1 = vadd.f32 %v16776_v52, %v16775_v21  ;;  %v16804_v43 = vpop.f32.mrb[171].mxu1  ;;  %v18352_v63 = vld [vmem:[%s23322_s7 + $0x120] sm:$0xff]  }
 0x498   :  { %v16805_v28 = vadd.f32 %v16804_v43, %v16803_v8  ;;  %16977 = vmatpush3.bf16.msra.mxu0 %v18352_v63  ;;  %v18367_v13 = vld [vmem:[%s23322_s7 + $0x2c0] sm:$0xff]  }
 0x499   :  { %v22501_v38 = vadd.f32 %v16802_v14, %v9237_v0  ;;  %v9238_v53 = vadd.f32 %v16777_v1, %v22399_v5  ;;  %16978 = vmatprep.subr.bf16.mxu0 %v18354_v36 }
 0x49b   :  { %v22510_v48 = vadd.f32 %v16805_v28, %v9238_v53  ;;  %v16778_v16 = vpop.f32.mrb[236].mxu0 }
 0x49c   :  { %v16806_v5 = vpop.f32.mrb[172].mxu1  ;;  %v16779_v41 = vpop.f32.mrb[237].mxu0  ;;  %16979 = vmatpush3.bf16.msra.mxu0 %v18356_v39 }
 0x49d   :  { %v16780_v44 = vadd.f32 %v16779_v41, %v16778_v16  ;;  %v16807_v27 = vpop.f32.mrb[173].mxu1  ;;  %v16781_v18 = vpop.f32.mrb[238].mxu0  ;;  %16980 = vmatprep.subr.bf16.mxu0 %v18358_v50 }
 0x49e   :  { %v16808_v58 = vadd.f32 %v16807_v27, %v16806_v5  ;;  %v16809_v37 = vpop.f32.mrb[174].mxu1  ;;  %v16782_v34 = vpop.f32.mrb[239].mxu0 }
 0x49f   :  { %v9239_v6 = vadd.f32 %v16780_v44, %v22419_v4  ;;  %v16783_v23 = vadd.f32 %v16782_v34, %v16781_v18  ;;  %v16810_v33 = vpop.f32.mrb[175].mxu1  ;;  %v18359_v4 = vld [vmem:[%s23322_s7 + $0x1f0] sm:$0xff]  }
 0x4a0   :  { %v16811_v19 = vadd.f32 %v16810_v33, %v16809_v37  ;;  %17002 = vmatprep.subr.bf16.mxu1 %v18359_v4  ;;  %16981 = vmatpush3.bf16.msra.mxu0 %v18360_v12  ;;  %v8661_v4 = vmul.f32 %v22568_v2, %v22568_v2 }
 0x4a1   :  { %v9429_v26 = vadd.f32 %v16808_v58, %v9239_v6  ;;  %v9240_v29 = vadd.f32 %v16783_v23, %v22427_v57  ;;  %v18361_v57 = vld [vmem:[%s23322_s7 + $0x1b0] sm:$0xff]   ;;  %16982 = vmatprep.subr.bf16.mxu0 %v18362_v22 }
 0x4a2   :  { %17003 = vmatpush3.bf16.msra.mxu1 %v18361_v57 }
 0x4a3   :  { %v9430_v31 = vadd.f32 %v16811_v19, %v9240_v29  ;;  %17004 = vmatprep.subr.bf16.mxu1 %v18363_v32  ;;  %v22562_v19 = vmax.f32 %v22337_v51, 0.0  ;;  %v22579_v51 = vmax.f32 %v22341_v7, 0.0 }
 0x4a4   :  { %16983 = vmatpush3.bf16.msra.mxu0 %v18364_v46 }
 0x4a5   :  { %17012 = vmatprep.subr.bf16.mxu0 %v18366_v45  ;;  %v8660_v29 = vmul.f32 %v22562_v19, %v22562_v19  ;;  %v8662_v32 = vmul.f32 %v22579_v51, %v22579_v51 }
 0x4a6   :  { %17005 = vmatpush3.bf16.msra.mxu1 %v18365_v15 }
 0x4a7   :  { %17034 = vmatprep.subr.bf16.mxu1 %v18367_v13 }
 0x4b4   :  { %v16828_v30 = vpop.f32.mrb[240].mxu0 }
 0x4b5   :  { %v16856_v21 = vpop.f32.mrb[176].mxu1  ;;  %v16829_v14 = vpop.f32.mrb[241].mxu0 }
 0x4b6   :  { %v16830_v8 = vadd.f32 %v16829_v14, %v16828_v30  ;;  %v16857_v52 = vpop.f32.mrb[177].mxu1  ;;  %v16831_v62 = vpop.f32.mrb[242].mxu0 }
 0x4b7   :  { %v16858_v24 = vadd.f32 %v16857_v52, %v16856_v21  ;;  %v16859_v0 = vpop.f32.mrb[178].mxu1  ;;  %v16832_v1 = vpop.f32.mrb[243].mxu0 }
 0x4b8   :  { %v9617_v43 = vadd.f32 %v16830_v8, %v22501_v38  ;;  %v16833_v60 = vadd.f32 %v16832_v1, %v16831_v62  ;;  %v16860_v28 = vpop.f32.mrb[179].mxu1 }
 0x4b9   :  { %v16861_v53 = vadd.f32 %v16860_v28, %v16859_v0 }
 0x4ba   :  { %v9807_v49 = vadd.f32 %v16858_v24, %v9617_v43  ;;  %v9618_v63 = vadd.f32 %v16833_v60, %v22510_v48  ;;  %v22565_v48 = vmax.f32 %v22335_v11, 0.0 }
 0x4bc   :  { %v9808_v16 = vadd.f32 %v16861_v53, %v9618_v63  ;;  %v16834_v40 = vpop.f32.mrb[244].mxu0  ;;  %v8659_v50 = vmul.f32 %v22565_v48, %v22565_v48 }
 0x4bd   :  { %v16862_v5 = vpop.f32.mrb[180].mxu1  ;;  %v16835_v41 = vpop.f32.mrb[245].mxu0 }
 0x4be   :  { %v16836_v36 = vadd.f32 %v16835_v41, %v16834_v40  ;;  %v16863_v55 = vpop.f32.mrb[181].mxu1  ;;  %v16837_v44 = vpop.f32.mrb[246].mxu0 }
 0x4bf   :  { %v16864_v27 = vadd.f32 %v16863_v55, %v16862_v5  ;;  %v16865_v18 = vpop.f32.mrb[182].mxu1  ;;  %v16838_v58 = vpop.f32.mrb[247].mxu0 }
 0x4c0   :  { %v9619_v37 = vadd.f32 %v16836_v36, %v9429_v26  ;;  %v16839_v34 = vadd.f32 %v16838_v58, %v16837_v44  ;;  %v16866_v6 = vpop.f32.mrb[183].mxu1  ;;  %v8649_v26 = vadd.f32 %v22562_v19, %v22565_v48 }
 0x4c1   :  { %v16867_v38 = vadd.f32 %v16866_v6, %v16865_v18 }
 0x4c2   :  { %v9809_v23 = vadd.f32 %v16864_v27, %v9619_v37  ;;  %v9620_v33 = vadd.f32 %v16839_v34, %v9430_v31  ;;  %v8650_v11 = vadd.f32 %v8649_v26, %v22568_v2  ;;  %v8663_v31 = vadd.f32 %v8660_v29, %v8659_v50 }
 0x4c4   :  { %v9810_v39 = vadd.f32 %v16867_v38, %v9620_v33  ;;  %v8664_v22 = vadd.f32 %v8663_v31, %v8661_v4  ;;  %v8651_v13 = vadd.f32 %v8650_v11, %v22579_v51 }
 0x4c6   :  { %v8665_v24 = vadd.f32 %v8664_v22, %v8662_v32  ;;  %v8652_v43 = vrot.slane %v8651_v13, 4 }
 0x4c8   :  { %v8666_v5 = vrot.slane %v8665_v24, 4 }
 0x4ca   :  { %v8667_v26 = vadd.f32 %v8666_v5, %v8665_v24 }
 0x4d5   :  { %v16884_v10 = vpop.f32.mrb[248].mxu0 }
 0x4d6   :  { %v16912_v12 = vpop.f32.mrb[184].mxu1  ;;  %v16885_v57 = vpop.f32.mrb[249].mxu0 }
 0x4d7   :  { %v16886_v46 = vadd.f32 %v16885_v57, %v16884_v10  ;;  %v16913_v15 = vpop.f32.mrb[185].mxu1  ;;  %v16887_v45 = vpop.f32.mrb[250].mxu0  ;;  %v8668_v57 = vrot.slane %v8667_v26, 2 }
 0x4d8   :  { %v16914_v30 = vadd.f32 %v16913_v15, %v16912_v12  ;;  %v16915_v21 = vpop.f32.mrb[186].mxu1  ;;  %v16888_v14 = vpop.f32.mrb[251].mxu0 }
 0x4d9   :  { %v9997_v7 = vadd.f32 %v16886_v46, %v9807_v49  ;;  %v16889_v8 = vadd.f32 %v16888_v14, %v16887_v45  ;;  %v16916_v52 = vpop.f32.mrb[187].mxu1  ;;  %v8653_v49 = vadd.f32 %v8652_v43, %v8651_v13 }
 0x4da   :  { %v16917_v62 = vadd.f32 %v16916_v52, %v16915_v21 }
 0x4db   :  { %v10187_v0 = vadd.f32 %v16914_v30, %v9997_v7  ;;  %v9998_v1 = vadd.f32 %v16889_v8, %v9808_v16  ;;  %v8654_v31 = vrot.slane %v8653_v49, 2  ;;  %v8669_v30 = vadd.f32 %v8668_v57, %v8667_v26  ;;  %v23522_v26 = vld [vmem:[#allocation46_spill] sm:$0xff] }
 0x4dd   :  { %v22585_v60 = vmax.f32 %v10187_v0, 0.0  ;;  %v10188_v28 = vadd.f32 %v16917_v62, %v9998_v1  ;;  %v16890_v53 = vpop.f32.mrb[252].mxu0  ;;  %v8655_v15 = vadd.f32 %v8654_v31, %v8653_v49  ;;  %v8670_v52 = vrot.slane %v8669_v30, 1 }
 0x4de   :  { %v16918_v63 = vpop.f32.mrb[188].mxu1  ;;  %v16891_v40 = vpop.f32.mrb[253].mxu0 }
 0x4df   :  { %v22587_v41 = vmax.f32 %v10188_v28, 0.0  ;;  %v16892_v36 = vadd.f32 %v16891_v40, %v16890_v53  ;;  %v16919_v55 = vpop.f32.mrb[189].mxu1  ;;  %v16893_v44 = vpop.f32.mrb[254].mxu0  ;;  %v10205_v27 = vmul.f32 %v22585_v60, %v22585_v60  ;;  %v8656_v7 = vrot.slane %v8655_v15, 1 }
 0x4e0   :  { %v16920_v18 = vadd.f32 %v16919_v55, %v16918_v63  ;;  %v16921_v58 = vpop.f32.mrb[190].mxu1  ;;  %v16894_v16 = vpop.f32.mrb[255].mxu0  ;;  %v8671_v28 = vadd.f32 %v8670_v52, %v8669_v30 }
 0x4e1   :  { %v10195_v37 = vadd.f32 %v22587_v41, %v22585_v60  ;;  %v10206_v34 = vmul.f32 %v22587_v41, %v22587_v41  ;;  %v9999_v6 = vadd.f32 %v16892_v36, %v9809_v23  ;;  %v16895_v38 = vadd.f32 %v16894_v16, %v16893_v44  ;;  %v16922_v33 = vpop.f32.mrb[191].mxu1 }
 0x4e2   :  { %v16923_v29 = vadd.f32 %v16922_v33, %v16921_v58  ;;  %v8657_v0 = vadd.f32 %v8656_v7, %v8655_v15  ;;  %v8672_v55 = vadd.f32 %v8671_v28, %v22292_v25  ;;  %v10234_v25 = vld [vmem:[%s23324_s6] sm:$0x1] }
 0x4e3   :  { %v10209_v50 = vadd.f32 %v10206_v34, %v10205_v27  ;;  %v10189_v4 = vadd.f32 %v16920_v18, %v9999_v6  ;;  %v10000_v11 = vadd.f32 %v16895_v38, %v9810_v39  ;;  %v10230_v38 = vld [vmem:[%s23323_s5] sm:$0x1] }
 0x4e4   :  { %v8658_v40 = vadd.f32 %v8657_v0, %v22281_v3 }
 0x4e5   :  { %v22595_v10 = vmax.f32 %v10189_v4, 0.0  ;;  %v10190_v12 = vadd.f32 %v16923_v29, %v10000_v11 }
 0x4e7   :  { %v10196_v22 = vadd.f32 %v10195_v37, %v22595_v10  ;;  %v10207_v32 = vmul.f32 %v22595_v10, %v22595_v10  ;;  %v10194_v46 = vmax.f32 %v10190_v12, 0.0 }
 0x4e9   :  { %v10210_v23 = vadd.f32 %v10209_v50, %v10207_v32  ;;  %v10197_v45 = vadd.f32 %v10196_v22, %v10194_v46  ;;  %v10208_v13 = vmul.f32 %v10194_v46, %v10194_v46 }
 0x4eb   :  { %v10198_v21 = vrot.slane %v10197_v45, 4  ;;  %v10211_v14 = vadd.f32 %v10210_v23, %v10208_v13 }
 0x4ed   :  { %v10199_v39 = vadd.f32 %v10198_v21, %v10197_v45  ;;  %v10212_v8 = vrot.slane %v10211_v14, 4 }
 0x4ef   :  { %v10200_v62 = vrot.slane %v10199_v39, 2  ;;  %v10213_v24 = vadd.f32 %v10212_v8, %v10211_v14  ;;  %v18370_v8 = vld [vmem:[%s23322_s7 + $0x248] sm:$0xff]  }
 0x4f1   :  { %v10201_v1 = vadd.f32 %v10200_v62, %v10199_v39  ;;  %v10214_v43 = vrot.slane %v10213_v24, 2 }
 0x4f3   :  { %v10202_v53 = vrot.slane %v10201_v1, 1  ;;  %v10215_v63 = vadd.f32 %v10214_v43, %v10213_v24  ;;  %v18371_v24 = vld [vmem:[%s23322_s7 + $0x2c8] sm:$0xff]  }
 0x4f4   :  { %v18372_v43 = vld [vmem:[%s23322_s7 + $0x208] sm:$0xff]  }
 0x4f5   :  { %v10203_v5 = vadd.f32 %v10202_v53, %v10201_v1  ;;  %v10216_v36 = vrot.slane %v10215_v63, 1 }
 0x4f7   :  { %v10204_v44 = vadd.f32 %v10203_v5, %v8658_v40  ;;  %v10217_v49 = vadd.f32 %v10216_v36, %v10215_v63  ;;  %v18373_v40 = vld [vmem:[%s23322_s7 + $0x288] sm:$0xff]  }
 0x4f9   :  { %v10218_v27 = vadd.f32 %v10217_v49, %v8672_v55  ;;  %v10225_v18 = vmul.f32 0.0078125, %v10204_v44  ;;  %v18374_v55 = vld [vmem:[%s23322_s7 + $0x250] sm:$0xff]  }
 0x4fa   :  { %v18375_v49 = vld [vmem:[%s23322_s7 + $0x2d0] sm:$0xff]  }
 0x4fb   :  { %v10226_v58 = vmul.f32 0.0078125, %v10218_v27  ;;  %v10227_v16 = vmul.f32 %v10225_v18, %v10225_v18 }
 0x4fd   :  { %v10228_v37 = vsub.f32 %v10226_v58, %v10227_v16  ;;  %v18376_v58 = vld [vmem:[%s23322_s7 + $0x210] sm:$0xff]  }
 0x4ff   :  { %v10229_v34 = vmax.f32 %v10228_v37, 0.0 }
 0x501   :  { %v10231_v6 = vadd.f32 1e-05, %v10229_v34  ;;  %v18377_v34 = vld [vmem:[%s23322_s7 + $0x290] sm:$0xff]  }
 0x503   :  { %18560 = vrsqrt.f32 %v10231_v6  ;;  %v18378_v6 = vld [vmem:[%s23322_s7 + $0x258] sm:$0xff]  }
 0x50d   :  { %v18561_v33 = vpop.eup %18560 }
 0x50e   :  { %v10233_v3 = vmul.f32 %v18561_v33, %v10230_v38 }
 0x510   :  { %v10235_v29 = vmul.f32 %v10233_v3, %v10225_v18  ;;  %v10245_v50 = vrot.slane %v10233_v3, %v23522_v26 }
 0x512   :  { %v10236_v4 = vsub.f32 %v10234_v25, %v10235_v29  ;;  %v10250_v11 = vmul.f32 %v10245_v50, %v10194_v46  ;;  %v10285_v31 = vmul.f32 %v10245_v50, %v21680_v54  ;;  %v10286_v12 = vmul.f32 %v10245_v50, %v21714_v17  ;;  %v18381_v25 = vld [vmem:[%s23322_s7 + $0x298] sm:$0xff]   ;;  %v18382_v29 = vld [vmem:[%s23322_s7 + $0x260] sm:$0xff]  }
 0x513   :  { %v10302_v57 = vmul.f32 %v10245_v50, %v21705_v61  ;;  %v10301_v22 = vmul.f32 %v10245_v50, %v21672_v47  ;;  %v10247_v32 = vmul.f32 %v10245_v50, %v22168_v20  ;;  %v10248_v15 = vmul.f32 %v10245_v50, %v22212_v42  ;;  %v18368_v42 = vld [vmem:[%s23322_s7 + $0x200] sm:$0xff]  }
 0x514   :  { %v10255_v23 = vrot.slane %v10236_v4, %v23522_v26  ;;  %v10270_v45 = vmul.f32 %v10245_v50, %v22204_v35  ;;  %v10269_v13 = vmul.f32 %v10245_v50, %v22180_v56  ;;  %v10287_v46 = vmul.f32 %v10245_v50, %v22562_v19  ;;  %v18369_v56 = vld [vmem:[%s23322_s7 + $0x280] sm:$0xff]  }
 0x515   :  { %v10288_v54 = vmul.f32 %v10245_v50, %v22579_v51  ;;  %v10304_v17 = vmul.f32 %v10245_v50, %v22568_v2  ;;  %v10249_v61 = vmul.f32 %v10245_v50, %v22587_v41  ;;  %v10303_v1 = vmul.f32 %v10245_v50, %v22565_v48  ;;  %v18384_v4 = vld [vmem:[%s23322_s7 + $0x220] sm:$0xff]  }
 0x516   :  { %v10289_v30 = vadd.f32 %v10285_v31, %v10255_v23  ;;  %v10290_v47 = vadd.f32 %v10286_v12, %v10255_v23  ;;  %v10306_v21 = vadd.f32 %v10302_v57, %v10255_v23  ;;  %v10305_v20 = vadd.f32 %v10301_v22, %v10255_v23  ;;  %v18386_v31 = vld [vmem:[%s23322_s7 + $0x268] sm:$0xff]  }
 0x517   :  { %v22628_v35 = vadd.f32 %v10255_v23, %v10247_v32  ;;  %v10258_v19 = vadd.f32 %v10255_v23, %v10248_v15  ;;  %v10274_v51 = vadd.f32 %v10270_v45, %v10255_v23  ;;  %v10273_v14 = vadd.f32 %v10269_v13, %v10255_v23  ;;  %v18387_v12 = vld [vmem:[%s23322_s7 + $0x2e8] sm:$0xff]   ;;  %v18390_v32 = vld [vmem:[%s23322_s7 + $0x270] sm:$0xff]   ;;  %v18394_v13 = vld [vmem:[%s23322_s7 + $0x278] sm:$0xff]  }
 0x518   :  { %v10664_v2 = vpack.c.bf16 %v10289_v30, %v23502_v59  ;;  %v10666_v41 = vpack.c.bf16 %v10290_v47, %v10289_v30  ;;  %v10843_v7 = vpack.c.bf16 %v23502_v59, %v10306_v21  ;;  %v10841_v39 = vpack.c.bf16 %v10306_v21, %v10305_v20  ;;  %v18388_v57 = vld [vmem:[%s23322_s7 + $0x228] sm:$0xff]   ;;  %v18391_v15 = vld [vmem:[%s23322_s7 + $0x2f0] sm:$0xff]   ;;  %v18399_v30 = vld [vmem:[%s23322_s7 + $0x3c0] sm:$0xff]  }
 0x519   :  { %v22636_v52 = vpack.c.bf16 %v10258_v19, %v22628_v35  ;;  %v22639_v62 = vpack.c.bf16 %v23502_v59, %v10274_v51  ;;  %v22644_v0 = vpack.c.bf16 %v10274_v51, %v10273_v14  ;;  %v22650_v28 = vadd.f32 %v10287_v46, %v10255_v23  ;;  %v18389_v22 = vld [vmem:[%s23322_s7 + $0x2a8] sm:$0xff]   ;;  %v18393_v45 = vld [vmem:[%s23322_s7 + $0x2b0] sm:$0xff]   ;;  %v18395_v46 = vld [vmem:[%s23322_s7 + $0x2f8] sm:$0xff]  }
 0x51a   :  { %10828 = vmatprep.mubr.bf16.mxu0 %v10666_v41  ;;  %11005 = vmatprep.mubr.bf16.mxu1 %v10843_v7  ;;  %v10292_v53 = vadd.f32 %v10288_v54, %v10255_v23  ;;  %v22652_v63 = vadd.f32 %v10304_v17, %v10255_v23  ;;  %v10307_v5 = vadd.f32 %v10303_v1, %v10255_v23  ;;  %v18396_v54 = vld [vmem:[%s23322_s7 + $0x238] sm:$0xff]   ;;  %v18400_v47 = vld [vmem:[%s23322_s7 + $0x300] sm:$0xff]   ;;  %v18405_v51 = vld [vmem:[%s23322_s7 + $0x388] sm:$0xff]  }
 0x51b   :  { %10829 = vmatmul.mubr.bf16.vlgmr.msra.gmra.mrb[4].mxu0 %v10664_v2  ;;  %11006 = vmatmul.mubr.bf16.vlgmr.msra.gmra.mrb[196].mxu1 %v10841_v39  ;;  %v22657_v36 = vadd.f32 %v10255_v23, %v10249_v61  ;;  %v22659_v48 = vadd.f32 %v10255_v23, %v10250_v11  ;;  %v10272_v16 = vmul.f32 %v10245_v50, %v22595_v10  ;;  %v18380_v10 = vld [vmem:[%s23322_s7 + $0x218] sm:$0xff]   ;;  %v18385_v11 = vld [vmem:[%s23322_s7 + $0x2a0] sm:$0xff]   ;;  %v18406_v14 = vld [vmem:[%s23322_s7 + $0x350] sm:$0xff]  }
 0x51c   :  { %17013 = vmatpush3.bf16.msra.mxu0 %v18368_v42  ;;  %17035 = vmatpush3.bf16.msra.mxu1 %v18369_v56  ;;  %v22665_v44 = vpack.c.bf16 %v10292_v53, %v22650_v28  ;;  %v22673_v27 = vpack.c.bf16 %v22652_v63, %v10307_v5  ;;  %v10271_v37 = vmul.f32 %v10245_v50, %v22585_v60  ;;  %v18379_v60 = vld [vmem:[%s23322_s7 + $0x2d8] sm:$0xff]   ;;  %v18383_v50 = vld [vmem:[%s23322_s7 + $0x2e0] sm:$0xff]   ;;  %v18402_v42 = vld [vmem:[%s23322_s7 + $0x348] sm:$0xff]  }
 0x51d   :  { %11182 = vmatprep.mubr.bf16.mxu0 %v22636_v52  ;;  %11359 = vmatprep.mubr.bf16.mxu1 %v22639_v62  ;;  %v12448_v18 = vpack.c.bf16 %v22659_v48, %v22657_v36  ;;  %v22688_v38 = vadd.f32 %v10272_v16, %v10255_v23  ;;  %v18397_v17 = vld [vmem:[%s23322_s7 + $0x2b8] sm:$0xff]   ;;  %v18398_v61 = vld [vmem:[%s23322_s7 + $0x340] sm:$0xff]   ;;  %v22765_v20 = vpack.c.bf16 %v22628_v35, %v23502_v59  ;;  %v18403_v56 = vld [vmem:[%s23322_s7 + $0x3c8] sm:$0xff]  }
 0x51e   :  { %17014 = vmatprep.subr.bf16.mxu0 %v18370_v8  ;;  %17036 = vmatprep.subr.bf16.mxu1 %v18371_v24  ;;  %v22690_v33 = vadd.f32 %v10271_v37, %v10255_v23  ;;  %v18392_v23 = vld [vmem:[%s23322_s7 + $0x230] sm:$0xff]   ;;  %v18401_v21 = vld [vmem:[%s23322_s7 + $0x380] sm:$0xff]   ;;  %v22777_v19 = vpack.c.bf16 %v23502_v59, %v22652_v63  ;;  %v18404_v35 = vld [vmem:[%s23322_s7 + $0x308] sm:$0xff]  }
 0x51f   :  { %v18407_v2 = vld [vmem:[%s23322_s7 + $0x3d0] sm:$0xff]   ;;  %v18410_v39 = vld [vmem:[%s23322_s7 + $0x358] sm:$0xff]   ;;  %v18415_v53 = vld [vmem:[%s23322_s7 + $0x3e0] sm:$0xff]  }
 0x520   :  { %17015 = vmatpush3.bf16.msra.mxu0 %v18372_v43  ;;  %17037 = vmatpush3.bf16.msra.mxu1 %v18373_v40  ;;  %v12622_v3 = vpack.c.bf16 %v22688_v38, %v22690_v33  ;;  %v18408_v41 = vld [vmem:[%s23322_s7 + $0x310] sm:$0xff]   ;;  %v18411_v8 = vld [vmem:[%s23322_s7 + $0x3d8] sm:$0xff]   ;;  %v18414_v43 = vld [vmem:[%s23322_s7 + $0x360] sm:$0xff]  }
 0x521   :  { %17016 = vmatprep.subr.bf16.mxu0 %v18374_v55  ;;  %17038 = vmatprep.subr.bf16.mxu1 %v18375_v49  ;;  %v18409_v7 = vld [vmem:[%s23322_s7 + $0x390] sm:$0xff]   ;;  %v18412_v24 = vld [vmem:[%s23322_s7 + $0x318] sm:$0xff]   ;;  %v18416_v63 = vld [vmem:[%s23322_s7 + $0x320] sm:$0xff]  }
 0x522   :  { %v18413_v1 = vld [vmem:[%s23322_s7 + $0x398] sm:$0xff]   ;;  %v18417_v40 = vld [vmem:[%s23322_s7 + $0x3a0] sm:$0xff]   ;;  %v18418_v5 = vld [vmem:[%s23322_s7 + $0x368] sm:$0xff]  }
 0x523   :  { %v18419_v55 = vld [vmem:[%s23322_s7 + $0x3e8] sm:$0xff]   ;;  %v18422_v16 = vld [vmem:[%s23322_s7 + $0x370] sm:$0xff]  }
 0x524   :  { %17017 = vmatpush3.bf16.msra.mxu0 %v18376_v58  ;;  %17039 = vmatpush3.bf16.msra.mxu1 %v18377_v34  ;;  %v18420_v49 = vld [vmem:[%s23322_s7 + $0x328] sm:$0xff]   ;;  %v18423_v37 = vld [vmem:[%s23322_s7 + $0x3f0] sm:$0xff]  }
 0x525   :  { %17018 = vmatprep.subr.bf16.mxu0 %v18378_v6  ;;  %17040 = vmatprep.subr.bf16.mxu1 %v18379_v60  ;;  %v18421_v58 = vld [vmem:[%s23322_s7 + $0x3a8] sm:$0xff]   ;;  %v18424_v34 = vld [vmem:[%s23322_s7 + $0x330] sm:$0xff]   ;;  %v18426_v60 = vld [vmem:[%s23322_s7 + $0x378] sm:$0xff]  }
 0x526   :  { %v18425_v6 = vld [vmem:[%s23322_s7 + $0x3b0] sm:$0xff]  }
 0x527   :  { %v18504_v48 = vld [vmem:[%s23322_s7 + $0x210] sm:$0xff]  }
 0x528   :  { %17019 = vmatpush3.bf16.msra.mxu0 %v18380_v10  ;;  %17041 = vmatpush3.bf16.msra.mxu1 %v18381_v25  ;;  %v18427_v10 = vld [vmem:[%s23322_s7 + $0x3f8] sm:$0xff]   ;;  %v18536_v33 = vld [vmem:[%s23322_s7 + $0x310] sm:$0xff]  }
 0x529   :  { %17020 = vmatprep.subr.bf16.mxu0 %v18382_v29  ;;  %17042 = vmatprep.subr.bf16.mxu1 %v18383_v50  ;;  %v18428_v25 = vld [vmem:[%s23322_s7 + $0x338] sm:$0xff]   ;;  %v18430_v50 = vld [vmem:[%s23322_s7 + $0xc0] sm:$0xff]  }
 0x52a   :  { %v18429_v29 = vld [vmem:[%s23322_s7 + $0x3b8] sm:$0xff]  }
 0x52c   :  { %17021 = vmatpush3.bf16.msra.mxu0 %v18384_v4  ;;  %17043 = vmatpush3.bf16.msra.mxu1 %v18385_v11  ;;  %v18431_v4 = vld [vmem:[%s23322_s7 + $0x40] sm:$0xff]  }
 0x52d   :  { %17022 = vmatprep.subr.bf16.mxu0 %v18386_v31  ;;  %17044 = vmatprep.subr.bf16.mxu1 %v18387_v12  ;;  %v18432_v11 = vld [vmem:[%s23322_s7 + $0x80] sm:$0xff]   ;;  %v22873_v12 = vpack.c.bf16 %v22650_v28, %v23502_v59  ;;  %v18437_v28 = vld [vmem:[%s23322_s7 + $0x8] sm:$0xff]  }
 0x52e   :  { %v18433_v31 = vld [vmem:[%s23322_s7] sm:$0xff]  }
 0x530   :  { %17023 = vmatpush3.bf16.msra.mxu0 %v18388_v57  ;;  %17045 = vmatpush3.bf16.msra.mxu1 %v18389_v22  ;;  %v18434_v57 = vld [vmem:[%s23322_s7 + $0xc8] sm:$0xff]  }
 0x531   :  { %17024 = vmatprep.subr.bf16.mxu0 %v18390_v32  ;;  %17046 = vmatprep.subr.bf16.mxu1 %v18391_v15  ;;  %v18435_v22 = vld [vmem:[%s23322_s7 + $0x48] sm:$0xff]   ;;  %v18438_v15 = vld [vmem:[%s23322_s7 + $0xd0] sm:$0xff]  }
 0x532   :  { %v18436_v32 = vld [vmem:[%s23322_s7 + $0x88] sm:$0xff]  }
 0x534   :  { %17025 = vmatpush3.bf16.msra.mxu0 %v18392_v23  ;;  %17047 = vmatpush3.bf16.msra.mxu1 %v18393_v45  ;;  %v18439_v45 = vld [vmem:[%s23322_s7 + $0x50] sm:$0xff]  }
 0x535   :  { %17026 = vmatprep.subr.bf16.mxu0 %v18394_v13  ;;  %17048 = vmatprep.subr.bf16.mxu1 %v18395_v46  ;;  %v18440_v13 = vld [vmem:[%s23322_s7 + $0x90] sm:$0xff]  }
 0x538   :  { %17027 = vmatpush3.bf16.msra.mxu0 %v18396_v54  ;;  %17049 = vmatpush3.bf16.msra.mxu1 %v18397_v17 }
 0x539   :  { %17056 = vmatprep.subr.bf16.mxu0 %v18398_v61  ;;  %17078 = vmatprep.subr.bf16.mxu1 %v18399_v30 }
 0x53b   :  { %11183 = vmatmul.mubr.bf16.vlgmr.msra.gmra.mrb[8].mxu0 %v22765_v20  ;;  %11360 = vmatmul.mubr.bf16.vlgmr.msra.gmra.mrb[200].mxu1 %v22644_v0 }
 0x53c   :  { %17057 = vmatpush3.bf16.msra.mxu0 %v18400_v47  ;;  %11536 = vmatprep.mubr.bf16.mxu0 %v22665_v44 }
 0x53d   :  { %17079 = vmatpush3.bf16.msra.mxu1 %v18401_v21  ;;  %11713 = vmatprep.mubr.bf16.mxu1 %v22777_v19 }
 0x53e   :  { %17058 = vmatprep.subr.bf16.mxu0 %v18402_v42  ;;  %17080 = vmatprep.subr.bf16.mxu1 %v18403_v56 }
 0x53f   :  { %v16940_v23 = vpop.f32.mrb[0].mxu0 }
 0x540   :  { %17059 = vmatpush3.bf16.msra.mxu0 %v18404_v35  ;;  %v16941_v54 = vpop.f32.mrb[1].mxu0  ;;  %v18443_v35 = vld [vmem:[%s23322_s7 + $0x58] sm:$0xff]  }
 0x541   :  { %17081 = vmatpush3.bf16.msra.mxu1 %v18405_v51  ;;  %17060 = vmatprep.subr.bf16.mxu0 %v18406_v14  ;;  %v16942_v17 = vadd.f32 %v16941_v54, %v16940_v23  ;;  %v16943_v30 = vpop.f32.mrb[2].mxu0  ;;  %v18478_v23 = vld [vmem:[%s23322_s7 + $0x160] sm:$0xff]   ;;  %v18482_v54 = vld [vmem:[%s23322_s7 + $0x168] sm:$0xff]  }
 0x542   :  { %17082 = vmatprep.subr.bf16.mxu1 %v18407_v2  ;;  %v16944_v42 = vpop.f32.mrb[3].mxu0 }
 0x543   :  { %v16945_v14 = vadd.f32 %v16944_v42, %v16943_v30  ;;  %v18486_v30 = vld [vmem:[%s23322_s7 + $0x170] sm:$0xff]   ;;  %v18490_v42 = vld [vmem:[%s23322_s7 + $0x178] sm:$0xff]  }
 0x544   :  { %17061 = vmatpush3.bf16.msra.mxu0 %v18408_v41  ;;  %v18444_v41 = vld [vmem:[%s23322_s7 + $0x98] sm:$0xff]  }
 0x545   :  { %17083 = vmatpush3.bf16.msra.mxu1 %v18409_v7  ;;  %17062 = vmatprep.subr.bf16.mxu0 %v18410_v39  ;;  %v18445_v7 = vld [vmem:[%s23322_s7 + $0x18] sm:$0xff]  }
 0x546   :  { %17084 = vmatprep.subr.bf16.mxu1 %v18411_v8  ;;  %v18446_v8 = vld [vmem:[%s23322_s7 + $0xe0] sm:$0xff]  }
 0x548   :  { %17063 = vmatpush3.bf16.msra.mxu0 %v18412_v24  ;;  %v18447_v24 = vld [vmem:[%s23322_s7 + $0x60] sm:$0xff]  }
 0x549   :  { %17085 = vmatpush3.bf16.msra.mxu1 %v18413_v1  ;;  %17064 = vmatprep.subr.bf16.mxu0 %v18414_v43  ;;  %v18448_v1 = vld [vmem:[%s23322_s7 + $0xa0] sm:$0xff]  }
 0x54a   :  { %17086 = vmatprep.subr.bf16.mxu1 %v18415_v53  ;;  %v16962_v46 = vpop.f32.mrb[192].mxu1  ;;  %v18449_v43 = vld [vmem:[%s23322_s7 + $0x20] sm:$0xff]   ;;  %v18450_v53 = vld [vmem:[%s23322_s7 + $0xe8] sm:$0xff]  }
 0x54b   :  { %v16963_v61 = vpop.f32.mrb[193].mxu1 }
 0x54c   :  { %17065 = vmatpush3.bf16.msra.mxu0 %v18416_v63  ;;  %v16964_v47 = vadd.f32 %v16963_v61, %v16962_v46  ;;  %v16965_v21 = vpop.f32.mrb[194].mxu1  ;;  %v18451_v63 = vld [vmem:[%s23322_s7 + $0x68] sm:$0xff]   ;;  %v18481_v46 = vld [vmem:[%s23322_s7 + $0x1a0] sm:$0xff]  }
 0x54d   :  { %17087 = vmatpush3.bf16.msra.mxu1 %v18417_v40  ;;  %17066 = vmatprep.subr.bf16.mxu0 %v18418_v5  ;;  %v16966_v56 = vpop.f32.mrb[195].mxu1  ;;  %v18452_v40 = vld [vmem:[%s23322_s7 + $0xa8] sm:$0xff]  }
 0x54e   :  { %17088 = vmatprep.subr.bf16.mxu1 %v18419_v55  ;;  %v22909_v51 = vadd.f32 %v16964_v47, %v16942_v17  ;;  %v16967_v2 = vadd.f32 %v16966_v56, %v16965_v21  ;;  %v18453_v5 = vld [vmem:[%s23322_s7 + $0x28] sm:$0xff]   ;;  %v18454_v55 = vld [vmem:[%s23322_s7 + $0xf0] sm:$0xff]   ;;  %v18491_v56 = vld [vmem:[%s23322_s7 + $0x1f8] sm:$0xff]  }
 0x54f   :  { %v18484_v17 = vld [vmem:[%s23322_s7 + $0x128] sm:$0xff]   ;;  %v18488_v47 = vld [vmem:[%s23322_s7 + $0x130] sm:$0xff]  }
 0x550   :  { %17067 = vmatpush3.bf16.msra.mxu0 %v18420_v49  ;;  %v22917_v39 = vadd.f32 %v16967_v2, %v16945_v14  ;;  %v18455_v49 = vld [vmem:[%s23322_s7 + $0x70] sm:$0xff]   ;;  %v18485_v61 = vld [vmem:[%s23322_s7 + $0x1a8] sm:$0xff]   ;;  %v18493_v14 = vld [vmem:[%s23322_s7 + $0x1b8] sm:$0xff]  }
 0x551   :  { %17089 = vmatpush3.bf16.msra.mxu1 %v18421_v58  ;;  %17068 = vmatprep.subr.bf16.mxu0 %v18422_v16  ;;  %v18456_v58 = vld [vmem:[%s23322_s7 + $0xb0] sm:$0xff]   ;;  %v18494_v2 = vld [vmem:[%s23322_s7 + $0x240] sm:$0xff]  }
 0x552   :  { %17090 = vmatprep.subr.bf16.mxu1 %v18423_v37  ;;  %v18457_v16 = vld [vmem:[%s23322_s7 + $0x30] sm:$0xff]   ;;  %v18458_v37 = vld [vmem:[%s23322_s7 + $0xf8] sm:$0xff]  }
 0x553   :  { %v18489_v21 = vld [vmem:[%s23322_s7 + $0x1b0] sm:$0xff]  }
 0x554   :  { %17069 = vmatpush3.bf16.msra.mxu0 %v18424_v34  ;;  %v18459_v34 = vld [vmem:[%s23322_s7 + $0x78] sm:$0xff]  }
 0x555   :  { %17091 = vmatpush3.bf16.msra.mxu1 %v18425_v6  ;;  %17070 = vmatprep.subr.bf16.mxu0 %v18426_v60  ;;  %v18460_v6 = vld [vmem:[%s23322_s7 + $0xb8] sm:$0xff]  }
 0x556   :  { %17092 = vmatprep.subr.bf16.mxu1 %v18427_v10  ;;  %v18461_v60 = vld [vmem:[%s23322_s7 + $0x38] sm:$0xff]   ;;  %v18462_v10 = vld [vmem:[%s23322_s7 + $0x140] sm:$0xff]  }
 0x558   :  { %17071 = vmatpush3.bf16.msra.mxu0 %v18428_v25  ;;  %v18463_v25 = vld [vmem:[%s23322_s7 + $0x1c0] sm:$0xff]  }
 0x559   :  { %17093 = vmatpush3.bf16.msra.mxu1 %v18429_v29  ;;  %17100 = vmatprep.subr.bf16.mxu0 %v18430_v50  ;;  %v18464_v29 = vld [vmem:[%s23322_s7 + $0x100] sm:$0xff]  }
 0x55a   :  { %17122 = vmatprep.subr.bf16.mxu1 %v18431_v4  ;;  %v18465_v50 = vld [vmem:[%s23322_s7 + $0x180] sm:$0xff]   ;;  %v18466_v4 = vld [vmem:[%s23322_s7 + $0x148] sm:$0xff]  }
 0x55b   :  { %11537 = vmatmul.mubr.bf16.vlgmr.msra.gmra.mrb[12].mxu0 %v22873_v12 }
 0x55c   :  { %11714 = vmatmul.mubr.bf16.vlgmr.msra.gmra.mrb[204].mxu1 %v22673_v27  ;;  %17101 = vmatpush3.bf16.msra.mxu0 %v18432_v11  ;;  %v18467_v11 = vld [vmem:[%s23322_s7 + $0x1c8] sm:$0xff]  }
 0x55d   :  { %11946 = vmatprep.mubr.bf16.mxu0 %v22639_v62  ;;  %17123 = vmatpush3.bf16.msra.mxu1 %v18433_v31  ;;  %v18441_v62 = vld [vmem:[%s23322_s7 + $0x10] sm:$0xff]   ;;  %v18468_v31 = vld [vmem:[%s23322_s7 + $0x108] sm:$0xff]  }
 0x55e   :  { %12083 = vmatprep.mubr.bf16.mxu1 %v22636_v52  ;;  %17102 = vmatprep.subr.bf16.mxu0 %v18434_v57  ;;  %v18442_v52 = vld [vmem:[%s23322_s7 + $0xd8] sm:$0xff]   ;;  %v18469_v57 = vld [vmem:[%s23322_s7 + $0x188] sm:$0xff]  }
 0x55f   :  { %17124 = vmatprep.subr.bf16.mxu1 %v18435_v22  ;;  %v18473_v22 = vld [vmem:[%s23322_s7 + $0x190] sm:$0xff]  }
 0x560   :  { %17103 = vmatpush3.bf16.msra.mxu0 %v18436_v32  ;;  %v18475_v32 = vld [vmem:[%s23322_s7 + $0x1d8] sm:$0xff]  }
 0x561   :  { %17125 = vmatpush3.bf16.msra.mxu1 %v18437_v28  ;;  %17104 = vmatprep.subr.bf16.mxu0 %v18438_v15  ;;  %v18476_v28 = vld [vmem:[%s23322_s7 + $0x118] sm:$0xff]  }
 0x562   :  { %17126 = vmatprep.subr.bf16.mxu1 %v18439_v45  ;;  %v18477_v15 = vld [vmem:[%s23322_s7 + $0x198] sm:$0xff]   ;;  %v18479_v45 = vld [vmem:[%s23322_s7 + $0x1e0] sm:$0xff]  }
 0x564   :  { %17105 = vmatpush3.bf16.msra.mxu0 %v18440_v13  ;;  %v18480_v13 = vld [vmem:[%s23322_s7 + $0x120] sm:$0xff]  }
 0x565   :  { %17127 = vmatpush3.bf16.msra.mxu1 %v18441_v62  ;;  %17106 = vmatprep.subr.bf16.mxu0 %v18442_v52  ;;  %v18483_v62 = vld [vmem:[%s23322_s7 + $0x1e8] sm:$0xff]   ;;  %v18487_v52 = vld [vmem:[%s23322_s7 + $0x1f0] sm:$0xff]  }
 0x566   :  { %17128 = vmatprep.subr.bf16.mxu1 %v18443_v35  ;;  %v18492_v35 = vld [vmem:[%s23322_s7 + $0x138] sm:$0xff]  }
 0x568   :  { %17107 = vmatpush3.bf16.msra.mxu0 %v18444_v41  ;;  %v18495_v41 = vld [vmem:[%s23322_s7 + $0x2c0] sm:$0xff]  }
 0x569   :  { %17129 = vmatpush3.bf16.msra.mxu1 %v18445_v7  ;;  %17108 = vmatprep.subr.bf16.mxu0 %v18446_v8  ;;  %v18496_v7 = vld [vmem:[%s23322_s7 + $0x200] sm:$0xff]  }
 0x56a   :  { %17130 = vmatprep.subr.bf16.mxu1 %v18447_v24  ;;  %v18497_v8 = vld [vmem:[%s23322_s7 + $0x280] sm:$0xff]   ;;  %v18498_v24 = vld [vmem:[%s23322_s7 + $0x248] sm:$0xff]  }
 0x56c   :  { %17109 = vmatpush3.bf16.msra.mxu0 %v18448_v1  ;;  %v18499_v1 = vld [vmem:[%s23322_s7 + $0x2c8] sm:$0xff]  }
 0x56d   :  { %17131 = vmatpush3.bf16.msra.mxu1 %v18449_v43  ;;  %17110 = vmatprep.subr.bf16.mxu0 %v18450_v53  ;;  %v12624_v43 = vpack.c.bf16 %v23502_v59, %v22688_v38  ;;  %v18500_v53 = vld [vmem:[%s23322_s7 + $0x208] sm:$0xff]   ;;  %v18535_v38 = vld [vmem:[%s23322_s7 + $0x3d0] sm:$0xff]  }
 0x56e   :  { %17132 = vmatprep.subr.bf16.mxu1 %v18451_v63  ;;  %v18503_v63 = vld [vmem:[%s23322_s7 + $0x2d0] sm:$0xff]  }
 0x570   :  { %17111 = vmatpush3.bf16.msra.mxu0 %v18452_v40  ;;  %v18506_v40 = vld [vmem:[%s23322_s7 + $0x258] sm:$0xff]  }
 0x571   :  { %17133 = vmatpush3.bf16.msra.mxu1 %v18453_v5  ;;  %17112 = vmatprep.subr.bf16.mxu0 %v18454_v55  ;;  %v18507_v5 = vld [vmem:[%s23322_s7 + $0x2d8] sm:$0xff]  }
 0x572   :  { %17134 = vmatprep.subr.bf16.mxu1 %v18455_v49  ;;  %v18508_v55 = vld [vmem:[%s23322_s7 + $0x218] sm:$0xff]  }
 0x573   :  { %v18509_v49 = vld [vmem:[%s23322_s7 + $0x298] sm:$0xff]  }
 0x574   :  { %17113 = vmatpush3.bf16.msra.mxu0 %v18456_v58  ;;  %v18510_v58 = vld [vmem:[%s23322_s7 + $0x260] sm:$0xff]  }
 0x575   :  { %17135 = vmatpush3.bf16.msra.mxu1 %v18457_v16  ;;  %17114 = vmatprep.subr.bf16.mxu0 %v18458_v37  ;;  %v18511_v16 = vld [vmem:[%s23322_s7 + $0x2e0] sm:$0xff]  }
 0x576   :  { %17136 = vmatprep.subr.bf16.mxu1 %v18459_v34  ;;  %v18512_v37 = vld [vmem:[%s23322_s7 + $0x220] sm:$0xff]  }
 0x577   :  { %v18513_v34 = vld [vmem:[%s23322_s7 + $0x2a0] sm:$0xff]  }
 0x578   :  { %17115 = vmatpush3.bf16.msra.mxu0 %v18460_v6  ;;  %v18514_v6 = vld [vmem:[%s23322_s7 + $0x268] sm:$0xff]  }
 0x579   :  { %17137 = vmatpush3.bf16.msra.mxu1 %v18461_v60  ;;  %17144 = vmatprep.subr.bf16.mxu0 %v18462_v10  ;;  %v18515_v60 = vld [vmem:[%s23322_s7 + $0x2e8] sm:$0xff]  }
 0x57a   :  { %17166 = vmatprep.subr.bf16.mxu1 %v18463_v25  ;;  %v18516_v10 = vld [vmem:[%s23322_s7 + $0x228] sm:$0xff]  }
 0x57b   :  { %11947 = vmatmul.mubr.bf16.vlgmr.msra.gmra.mrb[16].mxu0 %v22644_v0  ;;  %v18470_v0 = vld [vmem:[%s23322_s7 + $0x150] sm:$0xff]   ;;  %v18517_v25 = vld [vmem:[%s23322_s7 + $0x2a8] sm:$0xff]  }
 0x57c   :  { %12084 = vmatmul.mubr.bf16.vlgmr.msra.gmra.mrb[208].mxu1 %v22765_v20  ;;  %17145 = vmatpush3.bf16.msra.mxu0 %v18464_v29  ;;  %v18471_v20 = vld [vmem:[%s23322_s7 + $0x1d0] sm:$0xff]  }
 0x57d   :  { %12257 = vmatprep.mubr.bf16.mxu0 %v22665_v44  ;;  %17167 = vmatpush3.bf16.msra.mxu1 %v18465_v50  ;;  %v18472_v44 = vld [vmem:[%s23322_s7 + $0x110] sm:$0xff]  }
 0x57e   :  { %12433 = vmatprep.mubr.bf16.mxu1 %v22777_v19  ;;  %17146 = vmatprep.subr.bf16.mxu0 %v18466_v4  ;;  %v18474_v19 = vld [vmem:[%s23322_s7 + $0x158] sm:$0xff]   ;;  %v18518_v29 = vld [vmem:[%s23322_s7 + $0x270] sm:$0xff]  }
 0x57f   :  { %17168 = vmatprep.subr.bf16.mxu1 %v18467_v11  ;;  %v18519_v50 = vld [vmem:[%s23322_s7 + $0x2f0] sm:$0xff]  }
 0x580   :  { %17147 = vmatpush3.bf16.msra.mxu0 %v18468_v31  ;;  %v18520_v4 = vld [vmem:[%s23322_s7 + $0x230] sm:$0xff]   ;;  %v18522_v31 = vld [vmem:[%s23322_s7 + $0x278] sm:$0xff]  }
 0x581   :  { %17169 = vmatpush3.bf16.msra.mxu1 %v18469_v57  ;;  %17148 = vmatprep.subr.bf16.mxu0 %v18470_v0  ;;  %v18521_v11 = vld [vmem:[%s23322_s7 + $0x2b0] sm:$0xff]   ;;  %v18523_v57 = vld [vmem:[%s23322_s7 + $0x2f8] sm:$0xff]  }
 0x582   :  { %17170 = vmatprep.subr.bf16.mxu1 %v18471_v20  ;;  %v18524_v0 = vld [vmem:[%s23322_s7 + $0x238] sm:$0xff]  }
 0x583   :  { %v18525_v20 = vld [vmem:[%s23322_s7 + $0x2b8] sm:$0xff]  }
 0x584   :  { %17149 = vmatpush3.bf16.msra.mxu0 %v18472_v44  ;;  %v18526_v44 = vld [vmem:[%s23322_s7 + $0x340] sm:$0xff]  }
 0x585   :  { %17171 = vmatpush3.bf16.msra.mxu1 %v18473_v22  ;;  %17150 = vmatprep.subr.bf16.mxu0 %v18474_v19  ;;  %v18527_v22 = vld [vmem:[%s23322_s7 + $0x3c0] sm:$0xff]  }
 0x586   :  { %17172 = vmatprep.subr.bf16.mxu1 %v18475_v32  ;;  %v18528_v19 = vld [vmem:[%s23322_s7 + $0x300] sm:$0xff]   ;;  %v12446_v32 = vpack.c.bf16 %v22657_v36, %v23502_v59  ;;  %v18532_v59 = vld [vmem:[%s23322_s7 + $0x308] sm:$0xff]  }
 0x587   :  { %v18533_v36 = vld [vmem:[%s23322_s7 + $0x388] sm:$0xff]  }
 0x588   :  { %17151 = vmatpush3.bf16.msra.mxu0 %v18476_v28  ;;  %v18529_v28 = vld [vmem:[%s23322_s7 + $0x380] sm:$0xff]  }
 0x589   :  { %17173 = vmatpush3.bf16.msra.mxu1 %v18477_v15  ;;  %17152 = vmatprep.subr.bf16.mxu0 %v18478_v23  ;;  %v18530_v15 = vld [vmem:[%s23322_s7 + $0x348] sm:$0xff]  }
 0x58a   :  { %17174 = vmatprep.subr.bf16.mxu1 %v18479_v45  ;;  %v18531_v23 = vld [vmem:[%s23322_s7 + $0x3c8] sm:$0xff]   ;;  %v18534_v45 = vld [vmem:[%s23322_s7 + $0x350] sm:$0xff]  }
 0x58c   :  { %17153 = vmatpush3.bf16.msra.mxu0 %v18480_v13  ;;  %v18538_v13 = vld [vmem:[%s23322_s7 + $0x358] sm:$0xff]  }
 0x58d   :  { %17175 = vmatpush3.bf16.msra.mxu1 %v18481_v46  ;;  %17154 = vmatprep.subr.bf16.mxu0 %v18482_v54  ;;  %v18539_v46 = vld [vmem:[%s23322_s7 + $0x3d8] sm:$0xff]  }
 0x58e   :  { %17176 = vmatprep.subr.bf16.mxu1 %v18483_v62  ;;  %v18540_v54 = vld [vmem:[%s23322_s7 + $0x318] sm:$0xff]  }
 0x58f   :  { %v18541_v62 = vld [vmem:[%s23322_s7 + $0x398] sm:$0xff]  }
 0x590   :  { %17155 = vmatpush3.bf16.msra.mxu0 %v18484_v17  ;;  %v18542_v17 = vld [vmem:[%s23322_s7 + $0x360] sm:$0xff]  }
 0x591   :  { %17177 = vmatpush3.bf16.msra.mxu1 %v18485_v61  ;;  %17156 = vmatprep.subr.bf16.mxu0 %v18486_v30  ;;  %v18543_v61 = vld [vmem:[%s23322_s7 + $0x3e0] sm:$0xff]  }
 0x592   :  { %17178 = vmatprep.subr.bf16.mxu1 %v18487_v52  ;;  %v18544_v30 = vld [vmem:[%s23322_s7 + $0x320] sm:$0xff]  }
 0x593   :  { %v18545_v52 = vld [vmem:[%s23322_s7 + $0x3a0] sm:$0xff]  }
 0x594   :  { %17157 = vmatpush3.bf16.msra.mxu0 %v18488_v47  ;;  %v18546_v47 = vld [vmem:[%s23322_s7 + $0x368] sm:$0xff]  }
 0x595   :  { %17179 = vmatpush3.bf16.msra.mxu1 %v18489_v21  ;;  %17158 = vmatprep.subr.bf16.mxu0 %v18490_v42  ;;  %v18547_v21 = vld [vmem:[%s23322_s7 + $0x3e8] sm:$0xff]  }
 0x596   :  { %17180 = vmatprep.subr.bf16.mxu1 %v18491_v56  ;;  %v18548_v42 = vld [vmem:[%s23322_s7 + $0x328] sm:$0xff]  }
 0x597   :  { %v18549_v56 = vld [vmem:[%s23322_s7 + $0x3a8] sm:$0xff]  }
 0x598   :  { %17159 = vmatpush3.bf16.msra.mxu0 %v18492_v35  ;;  %v18550_v35 = vld [vmem:[%s23322_s7 + $0x370] sm:$0xff]  }
 0x599   :  { %17181 = vmatpush3.bf16.msra.mxu1 %v18493_v14  ;;  %17188 = vmatprep.subr.bf16.mxu0 %v18494_v2  ;;  %v18551_v14 = vld [vmem:[%s23322_s7 + $0x3f0] sm:$0xff]  }
 0x59a   :  { %17210 = vmatprep.subr.bf16.mxu1 %v18495_v41  ;;  %v18552_v2 = vld [vmem:[%s23322_s7 + $0x330] sm:$0xff]  }
 0x59b   :  { %12258 = vmatmul.mubr.bf16.vlgmr.msra.gmra.mrb[20].mxu0 %v22873_v12  ;;  %v18501_v12 = vld [vmem:[%s23322_s7 + $0x288] sm:$0xff]   ;;  %v18553_v41 = vld [vmem:[%s23322_s7 + $0x3b0] sm:$0xff]  }
 0x59c   :  { %12434 = vmatmul.mubr.bf16.vlgmr.msra.gmra.mrb[212].mxu1 %v22673_v27  ;;  %17189 = vmatpush3.bf16.msra.mxu0 %v18496_v7  ;;  %v18502_v27 = vld [vmem:[%s23322_s7 + $0x250] sm:$0xff]   ;;  %v18554_v7 = vld [vmem:[%s23322_s7 + $0x378] sm:$0xff]  }
 0x59d   :  { %12609 = vmatprep.mubr.bf16.mxu0 %v12448_v18  ;;  %17211 = vmatpush3.bf16.msra.mxu1 %v18497_v8  ;;  %v18505_v18 = vld [vmem:[%s23322_s7 + $0x290] sm:$0xff]   ;;  %v18555_v8 = vld [vmem:[%s23322_s7 + $0x3f8] sm:$0xff]  }
 0x59e   :  { %12785 = vmatprep.mubr.bf16.mxu1 %v12624_v43  ;;  %17190 = vmatprep.subr.bf16.mxu0 %v18498_v24  ;;  %v18556_v24 = vld [vmem:[%s23322_s7 + $0x338] sm:$0xff]  }
 0x59f   :  { %17212 = vmatprep.subr.bf16.mxu1 %v18499_v1  ;;  %v18557_v1 = vld [vmem:[%s23322_s7 + $0x3b8] sm:$0xff]  }
 0x5a0   :  { %17191 = vmatpush3.bf16.msra.mxu0 %v18500_v53 }
 0x5a1   :  { %17213 = vmatpush3.bf16.msra.mxu1 %v18501_v12  ;;  %17192 = vmatprep.subr.bf16.mxu0 %v18502_v27 }
 0x5a2   :  { %17214 = vmatprep.subr.bf16.mxu1 %v18503_v63 }
 0x5a4   :  { %17193 = vmatpush3.bf16.msra.mxu0 %v18504_v48 }
 0x5a5   :  { %17215 = vmatpush3.bf16.msra.mxu1 %v18505_v18  ;;  %17194 = vmatprep.subr.bf16.mxu0 %v18506_v40 }
 0x5a6   :  { %17216 = vmatprep.subr.bf16.mxu1 %v18507_v5 }
 0x5a8   :  { %17195 = vmatpush3.bf16.msra.mxu0 %v18508_v55 }
 0x5a9   :  { %17217 = vmatpush3.bf16.msra.mxu1 %v18509_v49  ;;  %17196 = vmatprep.subr.bf16.mxu0 %v18510_v58 }
 0x5aa   :  { %17218 = vmatprep.subr.bf16.mxu1 %v18511_v16 }
 0x5ac   :  { %17197 = vmatpush3.bf16.msra.mxu0 %v18512_v37 }
 0x5ad   :  { %17219 = vmatpush3.bf16.msra.mxu1 %v18513_v34  ;;  %17198 = vmatprep.subr.bf16.mxu0 %v18514_v6 }
 0x5ae   :  { %17220 = vmatprep.subr.bf16.mxu1 %v18515_v60 }
 0x5b0   :  { %17199 = vmatpush3.bf16.msra.mxu0 %v18516_v10 }
 0x5b1   :  { %17221 = vmatpush3.bf16.msra.mxu1 %v18517_v25  ;;  %17200 = vmatprep.subr.bf16.mxu0 %v18518_v29 }
 0x5b2   :  { %17222 = vmatprep.subr.bf16.mxu1 %v18519_v50 }
 0x5b4   :  { %17201 = vmatpush3.bf16.msra.mxu0 %v18520_v4 }
 0x5b5   :  { %17223 = vmatpush3.bf16.msra.mxu1 %v18521_v11  ;;  %17202 = vmatprep.subr.bf16.mxu0 %v18522_v31 }
 0x5b6   :  { %17224 = vmatprep.subr.bf16.mxu1 %v18523_v57 }
 0x5b8   :  { %17203 = vmatpush3.bf16.msra.mxu0 %v18524_v0 }
 0x5b9   :  { %17225 = vmatpush3.bf16.msra.mxu1 %v18525_v20  ;;  %17232 = vmatprep.subr.bf16.mxu0 %v18526_v44 }
 0x5ba   :  { %17254 = vmatprep.subr.bf16.mxu1 %v18527_v22 }
 0x5bb   :  { %12610 = vmatmul.mubr.bf16.vlgmr.msra.gmra.mrb[24].mxu0 %v12446_v32 }
 0x5bc   :  { %12786 = vmatmul.mubr.bf16.vlgmr.msra.gmra.mrb[216].mxu1 %v12622_v3  ;;  %17233 = vmatpush3.bf16.msra.mxu0 %v18528_v19  ;;  %v18537_v3 = vld [vmem:[%s23322_s7 + $0x390] sm:$0xff]  }
 0x5bd   :  { %17255 = vmatpush3.bf16.msra.mxu1 %v18529_v28  ;;  %17234 = vmatprep.subr.bf16.mxu0 %v18530_v15 }
 0x5be   :  { %17256 = vmatprep.subr.bf16.mxu1 %v18531_v23  ;;  %12961 = vmatprep.mubr.bf16.mxu0 %v23521_v9 }
 0x5bf   :  { %13137 = vmatprep.mubr.bf16.mxu1 %v23521_v9 }
 0x5c0   :  { %17235 = vmatpush3.bf16.msra.mxu0 %v18532_v59 }
 0x5c1   :  { %17257 = vmatpush3.bf16.msra.mxu1 %v18533_v36  ;;  %17236 = vmatprep.subr.bf16.mxu0 %v18534_v45 }
 0x5c2   :  { %17258 = vmatprep.subr.bf16.mxu1 %v18535_v38 }
 0x5c4   :  { %17237 = vmatpush3.bf16.msra.mxu0 %v18536_v33 }
 0x5c5   :  { %17259 = vmatpush3.bf16.msra.mxu1 %v18537_v3  ;;  %17238 = vmatprep.subr.bf16.mxu0 %v18538_v13 }
 0x5c6   :  { %17260 = vmatprep.subr.bf16.mxu1 %v18539_v46 }
 0x5c8   :  { %17239 = vmatpush3.bf16.msra.mxu0 %v18540_v54 }
 0x5c9   :  { %17261 = vmatpush3.bf16.msra.mxu1 %v18541_v62  ;;  %17240 = vmatprep.subr.bf16.mxu0 %v18542_v17 }
 0x5ca   :  { %17262 = vmatprep.subr.bf16.mxu1 %v18543_v61 }
 0x5cc   :  { %17241 = vmatpush3.bf16.msra.mxu0 %v18544_v30 }
 0x5cd   :  { %17263 = vmatpush3.bf16.msra.mxu1 %v18545_v52  ;;  %17242 = vmatprep.subr.bf16.mxu0 %v18546_v47 }
 0x5ce   :  { %17264 = vmatprep.subr.bf16.mxu1 %v18547_v21 }
 0x5d0   :  { %17243 = vmatpush3.bf16.msra.mxu0 %v18548_v42 }
 0x5d1   :  { %17265 = vmatpush3.bf16.msra.mxu1 %v18549_v56  ;;  %17244 = vmatprep.subr.bf16.mxu0 %v18550_v35 }
 0x5d2   :  { %17266 = vmatprep.subr.bf16.mxu1 %v18551_v14 }
 0x5d4   :  { %17245 = vmatpush3.bf16.msra.mxu0 %v18552_v2 }
 0x5d5   :  { %17267 = vmatpush3.bf16.msra.mxu1 %v18553_v41  ;;  %17246 = vmatprep.subr.bf16.mxu0 %v18554_v7 }
 0x5d6   :  { %17268 = vmatprep.subr.bf16.mxu1 %v18555_v8 }
 0x5d8   :  { %17247 = vmatpush3.bf16.msra.mxu0 %v18556_v24 }
 0x5d9   :  { %17269 = vmatpush3.bf16.msra.mxu1 %v18557_v1 }
 0x5db   :  { %12962 = vmatmul.mubr.bf16.vlgmr.msra.gmra.mrb[28].mxu0 %v23521_v9 }
 0x5dc   :  { %13138 = vmatmul.mubr.bf16.vlgmr.msra.gmra.mrb[220].mxu1 %v23521_v9 }
 0x5ee   :  { %v16984_v43 = vpop.f32.mrb[4].mxu0  ;;  %v17006_v53 = vpop.f32.mrb[196].mxu1 }
 0x5ef   :  { %v16985_v12 = vpop.f32.mrb[5].mxu0  ;;  %v17007_v27 = vpop.f32.mrb[197].mxu1 }
 0x5f0   :  { %v16986_v63 = vadd.f32 %v16985_v12, %v16984_v43  ;;  %v17008_v48 = vadd.f32 %v17007_v27, %v17006_v53  ;;  %v16987_v18 = vpop.f32.mrb[6].mxu0  ;;  %v17009_v40 = vpop.f32.mrb[198].mxu1 }
 0x5f1   :  { %v16988_v5 = vpop.f32.mrb[7].mxu0  ;;  %v17010_v55 = vpop.f32.mrb[199].mxu1 }
 0x5f2   :  { %v10837_v49 = vadd.f32 %v16986_v63, %v22909_v51  ;;  %v16989_v58 = vadd.f32 %v16988_v5, %v16987_v18  ;;  %v17011_v16 = vadd.f32 %v17010_v55, %v17009_v40 }
 0x5f4   :  { %v11014_v37 = vadd.f32 %v17008_v48, %v10837_v49  ;;  %v10838_v34 = vadd.f32 %v16989_v58, %v22917_v39 }
 0x5f6   :  { %v11015_v6 = vadd.f32 %v17011_v16, %v10838_v34 }
 0x60e   :  { %v17028_v60 = vpop.f32.mrb[8].mxu0  ;;  %v17050_v9 = vpop.f32.mrb[200].mxu1 }
 0x60f   :  { %v17029_v10 = vpop.f32.mrb[9].mxu0  ;;  %v17051_v25 = vpop.f32.mrb[201].mxu1 }
 0x610   :  { %v17030_v29 = vadd.f32 %v17029_v10, %v17028_v60  ;;  %v17052_v50 = vadd.f32 %v17051_v25, %v17050_v9  ;;  %v17031_v4 = vpop.f32.mrb[10].mxu0  ;;  %v17053_v11 = vpop.f32.mrb[202].mxu1 }
 0x611   :  { %v17032_v31 = vpop.f32.mrb[11].mxu0  ;;  %v17054_v57 = vpop.f32.mrb[203].mxu1 }
 0x612   :  { %v11191_v0 = vadd.f32 %v17030_v29, %v11014_v37  ;;  %v17033_v20 = vadd.f32 %v17032_v31, %v17031_v4  ;;  %v17055_v44 = vadd.f32 %v17054_v57, %v17053_v11 }
 0x614   :  { %v11368_v51 = vadd.f32 %v17052_v50, %v11191_v0  ;;  %v11192_v22 = vadd.f32 %v17033_v20, %v11015_v6 }
 0x616   :  { %v11369_v19 = vadd.f32 %v17055_v44, %v11192_v22 }
 0x62e   :  { %v17072_v32 = vpop.f32.mrb[12].mxu0 }
 0x62f   :  { %v17094_v28 = vpop.f32.mrb[204].mxu1  ;;  %v17073_v39 = vpop.f32.mrb[13].mxu0 }
 0x630   :  { %v17074_v15 = vadd.f32 %v17073_v39, %v17072_v32  ;;  %v17095_v23 = vpop.f32.mrb[205].mxu1  ;;  %v17075_v59 = vpop.f32.mrb[14].mxu0 }
 0x631   :  { %v17096_v36 = vadd.f32 %v17095_v23, %v17094_v28  ;;  %v17097_v45 = vpop.f32.mrb[206].mxu1  ;;  %v17076_v38 = vpop.f32.mrb[15].mxu0 }
 0x632   :  { %v11545_v33 = vadd.f32 %v17074_v15, %v11368_v51  ;;  %v17077_v3 = vadd.f32 %v17076_v38, %v17075_v59  ;;  %v17098_v13 = vpop.f32.mrb[207].mxu1 }
 0x633   :  { %v17099_v46 = vadd.f32 %v17098_v13, %v17097_v45 }
 0x634   :  { %v23277_v54 = vadd.f32 %v17096_v36, %v11545_v33  ;;  %v11546_v62 = vadd.f32 %v17077_v3, %v11369_v19 }
 0x636   :  { %v23279_v17 = vadd.f32 %v17099_v46, %v11546_v62  ;;  %v11732_v61 = vmul.f32 %v23277_v54, %v23277_v54 }
 0x638   :  { %v23285_v30 = vadd.f32 %v23279_v17, %v23277_v54  ;;  %v11733_v52 = vmul.f32 %v23279_v17, %v23279_v17 }
 0x63a   :  { %v23289_v47 = vadd.f32 %v11733_v52, %v11732_v61  ;;  %v11725_v36 = vrot.slane %v23285_v30, 4 }
 0x63c   :  { %v11735_v62 = vrot.slane %v23289_v47, 4 }
 0x64e   :  { %v17116_v21 = vpop.f32.mrb[16].mxu0 }
 0x64f   :  { %v17138_v42 = vpop.f32.mrb[208].mxu1  ;;  %v17117_v56 = vpop.f32.mrb[17].mxu0 }
 0x650   :  { %v17118_v35 = vadd.f32 %v17117_v56, %v17116_v21  ;;  %v17139_v14 = vpop.f32.mrb[209].mxu1  ;;  %v17119_v2 = vpop.f32.mrb[18].mxu0  ;;  %v11726_v56 = vadd.f32 %v11725_v36, %v23285_v30 }
 0x651   :  { %v17140_v41 = vadd.f32 %v17139_v14, %v17138_v42  ;;  %v17141_v7 = vpop.f32.mrb[210].mxu1  ;;  %v17120_v8 = vpop.f32.mrb[19].mxu0 }
 0x652   :  { %v17121_v24 = vadd.f32 %v17120_v8, %v17119_v2  ;;  %v17142_v1 = vpop.f32.mrb[211].mxu1  ;;  %v11736_v2 = vadd.f32 %v11735_v62, %v23289_v47 }
 0x653   :  { %v12086_v43 = vadd.f32 %v17140_v41, %v17118_v35  ;;  %v17143_v53 = vadd.f32 %v17142_v1, %v17141_v7  ;;  %v11727_v7 = vrot.slane %v11726_v56, 2 }
 0x655   :  { %v12089_v12 = vadd.f32 %v17143_v53, %v17121_v24 }
 0x66e   :  { %v17160_v27 = vpop.f32.mrb[20].mxu0 }
 0x66f   :  { %v17182_v63 = vpop.f32.mrb[212].mxu1  ;;  %v17161_v48 = vpop.f32.mrb[21].mxu0 }
 0x670   :  { %v17162_v18 = vadd.f32 %v17161_v48, %v17160_v27  ;;  %v17183_v40 = vpop.f32.mrb[213].mxu1  ;;  %v17163_v5 = vpop.f32.mrb[22].mxu0  ;;  %v11728_v27 = vadd.f32 %v11727_v7, %v11726_v56 }
 0x671   :  { %v17184_v55 = vadd.f32 %v17183_v40, %v17182_v63  ;;  %v17185_v49 = vpop.f32.mrb[214].mxu1  ;;  %v17164_v58 = vpop.f32.mrb[23].mxu0 }
 0x672   :  { %v12266_v16 = vadd.f32 %v17162_v18, %v12086_v43  ;;  %v17165_v37 = vadd.f32 %v17164_v58, %v17163_v5  ;;  %v17186_v34 = vpop.f32.mrb[215].mxu1  ;;  %v11737_v43 = vrot.slane %v11736_v2, 2 }
 0x673   :  { %v17187_v6 = vadd.f32 %v17186_v34, %v17185_v49 }
 0x674   :  { %v12442_v60 = vadd.f32 %v17184_v55, %v12266_v16  ;;  %v12267_v9 = vadd.f32 %v17165_v37, %v12089_v12  ;;  %v11738_v18 = vadd.f32 %v11737_v43, %v11736_v2  ;;  %v11729_v55 = vrot.slane %v11728_v27, 1 }
 0x676   :  { %v12443_v10 = vadd.f32 %v17187_v6, %v12267_v9  ;;  %v11739_v58 = vrot.slane %v11738_v18, 1  ;;  %v11730_v37 = vadd.f32 %v11729_v55, %v11728_v27 }
 0x68e   :  { %v17204_v25 = vpop.f32.mrb[24].mxu0 }
 0x68f   :  { %v17226_v29 = vpop.f32.mrb[216].mxu1  ;;  %v17205_v50 = vpop.f32.mrb[25].mxu0 }
 0x690   :  { %v17206_v4 = vadd.f32 %v17205_v50, %v17204_v25  ;;  %v17227_v11 = vpop.f32.mrb[217].mxu1  ;;  %v17207_v31 = vpop.f32.mrb[26].mxu0 }
 0x691   :  { %v17228_v57 = vadd.f32 %v17227_v11, %v17226_v29  ;;  %v17229_v0 = vpop.f32.mrb[218].mxu1  ;;  %v17208_v20 = vpop.f32.mrb[27].mxu0 }
 0x692   :  { %v12618_v44 = vadd.f32 %v17206_v4, %v12442_v60  ;;  %v17209_v51 = vadd.f32 %v17208_v20, %v17207_v31  ;;  %v17230_v22 = vpop.f32.mrb[219].mxu1  ;;  %v11740_v60 = vadd.f32 %v11739_v58, %v11738_v18 }
 0x693   :  { %v17231_v19 = vadd.f32 %v17230_v22, %v17229_v0  ;;  %v13173_v0 = vld [vmem:[%s23325_s8] sm:$0x1] }
 0x694   :  { %v12794_v32 = vadd.f32 %v17228_v57, %v12618_v44  ;;  %v12619_v28 = vadd.f32 %v17209_v51, %v12443_v10  ;;  %v13177_v51 = vld [vmem:[%s23326_s9] sm:$0x1] }
 0x696   :  { %v12795_v39 = vadd.f32 %v17231_v19, %v12619_v28 }
 0x6ae   :  { %v17248_v15 = vpop.f32.mrb[28].mxu0 }
 0x6af   :  { %v17270_v23 = vpop.f32.mrb[220].mxu1  ;;  %v17249_v59 = vpop.f32.mrb[29].mxu0 }
 0x6b0   :  { %v17250_v45 = vadd.f32 %v17249_v59, %v17248_v15  ;;  %v17271_v38 = vpop.f32.mrb[221].mxu1  ;;  %v17251_v33 = vpop.f32.mrb[30].mxu0 }
 0x6b1   :  { %v17272_v3 = vadd.f32 %v17271_v38, %v17270_v23  ;;  %v17273_v13 = vpop.f32.mrb[222].mxu1  ;;  %v17252_v46 = vpop.f32.mrb[31].mxu0 }
 0x6b2   :  { %v12970_v61 = vadd.f32 %v17250_v45, %v12794_v32  ;;  %v17253_v52 = vadd.f32 %v17252_v46, %v17251_v33  ;;  %v17274_v21 = vpop.f32.mrb[223].mxu1 }
 0x6b3   :  { %v17275_v42 = vadd.f32 %v17274_v21, %v17273_v13 }
 0x6b4   :  { %v13146_v35 = vadd.f32 %v17272_v3, %v12970_v61  ;;  %v12971_v14 = vadd.f32 %v17253_v52, %v12795_v39 }
 0x6b6   :  { %v13147_v41 = vadd.f32 %v17275_v42, %v12971_v14  ;;  %v13156_v8 = vmul.f32 %v13146_v35, %v13146_v35 }
 0x6b8   :  { %v13148_v24 = vadd.f32 %v13147_v41, %v13146_v35  ;;  %v13157_v1 = vmul.f32 %v13147_v41, %v13147_v41 }
 0x6ba   :  { %v13149_v53 = vrot.slane %v13148_v24, 4  ;;  %v13158_v12 = vadd.f32 %v13157_v1, %v13156_v8 }
 0x6bc   :  { %v13150_v63 = vadd.f32 %v13149_v53, %v13148_v24  ;;  %v13159_v48 = vrot.slane %v13158_v12, 4 }
 0x6be   :  { %v13151_v40 = vrot.slane %v13150_v63, 2  ;;  %v13160_v5 = vadd.f32 %v13159_v48, %v13158_v12 }
 0x6c0   :  { %v13152_v30 = vadd.f32 %v13151_v40, %v13150_v63  ;;  %v13161_v49 = vrot.slane %v13160_v5, 2 }
 0x6c2   :  { %v13153_v16 = vrot.slane %v13152_v30, 1  ;;  %v13162_v47 = vadd.f32 %v13161_v49, %v13160_v5 }
 0x6c4   :  { %v13154_v34 = vadd.f32 %v13153_v16, %v13152_v30  ;;  %v13163_v6 = vrot.slane %v13162_v47, 1 }
 0x6c6   :  { %v13155_v9 = vadd.f32 %v13154_v34, %v11730_v37  ;;  %v13164_v10 = vadd.f32 %v13163_v6, %v13162_v47 }
 0x6c8   :  { %v13165_v25 = vadd.f32 %v13164_v10, %v11740_v60  ;;  %v13168_v29 = vmul.f32 0.03125, %v13155_v9 }
 0x6ca   :  { %v13169_v50 = vmul.f32 0.03125, %v13165_v25  ;;  %v13170_v4 = vmul.f32 %v13168_v29, %v13168_v29 }
 0x6cc   :  { %v13171_v11 = vsub.f32 %v13169_v50, %v13170_v4 }
 0x6ce   :  { %v13172_v31 = vmax.f32 %v13171_v11, 0.0 }
 0x6d0   :  { %v13174_v57 = vadd.f32 1e-05, %v13172_v31 }
 0x6d2   :  { %18562 = vrsqrt.f32 %v13174_v57 }
 0x6dc   :  { %v18563_v20 = vpop.eup %18562 }
 0x6dd   :  { %v13176_v44 = vmul.f32 %v18563_v20, %v13173_v0 }
 0x6df   :  { %v13178_v22 = vmul.f32 %v13176_v44, %v13168_v29  ;;  %v13188_v19 = vrot.slane %v13176_v44, %v23522_v26 }
 0x6e1   :  { %v13179_v32 = vsub.f32 %v13177_v51, %v13178_v22  ;;  %v13190_v28 = vmul.f32 %v13188_v19, %v23277_v54  ;;  %v13191_v39 = vmul.f32 %v13188_v19, %v23279_v17  ;;  %v13192_v15 = vmul.f32 %v13188_v19, %v13146_v35 }
 0x6e2   :  { %v13193_v23 = vmul.f32 %v13188_v19, %v13147_v41 }
 0x6e3   :  { %v13198_v59 = vrot.slane %v13179_v32, %v23522_v26 }
 0x6e5   :  { %v13200_v36 = vadd.f32 %v13198_v59, %v13190_v28  ;;  %v13201_v45 = vadd.f32 %v13198_v59, %v13191_v39  ;;  %v13202_v38 = vadd.f32 %v13198_v59, %v13192_v15  ;;  %v13203_v33 = vadd.f32 %v13198_v59, %v13193_v23 }
 0x6e7   :  { %13204 = vst [vmem:[%s23327_s10] sm:$0xff] %v13200_v36  ;;  %13205 = vst [vmem:[%s23327_s10 + $0x8] sm:$0xff] %v13201_v45 }
 0x6e8   :  { %13206 = vst [vmem:[%s23327_s10 + $0x10] sm:$0xff] %v13202_v38  ;;  %13207 = vst [vmem:[%s23327_s10 + $0x18] sm:$0xff] %v13203_v33 }

</bundles_post_ra>
